<compile_context>
chip_gen: v6e
topology: v6e:2x2x1
jax: 0.10.0
libtpu: 0.0.40
codegen_flags: <defaults>
</compile_context>

<pallas_src>
import functools

import jax
import jax.numpy as jnp
from jax import lax
from jax.experimental import pallas as pl
from jax.experimental.pallas import tpu as pltpu

KH = KW = 5
EPS = 1e-5
_PAD = 8  # tail pad of the flattened image so every per-kh slab load is in bounds


def _largest_divisor(total, cap):
    """Largest divisor of `total` that is <= cap (>= 1)."""
    best = 1
    for d in range(1, total + 1):
        if total % d == 0 and d <= cap:
            best = d
    return best


def _pick_pass2_rows(rows, cap):
    """Row-block size for the elementwise pass: divisor of rows, <= cap,
    8-aligned (or full), preferring >= 2 (ideally even) grid steps for v7x."""
    divs = [d for d in range(1, rows + 1)
            if rows % d == 0 and d <= cap and (d % 8 == 0 or d == rows)]
    if not divs:
        return rows
    even = [d for d in divs if (rows // d) >= 2 and (rows // d) % 2 == 0]
    multi = [d for d in divs if (rows // d) >= 2]
    for cands in (even, multi, divs):
        if cands:
            return max(cands)
    return rows


# ---------------------------------------------------------------------------
# Shared conv helper: one flattened row block -> (m, cout) f32 accumulator.
# ---------------------------------------------------------------------------
def _conv_row_block(x_ref, w_ref, base, *, m, w, cin, cout, aligned):
    """x_ref: (1, h*w + _PAD, cin) flattened padded image (one batch element).
    w_ref: (KH, KW*cin, cout) repacked weights.  base: multiple of w."""
    acc = jnp.zeros((m, cout), jnp.float32)
    for kh in range(KH):
        if aligned:
            # One aligned wide load per kh; kw offsets realized with XLU rolls
            # (the XLU slot is otherwise idle here), concat along lanes.
            start = pl.multiple_of(base + kh * w, 8)
            slab = x_ref[0, pl.ds(start, m + _PAD), :]                # (m+_PAD, cin)
            parts = [slab if kw == 0
                     else pltpu.roll(slab, shift=m + _PAD - kw, axis=0)
                     for kw in range(KW)]
            op = jnp.concatenate(parts, axis=1)[:m, :]                # (m, KW*cin)
        else:
            # TODO(synk): w % 8 != 0 falls back to per-tap (possibly unaligned) loads.
            parts = [x_ref[0, pl.ds(base + kh * w + kw, m), :] for kw in range(KW)]
            op = jnp.concatenate(parts, axis=1)
        acc = acc + jnp.dot(op, w_ref[kh], preferred_element_type=jnp.float32)
    return acc


# ---------------------------------------------------------------------------
# Fused single-pass kernel: conv + BN batch stats + normalize + ReLU.
# Output is a VMEM-resident block (constant index map) across the whole grid,
# normalized in place on the last grid step, written to HBM exactly once.
# ---------------------------------------------------------------------------
def _fused_kernel(x_ref, w_ref, gamma_ref, beta_ref, mask_ref, y_ref,
                  ssum_sc, ssq_sc, *, m, w, cin, cout, ohw, inv_count, aligned):
    i = pl.program_id(0)
    r = pl.program_id(1)

    @pl.when(jnp.logical_and(i == 0, r == 0))
    def _():
        ssum_sc[...] = jnp.zeros_like(ssum_sc)
        ssq_sc[...] = jnp.zeros_like(ssq_sc)

    base = r * m
    acc = _conv_row_block(x_ref, w_ref, base, m=m, w=w, cin=cin, cout=cout,
                          aligned=aligned)

    # Fused partial BN statistics over the VALID columns only (resident mask).
    masked = acc * mask_ref[...]
    ssum_sc[...] += jnp.sum(masked, axis=0, keepdims=True)
    ssq_sc[...] += jnp.sum(masked * acc, axis=0, keepdims=True)

    off = i * ohw + base
    if aligned:
        off = pl.multiple_of(off, 8)
    # TODO(synk): cout(=8) in the lane dim makes this a masked VMEM store; a
    # lane-dense (th, w*cout) relayout via the XLU may pay off on v5e (1 vst slot).
    y_ref[pl.ds(off, m), :] = acc

    last = jnp.logical_and(i == pl.num_programs(0) - 1,
                           r == pl.num_programs(1) - 1)

    @pl.when(last)
    def _():
        mean = ssum_sc[...] * inv_count
        var = jnp.maximum(ssq_sc[...] * inv_count - mean * mean, 0.0)
        inv = lax.rsqrt(var + EPS)
        scale = gamma_ref[...] * inv
        shift = beta_ref[...] - mean * scale
        y_ref[...] = jnp.maximum(y_ref[...] * scale + shift, 0.0)


# ---------------------------------------------------------------------------
# Two-pass fallback (large activations).
# Pass 1: conv + stats (stats accumulate in the resident output block over r).
# ---------------------------------------------------------------------------
def _conv_stats_kernel(x_ref, w_ref, mask_ref, y_ref, ssum_ref, ssq_ref,
                       *, m, w, cin, cout, aligned):
    r = pl.program_id(1)

    @pl.when(r == 0)
    def _():
        ssum_ref[...] = jnp.zeros_like(ssum_ref)
        ssq_ref[...] = jnp.zeros_like(ssq_ref)

    acc = _conv_row_block(x_ref, w_ref, r * m, m=m, w=w, cin=cin, cout=cout,
                          aligned=aligned)

    masked = acc * mask_ref[...]
    ssum_ref[...] += jnp.sum(masked, axis=0, keepdims=True)[None]
    ssq_ref[...] += jnp.sum(masked * acc, axis=0, keepdims=True)[None]

    y_ref[0] = acc


# Pass 2: normalize + ReLU on the lane-dense (rows, W*Cout) collapsed view.
def _bn_relu_kernel(y_ref, scale_ref, shift_ref, o_ref):
    o_ref[...] = jnp.maximum(
        y_ref[...] * scale_ref[...] + shift_ref[...], 0.0).astype(o_ref.dtype)


def conv_block_forward_nhwc(x_nhwc, w_oihw, bias, gamma, beta,
                            *, force_two_pass=False):
    # Training-mode BN batch statistics exactly cancel the conv bias.
    # TODO(synk): re-add the bias if this path is ever used with eval-mode running stats.
    del bias
    n, h, w, cin = x_nhwc.shape
    cout = w_oihw.shape[0]
    oh, ow = h - KH + 1, w - KW + 1
    k = KH * KW * cin
    ohw = oh * w
    aligned = (w % 8 == 0)

    # Glue (free / O(C) work): flatten spatial dims + tail pad, repack weights
    # to (KH, KW*Cin, Cout), build the per-row-block column-validity mask.
    x_flat = jnp.pad(x_nhwc.reshape(n, h * w, cin), ((0, 0), (0, _PAD), (0, 0)))
    w3 = jnp.transpose(w_oihw, (2, 3, 1, 0)).reshape(KH, KW * cin, cout)

    # Rows per grid step (M = th * w): VMEM-budgeted, keeps m % 8 == 0 when w is
    # 8-aligned; full-dim block otherwise (sidesteps the (8,128) rule).
    th = _largest_divisor(oh, max(1, 4096 // w)) if aligned else oh
    nrb = oh // th
    m = th * w

    col = jnp.arange(m, dtype=jnp.int32) % w
    mask = (col < ow).astype(jnp.float32).reshape(m, 1)

    count = n * oh * ow
    xblk = h * w + _PAD
    in_bytes = (xblk * cin + KH * KW * cin * cout + 2 * cout + m) * 4
    # Worst-case lane padding for a narrow (cout < 128) minor dim.
    padded_out_bytes = n * ohw * max(cout, 128) * 4
    fuse = (not force_two_pass) and padded_out_bytes <= 4 * 1024 * 1024

    if fuse:
        # ------------------ fused single pass ------------------
        vmem_limit = int(min(32 * 2**20,
                             max(4 * 2**20, 4 * in_bytes + 2 * padded_out_bytes)))
        cost = pl.CostEstimate(
            flops=2 * n * oh * w * k * cout + 8 * n * oh * w * cout,
            transcendentals=cout,
            bytes_accessed=4 * (x_flat.size + w3.size + n * ohw * cout))
        # TODO(synk): for large H*W, replace the full-image input block with a
        # halo'd row band (memory_space=pl.ANY + make_async_copy double buffer).
        y = pl.pallas_call(
            functools.partial(_fused_kernel, m=m, w=w, cin=cin, cout=cout,
                              ohw=ohw, inv_count=1.0 / count, aligned=aligned),
            grid=(n, nrb),
            in_specs=[
                pl.BlockSpec((1, xblk, cin), lambda i, r: (i, 0, 0)),
                pl.BlockSpec((KH, KW * cin, cout), lambda i, r: (0, 0, 0)),
                pl.BlockSpec((1, cout), lambda i, r: (0, 0)),
                pl.BlockSpec((1, cout), lambda i, r: (0, 0)),
                pl.BlockSpec((m, 1), lambda i, r: (0, 0)),
            ],
            out_specs=pl.BlockSpec((n * ohw, cout), lambda i, r: (0, 0)),
            out_shape=jax.ShapeDtypeStruct((n * ohw, cout), jnp.float32),
            scratch_shapes=[pltpu.VMEM((1, cout), jnp.float32),
                            pltpu.VMEM((1, cout), jnp.float32)],
            compiler_params=pltpu.CompilerParams(
                dimension_semantics=("arbitrary", "arbitrary"),
                vmem_limit_bytes=vmem_limit),
            cost_estimate=cost,
        )(x_flat, w3, gamma.reshape(1, cout), beta.reshape(1, cout), mask)
        return y.reshape(n, oh, w, cout)[:, :, :ow, :]

    # ------------------ two-pass fallback ------------------
    vmem_limit1 = int(min(32 * 2**20,
                          max(4 * 2**20, 4 * in_bytes + 4 * m * cout * 4)))
    cost1 = pl.CostEstimate(
        flops=2 * n * oh * w * k * cout + 6 * n * oh * w * cout,
        transcendentals=0,
        bytes_accessed=4 * (x_flat.size + w3.size + n * ohw * cout + 2 * n * cout))
    # TODO(synk): for very large H*W, swap the full-image input block for a
    # halo'd row band via manual DMA to keep the v7x 64 MiB VMEM budget.
    conv_out, ssum, ssq = pl.pallas_call(
        functools.partial(_conv_stats_kernel, m=m, w=w, cin=cin, cout=cout,
                          aligned=aligned),
        grid=(n, nrb),
        in_specs=[
            pl.BlockSpec((1, xblk, cin), lambda i, r: (i, 0, 0)),
            pl.BlockSpec((KH, KW * cin, cout), lambda i, r: (0, 0, 0)),
            pl.BlockSpec((m, 1), lambda i, r: (0, 0)),
        ],
        out_specs=[
            pl.BlockSpec((1, m, cout), lambda i, r: (i, r, 0)),
            pl.BlockSpec((1, 1, cout), lambda i, r: (i, 0, 0)),
            pl.BlockSpec((1, 1, cout), lambda i, r: (i, 0, 0)),
        ],
        out_shape=[
            jax.ShapeDtypeStruct((n, ohw, cout), jnp.float32),
            jax.ShapeDtypeStruct((n, 1, cout), jnp.float32),
            jax.ShapeDtypeStruct((n, 1, cout), jnp.float32),
        ],
        compiler_params=pltpu.CompilerParams(
            dimension_semantics=("parallel", "arbitrary"),
            vmem_limit_bytes=vmem_limit1),
        cost_estimate=cost1,
    )(x_flat, w3, mask)

    # O(C) per-channel finalize (glue): biased variance, PyTorch BN forward.
    mean = ssum.sum(axis=(0, 1)) / count
    var = jnp.maximum(ssq.sum(axis=(0, 1)) / count - mean * mean, 0.0)
    inv = lax.rsqrt(var + EPS)
    scale = gamma * inv
    shift = beta - mean * scale
    scale_row = jnp.tile(scale, w).reshape(1, w * cout)
    shift_row = jnp.tile(shift, w).reshape(1, w * cout)

    rows = n * oh
    row_bytes = w * cout * 4
    tr = _pick_pass2_rows(rows, max(1, (6 * 2**20) // row_bytes))
    y2 = conv_out.reshape(rows, w * cout)      # free reshape; lane-dense view

    cost2 = pl.CostEstimate(
        flops=3 * rows * w * cout, transcendentals=0,
        bytes_accessed=4 * (2 * rows * w * cout + 2 * w * cout))
    vmem_limit2 = int(min(32 * 2**20, max(4 * 2**20, 6 * tr * row_bytes)))

    y_norm = pl.pallas_call(
        _bn_relu_kernel,
        grid=(rows // tr,),
        in_specs=[
            pl.BlockSpec((tr, w * cout), lambda b: (b, 0)),
            pl.BlockSpec((1, w * cout), lambda b: (0, 0)),
            pl.BlockSpec((1, w * cout), lambda b: (0, 0)),
        ],
        out_specs=pl.BlockSpec((tr, w * cout), lambda b: (b, 0)),
        out_shape=jax.ShapeDtypeStruct((rows, w * cout), jnp.float32),
        input_output_aliases={0: 0},   # conv_out is dead after normalization
        compiler_params=pltpu.CompilerParams(
            dimension_semantics=("parallel",),
            vmem_limit_bytes=vmem_limit2),
        cost_estimate=cost2,
    )(y2, scale_row, shift_row)

    # Drop the (W - OW) padded columns (fused into the caller's layout change).
    return y_norm.reshape(n, oh, w, cout)[:, :, :ow, :]


def conv_block_forward(x_nchw, w_oihw, bias, gamma, beta, *, force_two_pass=False):
    # NCHW adapter for PyTorch parity. Prefer conv_block_forward_nhwc in an
    # NHWC pipeline to avoid the two full activation transposes.
    x_nhwc = jnp.transpose(x_nchw, (0, 2, 3, 1))
    y = conv_block_forward_nhwc(x_nhwc, w_oihw, bias, gamma, beta,
                                force_two_pass=force_two_pass)
    return jnp.transpose(y, (0, 3, 1, 2))


# Pure-JAX reference (matches PyTorch ConvBlock.forward in training mode).
def reference(x, w, b, gamma, beta):
    y = lax.conv_general_dilated(
        x, w, window_strides=(1, 1), padding="VALID",
        dimension_numbers=("NCHW", "OIHW", "NCHW"))
    y = y + b[None, :, None, None]
    mean = jnp.mean(y, axis=(0, 2, 3), keepdims=True)
    var = jnp.mean((y - mean) ** 2, axis=(0, 2, 3), keepdims=True)
    y = (y - mean) * lax.rsqrt(var + EPS)
    y = y * gamma[None, :, None, None] + beta[None, :, None, None]
    return jnp.maximum(y, 0.0)


if __name__ == "__main__":
    N, CIN, COUT, H, W = 2, 4, 8, 16, 16

    key = jax.random.PRNGKey(0)
    k1, k2, k3, k4, k5 = jax.random.split(key, 5)
    x = jax.random.normal(k1, (N, CIN, H, W), jnp.float32)
    w = 0.1 * jax.random.normal(k2, (COUT, CIN, KH, KW), jnp.float32)
    b = 0.1 * jax.random.normal(k3, (COUT,), jnp.float32)
    gamma = 1.0 + 0.1 * jax.random.normal(k4, (COUT,), jnp.float32)
    beta = 0.1 * jax.random.normal(k5, (COUT,), jnp.float32)

    ref = reference(x, w, b, gamma, beta)

    # Fused single-pass path (activation fits VMEM at this size).
    out_fused = jax.block_until_ready(conv_block_forward(x, w, b, gamma, beta))
    # Two-pass fallback path (exercised explicitly for coverage).
    out_2pass = jax.block_until_ready(
        conv_block_forward(x, w, b, gamma, beta, force_two_pass=True))

    assert out_fused.shape == ref.shape == (N, COUT, H - 4, W - 4), out_fused.shape
    assert out_2pass.shape == ref.shape, out_2pass.shape
    err_fused = float(jnp.max(jnp.abs(out_fused - ref)))
    err_2pass = float(jnp.max(jnp.abs(out_2pass - ref)))
    assert err_fused < 1e-3, f"fused max abs error {err_fused}"
    assert err_2pass < 1e-3, f"two-pass max abs error {err_2pass}"
    print("KERNEL_OK")
</pallas_src>

<mosaic_0001>
module attributes {stable_mosaic.version = 11 : i64} {
  func.func @_fused_kernel(%arg0: i32, %arg1: i32, %arg2: memref<1x264x4xf32, #tpu.memory_space<vmem>>, %arg3: memref<5x20x8xf32, #tpu.memory_space<vmem>>, %arg4: memref<1x8xf32, #tpu.memory_space<vmem>>, %arg5: memref<1x8xf32, #tpu.memory_space<vmem>>, %arg6: memref<192x1xf32, #tpu.memory_space<vmem>>, %arg7: memref<384x8xf32, #tpu.memory_space<vmem>>, %arg8: memref<1x8xf32, #tpu.memory_space<vmem>>, %arg9: memref<1x8xf32, #tpu.memory_space<vmem>>) attributes {dimension_semantics = [#tpu.dimension_semantics<arbitrary>, #tpu.dimension_semantics<arbitrary>], iteration_bounds = array<i64: 2, 1>, scalar_prefetch = 0 : i64, scratch_operands = 2 : i64, tpu.core_type = #tpu.core_type<tc>, window_params = [{transform_indices = @transform_0, window_bounds = array<i64: 1, 264, 4>}, {pipeline_mode = #tpu.pipeline_mode<synchronous>, transform_indices = @transform_1, window_bounds = array<i64: 5, 20, 8>}, {pipeline_mode = #tpu.pipeline_mode<synchronous>, transform_indices = @transform_2, window_bounds = array<i64: 1, 8>}, {pipeline_mode = #tpu.pipeline_mode<synchronous>, transform_indices = @transform_3, window_bounds = array<i64: 1, 8>}, {pipeline_mode = #tpu.pipeline_mode<synchronous>, transform_indices = @transform_4, window_bounds = array<i64: 192, 1>}, {pipeline_mode = #tpu.pipeline_mode<synchronous>, transform_indices = @transform_5, window_bounds = array<i64: 384, 8>}]} {
    %c0_i32 = arith.constant 0 : i32
    %0 = arith.cmpi eq, %arg0, %c0_i32 : i32
    %c0_i32_0 = arith.constant 0 : i32
    %1 = arith.cmpi eq, %arg1, %c0_i32_0 : i32
    %2 = arith.andi %0, %1 : i1
    %3 = arith.extui %2 : i1 to i32
    %c0_i32_1 = arith.constant 0 : i32
    %4 = arith.cmpi ne, %3, %c0_i32_1 : i32
    scf.if %4 {
      %cst_60 = arith.constant 0.000000e+00 : f32
      %106 = vector.broadcast %cst_60 : f32 to vector<1x8xf32>
      %c0_61 = arith.constant 0 : index
      %c0_62 = arith.constant 0 : index
      %107 = vector.load %arg8[%c0_61, %c0_62] : memref<1x8xf32, #tpu.memory_space<vmem>>, vector<1x8xf32>
      tpu.vector_store %arg8[%c0_61, %c0_62], %106 {strides = array<i32>} : memref<1x8xf32, #tpu.memory_space<vmem>>, vector<1x8xf32>,
      %cst_63 = arith.constant 0.000000e+00 : f32
      %108 = vector.broadcast %cst_63 : f32 to vector<1x8xf32>
      %c0_64 = arith.constant 0 : index
      %c0_65 = arith.constant 0 : index
      %109 = vector.load %arg9[%c0_64, %c0_65] : memref<1x8xf32, #tpu.memory_space<vmem>>, vector<1x8xf32>
      tpu.vector_store %arg9[%c0_64, %c0_65], %108 {strides = array<i32>} : memref<1x8xf32, #tpu.memory_space<vmem>>, vector<1x8xf32>,
    } else {
    }
    %c192_i32 = arith.constant 192 : i32
    %5 = arith.muli %arg1, %c192_i32 : i32
    %cst = arith.constant 0.000000e+00 : f32
    %6 = vector.broadcast %cst : f32 to vector<192x8xf32>
    %c0_i32_2 = arith.constant 0 : i32
    %7 = arith.addi %5, %c0_i32_2 : i32
    %8 = tpu.assume_multiple %7, 8 : i32
    %c0 = arith.constant 0 : index
    %9 = arith.index_cast %8 : i32 to index
    %c0_3 = arith.constant 0 : index
    %10 = vector.load %arg2[%c0, %9, %c0_3] : memref<1x264x4xf32, #tpu.memory_space<vmem>>, vector<1x200x4xf32>
    %11 = vector.shape_cast %10 : vector<1x200x4xf32> to vector<200x4xf32>
    %c199_i32 = arith.constant 199 : i32
    %12 = tpu.dynamic_rotate %11 by %c199_i32 dim 0 : vector<200x4xf32>, i32 -> vector<200x4xf32>
    %c198_i32 = arith.constant 198 : i32
    %13 = tpu.dynamic_rotate %11 by %c198_i32 dim 0 : vector<200x4xf32>, i32 -> vector<200x4xf32>
    %c197_i32 = arith.constant 197 : i32
    %14 = tpu.dynamic_rotate %11 by %c197_i32 dim 0 : vector<200x4xf32>, i32 -> vector<200x4xf32>
    %c196_i32 = arith.constant 196 : i32
    %15 = tpu.dynamic_rotate %11 by %c196_i32 dim 0 : vector<200x4xf32>, i32 -> vector<200x4xf32>
    %16 = tpu.concatenate %11, %12, %13, %14, %15 in 1 : vector<200x4xf32>, vector<200x4xf32>, vector<200x4xf32>, vector<200x4xf32>, vector<200x4xf32> -> vector<200x20xf32>
    %17 = vector.extract_strided_slice %16 {offsets = [0, 0], sizes = [192, 20], strides = [1, 1]} : vector<200x20xf32> to vector<192x20xf32>
    %c0_4 = arith.constant 0 : index
    %c0_5 = arith.constant 0 : index
    %c0_6 = arith.constant 0 : index
    %18 = vector.load %arg3[%c0_4, %c0_5, %c0_6] : memref<5x20x8xf32, #tpu.memory_space<vmem>>, vector<1x20x8xf32>
    %19 = vector.shape_cast %18 : vector<1x20x8xf32> to vector<20x8xf32>
    %cst_7 = arith.constant dense<0.000000e+00> : vector<192x8xf32>
    %20 = tpu.matmul %17, %19, %cst_7 {dimension_numbers = #tpu.dot_dimension_numbers<[1], [0], [0], [1], [0, 0, 1, 1], [], []>} : vector<192x20xf32>, vector<20x8xf32>, vector<192x8xf32> -> vector<192x8xf32>
    %21 = arith.addf %6, %20 : vector<192x8xf32>
    %c16_i32 = arith.constant 16 : i32
    %22 = arith.addi %5, %c16_i32 : i32
    %23 = tpu.assume_multiple %22, 8 : i32
    %c0_8 = arith.constant 0 : index
    %24 = arith.index_cast %23 : i32 to index
    %c0_9 = arith.constant 0 : index
    %25 = vector.load %arg2[%c0_8, %24, %c0_9] : memref<1x264x4xf32, #tpu.memory_space<vmem>>, vector<1x200x4xf32>
    %26 = vector.shape_cast %25 : vector<1x200x4xf32> to vector<200x4xf32>
    %c199_i32_10 = arith.constant 199 : i32
    %27 = tpu.dynamic_rotate %26 by %c199_i32_10 dim 0 : vector<200x4xf32>, i32 -> vector<200x4xf32>
    %c198_i32_11 = arith.constant 198 : i32
    %28 = tpu.dynamic_rotate %26 by %c198_i32_11 dim 0 : vector<200x4xf32>, i32 -> vector<200x4xf32>
    %c197_i32_12 = arith.constant 197 : i32
    %29 = tpu.dynamic_rotate %26 by %c197_i32_12 dim 0 : vector<200x4xf32>, i32 -> vector<200x4xf32>
    %c196_i32_13 = arith.constant 196 : i32
    %30 = tpu.dynamic_rotate %26 by %c196_i32_13 dim 0 : vector<200x4xf32>, i32 -> vector<200x4xf32>
    %31 = tpu.concatenate %26, %27, %28, %29, %30 in 1 : vector<200x4xf32>, vector<200x4xf32>, vector<200x4xf32>, vector<200x4xf32>, vector<200x4xf32> -> vector<200x20xf32>
    %32 = vector.extract_strided_slice %31 {offsets = [0, 0], sizes = [192, 20], strides = [1, 1]} : vector<200x20xf32> to vector<192x20xf32>
    %c1 = arith.constant 1 : index
    %c0_14 = arith.constant 0 : index
    %c0_15 = arith.constant 0 : index
    %33 = vector.load %arg3[%c1, %c0_14, %c0_15] : memref<5x20x8xf32, #tpu.memory_space<vmem>>, vector<1x20x8xf32>
    %34 = vector.shape_cast %33 : vector<1x20x8xf32> to vector<20x8xf32>
    %cst_16 = arith.constant dense<0.000000e+00> : vector<192x8xf32>
    %35 = tpu.matmul %32, %34, %cst_16 {dimension_numbers = #tpu.dot_dimension_numbers<[1], [0], [0], [1], [0, 0, 1, 1], [], []>} : vector<192x20xf32>, vector<20x8xf32>, vector<192x8xf32> -> vector<192x8xf32>
    %36 = arith.addf %21, %35 : vector<192x8xf32>
    %c32_i32 = arith.constant 32 : i32
    %37 = arith.addi %5, %c32_i32 : i32
    %38 = tpu.assume_multiple %37, 8 : i32
    %c0_17 = arith.constant 0 : index
    %39 = arith.index_cast %38 : i32 to index
    %c0_18 = arith.constant 0 : index
    %40 = vector.load %arg2[%c0_17, %39, %c0_18] : memref<1x264x4xf32, #tpu.memory_space<vmem>>, vector<1x200x4xf32>
    %41 = vector.shape_cast %40 : vector<1x200x4xf32> to vector<200x4xf32>
    %c199_i32_19 = arith.constant 199 : i32
    %42 = tpu.dynamic_rotate %41 by %c199_i32_19 dim 0 : vector<200x4xf32>, i32 -> vector<200x4xf32>
    %c198_i32_20 = arith.constant 198 : i32
    %43 = tpu.dynamic_rotate %41 by %c198_i32_20 dim 0 : vector<200x4xf32>, i32 -> vector<200x4xf32>
    %c197_i32_21 = arith.constant 197 : i32
    %44 = tpu.dynamic_rotate %41 by %c197_i32_21 dim 0 : vector<200x4xf32>, i32 -> vector<200x4xf32>
    %c196_i32_22 = arith.constant 196 : i32
    %45 = tpu.dynamic_rotate %41 by %c196_i32_22 dim 0 : vector<200x4xf32>, i32 -> vector<200x4xf32>
    %46 = tpu.concatenate %41, %42, %43, %44, %45 in 1 : vector<200x4xf32>, vector<200x4xf32>, vector<200x4xf32>, vector<200x4xf32>, vector<200x4xf32> -> vector<200x20xf32>
    %47 = vector.extract_strided_slice %46 {offsets = [0, 0], sizes = [192, 20], strides = [1, 1]} : vector<200x20xf32> to vector<192x20xf32>
    %c2 = arith.constant 2 : index
    %c0_23 = arith.constant 0 : index
    %c0_24 = arith.constant 0 : index
    %48 = vector.load %arg3[%c2, %c0_23, %c0_24] : memref<5x20x8xf32, #tpu.memory_space<vmem>>, vector<1x20x8xf32>
    %49 = vector.shape_cast %48 : vector<1x20x8xf32> to vector<20x8xf32>
    %cst_25 = arith.constant dense<0.000000e+00> : vector<192x8xf32>
    %50 = tpu.matmul %47, %49, %cst_25 {dimension_numbers = #tpu.dot_dimension_numbers<[1], [0], [0], [1], [0, 0, 1, 1], [], []>} : vector<192x20xf32>, vector<20x8xf32>, vector<192x8xf32> -> vector<192x8xf32>
    %51 = arith.addf %36, %50 : vector<192x8xf32>
    %c48_i32 = arith.constant 48 : i32
    %52 = arith.addi %5, %c48_i32 : i32
    %53 = tpu.assume_multiple %52, 8 : i32
    %c0_26 = arith.constant 0 : index
    %54 = arith.index_cast %53 : i32 to index
    %c0_27 = arith.constant 0 : index
    %55 = vector.load %arg2[%c0_26, %54, %c0_27] : memref<1x264x4xf32, #tpu.memory_space<vmem>>, vector<1x200x4xf32>
    %56 = vector.shape_cast %55 : vector<1x200x4xf32> to vector<200x4xf32>
    %c199_i32_28 = arith.constant 199 : i32
    %57 = tpu.dynamic_rotate %56 by %c199_i32_28 dim 0 : vector<200x4xf32>, i32 -> vector<200x4xf32>
    %c198_i32_29 = arith.constant 198 : i32
    %58 = tpu.dynamic_rotate %56 by %c198_i32_29 dim 0 : vector<200x4xf32>, i32 -> vector<200x4xf32>
    %c197_i32_30 = arith.constant 197 : i32
    %59 = tpu.dynamic_rotate %56 by %c197_i32_30 dim 0 : vector<200x4xf32>, i32 -> vector<200x4xf32>
    %c196_i32_31 = arith.constant 196 : i32
    %60 = tpu.dynamic_rotate %56 by %c196_i32_31 dim 0 : vector<200x4xf32>, i32 -> vector<200x4xf32>
    %61 = tpu.concatenate %56, %57, %58, %59, %60 in 1 : vector<200x4xf32>, vector<200x4xf32>, vector<200x4xf32>, vector<200x4xf32>, vector<200x4xf32> -> vector<200x20xf32>
    %62 = vector.extract_strided_slice %61 {offsets = [0, 0], sizes = [192, 20], strides = [1, 1]} : vector<200x20xf32> to vector<192x20xf32>
    %c3 = arith.constant 3 : index
    %c0_32 = arith.constant 0 : index
    %c0_33 = arith.constant 0 : index
    %63 = vector.load %arg3[%c3, %c0_32, %c0_33] : memref<5x20x8xf32, #tpu.memory_space<vmem>>, vector<1x20x8xf32>
    %64 = vector.shape_cast %63 : vector<1x20x8xf32> to vector<20x8xf32>
    %cst_34 = arith.constant dense<0.000000e+00> : vector<192x8xf32>
    %65 = tpu.matmul %62, %64, %cst_34 {dimension_numbers = #tpu.dot_dimension_numbers<[1], [0], [0], [1], [0, 0, 1, 1], [], []>} : vector<192x20xf32>, vector<20x8xf32>, vector<192x8xf32> -> vector<192x8xf32>
    %66 = arith.addf %51, %65 : vector<192x8xf32>
    %c64_i32 = arith.constant 64 : i32
    %67 = arith.addi %5, %c64_i32 : i32
    %68 = tpu.assume_multiple %67, 8 : i32
    %c0_35 = arith.constant 0 : index
    %69 = arith.index_cast %68 : i32 to index
    %c0_36 = arith.constant 0 : index
    %70 = vector.load %arg2[%c0_35, %69, %c0_36] : memref<1x264x4xf32, #tpu.memory_space<vmem>>, vector<1x200x4xf32>
    %71 = vector.shape_cast %70 : vector<1x200x4xf32> to vector<200x4xf32>
    %c199_i32_37 = arith.constant 199 : i32
    %72 = tpu.dynamic_rotate %71 by %c199_i32_37 dim 0 : vector<200x4xf32>, i32 -> vector<200x4xf32>
    %c198_i32_38 = arith.constant 198 : i32
    %73 = tpu.dynamic_rotate %71 by %c198_i32_38 dim 0 : vector<200x4xf32>, i32 -> vector<200x4xf32>
    %c197_i32_39 = arith.constant 197 : i32
    %74 = tpu.dynamic_rotate %71 by %c197_i32_39 dim 0 : vector<200x4xf32>, i32 -> vector<200x4xf32>
    %c196_i32_40 = arith.constant 196 : i32
    %75 = tpu.dynamic_rotate %71 by %c196_i32_40 dim 0 : vector<200x4xf32>, i32 -> vector<200x4xf32>
    %76 = tpu.concatenate %71, %72, %73, %74, %75 in 1 : vector<200x4xf32>, vector<200x4xf32>, vector<200x4xf32>, vector<200x4xf32>, vector<200x4xf32> -> vector<200x20xf32>
    %77 = vector.extract_strided_slice %76 {offsets = [0, 0], sizes = [192, 20], strides = [1, 1]} : vector<200x20xf32> to vector<192x20xf32>
    %c4 = arith.constant 4 : index
    %c0_41 = arith.constant 0 : index
    %c0_42 = arith.constant 0 : index
    %78 = vector.load %arg3[%c4, %c0_41, %c0_42] : memref<5x20x8xf32, #tpu.memory_space<vmem>>, vector<1x20x8xf32>
    %79 = vector.shape_cast %78 : vector<1x20x8xf32> to vector<20x8xf32>
    %cst_43 = arith.constant dense<0.000000e+00> : vector<192x8xf32>
    %80 = tpu.matmul %77, %79, %cst_43 {dimension_numbers = #tpu.dot_dimension_numbers<[1], [0], [0], [1], [0, 0, 1, 1], [], []>} : vector<192x20xf32>, vector<20x8xf32>, vector<192x8xf32> -> vector<192x8xf32>
    %81 = arith.addf %66, %80 : vector<192x8xf32>
    %c0_44 = arith.constant 0 : index
    %c0_45 = arith.constant 0 : index
    %82 = vector.load %arg6[%c0_44, %c0_45] : memref<192x1xf32, #tpu.memory_space<vmem>>, vector<192x1xf32>
    %83 = vector.broadcast %82 : vector<192x1xf32> to vector<192x8xf32>
    %84 = arith.mulf %81, %83 : vector<192x8xf32>
    %c0_46 = arith.constant 0 : index
    %c0_47 = arith.constant 0 : index
    %85 = vector.load %arg8[%c0_46, %c0_47] : memref<1x8xf32, #tpu.memory_space<vmem>>, vector<1x8xf32>
    %cst_48 = arith.constant dense<0.000000e+00> : vector<8xf32>
    %86 = vector.multi_reduction <add>, %84, %cst_48 [0] : vector<192x8xf32> to vector<8xf32>
    %87 = vector.shape_cast %86 : vector<8xf32> to vector<1x8xf32>
    %88 = arith.addf %85, %87 : vector<1x8xf32>
    %c0_49 = arith.constant 0 : index
    %c0_50 = arith.constant 0 : index
    %89 = vector.load %arg8[%c0_49, %c0_50] : memref<1x8xf32, #tpu.memory_space<vmem>>, vector<1x8xf32>
    tpu.vector_store %arg8[%c0_49, %c0_50], %88 {strides = array<i32>} : memref<1x8xf32, #tpu.memory_space<vmem>>, vector<1x8xf32>,
    %c0_51 = arith.constant 0 : index
    %c0_52 = arith.constant 0 : index
    %90 = vector.load %arg9[%c0_51, %c0_52] : memref<1x8xf32, #tpu.memory_space<vmem>>, vector<1x8xf32>
    %91 = arith.mulf %84, %81 : vector<192x8xf32>
    %cst_53 = arith.constant dense<0.000000e+00> : vector<8xf32>
    %92 = vector.multi_reduction <add>, %91, %cst_53 [0] : vector<192x8xf32> to vector<8xf32>
    %93 = vector.shape_cast %92 : vector<8xf32> to vector<1x8xf32>
    %94 = arith.addf %90, %93 : vector<1x8xf32>
    %c0_54 = arith.constant 0 : index
    %c0_55 = arith.constant 0 : index
    %95 = vector.load %arg9[%c0_54, %c0_55] : memref<1x8xf32, #tpu.memory_space<vmem>>, vector<1x8xf32>
    tpu.vector_store %arg9[%c0_54, %c0_55], %94 {strides = array<i32>} : memref<1x8xf32, #tpu.memory_space<vmem>>, vector<1x8xf32>,
    %c192_i32_56 = arith.constant 192 : i32
    %96 = arith.muli %arg0, %c192_i32_56 : i32
    %97 = arith.addi %96, %5 : i32
    %98 = tpu.assume_multiple %97, 8 : i32
    %99 = arith.index_cast %98 : i32 to index
    %c0_57 = arith.constant 0 : index
    %100 = vector.load %arg7[%99, %c0_57] : memref<384x8xf32, #tpu.memory_space<vmem>>, vector<192x8xf32>
    tpu.vector_store %arg7[%99, %c0_57], %81 {strides = array<i32>} : memref<384x8xf32, #tpu.memory_space<vmem>>, vector<192x8xf32>,
    %c1_i32 = arith.constant 1 : i32
    %101 = arith.cmpi eq, %arg0, %c1_i32 : i32
    %c0_i32_58 = arith.constant 0 : i32
    %102 = arith.cmpi eq, %arg1, %c0_i32_58 : i32
    %103 = arith.andi %101, %102 : i1
    %104 = arith.extui %103 : i1 to i32
    %c0_i32_59 = arith.constant 0 : i32
    %105 = arith.cmpi ne, %104, %c0_i32_59 : i32
    scf.if %105 {
      %c0_60 = arith.constant 0 : index
      %c0_61 = arith.constant 0 : index
      %106 = vector.load %arg8[%c0_60, %c0_61] : memref<1x8xf32, #tpu.memory_space<vmem>>, vector<1x8xf32>
      %cst_62 = arith.constant 0.00347222225 : f32
      %107 = vector.broadcast %cst_62 : f32 to vector<1x8xf32>
      %108 = arith.mulf %106, %107 : vector<1x8xf32>
      %c0_63 = arith.constant 0 : index
      %c0_64 = arith.constant 0 : index
      %109 = vector.load %arg9[%c0_63, %c0_64] : memref<1x8xf32, #tpu.memory_space<vmem>>, vector<1x8xf32>
      %cst_65 = arith.constant 0.00347222225 : f32
      %110 = vector.broadcast %cst_65 : f32 to vector<1x8xf32>
      %111 = arith.mulf %109, %110 : vector<1x8xf32>
      %112 = arith.mulf %108, %108 : vector<1x8xf32>
      %113 = arith.subf %111, %112 : vector<1x8xf32>
      %cst_66 = arith.constant 0.000000e+00 : f32
      %114 = vector.broadcast %cst_66 : f32 to vector<1x8xf32>
      %115 = arith.maximumf %113, %114 : vector<1x8xf32>
      %cst_67 = arith.constant 9.99999974E-6 : f32
      %116 = vector.broadcast %cst_67 : f32 to vector<1x8xf32>
      %117 = arith.addf %115, %116 : vector<1x8xf32>
      %118 = math.rsqrt %117 : vector<1x8xf32>
      %c0_68 = arith.constant 0 : index
      %c0_69 = arith.constant 0 : index
      %119 = vector.load %arg4[%c0_68, %c0_69] : memref<1x8xf32, #tpu.memory_space<vmem>>, vector<1x8xf32>
      %120 = arith.mulf %119, %118 : vector<1x8xf32>
      %c0_70 = arith.constant 0 : index
      %c0_71 = arith.constant 0 : index
      %121 = vector.load %arg5[%c0_70, %c0_71] : memref<1x8xf32, #tpu.memory_space<vmem>>, vector<1x8xf32>
      %122 = arith.mulf %108, %120 : vector<1x8xf32>
      %123 = arith.subf %121, %122 : vector<1x8xf32>
      %c0_72 = arith.constant 0 : index
      %c0_73 = arith.constant 0 : index
      %124 = vector.load %arg7[%c0_72, %c0_73] : memref<384x8xf32, #tpu.memory_space<vmem>>, vector<384x8xf32>
      %125 = vector.broadcast %120 : vector<1x8xf32> to vector<384x8xf32>
      %126 = arith.mulf %124, %125 : vector<384x8xf32>
      %127 = vector.broadcast %123 : vector<1x8xf32> to vector<384x8xf32>
      %128 = arith.addf %126, %127 : vector<384x8xf32>
      %cst_74 = arith.constant 0.000000e+00 : f32
      %129 = vector.broadcast %cst_74 : f32 to vector<384x8xf32>
      %130 = arith.maximumf %128, %129 : vector<384x8xf32>
      %c0_75 = arith.constant 0 : index
      %c0_76 = arith.constant 0 : index
      %131 = vector.load %arg7[%c0_75, %c0_76] : memref<384x8xf32, #tpu.memory_space<vmem>>, vector<384x8xf32>
      tpu.vector_store %arg7[%c0_75, %c0_76], %130 {strides = array<i32>} : memref<384x8xf32, #tpu.memory_space<vmem>>, vector<384x8xf32>,
    } else {
    }
    return
  }
  func.func @transform_0(%arg0: i32, %arg1: i32) -> (i32, i32, i32) {
    %c0_i32 = arith.constant 0 : i32
    %c0_i32_0 = arith.constant 0 : i32
    %c0_i32_1 = arith.constant 0 : i32
    return %arg0, %c0_i32, %c0_i32_0 : i32, i32, i32
  }
  func.func @transform_1(%arg0: i32, %arg1: i32) -> (i32, i32, i32) {
    %c0_i32 = arith.constant 0 : i32
    %c0_i32_0 = arith.constant 0 : i32
    %c0_i32_1 = arith.constant 0 : i32
    %c0_i32_2 = arith.constant 0 : i32
    return %c0_i32, %c0_i32_0, %c0_i32_1 : i32, i32, i32
  }
  func.func @transform_2(%arg0: i32, %arg1: i32) -> (i32, i32) {
    %c0_i32 = arith.constant 0 : i32
    %c0_i32_0 = arith.constant 0 : i32
    %c0_i32_1 = arith.constant 0 : i32
    return %c0_i32, %c0_i32_0 : i32, i32
  }
  func.func @transform_3(%arg0: i32, %arg1: i32) -> (i32, i32) {
    %c0_i32 = arith.constant 0 : i32
    %c0_i32_0 = arith.constant 0 : i32
    %c0_i32_1 = arith.constant 0 : i32
    return %c0_i32, %c0_i32_0 : i32, i32
  }
  func.func @transform_4(%arg0: i32, %arg1: i32) -> (i32, i32) {
    %c0_i32 = arith.constant 0 : i32
    %c0_i32_0 = arith.constant 0 : i32
    %c0_i32_1 = arith.constant 0 : i32
    return %c0_i32, %c0_i32_0 : i32, i32
  }
  func.func @transform_5(%arg0: i32, %arg1: i32) -> (i32, i32) {
    %c0_i32 = arith.constant 0 : i32
    %c0_i32_0 = arith.constant 0 : i32
    %c0_i32_1 = arith.constant 0 : i32
    return %c0_i32, %c0_i32_0 : i32, i32
  }
}

</mosaic_0001>

<bundles_post_ra>
// kernel: tpu_custom_call.1
= control target key start
LH: loop header
LB: loop body
LE: loop exit
PB: predicated region body
PF: predicated region fallthrough
CT: control target
= control target key end

     0   :  { %s6577_s18 = smov 0   ;;  %s6579_s19 = smov 0   ;;  %s11788_s0 = inlined_call_operand.vmem [shape: f32[2,264,4], index: 0, kind: input, shape index: {}]   ;;  %s11789_s1 = inlined_call_operand.vmem [shape: f32[5,20,8], index: 1, kind: input, shape index: {}]   ;;  %s11790_s2 = inlined_call_operand.vmem [shape: f32[1,8], index: 2, kind: input, shape index: {}]   ;;  %s11791_s3 = inlined_call_operand.vmem [shape: f32[1,8], index: 3, kind: input, shape index: {}]   ;;  %s11792_s4 = inlined_call_operand.vmem [shape: f32[192,1], index: 4, kind: input, shape index: {}]   ;;  %s11793_s5 = inlined_call_operand.vmem [shape: f32[384,8], index: 5, kind: output, shape index: {}]  }
   0x1   :  { %s6581_s20 = smov 0  }
   0x2 LB: > { %s27_s21 = sadd.s32 1, %s6535_s19  ;;  %p5809_p0 = scmp.ge.s32.totalorder %s6539_s20, 1  ;;  %s6539_s20 = sphi %s6581_s20, %s15_s20   ;;  %s6535_s19 = sphi %s6579_s19, %s12610_s19   ;;  %s6531_s18 = sphi %s6577_s18, %s12609_s18  }
   0x3   : > { %p29_p1 = scmp.ge.s32.totalorder %s27_s21, 2  ;;  %p194_p2 = scmp.lt.s32.totalorder %s6539_s20, 3 }
   0x5   : > { %s12612_s21 = smov (%p29_p1, %s27_s21), 0  ;;  %p195_p3 = pnand %p5809_p0, %p194_p2 }
   0x7   : > { %198 = sbr.rel (%p195_p3) target bundleno = 1396 (0x574), region = 40 }
   0xc   : > { %p217_p4 = scmp.lt.s32.totalorder %s6531_s18, 1  ;;  %p222_p5 = scmp.eq.s32.totalorder %s6531_s18, 0 }
   0xd   : > { %vm228_vm0 = vcmask (%p222_p5), 57344   ;;  %v6541_v0 = vmov (%p222_p5), 0.0  }
   0xe   : > { %s218_s22 = scalar_select %p217_p4, %s6531_s18, 1  ;;  %229 = vst.msk [vmem:[#allocation2] sm:$0x1] (%p222_p5), %vm228_vm0, %v6541_v0  ;;  %230 = vst.msk [vmem:[#allocation3] sm:$0x1] (%p222_p5), %vm228_vm0, %v6541_v0 }
   0xf   : > { %227 = sbr.rel (!%p222_p5) target bundleno = 20 (0x14), region = 44 }
  0x10   : > { %s6405_s23 = smul.u32 264, %s218_s22 }
  0x12   : > { %s6603_s26 = scalar_lea.vmem %s11788_s0, %s6405_s23 }
  0x14 PF: > { %v6606_v1 = vld [vmem:[%s6603_s26 + $0x10] sm:$0xff]  ;;  %v6609_v2 = vld [vmem:[%s6603_s26 + $0x18] sm:$0xff]  ;;  %v283_v3 = vlaneseq  ;;  %v6612_v4 = vld [vmem:[%s6603_s26] sm:$0xff]  ;;  %s6542_s27 = smov 4   ;;  %s6543_s28 = smov 8   ;;  %vm1727_vm5 = vcmask 1043456  }
  0x15   : > { %v260_v5 = vrot.slane %v6606_v1, 1  ;;  %v261_v6 = vrot.slane %v6609_v2, 1  ;;  %v6617_v7 = vld [vmem:[%s6603_s26 + $0x8] sm:$0xff]  ;;  %v258_v8 = vrot.slane %v6612_v4, 1  ;;  %v6621_v9 = vld [vmem:[%s6603_s26 + $0x20] sm:$0xff]  ;;  %v6632_v14 = vld [vmem:[%s6603_s26 + $0x30] sm:$0xff] }
  0x16   : > { %v6623_v10 = vshrl.u32 %v283_v3, 7  ;;  %v259_v11 = vrot.slane %v6617_v7, 1  ;;  %v262_v12 = vrot.slane %v6621_v9, 1  ;;  %v6629_v13 = vld [vmem:[%s6603_s26 + $0x28] sm:$0xff]  ;;  %v264_v20 = vrot.slane %v6632_v14, 1  ;;  %v6652_v21 = vld [vmem:[%s6603_s26 + $0x38] sm:$0xff] }
  0x17   : > { %v263_v19 = vrot.slane %v6629_v13, 1  ;;  %v6655_v22 = vld [vmem:[%s6603_s26 + $0x40] sm:$0xff]  ;;  %v265_v25 = vrot.slane %v6652_v21, 1  ;;  %v6671_v27 = vld [vmem:[%s6603_s26 + $0x48] sm:$0xff]  ;;  %v6674_v28 = vld [vmem:[%s6603_s26 + $0x50] sm:$0xff]  ;;  %s6544_s29 = smov 12  }
  0x18   : > { %vm285_vm1 = vcmp.lt.s32.totalorder %v6623_v10, 7  ;;  %v266_v26 = vrot.slane %v6655_v22, 1  ;;  %v267_v31 = vrot.slane %v6671_v27, 1  ;;  %v268_v32 = vrot.slane %v6674_v28, 1  ;;  %v6691_v33 = vld [vmem:[%s6603_s26 + $0x58] sm:$0xff]  ;;  %v6694_v34 = vld [vmem:[%s6603_s26 + $0x60] sm:$0xff] }
  0x19   : > { %v6636_v15 = vsel %vm285_vm1, %v260_v5, %v261_v6  ;;  %v309_v16 = vsel %vm285_vm1, %v258_v8, %v259_v11  ;;  %v6645_v17 = vsel %vm285_vm1, %v261_v6, %v262_v12  ;;  %v308_v18 = vsel %vm285_vm1, %v259_v11, %v260_v5  ;;  %v6711_v39 = vld [vmem:[%s6603_s26 + $0x68] sm:$0xff]  ;;  %v6714_v40 = vld [vmem:[%s6603_s26 + $0x70] sm:$0xff]  ;;  %v6731_v45 = vld [vmem:[%s6603_s26 + $0x78] sm:$0xff]  ;;  %s6545_s30 = smov 16   ;;  %s5454_s25 = smul.u32 192, %s6531_s18 }
  0x1a   : > { %488 = vrot.lane.b32.xlu1 %v6636_v15, %s6542_s27  ;;  %484 = vrot.lane.b32.xlu0 %v309_v16, %s6542_s27  ;;  %v6662_v23 = vsel %vm285_vm1, %v263_v19, %v264_v20  ;;  %v6666_v24 = vsel %vm285_vm1, %v262_v12, %v263_v19  ;;  %v6682_v29 = vsel %vm285_vm1, %v265_v25, %v266_v26  ;;  %v269_v37 = vrot.slane %v6691_v33, 1  ;;  %v6734_v46 = vld [vmem:[%s6603_s26 + $0x80] sm:$0xff]  ;;  %v6751_v51 = vld [vmem:[%s6603_s26 + $0x88] sm:$0xff]  ;;  %p5481_p6 = scmp.eq.s32.totalorder %s6531_s18, 1 }
  0x1b   : > { %v6686_v30 = vsel %vm285_vm1, %v264_v20, %v265_v25  ;;  %v6702_v35 = vsel %vm285_vm1, %v267_v31, %v268_v32  ;;  %v6706_v36 = vsel %vm285_vm1, %v266_v26, %v267_v31  ;;  %v270_v38 = vrot.slane %v6694_v34, 1  ;;  %v6754_v52 = vld [vmem:[%s6603_s26 + $0x90] sm:$0xff]  ;;  %v6771_v57 = vld [vmem:[%s6603_s26 + $0x98] sm:$0xff]  ;;  %v6774_v58 = vld [vmem:[%s6603_s26 + $0xa0] sm:$0xff]  ;;  %s11173_s8 = scalar_lea.vmem %s11793_s5, %s5454_s25 }
  0x1c   : > { %v6726_v42 = vsel %vm285_vm1, %v268_v32, %v269_v37  ;;  %v271_v43 = vrot.slane %v6711_v39, 1  ;;  %v272_v44 = vrot.slane %v6714_v40, 1  ;;  %v273_v49 = vrot.slane %v6731_v45, 1  ;;  %v6791_v63 = vld [vmem:[%s6603_s26 + $0xa8] sm:$0xff]  ;;  %v6794_v0 = vld [vmem:[%s6603_s26 + $0xb0] sm:$0xff]  ;;  %v6811_v11 = vld [vmem:[%s6603_s26 + $0xb8] sm:$0xff] }
  0x1d   : > { %v6722_v41 = vsel %vm285_vm1, %v269_v37, %v270_v38  ;;  %v274_v50 = vrot.slane %v6734_v46, 1  ;;  %v275_v55 = vrot.slane %v6751_v51, 1  ;;  %v276_v56 = vrot.slane %v6754_v52, 1  ;;  %v6814_v12 = vld [vmem:[%s6603_s26 + $0xc0] sm:$0xff] }
  0x1e   : > { %490 = vrot.lane.b32.xlu1 %v6645_v17, %s6542_s27  ;;  %486 = vrot.lane.b32.xlu0 %v308_v18, %s6542_s27  ;;  %v6742_v47 = vsel %vm285_vm1, %v271_v43, %v272_v44  ;;  %v6746_v48 = vsel %vm285_vm1, %v270_v38, %v271_v43  ;;  %v6766_v54 = vsel %vm285_vm1, %v272_v44, %v273_v49  ;;  %v277_v61 = vrot.slane %v6771_v57, 1 }
  0x1f   : > { %v6762_v53 = vsel %vm285_vm1, %v273_v49, %v274_v50  ;;  %v6782_v59 = vsel %vm285_vm1, %v275_v55, %v276_v56  ;;  %v6786_v60 = vsel %vm285_vm1, %v274_v50, %v275_v55  ;;  %v278_v62 = vrot.slane %v6774_v58, 1 }
  0x20   : > { %v6806_v5 = vsel %vm285_vm1, %v276_v56, %v277_v61  ;;  %v279_v6 = vrot.slane %v6791_v63, 1  ;;  %v280_v8 = vrot.slane %v6794_v0, 1  ;;  %v281_v19 = vrot.slane %v6811_v11, 1 }
  0x21   : > { %v6802_v3 = vsel %vm285_vm1, %v277_v61, %v278_v62  ;;  %v11794_v20 = vrot.slane %v6814_v12, 1  ;;  %v311_v25 = vrot.slane %v6617_v7, 2  ;;  %v312_v32 = vrot.slane %v6606_v1, 2 }
  0x22   : > { %494 = vrot.lane.b32.xlu1 %v6662_v23, %s6542_s27  ;;  %492 = vrot.lane.b32.xlu0 %v6666_v24, %s6542_s27  ;;  %v6822_v16 = vsel %vm285_vm1, %v279_v6, %v280_v8  ;;  %v6826_v18 = vsel %vm285_vm1, %v278_v62, %v279_v6  ;;  %v6843_v31 = vsel %vm285_vm1, %v280_v8, %v281_v19  ;;  %v310_v37 = vrot.slane %v6612_v4, 2 }
  0x23   : > { %v6839_v26 = vsel %vm285_vm1, %v281_v19, %v11794_v20  ;;  %vm335_vm2 = vcmp.lt.s32.totalorder %v6623_v10, 6  ;;  %v313_v44 = vrot.slane %v6609_v2, 2  ;;  %v314_v49 = vrot.slane %v6621_v9, 2 }
  0x24   : > { %v358_v38 = vsel %vm335_vm2, %v311_v25, %v312_v32  ;;  %v359_v43 = vsel %vm335_vm2, %v310_v37, %v311_v25  ;;  %v315_v56 = vrot.slane %v6629_v13, 2  ;;  %v316_v61 = vrot.slane %v6632_v14, 2 }
  0x25   : > { %v6862_v50 = vsel %vm335_vm2, %v313_v44, %v314_v49  ;;  %v6866_v55 = vsel %vm335_vm2, %v312_v32, %v313_v44  ;;  %v317_v8 = vrot.slane %v6652_v21, 2  ;;  %v318_v19 = vrot.slane %v6655_v22, 2 }
  0x26   : > { %498 = vrot.lane.b32.xlu1 %v6682_v29, %s6542_s27  ;;  %496 = vrot.lane.b32.xlu0 %v6686_v30, %s6542_s27  ;;  %v6876_v62 = vsel %vm335_vm2, %v315_v56, %v316_v61  ;;  %v6880_v6 = vsel %vm335_vm2, %v314_v49, %v315_v56  ;;  %v319_v37 = vrot.slane %v6671_v27, 2  ;;  %v321_v49 = vrot.slane %v6691_v33, 2 }
  0x27   : > { %v6890_v25 = vsel %vm335_vm2, %v317_v8, %v318_v19  ;;  %v6894_v32 = vsel %vm335_vm2, %v316_v61, %v317_v8  ;;  %v322_v56 = vrot.slane %v6694_v34, 2  ;;  %vm385_vm3 = vcmp.lt.s32.totalorder %v6623_v10, 5 }
  0x28   : > { %11914 = vst [vmem:[#allocation4_spill] sm:$0xff] %v6894_v32  ;;  %v6908_v44 = vsel %vm335_vm2, %v318_v19, %v319_v37  ;;  %v323_v19 = vrot.slane %v6711_v39, 2  ;;  %vm435_vm4 = vcmp.lt.s32.totalorder %v6623_v10, 4  ;;  %vm844_vm6 = vcmask 31744  }
  0x29   : > { %11916 = vst [vmem:[#allocation6_spill] sm:$0xff] %v6908_v44  ;;  %v6918_v61 = vsel %vm335_vm2, %v321_v49, %v322_v56  ;;  %vm869_vm7 = vcmask 64512   ;;  %vm894_vm8 = vcmask 97280   ;;  %vm919_vm9 = vcmask 130048  }
  0x2a   : > { %502 = vrot.lane.b32.xlu1 %v6702_v35, %s6542_s27  ;;  %500 = vrot.lane.b32.xlu0 %v6706_v36, %s6542_s27  ;;  %11917 = vst [vmem:[#allocation7_spill] sm:$0xff] %v6918_v61  ;;  %vm1654_vm10 = vcmask 162816   ;;  %vm5372_vm11 = vcmask 57344  }
  0x2e   : > { %506 = vrot.lane.b32.xlu1 %v6722_v41, %s6542_s27  ;;  %504 = vrot.lane.b32.xlu0 %v6726_v42, %s6542_s27 }
  0x32   : > { %510 = vrot.lane.b32.xlu1 %v6742_v47, %s6542_s27  ;;  %508 = vrot.lane.b32.xlu0 %v6746_v48, %s6542_s27 }
  0x36   : > { %514 = vrot.lane.b32.xlu1 %v6762_v53, %s6542_s27  ;;  %512 = vrot.lane.b32.xlu0 %v6766_v54, %s6542_s27 }
  0x3a   : > { %518 = vrot.lane.b32.xlu1 %v6782_v59, %s6542_s27  ;;  %516 = vrot.lane.b32.xlu0 %v6786_v60, %s6542_s27 }
  0x3e   : > { %522 = vrot.lane.b32.xlu1 %v6802_v3, %s6542_s27  ;;  %520 = vrot.lane.b32.xlu0 %v6806_v5, %s6542_s27 }
  0x42   : > { %526 = vrot.lane.b32.xlu1 %v6822_v16, %s6542_s27  ;;  %524 = vrot.lane.b32.xlu0 %v6826_v18, %s6542_s27 }
  0x46   : > { %530 = vrot.lane.b32.xlu1 %v6839_v26, %s6542_s27  ;;  %528 = vrot.lane.b32.xlu0 %v6843_v31, %s6542_s27 }
  0x4a   : > { %582 = vrot.lane.b32.xlu1 %v358_v38, %s6543_s28  ;;  %580 = vrot.lane.b32.xlu0 %v359_v43, %s6543_s28  ;;  %v320_v38 = vrot.slane %v6674_v28, 2 }
  0x4c   : > { %v6904_v43 = vsel %vm335_vm2, %v319_v37, %v320_v38  ;;  %v6922_v8 = vsel %vm335_vm2, %v320_v38, %v321_v49  ;;  %v324_v37 = vrot.slane %v6714_v40, 2  ;;  %v325_v38 = vrot.slane %v6731_v45, 2 }
  0x4d   : > { %11915 = vst [vmem:[#allocation5_spill] sm:$0xff] %v6904_v43  ;;  %11918 = vst [vmem:[#allocation8_spill] sm:$0xff] %v6922_v8  ;;  %v326_v49 = vrot.slane %v6734_v46, 2 }
  0x4e   : > { %586 = vrot.lane.b32.xlu1 %v6862_v50, %s6543_s28  ;;  %584 = vrot.lane.b32.xlu0 %v6866_v55, %s6543_s28  ;;  %v6932_v20 = vsel %vm335_vm2, %v323_v19, %v324_v37 }
  0x4f   : > { %11919 = vst [vmem:[#allocation9_spill] sm:$0xff] %v6932_v20 }
  0x52   : > { %590 = vrot.lane.b32.xlu1 %v6876_v62, %s6543_s28  ;;  %588 = vrot.lane.b32.xlu0 %v6880_v6, %s6543_s28 }
  0x56   : > { %594 = vrot.lane.b32.xlu1 %v6890_v25, %s6543_s28  ;;  %592 = vrot.lane.b32.xlu0 %v6894_v32, %s6543_s28 }
  0x5a   : > { %598 = vrot.lane.b32.xlu1 %v6904_v43, %s6543_s28  ;;  %596 = vrot.lane.b32.xlu0 %v6908_v44, %s6543_s28  ;;  %v6936_v44 = vsel %vm335_vm2, %v322_v56, %v323_v19  ;;  %v327_v56 = vrot.slane %v6751_v51, 2  ;;  %v328_v19 = vrot.slane %v6754_v52, 2  ;;  %v360_v43 = vrot.slane %v6612_v4, 3 }
  0x5b   : > { %11920 = vst [vmem:[#allocation10_spill] sm:$0xff] %v6936_v44 }
  0x5e   : > { %602 = vrot.lane.b32.xlu1 %v6918_v61, %s6543_s28  ;;  %600 = vrot.lane.b32.xlu0 %v6922_v8, %s6543_s28  ;;  %v6946_v8 = vsel %vm335_vm2, %v325_v38, %v326_v49  ;;  %v6950_v61 = vsel %vm335_vm2, %v324_v37, %v325_v38  ;;  %v329_v37 = vrot.slane %v6771_v57, 2  ;;  %v330_v38 = vrot.slane %v6774_v58, 2 }
  0x5f   : > { %11921 = vst [vmem:[#allocation11_spill] sm:$0xff] %v6946_v8  ;;  %11922 = vst [vmem:[#allocation12_spill] sm:$0xff] %v6950_v61 }
  0x62   : > { %606 = vrot.lane.b32.xlu1 %v6932_v20, %s6543_s28  ;;  %604 = vrot.lane.b32.xlu0 %v6936_v44, %s6543_s28  ;;  %v6960_v44 = vsel %vm335_vm2, %v327_v56, %v328_v19  ;;  %v6964_v20 = vsel %vm335_vm2, %v326_v49, %v327_v56  ;;  %v331_v49 = vrot.slane %v6791_v63, 2  ;;  %v332_v56 = vrot.slane %v6794_v0, 2 }
  0x63   : > { %11923 = vst [vmem:[#allocation13_spill] sm:$0xff] %v6960_v44  ;;  %11924 = vst [vmem:[#allocation14_spill] sm:$0xff] %v6964_v20 }
  0x66   : > { %610 = vrot.lane.b32.xlu1 %v6946_v8, %s6543_s28  ;;  %608 = vrot.lane.b32.xlu0 %v6950_v61, %s6543_s28  ;;  %v6974_v61 = vsel %vm335_vm2, %v329_v37, %v330_v38  ;;  %v6978_v8 = vsel %vm335_vm2, %v328_v19, %v329_v37  ;;  %v333_v19 = vrot.slane %v6811_v11, 2  ;;  %v11807_v37 = vrot.slane %v6814_v12, 2 }
  0x67   : > { %11925 = vst [vmem:[#allocation15_spill] sm:$0xff] %v6974_v61  ;;  %11926 = vst [vmem:[#allocation16_spill] sm:$0xff] %v6978_v8 }
  0x6a   : > { %614 = vrot.lane.b32.xlu1 %v6960_v44, %s6543_s28  ;;  %612 = vrot.lane.b32.xlu0 %v6964_v20, %s6543_s28  ;;  %v6988_v20 = vsel %vm335_vm2, %v331_v49, %v332_v56  ;;  %v6992_v44 = vsel %vm335_vm2, %v330_v38, %v331_v49  ;;  %v7009_v38 = vsel %vm335_vm2, %v332_v56, %v333_v19  ;;  %v362_v49 = vrot.slane %v6606_v1, 3 }
  0x6b   : > { %11927 = vst [vmem:[#allocation17_spill] sm:$0xff] %v6988_v20  ;;  %11928 = vst [vmem:[#allocation18_spill] sm:$0xff] %v6992_v44  ;;  %v363_v56 = vrot.slane %v6609_v2, 3 }
  0x6c   : > { %11930 = vst [vmem:[#allocation20_spill] sm:$0xff] %v7009_v38 }
  0x6e   : > { %618 = vrot.lane.b32.xlu1 %v6974_v61, %s6543_s28  ;;  %616 = vrot.lane.b32.xlu0 %v6978_v8, %s6543_s28  ;;  %v361_v8 = vrot.slane %v6617_v7, 3  ;;  %v7005_v61 = vsel %vm335_vm2, %v333_v19, %v11807_v37  ;;  %v364_v19 = vrot.slane %v6621_v9, 3 }
  0x6f   : > { %11929 = vst [vmem:[#allocation19_spill] sm:$0xff] %v7005_v61 }
  0x70   : > { %v408_v37 = vsel %vm385_vm3, %v361_v8, %v362_v49 }
  0x72   : > { %622 = vrot.lane.b32.xlu1 %v6988_v20, %s6543_s28  ;;  %620 = vrot.lane.b32.xlu0 %v6992_v44, %s6543_s28  ;;  %v409_v44 = vsel %vm385_vm3, %v360_v43, %v361_v8  ;;  %v365_v20 = vrot.slane %v6629_v13, 3  ;;  %v366_v43 = vrot.slane %v6632_v14, 3 }
  0x74   : > { %v7046_v8 = vsel %vm385_vm3, %v364_v19, %v365_v20 }
  0x75   : > { %11934 = vst [vmem:[#allocation24_spill] sm:$0xff] %v7046_v8 }
  0x76   : > { %626 = vrot.lane.b32.xlu1 %v7005_v61, %s6543_s28  ;;  %624 = vrot.lane.b32.xlu0 %v7009_v38, %s6543_s28  ;;  %v7028_v61 = vsel %vm385_vm3, %v363_v56, %v364_v19  ;;  %v7032_v38 = vsel %vm385_vm3, %v362_v49, %v363_v56  ;;  %v368_v49 = vrot.slane %v6655_v22, 3  ;;  %v370_v19 = vrot.slane %v6674_v28, 3 }
  0x77   : > { %11931 = vst [vmem:[#allocation21_spill] sm:$0xff] %v7028_v61  ;;  %11932 = vst [vmem:[#allocation22_spill] sm:$0xff] %v7032_v38 }
  0x7a   : > { %678 = vrot.lane.b32.xlu1 %v408_v37, %s6544_s29  ;;  %676 = vrot.lane.b32.xlu0 %v409_v44, %s6544_s29  ;;  %v7042_v44 = vsel %vm385_vm3, %v365_v20, %v366_v43  ;;  %v367_v37 = vrot.slane %v6652_v21, 3  ;;  %v369_v20 = vrot.slane %v6671_v27, 3 }
  0x7b   : > { %11933 = vst [vmem:[#allocation23_spill] sm:$0xff] %v7042_v44 }
  0x7c   : > { %v7056_v56 = vsel %vm385_vm3, %v367_v37, %v368_v49 }
  0x7d   : > { %11935 = vst [vmem:[#allocation25_spill] sm:$0xff] %v7056_v56 }
  0x7e   : > { %682 = vrot.lane.b32.xlu1 %v7028_v61, %s6544_s29  ;;  %680 = vrot.lane.b32.xlu0 %v7032_v38, %s6544_s29  ;;  %v7060_v38 = vsel %vm385_vm3, %v366_v43, %v367_v37  ;;  %v371_v43 = vrot.slane %v6691_v33, 3  ;;  %v372_v37 = vrot.slane %v6694_v34, 3 }
  0x7f   : > { %11936 = vst [vmem:[#allocation26_spill] sm:$0xff] %v7060_v38 }
  0x82   : > { %686 = vrot.lane.b32.xlu1 %v7042_v44, %s6544_s29  ;;  %684 = vrot.lane.b32.xlu0 %v7046_v8, %s6544_s29  ;;  %v7070_v8 = vsel %vm385_vm3, %v369_v20, %v370_v19  ;;  %v7074_v44 = vsel %vm385_vm3, %v368_v49, %v369_v20  ;;  %v373_v49 = vrot.slane %v6711_v39, 3  ;;  %v374_v20 = vrot.slane %v6714_v40, 3 }
  0x83   : > { %11937 = vst [vmem:[#allocation27_spill] sm:$0xff] %v7070_v8  ;;  %11938 = vst [vmem:[#allocation28_spill] sm:$0xff] %v7074_v44 }
  0x86   : > { %690 = vrot.lane.b32.xlu1 %v7056_v56, %s6544_s29  ;;  %688 = vrot.lane.b32.xlu0 %v7060_v38, %s6544_s29  ;;  %v7084_v38 = vsel %vm385_vm3, %v371_v43, %v372_v37  ;;  %v7088_v56 = vsel %vm385_vm3, %v370_v19, %v371_v43  ;;  %v7106_v19 = vsel %vm385_vm3, %v372_v37, %v373_v49  ;;  %v375_v43 = vrot.slane %v6731_v45, 3 }
  0x87   : > { %11939 = vst [vmem:[#allocation29_spill] sm:$0xff] %v7084_v38  ;;  %11940 = vst [vmem:[#allocation30_spill] sm:$0xff] %v7088_v56 }
  0x88   : > { %11944 = vst [vmem:[#allocation34_spill] sm:$0xff] %v7106_v19  ;;  %v7124_v37 = vsel %vm385_vm3, %v374_v20, %v375_v43 }
  0x89   : > { %11948 = vst [vmem:[#allocation38_spill] sm:$0xff] %v7124_v37 }
  0x8a   : > { %694 = vrot.lane.b32.xlu1 %v7070_v8, %s6544_s29  ;;  %692 = vrot.lane.b32.xlu0 %v7074_v44, %s6544_s29  ;;  %v7102_v44 = vsel %vm385_vm3, %v373_v49, %v374_v20  ;;  %v377_v49 = vrot.slane %v6751_v51, 3 }
  0x8b   : > { %11943 = vst [vmem:[#allocation33_spill] sm:$0xff] %v7102_v44 }
  0x8c   : > { %v7092_v61 = vpop.permute.xlu1 %488  ;;  %v7094_v32 = vpop.permute.xlu0 %484 }
  0x8d   : > { %11941 = vst [vmem:[#allocation31_spill] sm:$0xff] %v7092_v61  ;;  %11942 = vst [vmem:[#allocation32_spill] sm:$0xff] %v7094_v32  ;;  %v376_v61 = vrot.slane %v6734_v46, 3 }
  0x8e   : > { %698 = vrot.lane.b32.xlu1 %v7084_v38, %s6544_s29  ;;  %696 = vrot.lane.b32.xlu0 %v7088_v56, %s6544_s29 }
  0x8f   : > { %v7120_v56 = vsel %vm385_vm3, %v375_v43, %v376_v61  ;;  %v7142_v20 = vsel %vm385_vm3, %v376_v61, %v377_v49  ;;  %v379_v43 = vrot.slane %v6771_v57, 3 }
  0x90   : > { %v7110_v8 = vpop.permute.xlu1 %490  ;;  %v7112_v32 = vpop.permute.xlu0 %486  ;;  %11947 = vst [vmem:[#allocation37_spill] sm:$0xff] %v7120_v56  ;;  %11952 = vst [vmem:[#allocation42_spill] sm:$0xff] %v7142_v20 }
  0x91   : > { %11945 = vst [vmem:[#allocation35_spill] sm:$0xff] %v7110_v8  ;;  %11946 = vst [vmem:[#allocation36_spill] sm:$0xff] %v7112_v32  ;;  %v378_v8 = vrot.slane %v6754_v52, 3 }
  0x92   : > { %702 = vrot.lane.b32.xlu1 %v7102_v44, %s6544_s29  ;;  %700 = vrot.lane.b32.xlu0 %v7106_v19, %s6544_s29 }
  0x93   : > { %v7138_v19 = vsel %vm385_vm3, %v377_v49, %v378_v8  ;;  %v7160_v61 = vsel %vm385_vm3, %v378_v8, %v379_v43  ;;  %v381_v49 = vrot.slane %v6791_v63, 3 }
  0x94   : > { %v7128_v38 = vpop.permute.xlu1 %494  ;;  %v7130_v32 = vpop.permute.xlu0 %492  ;;  %11951 = vst [vmem:[#allocation41_spill] sm:$0xff] %v7138_v19  ;;  %11956 = vst [vmem:[#allocation46_spill] sm:$0xff] %v7160_v61 }
  0x95   : > { %11949 = vst [vmem:[#allocation39_spill] sm:$0xff] %v7128_v38  ;;  %11950 = vst [vmem:[#allocation40_spill] sm:$0xff] %v7130_v32  ;;  %v380_v38 = vrot.slane %v6774_v58, 3 }
  0x96   : > { %706 = vrot.lane.b32.xlu1 %v7120_v56, %s6544_s29  ;;  %704 = vrot.lane.b32.xlu0 %v7124_v37, %s6544_s29 }
  0x97   : > { %v7156_v37 = vsel %vm385_vm3, %v379_v43, %v380_v38  ;;  %v7178_v8 = vsel %vm385_vm3, %v380_v38, %v381_v49  ;;  %v383_v43 = vrot.slane %v6811_v11, 3 }
  0x98   : > { %v7146_v44 = vpop.permute.xlu1 %498  ;;  %v7148_v32 = vpop.permute.xlu0 %496  ;;  %11955 = vst [vmem:[#allocation45_spill] sm:$0xff] %v7156_v37 }
  0x99   : > { %11953 = vst [vmem:[#allocation43_spill] sm:$0xff] %v7146_v44  ;;  %11954 = vst [vmem:[#allocation44_spill] sm:$0xff] %v7148_v32  ;;  %v382_v44 = vrot.slane %v6794_v0, 3 }
  0x9a   : > { %710 = vrot.lane.b32.xlu1 %v7138_v19, %s6544_s29  ;;  %708 = vrot.lane.b32.xlu0 %v7142_v20, %s6544_s29 }
  0x9b   : > { %v7174_v20 = vsel %vm385_vm3, %v381_v49, %v382_v44  ;;  %v7199_v49 = vsel %vm385_vm3, %v382_v44, %v383_v43  ;;  %v414_v44 = vrot.slane %v6621_v9, 4  ;;  %v415_v9 = vrot.slane %v6629_v13, 4 }
  0x9c   : > { %v7164_v56 = vpop.permute.xlu1 %502  ;;  %v7166_v32 = vpop.permute.xlu0 %500  ;;  %11959 = vst [vmem:[#allocation49_spill] sm:$0xff] %v7174_v20  ;;  %v417_v13 = vrot.slane %v6652_v21, 4  ;;  %v419_v21 = vrot.slane %v6671_v27, 4  ;;  %v421_v27 = vrot.slane %v6691_v33, 4  ;;  %v423_v33 = vrot.slane %v6711_v39, 4 }
  0x9d   : > { %11957 = vst [vmem:[#allocation47_spill] sm:$0xff] %v7164_v56  ;;  %11958 = vst [vmem:[#allocation48_spill] sm:$0xff] %v7166_v32  ;;  %v11832_v56 = vrot.slane %v6814_v12, 3  ;;  %v425_v39 = vrot.slane %v6731_v45, 4  ;;  %v427_v45 = vrot.slane %v6751_v51, 4  ;;  %v429_v51 = vrot.slane %v6771_v57, 4 }
  0x9e   : > { %714 = vrot.lane.b32.xlu1 %v7156_v37, %s6544_s29  ;;  %712 = vrot.lane.b32.xlu0 %v7160_v61, %s6544_s29  ;;  %v411_v61 = vrot.slane %v6617_v7, 4  ;;  %v431_v57 = vrot.slane %v6791_v63, 4  ;;  %v433_v63 = vrot.slane %v6811_v11, 4 }
  0x9f   : > { %v7195_v38 = vsel %vm385_vm3, %v383_v43, %v11832_v56 }
  0xa0   : > { %v7182_v19 = vpop.permute.xlu1 %506  ;;  %v7184_v32 = vpop.permute.xlu0 %504 }
  0xa1   : > { %11960 = vst [vmem:[#allocation50_spill] sm:$0xff] %v7182_v19  ;;  %11961 = vst [vmem:[#allocation51_spill] sm:$0xff] %v7184_v32  ;;  %v412_v32 = vrot.slane %v6606_v1, 4  ;;  %v410_v19 = vrot.slane %v6612_v4, 4  ;;  %v7217_v4 = vrot.slane %v6609_v2, 4 }
  0xa2   : > { %718 = vrot.lane.b32.xlu1 %v7174_v20, %s6544_s29  ;;  %716 = vrot.lane.b32.xlu0 %v7178_v8, %s6544_s29 }
  0xa3   : > { %v458_v7 = vsel %vm435_vm4, %v411_v61, %v412_v32  ;;  %v459_v1 = vsel %vm435_vm4, %v410_v19, %v411_v61  ;;  %v457_v2 = vsel %vm435_vm4, %v412_v32, %v7217_v4  ;;  %v416_v19 = vrot.slane %v6632_v14, 4 }
  0xa4   : > { %v7203_v20 = vpop.permute.xlu1 %510  ;;  %v7205_v37 = vpop.permute.xlu0 %508  ;;  %v7249_v32 = vsel %vm435_vm4, %v414_v44, %v415_v9  ;;  %v418_v14 = vrot.slane %v6655_v22, 4  ;;  %v420_v22 = vrot.slane %v6674_v28, 4  ;;  %v422_v28 = vrot.slane %v6694_v34, 4 }
  0xa5   : > { %11962 = vst [vmem:[#allocation52_spill] sm:$0xff] %v7203_v20  ;;  %11963 = vst [vmem:[#allocation53_spill] sm:$0xff] %v7205_v37  ;;  %v7229_v20 = vsel %vm435_vm4, %v7217_v4, %v414_v44  ;;  %v7267_v44 = vsel %vm435_vm4, %v416_v19, %v417_v13  ;;  %v424_v34 = vrot.slane %v6714_v40, 4  ;;  %v426_v40 = vrot.slane %v6734_v46, 4 }
  0xa6   : > { %722 = vrot.lane.b32.xlu1 %v7195_v38, %s6544_s29  ;;  %720 = vrot.lane.b32.xlu0 %v7199_v49, %s6544_s29  ;;  %v428_v46 = vrot.slane %v6754_v52, 4  ;;  %v430_v52 = vrot.slane %v6774_v58, 4  ;;  %v432_v58 = vrot.slane %v6794_v0, 4  ;;  %v11833_v0 = vrot.slane %v6814_v12, 4 }
  0xa8   : > { %v7220_v43 = vpop.permute.xlu1 %514  ;;  %v7222_v56 = vpop.permute.xlu0 %512  ;;  %v7413_v11 = vsel %vm435_vm4, %v432_v58, %v433_v63 }
  0xa9   : > { %11964 = vst [vmem:[#allocation54_spill] sm:$0xff] %v7220_v43  ;;  %11965 = vst [vmem:[#allocation55_spill] sm:$0xff] %v7222_v56  ;;  %v7335_v56 = vsel %vm435_vm4, %v425_v39, %v426_v40 }
  0xaa   : > { %774 = vrot.lane.b32.xlu1 %v458_v7, %s6545_s30  ;;  %772 = vrot.lane.b32.xlu0 %v459_v1, %s6545_s30  ;;  %v7245_v7 = vsel %vm435_vm4, %v415_v9, %v416_v19  ;;  %v7285_v19 = vsel %vm435_vm4, %v418_v14, %v419_v21 }
  0xac   : > { %v7236_v61 = vpop.permute.xlu1 %518  ;;  %v7238_v43 = vpop.permute.xlu0 %516 }
  0xad   : > { %11966 = vst [vmem:[#allocation56_spill] sm:$0xff] %v7236_v61  ;;  %11967 = vst [vmem:[#allocation57_spill] sm:$0xff] %v7238_v43 }
  0xae   : > { %778 = vrot.lane.b32.xlu1 %v7229_v20, %s6545_s30  ;;  %776 = vrot.lane.b32.xlu0 %v457_v2, %s6545_s30  ;;  %v7263_v2 = vsel %vm435_vm4, %v417_v13, %v418_v14  ;;  %v7303_v14 = vsel %vm435_vm4, %v420_v22, %v421_v27 }
  0xb0   : > { %v7253_v1 = vpop.permute.xlu1 %522  ;;  %v7255_v61 = vpop.permute.xlu0 %520 }
  0xb1   : > { %11968 = vst [vmem:[#allocation58_spill] sm:$0xff] %v7253_v1  ;;  %11969 = vst [vmem:[#allocation59_spill] sm:$0xff] %v7255_v61  ;;  %v7281_v61 = vsel %vm435_vm4, %v419_v21, %v420_v22  ;;  %v7321_v22 = vsel %vm435_vm4, %v422_v28, %v423_v33 }
  0xb2   : > { %782 = vrot.lane.b32.xlu1 %v7245_v7, %s6545_s30  ;;  %780 = vrot.lane.b32.xlu0 %v7249_v32, %s6545_s30 }
  0xb4   : > { %v7271_v9 = vpop.permute.xlu1 %526  ;;  %v7273_v1 = vpop.permute.xlu0 %524 }
  0xb5   : > { %11970 = vst [vmem:[#allocation60_spill] sm:$0xff] %v7271_v9  ;;  %11971 = vst [vmem:[#allocation61_spill] sm:$0xff] %v7273_v1  ;;  %v7299_v1 = vsel %vm435_vm4, %v421_v27, %v422_v28  ;;  %v7339_v28 = vsel %vm435_vm4, %v424_v34, %v425_v39 }
  0xb6   : > { %786 = vrot.lane.b32.xlu1 %v7263_v2, %s6545_s30  ;;  %784 = vrot.lane.b32.xlu0 %v7267_v44, %s6545_s30 }
  0xb8   : > { %v7289_v13 = vpop.permute.xlu1 %530  ;;  %v7291_v9 = vpop.permute.xlu0 %528 }
  0xb9   : > { %11972 = vst [vmem:[#allocation62_spill] sm:$0xff] %v7289_v13  ;;  %11973 = vst [vmem:[#allocation63_spill] sm:$0xff] %v7291_v9  ;;  %v7317_v9 = vsel %vm435_vm4, %v423_v33, %v424_v34  ;;  %v7357_v34 = vsel %vm435_vm4, %v426_v40, %v427_v45  ;;  %v7375_v40 = vsel %vm435_vm4, %v428_v46, %v429_v51 }
  0xba   : > { %790 = vrot.lane.b32.xlu1 %v7281_v61, %s6545_s30  ;;  %788 = vrot.lane.b32.xlu0 %v7285_v19, %s6545_s30 }
  0xbc   : > { %v7307_v21 = vpop.permute.xlu1 %582  ;;  %v7309_v13 = vpop.permute.xlu0 %580 }
  0xbd   : > { %11974 = vst [vmem:[#allocation64_spill] sm:$0xff] %v7307_v21  ;;  %11975 = vst [vmem:[#allocation65_spill] sm:$0xff] %v7309_v13 }
  0xbe   : > { %794 = vrot.lane.b32.xlu1 %v7299_v1, %s6545_s30  ;;  %792 = vrot.lane.b32.xlu0 %v7303_v14, %s6545_s30 }
  0xc0   : > { %v7325_v27 = vpop.permute.xlu1 %586  ;;  %v7327_v43 = vpop.permute.xlu0 %584 }
  0xc1   : > { %11976 = vst [vmem:[#allocation66_spill] sm:$0xff] %v7325_v27  ;;  %11977 = vst [vmem:[#allocation67_spill] sm:$0xff] %v7327_v43  ;;  %v7353_v27 = vsel %vm435_vm4, %v427_v45, %v428_v46  ;;  %v7393_v46 = vsel %vm435_vm4, %v430_v52, %v431_v57 }
  0xc2   : > { %798 = vrot.lane.b32.xlu1 %v7317_v9, %s6545_s30  ;;  %796 = vrot.lane.b32.xlu0 %v7321_v22, %s6545_s30 }
  0xc4   : > { %v7343_v33 = vpop.permute.xlu1 %590  ;;  %v7345_v37 = vpop.permute.xlu0 %588 }
  0xc5   : > { %11978 = vst [vmem:[#allocation68_spill] sm:$0xff] %v7343_v33  ;;  %11979 = vst [vmem:[#allocation69_spill] sm:$0xff] %v7345_v37  ;;  %v7371_v37 = vsel %vm435_vm4, %v429_v51, %v430_v52  ;;  %v7409_v52 = vsel %vm435_vm4, %v433_v63, %v11833_v0 }
  0xc6   : > { %802 = vrot.lane.b32.xlu1 %v7335_v56, %s6545_s30  ;;  %800 = vrot.lane.b32.xlu0 %v7339_v28, %s6545_s30 }
  0xc8   : > { %v7361_v39 = vpop.permute.xlu1 %594  ;;  %v7363_v33 = vpop.permute.xlu0 %592 }
  0xc9   : > { %11980 = vst [vmem:[#allocation70_spill] sm:$0xff] %v7361_v39  ;;  %11981 = vst [vmem:[#allocation71_spill] sm:$0xff] %v7363_v33  ;;  %v7389_v33 = vsel %vm435_vm4, %v431_v57, %v432_v58 }
  0xca   : > { %806 = vrot.lane.b32.xlu1 %v7353_v27, %s6545_s30  ;;  %804 = vrot.lane.b32.xlu0 %v7357_v34, %s6545_s30 }
  0xcc   : > { %v7379_v45 = vpop.permute.xlu1 %598  ;;  %v7381_v39 = vpop.permute.xlu0 %596 }
  0xcd   : > { %11982 = vst [vmem:[#allocation72_spill] sm:$0xff] %v7379_v45  ;;  %11983 = vst [vmem:[#allocation73_spill] sm:$0xff] %v7381_v39 }
  0xce   : > { %810 = vrot.lane.b32.xlu1 %v7371_v37, %s6545_s30  ;;  %808 = vrot.lane.b32.xlu0 %v7375_v40, %s6545_s30 }
  0xd0   : > { %v7397_v51 = vpop.permute.xlu1 %602  ;;  %v7399_v45 = vpop.permute.xlu0 %600 }
  0xd1   : > { %11984 = vst [vmem:[#allocation74_spill] sm:$0xff] %v7397_v51  ;;  %11985 = vst [vmem:[#allocation75_spill] sm:$0xff] %v7399_v45 }
  0xd2   : > { %814 = vrot.lane.b32.xlu1 %v7389_v33, %s6545_s30  ;;  %812 = vrot.lane.b32.xlu0 %v7393_v46, %s6545_s30 }
  0xd4   : > { %v7415_v57 = vpop.permute.xlu1 %606  ;;  %v7417_v51 = vpop.permute.xlu0 %604 }
  0xd5   : > { %11986 = vst [vmem:[#allocation76_spill] sm:$0xff] %v7415_v57  ;;  %11987 = vst [vmem:[#allocation77_spill] sm:$0xff] %v7417_v51 }
  0xd6   : > { %818 = vrot.lane.b32.xlu1 %v7409_v52, %s6545_s30  ;;  %816 = vrot.lane.b32.xlu0 %v7413_v11, %s6545_s30 }
  0xd8   : > { %v7423_v45 = vpop.permute.xlu1 %610  ;;  %v7425_v39 = vpop.permute.xlu0 %608 }
  0xd9   : > { %11988 = vst [vmem:[#allocation78_spill] sm:$0xff] %v7423_v45  ;;  %11989 = vst [vmem:[#allocation79_spill] sm:$0xff] %v7425_v39  ;;  %v12046_v39 = vld [vmem:[#allocation17_spill] sm:$0xff] }
  0xda   : > { %1196 = vrot.lane.b32.xlu1 %v6645_v17, %s6542_s27  ;;  %1194 = vrot.lane.b32.xlu0 %v6636_v15, %s6542_s27 }
  0xdc   : > { %v7431_v58 = vpop.permute.xlu1 %614  ;;  %v7433_v63 = vpop.permute.xlu0 %612 }
  0xdd   : > { %11990 = vst [vmem:[#allocation80_spill] sm:$0xff] %v7431_v58  ;;  %11991 = vst [vmem:[#allocation81_spill] sm:$0xff] %v7433_v63  ;;  %v12022_v58 = vld [vmem:[#allocation5_spill] sm:$0xff] }
  0xde   : > { %1200 = vrot.lane.b32.xlu1 %v6662_v23, %s6542_s27  ;;  %1198 = vrot.lane.b32.xlu0 %v6666_v24, %s6542_s27 }
  0xe0   : > { %v7439_v0 = vpop.permute.xlu1 %618  ;;  %v7441_v45 = vpop.permute.xlu0 %616 }
  0xe1   : > { %11992 = vst [vmem:[#allocation82_spill] sm:$0xff] %v7439_v0  ;;  %11993 = vst [vmem:[#allocation83_spill] sm:$0xff] %v7441_v45 }
  0xe2   : > { %1204 = vrot.lane.b32.xlu1 %v6682_v29, %s6542_s27  ;;  %1202 = vrot.lane.b32.xlu0 %v6686_v30, %s6542_s27 }
  0xe4   : > { %v7447_v15 = vpop.permute.xlu1 %622  ;;  %v7449_v17 = vpop.permute.xlu0 %620 }
  0xe5   : > { %11994 = vst [vmem:[#allocation84_spill] sm:$0xff] %v7447_v15  ;;  %11995 = vst [vmem:[#allocation85_spill] sm:$0xff] %v7449_v17 }
  0xe6   : > { %1208 = vrot.lane.b32.xlu1 %v6702_v35, %s6542_s27  ;;  %1206 = vrot.lane.b32.xlu0 %v6706_v36, %s6542_s27 }
  0xe8   : > { %v7455_v23 = vpop.permute.xlu1 %626  ;;  %v7457_v24 = vpop.permute.xlu0 %624 }
  0xe9   : > { %11996 = vst [vmem:[#allocation86_spill] sm:$0xff] %v7455_v23  ;;  %11997 = vst [vmem:[#allocation87_spill] sm:$0xff] %v7457_v24  ;;  %v7500_v23 = vld [vmem:[%s6603_s26 + $0xc8] sm:$0xff] }
  0xea   : > { %1212 = vrot.lane.b32.xlu1 %v6722_v41, %s6542_s27  ;;  %1210 = vrot.lane.b32.xlu0 %v6726_v42, %s6542_s27 }
  0xec   : > { %v7463_v29 = vpop.permute.xlu1 %678  ;;  %v7465_v30 = vpop.permute.xlu0 %676 }
  0xed   : > { %11998 = vst [vmem:[#allocation88_spill] sm:$0xff] %v7463_v29  ;;  %11999 = vst [vmem:[#allocation89_spill] sm:$0xff] %v7465_v30  ;;  %v7910_v30 = vld [vmem:[%s6603_s26 + $0x48] sm:$0xff] }
  0xee   : > { %1216 = vrot.lane.b32.xlu1 %v6742_v47, %s6542_s27  ;;  %1214 = vrot.lane.b32.xlu0 %v6746_v48, %s6542_s27  ;;  %12115 = vst [vmem:[#allocation129_spill] sm:$0xff] %v7910_v30 }
  0xf0   : > { %v7471_v35 = vpop.permute.xlu1 %682  ;;  %v7473_v36 = vpop.permute.xlu0 %680 }
  0xf1   : > { %12000 = vst [vmem:[#allocation90_spill] sm:$0xff] %v7471_v35  ;;  %12001 = vst [vmem:[#allocation91_spill] sm:$0xff] %v7473_v36  ;;  %v7872_v35 = vld [vmem:[%s6603_s26 + $0x20] sm:$0xff] }
  0xf2   : > { %1220 = vrot.lane.b32.xlu1 %v6762_v53, %s6542_s27  ;;  %1218 = vrot.lane.b32.xlu0 %v6766_v54, %s6542_s27  ;;  %12107 = vst [vmem:[#allocation122_spill] sm:$0xff] %v7872_v35  ;;  %v2203_v36 = vrot.slane %v7872_v35, 1 }
  0xf4   : > { %v7479_v41 = vpop.permute.xlu1 %686  ;;  %v7481_v42 = vpop.permute.xlu0 %684 }
  0xf5   : > { %12002 = vst [vmem:[#allocation92_spill] sm:$0xff] %v7479_v41  ;;  %12003 = vst [vmem:[#allocation93_spill] sm:$0xff] %v7481_v42 }
  0xf6   : > { %1224 = vrot.lane.b32.xlu1 %v6782_v59, %s6542_s27  ;;  %1222 = vrot.lane.b32.xlu0 %v6786_v60, %s6542_s27  ;;  %v7503_v59 = vld [vmem:[%s6603_s26 + $0xd0] sm:$0xff]  ;;  %v7510_v60 = vrot.slane %v7500_v23, 1 }
  0xf7   : > { %v11835_v57 = vrot.slane %v7503_v59, 2 }
  0xf8   : > { %v7487_v47 = vpop.permute.xlu1 %690  ;;  %v7489_v48 = vpop.permute.xlu0 %688 }
  0xf9   : > { %12004 = vst [vmem:[#allocation94_spill] sm:$0xff] %v7487_v47  ;;  %12005 = vst [vmem:[#allocation95_spill] sm:$0xff] %v7489_v48 }
  0xfa   : > { %1228 = vrot.lane.b32.xlu1 %v6802_v3, %s6542_s27  ;;  %1226 = vrot.lane.b32.xlu0 %v6806_v5, %s6542_s27  ;;  %v11834_v3 = vrot.slane %v7503_v59, 1 }
  0xfc   : > { %v7495_v53 = vpop.permute.xlu1 %694  ;;  %v7497_v54 = vpop.permute.xlu0 %692 }
  0xfd   : > { %12006 = vst [vmem:[#allocation96_spill] sm:$0xff] %v7495_v53  ;;  %12007 = vst [vmem:[#allocation97_spill] sm:$0xff] %v7497_v54  ;;  %v12084_v54 = vld [vmem:[#allocation46_spill] sm:$0xff] }
  0xfe   : > { %1232 = vrot.lane.b32.xlu1 %v6822_v16, %s6542_s27  ;;  %1230 = vrot.lane.b32.xlu0 %v6826_v18, %s6542_s27  ;;  %v7526_v16 = vsel %vm285_vm1, %v7510_v60, %v11834_v3  ;;  %v12010_v18 = vrot.slane %v6814_v12, 1 }
 0x100   : > { %v7513_v5 = vpop.permute.xlu1 %698  ;;  %v7515_v24 = vpop.permute.xlu0 %696  ;;  %v1000_v15 = vsel %vm285_vm1, %v12010_v18, %v7510_v60 }
 0x101   : > { %12008 = vst [vmem:[#allocation98_spill] sm:$0xff] %v7513_v5  ;;  %12009 = vst [vmem:[#allocation99_spill] sm:$0xff] %v7515_v24  ;;  %v12052_v5 = vld [vmem:[#allocation20_spill] sm:$0xff] }
 0x102   : > { %1236 = vrot.lane.b32.xlu1 %v6839_v26, %s6542_s27  ;;  %1234 = vrot.lane.b32.xlu0 %v6843_v31, %s6542_s27  ;;  %v12064_v24 = vld [vmem:[#allocation24_spill] sm:$0xff] }
 0x104   : > { %v7533_v17 = vpop.permute.xlu1 %702  ;;  %v7535_v0 = vpop.permute.xlu0 %700 }
 0x105   : > { %12011 = vst [vmem:[#allocation100_spill] sm:$0xff] %v7533_v17  ;;  %12012 = vst [vmem:[#allocation101_spill] sm:$0xff] %v7535_v0 }
 0x106   : > { %1240 = vrot.lane.b32.xlu1 %v7526_v16, %s6542_s27  ;;  %1238 = vrot.lane.b32.xlu0 %v1000_v15, %s6542_s27 }
 0x108   : > { %v7540_v26 = vpop.permute.xlu1 %706  ;;  %v7542_v31 = vpop.permute.xlu0 %704 }
 0x109   : > { %12013 = vst [vmem:[#allocation102_spill] sm:$0xff] %v7540_v26  ;;  %12014 = vst [vmem:[#allocation103_spill] sm:$0xff] %v7542_v31  ;;  %v12038_v26 = vld [vmem:[#allocation13_spill] sm:$0xff]  ;;  %v12042_v31 = vld [vmem:[#allocation15_spill] sm:$0xff] }
 0x10a   : > { %1292 = vrot.lane.b32.xlu1 %v6862_v50, %s6543_s28  ;;  %1290 = vrot.lane.b32.xlu0 %v6866_v55, %s6543_s28  ;;  %v12019_v50 = vld [vmem:[#allocation4_spill] sm:$0xff] }
 0x10c   : > { %v7548_v18 = vpop.permute.xlu1 %710  ;;  %v7550_v3 = vpop.permute.xlu0 %708 }
 0x10d   : > { %12015 = vst [vmem:[#allocation104_spill] sm:$0xff] %v7548_v18  ;;  %12016 = vst [vmem:[#allocation105_spill] sm:$0xff] %v7550_v3 }
 0x10e   : > { %1296 = vrot.lane.b32.xlu1 %v6876_v62, %s6543_s28  ;;  %1294 = vrot.lane.b32.xlu0 %v6880_v6, %s6543_s28  ;;  %v12023_v62 = vld [vmem:[#allocation6_spill] sm:$0xff] }
 0x110   : > { %v7556_v15 = vpop.permute.xlu1 %714  ;;  %v7558_v45 = vpop.permute.xlu0 %712 }
 0x111   : > { %12017 = vst [vmem:[#allocation106_spill] sm:$0xff] %v7556_v15  ;;  %12018 = vst [vmem:[#allocation107_spill] sm:$0xff] %v7558_v45  ;;  %v12026_v45 = vld [vmem:[#allocation7_spill] sm:$0xff] }
 0x112   : > { %1300 = vrot.lane.b32.xlu1 %v6890_v25, %s6543_s28  ;;  %1298 = vrot.lane.b32.xlu0 %v12019_v50, %s6543_s28  ;;  %v12027_v25 = vld [vmem:[#allocation8_spill] sm:$0xff] }
 0x114   : > { %v7564_v55 = vpop.permute.xlu1 %718  ;;  %v7566_v18 = vpop.permute.xlu0 %716 }
 0x115   : > { %12020 = vst [vmem:[#allocation4_spill] sm:$0xff] %v7564_v55  ;;  %12021 = vst [vmem:[#allocation108_spill] sm:$0xff] %v7566_v18  ;;  %v12030_v18 = vld [vmem:[#allocation9_spill] sm:$0xff] }
 0x116   : > { %1304 = vrot.lane.b32.xlu1 %v12022_v58, %s6543_s28  ;;  %1302 = vrot.lane.b32.xlu0 %v12023_v62, %s6543_s28  ;;  %v12031_v58 = vld [vmem:[#allocation10_spill] sm:$0xff] }
 0x118   : > { %v7572_v6 = vpop.permute.xlu1 %722  ;;  %v7574_v15 = vpop.permute.xlu0 %720 }
 0x119   : > { %12024 = vst [vmem:[#allocation5_spill] sm:$0xff] %v7572_v6  ;;  %12025 = vst [vmem:[#allocation6_spill] sm:$0xff] %v7574_v15  ;;  %v12034_v15 = vld [vmem:[#allocation11_spill] sm:$0xff] }
 0x11a   : > { %1308 = vrot.lane.b32.xlu1 %v12026_v45, %s6543_s28  ;;  %1306 = vrot.lane.b32.xlu0 %v12027_v25, %s6543_s28  ;;  %v12035_v45 = vld [vmem:[#allocation12_spill] sm:$0xff] }
 0x11c   : > { %v7580_v50 = vpop.permute.xlu1 %774  ;;  %v7582_v55 = vpop.permute.xlu0 %772 }
 0x11d   : > { %12028 = vst [vmem:[#allocation7_spill] sm:$0xff] %v7580_v50  ;;  %12029 = vst [vmem:[#allocation8_spill] sm:$0xff] %v7582_v55 }
 0x11e   : > { %1312 = vrot.lane.b32.xlu1 %v12030_v18, %s6543_s28  ;;  %1310 = vrot.lane.b32.xlu0 %v12031_v58, %s6543_s28  ;;  %v12039_v18 = vld [vmem:[#allocation14_spill] sm:$0xff] }
 0x120   : > { %v7588_v62 = vpop.permute.xlu1 %778  ;;  %v7590_v6 = vpop.permute.xlu0 %776 }
 0x121   : > { %12032 = vst [vmem:[#allocation9_spill] sm:$0xff] %v7588_v62  ;;  %12033 = vst [vmem:[#allocation10_spill] sm:$0xff] %v7590_v6 }
 0x122   : > { %1316 = vrot.lane.b32.xlu1 %v12034_v15, %s6543_s28  ;;  %1314 = vrot.lane.b32.xlu0 %v12035_v45, %s6543_s28  ;;  %v12043_v15 = vld [vmem:[#allocation16_spill] sm:$0xff] }
 0x124   : > { %v7596_v25 = vpop.permute.xlu1 %782  ;;  %v7598_v3 = vpop.permute.xlu0 %780 }
 0x125   : > { %12036 = vst [vmem:[#allocation11_spill] sm:$0xff] %v7596_v25  ;;  %12037 = vst [vmem:[#allocation12_spill] sm:$0xff] %v7598_v3  ;;  %v1096_v25 = vrot.slane %v7503_v59, 3  ;;  %v7761_v3 = vld [vmem:[%s6603_s26 + $0x10] sm:$0xff] }
 0x126   : > { %1320 = vrot.lane.b32.xlu1 %v12038_v26, %s6543_s28  ;;  %1318 = vrot.lane.b32.xlu0 %v12039_v18, %s6543_s28  ;;  %v12047_v26 = vld [vmem:[#allocation18_spill] sm:$0xff]  ;;  %v7621_v18 = vrot.slane %v7500_v23, 2  ;;  %v1121_v62 = vrot.slane %v7761_v3, 4 }
 0x128   : > { %v7604_v58 = vpop.permute.xlu1 %786  ;;  %v7606_v63 = vpop.permute.xlu0 %784  ;;  %12048 = vst [vmem:[#allocation17_spill] sm:$0xff] %v7621_v18 }
 0x129   : > { %12040 = vst [vmem:[#allocation13_spill] sm:$0xff] %v7604_v58  ;;  %12041 = vst [vmem:[#allocation14_spill] sm:$0xff] %v7606_v63  ;;  %v1095_v63 = vrot.slane %v7500_v23, 3 }
 0x12a   : > { %1324 = vrot.lane.b32.xlu1 %v12042_v31, %s6543_s28  ;;  %1322 = vrot.lane.b32.xlu0 %v12043_v15, %s6543_s28  ;;  %v12051_v15 = vld [vmem:[#allocation19_spill] sm:$0xff] }
 0x12c   : > { %v7612_v45 = vpop.permute.xlu1 %790  ;;  %v7614_v17 = vpop.permute.xlu0 %788 }
 0x12d   : > { %12044 = vst [vmem:[#allocation15_spill] sm:$0xff] %v7612_v45  ;;  %12045 = vst [vmem:[#allocation16_spill] sm:$0xff] %v7614_v17  ;;  %v12060_v45 = vld [vmem:[#allocation22_spill] sm:$0xff]  ;;  %v12081_v17 = vld [vmem:[#allocation41_spill] sm:$0xff] }
 0x12e   : > { %1328 = vrot.lane.b32.xlu1 %v12046_v39, %s6543_s28  ;;  %1326 = vrot.lane.b32.xlu0 %v12047_v26, %s6543_s28  ;;  %v7637_v39 = vsel %vm335_vm2, %v7621_v18, %v11835_v57  ;;  %v12054_v26 = vrot.slane %v6814_v12, 2  ;;  %v12059_v57 = vld [vmem:[#allocation21_spill] sm:$0xff] }
 0x12f   : > { %12053 = vst [vmem:[#allocation19_spill] sm:$0xff] %v7637_v39 }
 0x130   : > { %v7624_v0 = vpop.permute.xlu1 %794  ;;  %v7626_v31 = vpop.permute.xlu0 %792 }
 0x131   : > { %12049 = vst [vmem:[#allocation18_spill] sm:$0xff] %v7624_v0  ;;  %12050 = vst [vmem:[#allocation109_spill] sm:$0xff] %v7626_v31  ;;  %v1049_v0 = vsel %vm335_vm2, %v12054_v26, %v7621_v18  ;;  %v8036_v18 = vld [vmem:[%s6603_s26 + $0xb8] sm:$0xff] }
 0x132   : > { %1332 = vrot.lane.b32.xlu1 %v12051_v15, %s6543_s28  ;;  %1330 = vrot.lane.b32.xlu0 %v12052_v5, %s6543_s28 }
 0x134   : > { %v7644_v51 = vpop.permute.xlu1 %798  ;;  %v7646_v31 = vpop.permute.xlu0 %796 }
 0x135   : > { %12055 = vst [vmem:[#allocation20_spill] sm:$0xff] %v7644_v51  ;;  %12056 = vst [vmem:[#allocation110_spill] sm:$0xff] %v7646_v31  ;;  %v12063_v31 = vld [vmem:[#allocation23_spill] sm:$0xff] }
 0x136   : > { %1336 = vrot.lane.b32.xlu1 %v7637_v39, %s6543_s28  ;;  %1334 = vrot.lane.b32.xlu0 %v1049_v0, %s6543_s28 }
 0x138   : > { %v7651_v5 = vpop.permute.xlu1 %802  ;;  %v7653_v15 = vpop.permute.xlu0 %800 }
 0x139   : > { %12057 = vst [vmem:[#allocation111_spill] sm:$0xff] %v7651_v5  ;;  %12058 = vst [vmem:[#allocation112_spill] sm:$0xff] %v7653_v15  ;;  %v12067_v15 = vld [vmem:[#allocation25_spill] sm:$0xff] }
 0x13a   : > { %1388 = vrot.lane.b32.xlu1 %v12059_v57, %s6544_s29  ;;  %1386 = vrot.lane.b32.xlu0 %v12060_v45, %s6544_s29  ;;  %v12068_v57 = vld [vmem:[#allocation26_spill] sm:$0xff] }
 0x13c   : > { %v7659_v26 = vpop.permute.xlu1 %806  ;;  %v7661_v51 = vpop.permute.xlu0 %804 }
 0x13d   : > { %12061 = vst [vmem:[#allocation21_spill] sm:$0xff] %v7659_v26  ;;  %12062 = vst [vmem:[#allocation22_spill] sm:$0xff] %v7661_v51  ;;  %v12071_v51 = vld [vmem:[#allocation27_spill] sm:$0xff] }
 0x13e   : > { %1392 = vrot.lane.b32.xlu1 %v12063_v31, %s6544_s29  ;;  %1390 = vrot.lane.b32.xlu0 %v12064_v24, %s6544_s29  ;;  %v12072_v31 = vld [vmem:[#allocation28_spill] sm:$0xff] }
 0x140   : > { %v7667_v0 = vpop.permute.xlu1 %810  ;;  %v7669_v5 = vpop.permute.xlu0 %808 }
 0x141   : > { %12065 = vst [vmem:[#allocation23_spill] sm:$0xff] %v7667_v0  ;;  %12066 = vst [vmem:[#allocation24_spill] sm:$0xff] %v7669_v5  ;;  %v12075_v5 = vld [vmem:[#allocation29_spill] sm:$0xff] }
 0x142   : > { %1396 = vrot.lane.b32.xlu1 %v12067_v15, %s6544_s29  ;;  %1394 = vrot.lane.b32.xlu0 %v12068_v57, %s6544_s29  ;;  %v12076_v15 = vld [vmem:[#allocation30_spill] sm:$0xff] }
 0x144   : > { %v7675_v45 = vpop.permute.xlu1 %814  ;;  %v7677_v26 = vpop.permute.xlu0 %812 }
 0x145   : > { %12069 = vst [vmem:[#allocation25_spill] sm:$0xff] %v7675_v45  ;;  %12070 = vst [vmem:[#allocation26_spill] sm:$0xff] %v7677_v26  ;;  %v12077_v26 = vld [vmem:[#allocation33_spill] sm:$0xff] }
 0x146   : > { %1400 = vrot.lane.b32.xlu1 %v12071_v51, %s6544_s29  ;;  %1398 = vrot.lane.b32.xlu0 %v12072_v31, %s6544_s29  ;;  %v12078_v51 = vld [vmem:[#allocation34_spill] sm:$0xff]  ;;  %12089 = vst [vmem:[#allocation33_spill] sm:$0xff] %v7761_v3 }
 0x148   : > { %v7683_v24 = vpop.permute.xlu1 %818  ;;  %v7685_v0 = vpop.permute.xlu0 %816 }
 0x149   : > { %12073 = vst [vmem:[#allocation27_spill] sm:$0xff] %v7683_v24  ;;  %12074 = vst [vmem:[#allocation28_spill] sm:$0xff] %v7685_v0  ;;  %v12079_v0 = vld [vmem:[#allocation37_spill] sm:$0xff] }
 0x14a   : > { %1404 = vrot.lane.b32.xlu1 %v12075_v5, %s6544_s29  ;;  %1402 = vrot.lane.b32.xlu0 %v12076_v15, %s6544_s29  ;;  %v12080_v5 = vld [vmem:[#allocation38_spill] sm:$0xff] }
 0x14c   : > { %v7691_v57 = vpop.permute.xlu1 %1196  ;;  %v7693_v45 = vpop.permute.xlu0 %1194 }
 0x14e   : > { %1408 = vrot.lane.b32.xlu1 %v12077_v26, %s6544_s29  ;;  %1406 = vrot.lane.b32.xlu0 %v12078_v51, %s6544_s29  ;;  %v12082_v26 = vld [vmem:[#allocation42_spill] sm:$0xff] }
 0x150   : > { %v7699_v31 = vpop.permute.xlu1 %1200  ;;  %v7701_v24 = vpop.permute.xlu0 %1198 }
 0x152   : > { %1412 = vrot.lane.b32.xlu1 %v12079_v0, %s6544_s29  ;;  %1410 = vrot.lane.b32.xlu0 %v12080_v5, %s6544_s29  ;;  %v5839_v0 = vld [vmem:[%s11789_s1 + $0x28] sm:$0xf] }
 0x153   : > { %6189 = vmatprep.subr.msk.mxu0 %vm1727_vm5, %v5839_v0  ;;  %v12083_v5 = vld [vmem:[#allocation45_spill] sm:$0xff]  ;;  %6399 = vmatprep.subr.msk.mxu1 %vm1727_vm5, %v5839_v0 }
 0x154   : > { %v7707_v15 = vpop.permute.xlu1 %1204  ;;  %v7709_v53 = vpop.permute.xlu0 %1202  ;;  %6190 = vmatpush3.msk.msra.mxu0 %vm1727_vm5, %v5839_v0  ;;  %6402 = vmatpush3.msk.msra.mxu1 %vm1727_vm5, %v5839_v0  ;;  %v12088_v0 = vrot.slane %v6814_v12, 3 }
 0x156   : > { %1416 = vrot.lane.b32.xlu1 %v12081_v17, %s6544_s29  ;;  %1414 = vrot.lane.b32.xlu0 %v12082_v26, %s6544_s29  ;;  %v5838_v17 = vld [vmem:[%s11789_s1 + $0x20] sm:$0xff] }
 0x157   : > { %6191 = vmatprep.subr.mxu0 %v5838_v17  ;;  %6400 = vmatprep.subr.mxu1 %v5838_v17 }
 0x158   : > { %v7715_v51 = vpop.permute.xlu1 %1208  ;;  %v7717_v58 = vpop.permute.xlu0 %1206  ;;  %6192 = vmatpush3.msra.mxu0 %v5838_v17  ;;  %6403 = vmatpush3.msra.mxu1 %v5838_v17 }
 0x15a   : > { %1420 = vrot.lane.b32.xlu1 %v12083_v5, %s6544_s29  ;;  %1418 = vrot.lane.b32.xlu0 %v12084_v54, %s6544_s29  ;;  %v5837_v5 = vld [vmem:[%s11789_s1 + $0x18] sm:$0xff]  ;;  %v12085_v54 = vld [vmem:[#allocation49_spill] sm:$0xff] }
 0x15b   : > { %6193 = vmatprep.subr.mxu0 %v5837_v5  ;;  %6401 = vmatprep.subr.mxu1 %v5837_v5 }
 0x15c   : > { %v7732_v26 = vpop.permute.xlu1 %1212  ;;  %v7734_v47 = vpop.permute.xlu0 %1210  ;;  %6194 = vmatpush3.msra.mxu0 %v5837_v5  ;;  %6404 = vmatpush3.msra.mxu1 %v5837_v5 }
 0x15e   : > { %1424 = vrot.lane.b32.xlu1 %v12085_v54, %s6544_s29  ;;  %1422 = vrot.lane.b32.xlu0 %v7178_v8, %s6544_s29  ;;  %v1097_v8 = vsel %vm385_vm3, %v1095_v63, %v1096_v25  ;;  %v1098_v54 = vsel %vm385_vm3, %v12088_v0, %v1095_v63 }
 0x160   : > { %v7746_v48 = vpop.permute.xlu1 %1216  ;;  %v7748_v41 = vpop.permute.xlu0 %1214 }
 0x161   : > { %12086 = vst [vmem:[#allocation29_spill] sm:$0xff] %v7746_v48  ;;  %12087 = vst [vmem:[#allocation30_spill] sm:$0xff] %v7748_v41  ;;  %v8060_v48 = vld [vmem:[%s6603_s26 + $0xd8] sm:$0xff] }
 0x162   : > { %1428 = vrot.lane.b32.xlu1 %v7195_v38, %s6544_s29  ;;  %1426 = vrot.lane.b32.xlu0 %v7199_v49, %s6544_s29  ;;  %v1169_v38 = vsel %vm435_vm4, %v1121_v62, %v7217_v4  ;;  %12126 = vst [vmem:[#allocation140_spill] sm:$0xff] %v8060_v48 }
 0x164   : > { %v7764_v17 = vpop.permute.xlu1 %1220  ;;  %v7766_v42 = vpop.permute.xlu0 %1218 }
 0x165   : > { %12090 = vst [vmem:[#allocation34_spill] sm:$0xff] %v7764_v17  ;;  %12091 = vst [vmem:[#allocation37_spill] sm:$0xff] %v7766_v42 }
 0x166   : > { %1432 = vrot.lane.b32.xlu1 %v1097_v8, %s6544_s29  ;;  %1430 = vrot.lane.b32.xlu0 %v1098_v54, %s6544_s29  ;;  %v7866_v54 = vld [vmem:[%s6603_s26 + $0x28] sm:$0xff] }
 0x167   : > { %v2204_v6 = vrot.slane %v7866_v54, 1 }
 0x168   : > { %v7773_v49 = vpop.permute.xlu1 %1224  ;;  %v7775_v63 = vpop.permute.xlu0 %1222 }
 0x169   : > { %12092 = vst [vmem:[#allocation38_spill] sm:$0xff] %v7773_v49  ;;  %12093 = vst [vmem:[#allocation41_spill] sm:$0xff] %v7775_v63 }
 0x16a   : > { %1484 = vrot.lane.b32.xlu1 %v7229_v20, %s6545_s30  ;;  %1482 = vrot.lane.b32.xlu0 %v1169_v38, %s6545_s30  ;;  %v7869_v38 = vld [vmem:[%s6603_s26 + $0x30] sm:$0xff] }
 0x16b   : > { %v2205_v50 = vrot.slane %v7869_v38, 1 }
 0x16c   : > { %v7780_v25 = vpop.permute.xlu1 %1228  ;;  %v7782_v5 = vpop.permute.xlu0 %1226 }
 0x16d   : > { %12094 = vst [vmem:[#allocation42_spill] sm:$0xff] %v7780_v25  ;;  %12095 = vst [vmem:[#allocation45_spill] sm:$0xff] %v7782_v5  ;;  %v7964_v5 = vld [vmem:[%s6603_s26 + $0x78] sm:$0xff]  ;;  %v7982_v25 = vld [vmem:[%s6603_s26 + $0x88] sm:$0xff] }
 0x16e   : > { %1488 = vrot.lane.b32.xlu1 %v7245_v7, %s6545_s30  ;;  %1486 = vrot.lane.b32.xlu0 %v7249_v32, %s6545_s30 }
 0x170   : > { %v7788_v4 = vpop.permute.xlu1 %1232  ;;  %v7790_v62 = vpop.permute.xlu0 %1230 }
 0x171   : > { %12096 = vst [vmem:[#allocation46_spill] sm:$0xff] %v7788_v4  ;;  %12097 = vst [vmem:[#allocation49_spill] sm:$0xff] %v7790_v62 }
 0x172   : > { %1492 = vrot.lane.b32.xlu1 %v7263_v2, %s6545_s30  ;;  %1490 = vrot.lane.b32.xlu0 %v7267_v44, %s6545_s30 }
 0x174   : > { %v7796_v20 = vpop.permute.xlu1 %1236  ;;  %v7798_v8 = vpop.permute.xlu0 %1234 }
 0x175   : > { %12098 = vst [vmem:[#allocation113_spill] sm:$0xff] %v7796_v20  ;;  %12099 = vst [vmem:[#allocation114_spill] sm:$0xff] %v7798_v8  ;;  %v7928_v8 = vld [vmem:[%s6603_s26 + $0x58] sm:$0xff] }
 0x176   : > { %1496 = vrot.lane.b32.xlu1 %v7281_v61, %s6545_s30  ;;  %1494 = vrot.lane.b32.xlu0 %v7285_v19, %s6545_s30 }
 0x178   : > { %v7804_v7 = vpop.permute.xlu1 %1240  ;;  %v7806_v32 = vpop.permute.xlu0 %1238 }
 0x179   : > { %12100 = vst [vmem:[#allocation115_spill] sm:$0xff] %v7804_v7  ;;  %12101 = vst [vmem:[#allocation116_spill] sm:$0xff] %v7806_v32 }
 0x17a   : > { %1500 = vrot.lane.b32.xlu1 %v7299_v1, %s6545_s30  ;;  %1498 = vrot.lane.b32.xlu0 %v7303_v14, %s6545_s30 }
 0x17c   : > { %v7812_v2 = vpop.permute.xlu1 %1292  ;;  %v7814_v44 = vpop.permute.xlu0 %1290 }
 0x17e   : > { %1504 = vrot.lane.b32.xlu1 %v7317_v9, %s6545_s30  ;;  %1502 = vrot.lane.b32.xlu0 %v7321_v22, %s6545_s30 }
 0x180   : > { %v7820_v61 = vpop.permute.xlu1 %1296  ;;  %v7822_v19 = vpop.permute.xlu0 %1294 }
 0x182   : > { %1508 = vrot.lane.b32.xlu1 %v7335_v56, %s6545_s30  ;;  %1506 = vrot.lane.b32.xlu0 %v7339_v28, %s6545_s30  ;;  %v7843_v56 = vld [vmem:[%s11789_s1 + $0x10] sm:$0xf] }
 0x183   : > { %12102 = vst [vmem:[#allocation117_spill] sm:$0xff] %v7843_v56  ;;  %6231 = vmatprep.subr.msk.mxu1 %vm1727_vm5, %v7843_v56 }
 0x184   : > { %v7828_v1 = vpop.permute.xlu1 %1300  ;;  %v7830_v14 = vpop.permute.xlu0 %1298 }
 0x186   : > { %1512 = vrot.lane.b32.xlu1 %v7353_v27, %s6545_s30  ;;  %1510 = vrot.lane.b32.xlu0 %v7357_v34, %s6545_s30  ;;  %v1144_v34 = vrot.slane %v7500_v23, 4 }
 0x188   : > { %v7836_v9 = vpop.permute.xlu1 %1304  ;;  %v7838_v22 = vpop.permute.xlu0 %1302 }
 0x18a   : > { %1516 = vrot.lane.b32.xlu1 %v7371_v37, %s6545_s30  ;;  %1514 = vrot.lane.b32.xlu0 %v7375_v40, %s6545_s30  ;;  %v1145_v37 = vrot.slane %v7503_v59, 4 }
 0x18c   : > { %v7851_v27 = vpop.permute.xlu1 %1308  ;;  %v7853_v28 = vpop.permute.xlu0 %1306 }
 0x18d   : > { %12103 = vst [vmem:[#allocation118_spill] sm:$0xff] %v7851_v27  ;;  %12104 = vst [vmem:[#allocation119_spill] sm:$0xff] %v7853_v28 }
 0x18e   : > { %1520 = vrot.lane.b32.xlu1 %v7389_v33, %s6545_s30  ;;  %1518 = vrot.lane.b32.xlu0 %v7393_v46, %s6545_s30  ;;  %v1146_v33 = vsel %vm435_vm4, %v1144_v34, %v1145_v37  ;;  %v12108_v46 = vrot.slane %v6814_v12, 4  ;;  %v7895_v37 = vld [vmem:[%s6603_s26 + $0x40] sm:$0xff]  ;;  %v2250_v12 = vsel %vm285_vm1, %v2204_v6, %v2205_v50 }
 0x18f   : > { %12112 = vst [vmem:[#allocation126_spill] sm:$0xff] %v7895_v37  ;;  %v2207_v43 = vrot.slane %v7895_v37, 1 }
 0x190   : > { %v7861_v40 = vpop.permute.xlu1 %1312  ;;  %v7863_v0 = vpop.permute.xlu0 %1310  ;;  %v1147_v23 = vsel %vm435_vm4, %v12108_v46, %v1144_v34  ;;  %v2251_v34 = vsel %vm285_vm1, %v2203_v36, %v2204_v6 }
 0x191   : > { %12105 = vst [vmem:[#allocation120_spill] sm:$0xff] %v7861_v40  ;;  %12106 = vst [vmem:[#allocation121_spill] sm:$0xff] %v7863_v0 }
 0x192   : > { %1524 = vrot.lane.b32.xlu1 %v7409_v52, %s6545_s30  ;;  %1522 = vrot.lane.b32.xlu0 %v7413_v11, %s6545_s30  ;;  %v7892_v11 = vld [vmem:[%s6603_s26 + $0x38] sm:$0xff] }
 0x193   : > { %12111 = vst [vmem:[#allocation125_spill] sm:$0xff] %v7892_v11  ;;  %v2206_v46 = vrot.slane %v7892_v11, 1 }
 0x194   : > { %v7887_v52 = vpop.permute.xlu1 %1316  ;;  %v7889_v29 = vpop.permute.xlu0 %1314 }
 0x195   : > { %12109 = vst [vmem:[#allocation123_spill] sm:$0xff] %v7887_v52  ;;  %12110 = vst [vmem:[#allocation124_spill] sm:$0xff] %v7889_v29  ;;  %v2248_v36 = vsel %vm285_vm1, %v2206_v46, %v2207_v43  ;;  %v2249_v6 = vsel %vm285_vm1, %v2205_v50, %v2206_v46  ;;  %v2210_v46 = vrot.slane %v7928_v8, 1  ;;  %v8018_v52 = vld [vmem:[%s6603_s26 + $0xa8] sm:$0xff] }
 0x196   : > { %1528 = vrot.lane.b32.xlu1 %v1146_v33, %s6545_s30  ;;  %1526 = vrot.lane.b32.xlu0 %v1147_v23, %s6545_s30  ;;  %v7913_v33 = vld [vmem:[%s6603_s26 + $0x50] sm:$0xff]  ;;  %v2208_v23 = vrot.slane %v7910_v30, 1 }
 0x197   : > { %12116 = vst [vmem:[#allocation130_spill] sm:$0xff] %v7913_v33  ;;  %v2209_v13 = vrot.slane %v7913_v33, 1 }
 0x198   : > { %v7905_v55 = vpop.permute.xlu1 %1320  ;;  %v7907_v21 = vpop.permute.xlu0 %1318 }
 0x199   : > { %12113 = vst [vmem:[#allocation127_spill] sm:$0xff] %v7905_v55  ;;  %12114 = vst [vmem:[#allocation128_spill] sm:$0xff] %v7907_v21  ;;  %v2246_v50 = vsel %vm285_vm1, %v2208_v23, %v2209_v13  ;;  %v8000_v55 = vld [vmem:[%s6603_s26 + $0x98] sm:$0xff] }
 0x19a   : > { %2425 = vrot.lane.b32.xlu1 %v2250_v12, %s6542_s27  ;;  %2423 = vrot.lane.b32.xlu0 %v2251_v34, %s6542_s27  ;;  %v7931_v12 = vld [vmem:[%s6603_s26 + $0x60] sm:$0xff]  ;;  %v2247_v34 = vsel %vm285_vm1, %v2207_v43, %v2208_v23 }
 0x19b   : > { %12119 = vst [vmem:[#allocation133_spill] sm:$0xff] %v7931_v12  ;;  %v2211_v20 = vrot.slane %v7931_v12, 1 }
 0x19c   : > { %v7923_v32 = vpop.permute.xlu1 %1324  ;;  %v7925_v7 = vpop.permute.xlu0 %1322 }
 0x19d   : > { %12117 = vst [vmem:[#allocation131_spill] sm:$0xff] %v7923_v32  ;;  %12118 = vst [vmem:[#allocation132_spill] sm:$0xff] %v7925_v7  ;;  %v7946_v7 = vld [vmem:[%s6603_s26 + $0x68] sm:$0xff]  ;;  %v2244_v43 = vsel %vm285_vm1, %v2210_v46, %v2211_v20 }
 0x19e   : > { %2429 = vrot.lane.b32.xlu1 %v2248_v36, %s6542_s27  ;;  %2427 = vrot.lane.b32.xlu0 %v2249_v6, %s6542_s27  ;;  %v7949_v36 = vld [vmem:[%s6603_s26 + $0x70] sm:$0xff]  ;;  %v2245_v6 = vsel %vm285_vm1, %v2209_v13, %v2210_v46  ;;  %v2212_v23 = vrot.slane %v7946_v7, 1  ;;  %v2214_v46 = vrot.slane %v7964_v5, 1 }
 0x1a0   : > { %v7941_v62 = vpop.permute.xlu1 %1328  ;;  %v7943_v4 = vpop.permute.xlu0 %1326 }
 0x1a1   : > { %12120 = vst [vmem:[#allocation134_spill] sm:$0xff] %v7941_v62  ;;  %12121 = vst [vmem:[#allocation135_spill] sm:$0xff] %v7943_v4  ;;  %v2213_v4 = vrot.slane %v7949_v36, 1 }
 0x1a2   : > { %2433 = vrot.lane.b32.xlu1 %v2246_v50, %s6542_s27  ;;  %2431 = vrot.lane.b32.xlu0 %v2247_v34, %s6542_s27  ;;  %v7967_v50 = vld [vmem:[%s6603_s26 + $0x80] sm:$0xff]  ;;  %v2243_v34 = vsel %vm285_vm1, %v2211_v20, %v2212_v23 }
 0x1a3   : > { %v2242_v13 = vsel %vm285_vm1, %v2212_v23, %v2213_v4  ;;  %v2216_v23 = vrot.slane %v7982_v25, 1 }
 0x1a4   : > { %v7959_v62 = vpop.permute.xlu1 %1332  ;;  %v7961_v32 = vpop.permute.xlu0 %1330 }
 0x1a5   : > { %12122 = vst [vmem:[#allocation136_spill] sm:$0xff] %v7959_v62  ;;  %12123 = vst [vmem:[#allocation137_spill] sm:$0xff] %v7961_v32  ;;  %v2215_v32 = vrot.slane %v7967_v50, 1 }
 0x1a6   : > { %2437 = vrot.lane.b32.xlu1 %v2244_v43, %s6542_s27  ;;  %2435 = vrot.lane.b32.xlu0 %v2245_v6, %s6542_s27  ;;  %v7985_v43 = vld [vmem:[%s6603_s26 + $0x90] sm:$0xff]  ;;  %v2241_v6 = vsel %vm285_vm1, %v2213_v4, %v2214_v46 }
 0x1a7   : > { %v2240_v20 = vsel %vm285_vm1, %v2214_v46, %v2215_v32  ;;  %v2218_v46 = vrot.slane %v8000_v55, 1 }
 0x1a8   : > { %v7977_v62 = vpop.permute.xlu1 %1336  ;;  %v7979_v56 = vpop.permute.xlu0 %1334 }
 0x1a9   : > { %12124 = vst [vmem:[#allocation138_spill] sm:$0xff] %v7977_v62  ;;  %12125 = vst [vmem:[#allocation139_spill] sm:$0xff] %v7979_v56  ;;  %v2217_v56 = vrot.slane %v7985_v43, 1 }
 0x1aa   : > { %2441 = vrot.lane.b32.xlu1 %v2242_v13, %s6542_s27  ;;  %2439 = vrot.lane.b32.xlu0 %v2243_v34, %s6542_s27  ;;  %v8003_v13 = vld [vmem:[%s6603_s26 + $0xa0] sm:$0xff]  ;;  %v2239_v34 = vsel %vm285_vm1, %v2215_v32, %v2216_v23 }
 0x1ab   : > { %v2238_v4 = vsel %vm285_vm1, %v2216_v23, %v2217_v56  ;;  %v2219_v63 = vrot.slane %v8003_v13, 1  ;;  %v2220_v23 = vrot.slane %v8018_v52, 1 }
 0x1ac   : > { %v7995_v62 = vpop.permute.xlu1 %1388  ;;  %v7997_v21 = vpop.permute.xlu0 %1386 }
 0x1ad   : > { %v2236_v32 = vsel %vm285_vm1, %v2218_v46, %v2219_v63 }
 0x1ae   : > { %2445 = vrot.lane.b32.xlu1 %v2240_v20, %s6542_s27  ;;  %2443 = vrot.lane.b32.xlu0 %v2241_v6, %s6542_s27  ;;  %v8021_v20 = vld [vmem:[%s6603_s26 + $0xb0] sm:$0xff]  ;;  %v2237_v6 = vsel %vm285_vm1, %v2217_v56, %v2218_v46  ;;  %v2222_v46 = vrot.slane %v8036_v18, 1 }
 0x1af   : > { %v2221_v39 = vrot.slane %v8021_v20, 1 }
 0x1b0   : > { %v8013_v49 = vpop.permute.xlu1 %1392  ;;  %v8015_v29 = vpop.permute.xlu0 %1390 }
 0x1b1   : > { %v2234_v56 = vsel %vm285_vm1, %v2220_v23, %v2221_v39 }
 0x1b2   : > { %2449 = vrot.lane.b32.xlu1 %v2238_v4, %s6542_s27  ;;  %2447 = vrot.lane.b32.xlu0 %v2239_v34, %s6542_s27  ;;  %v8039_v4 = vld [vmem:[%s6603_s26 + $0xc0] sm:$0xff]  ;;  %v2235_v34 = vsel %vm285_vm1, %v2219_v63, %v2220_v23 }
 0x1b3   : > { %v2223_v0 = vrot.slane %v8039_v4, 1  ;;  %v8063_v63 = vld [vmem:[%s6603_s26 + $0xe0] sm:$0xff] }
 0x1b4   : > { %v8031_v42 = vpop.permute.xlu1 %1396  ;;  %v8033_v17 = vpop.permute.xlu0 %1394  ;;  %12127 = vst [vmem:[#allocation141_spill] sm:$0xff] %v8063_v63 }
 0x1b6   : > { %2453 = vrot.lane.b32.xlu1 %v2236_v32, %s6542_s27  ;;  %2451 = vrot.lane.b32.xlu0 %v2237_v6, %s6542_s27  ;;  %v2232_v32 = vsel %vm285_vm1, %v2222_v46, %v2223_v0  ;;  %v2233_v6 = vsel %vm285_vm1, %v2221_v39, %v2222_v46  ;;  %v2231_v39 = vsel %vm285_vm1, %v2223_v0, %v7510_v60  ;;  %v2254_v60 = vrot.slane %v7869_v38, 2 }
 0x1b7   : > { %v2252_v0 = vrot.slane %v7872_v35, 2 }
 0x1b8   : > { %v8049_v40 = vpop.permute.xlu1 %1400  ;;  %v8051_v41 = vpop.permute.xlu0 %1398 }
 0x1ba   : > { %2457 = vrot.lane.b32.xlu1 %v2234_v56, %s6542_s27  ;;  %2455 = vrot.lane.b32.xlu0 %v2235_v34, %s6542_s27  ;;  %v2226_v56 = vrot.slane %v8060_v48, 1  ;;  %v2227_v34 = vrot.slane %v8063_v63, 1  ;;  %v2253_v48 = vrot.slane %v7866_v54, 2 }
 0x1bc   : > { %v8065_v23 = vpop.permute.xlu1 %1404  ;;  %v8067_v28 = vpop.permute.xlu0 %1402 }
 0x1be   : > { %2461 = vrot.lane.b32.xlu1 %v2232_v32, %s6542_s27  ;;  %2459 = vrot.lane.b32.xlu0 %v2233_v6, %s6542_s27  ;;  %v2228_v32 = vsel %vm285_vm1, %v2226_v56, %v2227_v34  ;;  %v12130_v6 = vrot.slane %v7503_v59, 1  ;;  %v2255_v34 = vrot.slane %v7892_v11, 2 }
 0x1c0   : > { %v8076_v46 = vpop.permute.xlu1 %1408  ;;  %v8078_v27 = vpop.permute.xlu0 %1406  ;;  %v2229_v63 = vsel %vm285_vm1, %v12130_v6, %v2226_v56  ;;  %v2300_v56 = vsel %vm335_vm2, %v2252_v0, %v2253_v48  ;;  %v2258_v0 = vrot.slane %v7913_v33, 2 }
 0x1c1   : > { %12128 = vst [vmem:[#allocation142_spill] sm:$0xff] %v8076_v46  ;;  %12129 = vst [vmem:[#allocation143_spill] sm:$0xff] %v8078_v27 }
 0x1c2   : > { %2465 = vrot.lane.b32.xlu1 %v7526_v16, %s6542_s27  ;;  %2463 = vrot.lane.b32.xlu0 %v2231_v39, %s6542_s27  ;;  %v2299_v16 = vsel %vm335_vm2, %v2253_v48, %v2254_v60  ;;  %v2256_v39 = vrot.slane %v7895_v37, 2  ;;  %v2257_v48 = vrot.slane %v7910_v30, 2 }
 0x1c4   : > { %v8092_v27 = vpop.permute.xlu1 %1412  ;;  %v8094_v46 = vpop.permute.xlu0 %1410 }
 0x1c6   : > { %2469 = vrot.lane.b32.xlu1 %v2228_v32, %s6542_s27  ;;  %2467 = vrot.lane.b32.xlu0 %v2229_v63, %s6542_s27  ;;  %v2297_v63 = vsel %vm335_vm2, %v2255_v34, %v2256_v39  ;;  %v2298_v32 = vsel %vm335_vm2, %v2254_v60, %v2255_v34  ;;  %v2259_v60 = vrot.slane %v7928_v8, 2  ;;  %v2260_v34 = vrot.slane %v7931_v12, 2 }
 0x1c8   : > { %v8104_v6 = vpop.permute.xlu1 %1416  ;;  %v8106_v35 = vpop.permute.xlu0 %1414 }
 0x1ca   : > { %2521 = vrot.lane.b32.xlu1 %v2299_v16, %s6543_s28  ;;  %2519 = vrot.lane.b32.xlu0 %v2300_v56, %s6543_s28  ;;  %v2295_v16 = vsel %vm335_vm2, %v2257_v48, %v2258_v0  ;;  %v2296_v56 = vsel %vm335_vm2, %v2256_v39, %v2257_v48  ;;  %v2261_v39 = vrot.slane %v7946_v7, 2  ;;  %v2262_v48 = vrot.slane %v7949_v36, 2 }
 0x1cc   : > { %v8116_v11 = vpop.permute.xlu1 %1420  ;;  %v8118_v37 = vpop.permute.xlu0 %1418 }
 0x1ce   : > { %2525 = vrot.lane.b32.xlu1 %v2297_v63, %s6543_s28  ;;  %2523 = vrot.lane.b32.xlu0 %v2298_v32, %s6543_s28  ;;  %v2293_v63 = vsel %vm335_vm2, %v2259_v60, %v2260_v34  ;;  %v2294_v32 = vsel %vm335_vm2, %v2258_v0, %v2259_v60  ;;  %v2292_v0 = vsel %vm335_vm2, %v2260_v34, %v2261_v39 }
 0x1d0   : > { %v8128_v30 = vpop.permute.xlu1 %1424  ;;  %v8130_v33 = vpop.permute.xlu0 %1422 }
 0x1d1   : > { %12131 = vst [vmem:[#allocation144_spill] sm:$0xff] %v8128_v30  ;;  %12132 = vst [vmem:[#allocation145_spill] sm:$0xff] %v8130_v33  ;;  %v2291_v33 = vsel %vm335_vm2, %v2261_v39, %v2262_v48 }
 0x1d2   : > { %2529 = vrot.lane.b32.xlu1 %v2295_v16, %s6543_s28  ;;  %2527 = vrot.lane.b32.xlu0 %v2296_v56, %s6543_s28  ;;  %v2263_v16 = vrot.slane %v7964_v5, 2  ;;  %v2264_v56 = vrot.slane %v7967_v50, 2 }
 0x1d4   : > { %v8140_v12 = vpop.permute.xlu1 %1428  ;;  %v8142_v30 = vpop.permute.xlu0 %1426  ;;  %v2289_v34 = vsel %vm335_vm2, %v2263_v16, %v2264_v56  ;;  %v2290_v39 = vsel %vm335_vm2, %v2262_v48, %v2263_v16  ;;  %v8184_v16 = vld [vmem:[%s6603_s26 + $0x28] sm:$0xff] }
 0x1d5   : > { %12133 = vst [vmem:[#allocation146_spill] sm:$0xff] %v8140_v12  ;;  %12134 = vst [vmem:[#allocation147_spill] sm:$0xff] %v8142_v30  ;;  %v8157_v30 = vld [vmem:[%s6603_s26 + $0x18] sm:$0xff] }
 0x1d6   : > { %2533 = vrot.lane.b32.xlu1 %v2293_v63, %s6543_s28  ;;  %2531 = vrot.lane.b32.xlu0 %v2294_v32, %s6543_s28  ;;  %12137 = vst [vmem:[#allocation150_spill] sm:$0xff] %v8157_v30  ;;  %v1555_v63 = vsel %vm844_vm6, %v8157_v30, %v7691_v57  ;;  %v1554_v32 = vsel %vm844_vm6, %v7761_v3, %v7693_v45  ;;  %v2265_v45 = vrot.slane %v7982_v25, 2 }
 0x1d7   : > { %v1579_v57 = vsel %vm869_vm7, %v1555_v63, %v7812_v2  ;;  %v1578_v30 = vsel %vm869_vm7, %v1554_v32, %v7814_v44  ;;  %v1557_v44 = vsel %vm844_vm6, %v8184_v16, %v7699_v31  ;;  %v8190_v63 = vld [vmem:[%s6603_s26 + $0x20] sm:$0xff] }
 0x1d8   : > { %v8152_v60 = vpop.permute.xlu1 %1432  ;;  %v8154_v12 = vpop.permute.xlu0 %1430  ;;  %v1602_v3 = vsel %vm894_vm8, %v1578_v30, %v7997_v21  ;;  %v1556_v21 = vsel %vm844_vm6, %v8190_v63, %v7701_v24  ;;  %v2267_v30 = vrot.slane %v8000_v55, 2 }
 0x1d9   : > { %12135 = vst [vmem:[#allocation148_spill] sm:$0xff] %v8152_v60  ;;  %12136 = vst [vmem:[#allocation149_spill] sm:$0xff] %v8154_v12  ;;  %v1580_v31 = vsel %vm869_vm7, %v1556_v21, %v7822_v19 }
 0x1da   : > { %2537 = vrot.lane.b32.xlu1 %v2291_v33, %s6543_s28  ;;  %2535 = vrot.lane.b32.xlu0 %v2292_v0, %s6543_s28  ;;  %v2266_v33 = vrot.slane %v7985_v43, 2  ;;  %v1603_v0 = vsel %vm894_vm8, %v1579_v57, %v7995_v62  ;;  %v1581_v62 = vsel %vm869_vm7, %v1557_v44, %v7820_v61  ;;  %v1604_v32 = vsel %vm894_vm8, %v1580_v31, %v8015_v29 }
 0x1dc   : > { %v1485_v12 = vpop.permute.xlu1 %1484  ;;  %v1483_v60 = vpop.permute.xlu0 %1482  ;;  %v2287_v24 = vsel %vm335_vm2, %v2265_v45, %v2266_v33 }
 0x1dd   : > { %v1627_v48 = vsel %vm919_vm9, %v1603_v0, %v1485_v12  ;;  %v1626_v2 = vsel %vm919_vm9, %v1602_v3, %v1483_v60  ;;  %v2268_v3 = vrot.slane %v8003_v13, 2  ;;  %v2288_v12 = vsel %vm335_vm2, %v2264_v56, %v2265_v45  ;;  %v8222_v45 = vld [vmem:[%s6603_s26 + $0x30] sm:$0xff] }
 0x1de   : > { %2541 = vrot.lane.b32.xlu1 %v2289_v34, %s6543_s28  ;;  %2539 = vrot.lane.b32.xlu0 %v2290_v39, %s6543_s28  ;;  %v1605_v60 = vsel %vm894_vm8, %v1581_v62, %v8013_v49  ;;  %v8214_v39 = vld [vmem:[%s6603_s26 + $0x38] sm:$0xff]  ;;  %v1558_v29 = vsel %vm844_vm6, %v8222_v45, %v7709_v53  ;;  %v2269_v53 = vrot.slane %v8018_v52, 2  ;;  %v8248_v62 = vld [vmem:[%s6603_s26 + $0x48] sm:$0xff] }
 0x1df   : > { %6195 = vmatprep.mubr.msk.f32.mxu0 %vm1654_vm10, %v1626_v2  ;;  %v1559_v19 = vsel %vm844_vm6, %v8214_v39, %v7707_v15  ;;  %v2285_v49 = vsel %vm335_vm2, %v2267_v30, %v2268_v3  ;;  %v2286_v15 = vsel %vm335_vm2, %v2266_v33, %v2267_v30  ;;  %v2270_v2 = vrot.slane %v8021_v20, 2 }
 0x1e0   : > { %6196 = vmatmul.mubr.msk.f32.vlgmr.msra.gmra.mxu0 %vm1654_vm10, %v1627_v48  ;;  %v1489_v61 = vpop.permute.xlu1 %1488  ;;  %v1487_v34 = vpop.permute.xlu0 %1486  ;;  %v1583_v0 = vsel %vm869_vm7, %v1559_v19, %v7828_v1  ;;  %v1582_v48 = vsel %vm869_vm7, %v1558_v29, %v7830_v14  ;;  %v1561_v31 = vsel %vm844_vm6, %v8248_v62, %v7715_v51  ;;  %v8286_v29 = vld [vmem:[%s6603_s26 + $0x50] sm:$0xff] }
 0x1e1   : > { %v1629_v57 = vsel %vm919_vm9, %v1605_v60, %v1489_v61  ;;  %v1628_v56 = vsel %vm919_vm9, %v1604_v32, %v1487_v34  ;;  %v1607_v44 = vsel %vm894_vm8, %v1583_v0, %v8031_v42  ;;  %v1606_v21 = vsel %vm894_vm8, %v1582_v48, %v8033_v17  ;;  %v12139_v0 = vld [vmem:[#allocation119_spill] sm:$0xff] }
 0x1e2   : > { %2545 = vrot.lane.b32.xlu1 %v2287_v24, %s6543_s28  ;;  %2543 = vrot.lane.b32.xlu0 %v2288_v12, %s6543_s28  ;;  %v8254_v24 = vld [vmem:[%s6603_s26 + $0x40] sm:$0xff]  ;;  %v2271_v17 = vrot.slane %v8036_v18, 2  ;;  %v2272_v12 = vrot.slane %v8039_v4, 2  ;;  %v1585_v60 = vsel %vm869_vm7, %v1561_v31, %v7836_v9  ;;  %v2284_v32 = vsel %vm335_vm2, %v2268_v3, %v2269_v53 }
 0x1e3   : > { %6198 = vmatprep.mubr.msk.f32.mxu0 %vm1654_vm10, %v1628_v56  ;;  %v1560_v42 = vsel %vm844_vm6, %v8254_v24, %v7717_v58  ;;  %v2283_v58 = vsel %vm335_vm2, %v2269_v53, %v2270_v2  ;;  %v1609_v61 = vsel %vm894_vm8, %v1585_v60, %v8049_v40  ;;  %v8316_v31 = vld [vmem:[%s6603_s26 + $0x60] sm:$0xff]  ;;  %v12143_v60 = vld [vmem:[#allocation141_spill] sm:$0xff] }
 0x1e4   : > { %6199 = vmatmul.mubr.msk.f32.gmra.mxu0 %vm1654_vm10, %v1629_v57  ;;  %v1493_v33 = vpop.permute.xlu1 %1492  ;;  %v1491_v30 = vpop.permute.xlu0 %1490  ;;  %v1584_v51 = vsel %vm869_vm7, %v1560_v42, %v7838_v22  ;;  %v8278_v57 = vld [vmem:[%s6603_s26 + $0x58] sm:$0xff]  ;;  %v2281_v40 = vsel %vm335_vm2, %v2271_v17, %v2272_v12  ;;  %v12142_v42 = vld [vmem:[#allocation140_spill] sm:$0xff] }
 0x1e5   : > { %v1631_v1 = vsel %vm919_vm9, %v1607_v44, %v1493_v33  ;;  %v1630_v14 = vsel %vm919_vm9, %v1606_v21, %v1491_v30  ;;  %v1608_v34 = vsel %vm894_vm8, %v1584_v51, %v8051_v41  ;;  %v1563_v22 = vsel %vm844_vm6, %v8278_v57, %v7732_v26  ;;  %v8310_v30 = vld [vmem:[%s6603_s26 + $0x68] sm:$0xff] }
 0x1e6   : > { %2549 = vrot.lane.b32.xlu1 %v2285_v49, %s6543_s28  ;;  %2547 = vrot.lane.b32.xlu0 %v2286_v15, %s6543_s28  ;;  %v1562_v41 = vsel %vm844_vm6, %v8286_v29, %v7734_v47  ;;  %v2282_v26 = vsel %vm335_vm2, %v2270_v2, %v2271_v17  ;;  %v12138_v49 = vld [vmem:[#allocation118_spill] sm:$0xff]  ;;  %v2275_v17 = vrot.slane %v12142_v42, 2  ;;  %v2276_v51 = vrot.slane %v12143_v60, 2 }
 0x1e7   : > { %6201 = vmatprep.mubr.msk.f32.mxu0 %vm1654_vm10, %v1630_v14  ;;  %v1587_v15 = vsel %vm869_vm7, %v1563_v22, %v12138_v49  ;;  %v1586_v48 = vsel %vm869_vm7, %v1562_v41, %v12139_v0  ;;  %v12147_v22 = vld [vmem:[#allocation142_spill] sm:$0xff] }
 0x1e8   : > { %6202 = vmatmul.mubr.msk.f32.gmra.mxu0 %vm1654_vm10, %v1631_v1  ;;  %v1497_v9 = vpop.permute.xlu1 %1496  ;;  %v1495_v19 = vpop.permute.xlu0 %1494  ;;  %v1611_v47 = vsel %vm894_vm8, %v1587_v15, %v8065_v23  ;;  %v1610_v53 = vsel %vm894_vm8, %v1586_v48, %v8067_v28  ;;  %v12140_v1 = vld [vmem:[#allocation29_spill] sm:$0xff]  ;;  %v12141_v23 = vld [vmem:[#allocation30_spill] sm:$0xff] }
 0x1e9   : > { %v1633_v56 = vsel %vm919_vm9, %v1609_v61, %v1497_v9  ;;  %v1632_v3 = vsel %vm919_vm9, %v1608_v34, %v1495_v19  ;;  %v1565_v14 = vsel %vm844_vm6, %v8310_v30, %v12140_v1  ;;  %v1564_v28 = vsel %vm844_vm6, %v8316_v31, %v12141_v23  ;;  %v12145_v61 = vld [vmem:[#allocation121_spill] sm:$0xff]  ;;  %v8339_v49 = vld [vmem:[%s6603_s26 + $0x78] sm:$0xff] }
 0x1ea   : > { %2553 = vrot.lane.b32.xlu1 %v2283_v58, %s6543_s28  ;;  %2551 = vrot.lane.b32.xlu0 %v2284_v32, %s6543_s28  ;;  %v12144_v58 = vld [vmem:[#allocation120_spill] sm:$0xff]  ;;  %v1588_v34 = vsel %vm869_vm7, %v1564_v28, %v12145_v61  ;;  %v12146_v9 = vld [vmem:[#allocation17_spill] sm:$0xff]  ;;  %v12149_v15 = vld [vmem:[#allocation34_spill] sm:$0xff]  ;;  %v2303_v61 = vrot.slane %v7869_v38, 3 }
 0x1eb   : > { %6204 = vmatprep.mubr.msk.f32.mxu0 %vm1654_vm10, %v1632_v3  ;;  %v1589_v32 = vsel %vm869_vm7, %v1565_v14, %v12144_v58  ;;  %v2280_v19 = vsel %vm335_vm2, %v2272_v12, %v12146_v9  ;;  %v12148_v3 = vld [vmem:[#allocation143_spill] sm:$0xff]  ;;  %v1567_v0 = vsel %vm844_vm6, %v8339_v49, %v12149_v15  ;;  %v2302_v14 = vrot.slane %v7866_v54, 3  ;;  %v12154_v58 = vld [vmem:[#allocation124_spill] sm:$0xff]  ;;  %v12159_v15 = vld [vmem:[#allocation126_spill] sm:$0xff] }
 0x1ec   : > { %6205 = vmatmul.mubr.msk.f32.gmra.mxu0 %vm1654_vm10, %v1633_v56  ;;  %v1501_v44 = vpop.permute.xlu1 %1500  ;;  %v1499_v21 = vpop.permute.xlu0 %1498  ;;  %v1613_v56 = vsel %vm894_vm8, %v1589_v32, %v12147_v22  ;;  %v1612_v41 = vsel %vm894_vm8, %v1588_v34, %v12148_v3  ;;  %v12153_v23 = vld [vmem:[#allocation123_spill] sm:$0xff]  ;;  %v12155_v34 = vld [vmem:[#allocation122_spill] sm:$0xff] }
 0x1ed   : > { %v1635_v2 = vsel %vm919_vm9, %v1611_v47, %v1501_v44  ;;  %v1634_v33 = vsel %vm919_vm9, %v1610_v53, %v1499_v21  ;;  %v8347_v47 = vld [vmem:[%s6603_s26 + $0x70] sm:$0xff]  ;;  %v12151_v21 = vld [vmem:[#allocation19_spill] sm:$0xff]  ;;  %v1591_v28 = vsel %vm869_vm7, %v1567_v0, %v12153_v23  ;;  %v2305_v0 = vrot.slane %v12159_v15, 3 }
 0x1ee   : > { %2557 = vrot.lane.b32.xlu1 %v2281_v40, %s6543_s28  ;;  %2555 = vrot.lane.b32.xlu0 %v2282_v26, %s6543_s28  ;;  %v12150_v53 = vld [vmem:[#allocation37_spill] sm:$0xff]  ;;  %v12156_v3 = vld [vmem:[#allocation38_spill] sm:$0xff] }
 0x1ef   : > { %6207 = vmatprep.mubr.msk.f32.mxu0 %vm1654_vm10, %v1634_v33  ;;  %v1566_v44 = vsel %vm844_vm6, %v8347_v47, %v12150_v53  ;;  %v12152_v33 = vrot.slane %v7503_v59, 2  ;;  %v1615_v59 = vsel %vm894_vm8, %v1591_v28, %v8092_v27  ;;  %v12157_v27 = vld [vmem:[#allocation41_spill] sm:$0xff]  ;;  %v12161_v53 = vld [vmem:[#allocation128_spill] sm:$0xff] }
 0x1f0   : > { %6208 = vmatmul.mubr.msk.f32.gmra.mxu0 %vm1654_vm10, %v1635_v2  ;;  %v1505_v40 = vpop.permute.xlu1 %1504  ;;  %v1503_v26 = vpop.permute.xlu0 %1502  ;;  %v2277_v2 = vsel %vm335_vm2, %v2275_v17, %v2276_v51  ;;  %v1590_v32 = vsel %vm869_vm7, %v1566_v44, %v12154_v58  ;;  %v2301_v51 = vrot.slane %v12155_v34, 3  ;;  %v945_v58 = vld [vmem:[%s11789_s1 + $0x8] sm:$0xff]  ;;  %v12162_v34 = vld [vmem:[#allocation42_spill] sm:$0xff] }
 0x1f1   : > { %v1637_v48 = vsel %vm919_vm9, %v1613_v56, %v1505_v40  ;;  %v1636_v12 = vsel %vm919_vm9, %v1612_v41, %v1503_v26  ;;  %v2278_v1 = vsel %vm335_vm2, %v12152_v33, %v2275_v17  ;;  %v1614_v17 = vsel %vm894_vm8, %v1590_v32, %v8094_v46  ;;  %v8377_v56 = vld [vmem:[%s6603_s26 + $0x88] sm:$0xff]  ;;  %v8383_v41 = vld [vmem:[%s6603_s26 + $0x80] sm:$0xff]  ;;  %v8410_v32 = vld [vmem:[%s6603_s26 + $0x98] sm:$0xff] }
 0x1f2   : > { %2561 = vrot.lane.b32.xlu1 %v12151_v21, %s6543_s28  ;;  %2559 = vrot.lane.b32.xlu0 %v2280_v19, %s6543_s28  ;;  %v1569_v38 = vsel %vm844_vm6, %v8377_v56, %v12156_v3  ;;  %v1568_v46 = vsel %vm844_vm6, %v8383_v41, %v12157_v27  ;;  %v12158_v40 = vld [vmem:[#allocation125_spill] sm:$0xff]  ;;  %v2348_v21 = vsel %vm385_vm3, %v2302_v14, %v2303_v61  ;;  %v12166_v3 = vld [vmem:[#allocation130_spill] sm:$0xff]  ;;  %v12167_v27 = vld [vmem:[#allocation131_spill] sm:$0xff] }
 0x1f3   : > { %6210 = vmatprep.mubr.msk.f32.mxu0 %vm1654_vm10, %v1636_v12  ;;  %v2304_v26 = vrot.slane %v12158_v40, 3  ;;  %v1592_v44 = vsel %vm869_vm7, %v1568_v46, %v12161_v53  ;;  %v12168_v40 = vld [vmem:[#allocation132_spill] sm:$0xff] }
 0x1f4   : > { %6211 = vmatmul.mubr.msk.f32.gmra.mxu0 %vm1654_vm10, %v1637_v48  ;;  %v1509_v54 = vpop.permute.xlu1 %1508  ;;  %v1507_v9 = vpop.permute.xlu0 %1506  ;;  %v12160_v48 = vld [vmem:[#allocation127_spill] sm:$0xff] }
 0x1f5   : > { %v1639_v19 = vsel %vm919_vm9, %v1615_v59, %v1509_v54  ;;  %v1638_v22 = vsel %vm919_vm9, %v1614_v17, %v1507_v9  ;;  %v1593_v12 = vsel %vm869_vm7, %v1569_v38, %v12160_v48  ;;  %v12163_v59 = vld [vmem:[#allocation117_spill] sm:$0xff]  ;;  %v2346_v9 = vsel %vm385_vm3, %v2304_v26, %v2305_v0 }
 0x1f6   : > { %2565 = vrot.lane.b32.xlu1 %v2277_v2, %s6543_s28  ;;  %2563 = vrot.lane.b32.xlu0 %v2278_v1, %s6543_s28  ;;  %v2349_v2 = vsel %vm385_vm3, %v2301_v51, %v2302_v14  ;;  %v1617_v33 = vsel %vm894_vm8, %v1593_v12, %v8104_v6  ;;  %v1616_v1 = vsel %vm894_vm8, %v1592_v44, %v8106_v35  ;;  %v8420_v35 = vld [vmem:[%s6603_s26 + $0x90] sm:$0xff]  ;;  %v2307_v38 = vrot.slane %v12166_v3, 3 }
 0x1f7   : > { %6213 = vmatprep.mubr.msk.f32.mxu1 %vm1654_vm10, %v1638_v22  ;;  %v1571_v14 = vsel %vm844_vm6, %v8410_v32, %v12162_v34  ;;  %v12164_v17 = vld [vmem:[#allocation45_spill] sm:$0xff]  ;;  %v2347_v48 = vsel %vm385_vm3, %v2303_v61, %v2304_v26 }
 0x1f8   : > { %6214 = vmatmul.mubr.msk.f32.vlgmr.msra.gmra.mxu1 %vm1654_vm10, %v1639_v19  ;;  %v1513_v23 = vpop.permute.xlu1 %1512  ;;  %v1511_v28 = vpop.permute.xlu0 %1510  ;;  %v1570_v54 = vsel %vm844_vm6, %v8420_v35, %v12164_v17  ;;  %v12165_v19 = vld [vmem:[#allocation129_spill] sm:$0xff]  ;;  %v1595_v46 = vsel %vm869_vm7, %v1571_v14, %v12167_v27  ;;  %v2308_v17 = vrot.slane %v7928_v8, 3 }
 0x1f9   : > { %v1641_v51 = vsel %vm919_vm9, %v1617_v33, %v1513_v23  ;;  %v1640_v6 = vsel %vm919_vm9, %v1616_v1, %v1511_v28  ;;  %6232 = vmatpush3.msk.msra.mxu1 %vm1727_vm5, %v12163_v59  ;;  %v2306_v22 = vrot.slane %v12165_v19, 3  ;;  %v1594_v15 = vsel %vm869_vm7, %v1570_v54, %v12168_v40  ;;  %v8447_v33 = vld [vmem:[%s6603_s26 + $0xa8] sm:$0xff]  ;;  %v12169_v1 = vld [vmem:[#allocation46_spill] sm:$0xff] }
 0x1fa   : > { %2617 = vrot.lane.b32.xlu1 %v2348_v21, %s6544_s29  ;;  %2615 = vrot.lane.b32.xlu0 %v2349_v2, %s6544_s29  ;;  %v1619_v12 = vsel %vm894_vm8, %v1595_v46, %v8116_v11  ;;  %v1618_v53 = vsel %vm894_vm8, %v1594_v15, %v8118_v37  ;;  %v944_v2 = vld [vmem:[%s11789_s1] sm:$0xff]  ;;  %v1573_v61 = vsel %vm844_vm6, %v8447_v33, %v12169_v1  ;;  %v12170_v23 = vld [vmem:[#allocation49_spill] sm:$0xff]  ;;  %v2310_v1 = vrot.slane %v7946_v7, 3 }
 0x1fb   : > { %6216 = vmatprep.mubr.msk.f32.mxu1 %vm1654_vm10, %v1640_v6  ;;  %6233 = vmatprep.subr.mxu1 %v945_v58  ;;  %v8455_v37 = vld [vmem:[%s6603_s26 + $0xa0] sm:$0xff]  ;;  %v2344_v34 = vsel %vm385_vm3, %v2306_v22, %v2307_v38  ;;  %v2345_v14 = vsel %vm385_vm3, %v2305_v0, %v2306_v22  ;;  %v12173_v54 = vld [vmem:[#allocation133_spill] sm:$0xff] }
 0x1fc   : > { %6217 = vmatmul.mubr.msk.f32.gmra.mxu1 %vm1654_vm10, %v1641_v51  ;;  %v1517_v44 = vpop.permute.xlu1 %1516  ;;  %v1515_v21 = vpop.permute.xlu0 %1514  ;;  %v1572_v28 = vsel %vm844_vm6, %v8455_v37, %v12170_v23  ;;  %v12171_v51 = vld [vmem:[#allocation134_spill] sm:$0xff]  ;;  %v12172_v6 = vld [vmem:[#allocation135_spill] sm:$0xff]  ;;  %v12174_v19 = vld [vmem:[#allocation144_spill] sm:$0xff] }
 0x1fd   : > { %v1643_v26 = vsel %vm919_vm9, %v1619_v12, %v1517_v44  ;;  %v1642_v11 = vsel %vm919_vm9, %v1618_v53, %v1515_v21  ;;  %6234 = vmatpush3.msra.mxu1 %v945_v58  ;;  %v1597_v58 = vsel %vm869_vm7, %v1573_v61, %v12171_v51  ;;  %v1596_v59 = vsel %vm869_vm7, %v1572_v28, %v12172_v6  ;;  %v12175_v27 = vld [vmem:[#allocation145_spill] sm:$0xff]  ;;  %v12177_v44 = vld [vmem:[#allocation114_spill] sm:$0xff]  ;;  %v12178_v61 = vld [vmem:[#allocation136_spill] sm:$0xff] }
 0x1fe   : > { %2621 = vrot.lane.b32.xlu1 %v2346_v9, %s6544_s29  ;;  %2619 = vrot.lane.b32.xlu0 %v2347_v48, %s6544_s29  ;;  %v2309_v9 = vrot.slane %v12173_v54, 3  ;;  %v1621_v3 = vsel %vm894_vm8, %v1597_v58, %v12174_v19  ;;  %v1620_v0 = vsel %vm894_vm8, %v1596_v59, %v12175_v27  ;;  %v8481_v48 = vld [vmem:[%s6603_s26 + $0xb8] sm:$0xff]  ;;  %v12176_v8 = vld [vmem:[#allocation113_spill] sm:$0xff]  ;;  %v12183_v27 = vld [vmem:[#allocation116_spill] sm:$0xff] }
 0x1ff   : > { %6219 = vmatprep.mubr.msk.f32.mxu1 %vm1654_vm10, %v1642_v11  ;;  %6235 = vmatprep.subr.mxu1 %v944_v2  ;;  %v1575_v12 = vsel %vm844_vm6, %v8481_v48, %v12176_v8  ;;  %v8487_v53 = vld [vmem:[%s6603_s26 + $0xb0] sm:$0xff]  ;;  %v12181_v51 = vld [vmem:[#allocation147_spill] sm:$0xff]  ;;  %v8511_v59 = vld [vmem:[%s6603_s26 + $0xc8] sm:$0xff] }
 0x200   : > { %6220 = vmatmul.mubr.msk.f32.gmra.mxu1 %vm1654_vm10, %v1643_v26  ;;  %v1521_v22 = vpop.permute.xlu1 %1520  ;;  %v1519_v46 = vpop.permute.xlu0 %1518  ;;  %v1574_v21 = vsel %vm844_vm6, %v8487_v53, %v12177_v44  ;;  %v1599_v26 = vsel %vm869_vm7, %v1575_v12, %v12178_v61  ;;  %v12179_v11 = vld [vmem:[#allocation137_spill] sm:$0xff]  ;;  %v2342_v28 = vsel %vm385_vm3, %v2308_v17, %v2309_v9  ;;  %v12182_v54 = vld [vmem:[#allocation115_spill] sm:$0xff]  ;;  %v2312_v44 = vrot.slane %v7964_v5, 3 }
 0x201   : > { %v1645_v40 = vsel %vm919_vm9, %v1621_v3, %v1521_v22  ;;  %v1644_v15 = vsel %vm919_vm9, %v1620_v0, %v1519_v46  ;;  %6236 = vmatpush3.msra.mxu1 %v944_v2  ;;  %v2311_v2 = vrot.slane %v7949_v36, 3  ;;  %v1598_v23 = vsel %vm869_vm7, %v1574_v21, %v12179_v11  ;;  %v12185_v8 = vld [vmem:[#allocation139_spill] sm:$0xff] }
 0x202   : > { %2625 = vrot.lane.b32.xlu1 %v2344_v34, %s6544_s29  ;;  %2623 = vrot.lane.b32.xlu0 %v2345_v14, %s6544_s29  ;;  %v2343_v34 = vsel %vm385_vm3, %v2307_v38, %v2308_v17  ;;  %v12180_v14 = vld [vmem:[#allocation146_spill] sm:$0xff]  ;;  %v1622_v36 = vsel %vm894_vm8, %v1598_v23, %v12181_v51  ;;  %v1577_v19 = vsel %vm844_vm6, %v8511_v59, %v12182_v54  ;;  %v6461_v17 = vld [vmem:[%s6603_s26 + $0xc0] sm:$0xff]  ;;  %v2313_v21 = vrot.slane %v7967_v50, 3  ;;  %v12191_v54 = vld [vmem:[#allocation89_spill] sm:$0xff] }
 0x203   : > { %6222 = vmatprep.mubr.msk.f32.mxu1 %vm1654_vm10, %v1644_v15  ;;  %v1623_v7 = vsel %vm894_vm8, %v1599_v26, %v12180_v14  ;;  %v1576_v0 = vsel %vm844_vm6, %v6461_v17, %v12183_v27  ;;  %v2340_v22 = vsel %vm385_vm3, %v2310_v1, %v2311_v2  ;;  %v2341_v46 = vsel %vm385_vm3, %v2309_v9, %v2310_v1  ;;  %v6462_v61 = vld [vmem:[%s6603_s26] sm:$0xff]  ;;  %v12188_v1 = vld [vmem:[#allocation149_spill] sm:$0xff] }
 0x204   : > { %6223 = vmatmul.mubr.msk.f32.gmra.mxu1 %vm1654_vm10, %v1645_v40  ;;  %v1525_v58 = vpop.permute.xlu1 %1524  ;;  %v1523_v6 = vpop.permute.xlu0 %1522  ;;  %v12184_v40 = vld [vmem:[#allocation138_spill] sm:$0xff]  ;;  %v1600_v12 = vsel %vm869_vm7, %v1576_v0, %v12185_v8  ;;  %v12186_v26 = vld [vmem:[#allocation32_spill] sm:$0xff]  ;;  %v2314_v17 = vrot.slane %v7982_v25, 3  ;;  %v2315_v27 = vrot.slane %v7985_v43, 3  ;;  %v12192_v0 = vld [vmem:[#allocation31_spill] sm:$0xff] }
 0x205   : > { %v1647_v3 = vsel %vm919_vm9, %v1623_v7, %v1525_v58  ;;  %v1646_v38 = vsel %vm919_vm9, %v1622_v36, %v1523_v6  ;;  %v1601_v15 = vsel %vm869_vm7, %v1577_v19, %v12184_v40  ;;  %v845_v11 = vsel %vm844_vm6, %v6462_v61, %v12186_v26  ;;  %v12187_v23 = vld [vmem:[#allocation148_spill] sm:$0xff]  ;;  %v12189_v7 = vld [vmem:[#allocation65_spill] sm:$0xff] }
 0x206   : > { %2629 = vrot.lane.b32.xlu1 %v2342_v28, %s6544_s29  ;;  %2627 = vrot.lane.b32.xlu0 %v2343_v34, %s6544_s29  ;;  %v1625_v9 = vsel %vm894_vm8, %v1601_v15, %v12187_v23  ;;  %v1624_v28 = vsel %vm894_vm8, %v1600_v12, %v12188_v1  ;;  %v870_v51 = vsel %vm869_vm7, %v845_v11, %v12189_v7  ;;  %v6463_v36 = vld [vmem:[%s6603_s26 + $0x8] sm:$0xff]  ;;  %v12198_v11 = vld [vmem:[#allocation35_spill] sm:$0xff]  ;;  %v12199_v23 = vld [vmem:[#allocation150_spill] sm:$0xff] }
 0x207   : > { %6225 = vmatprep.mubr.msk.f32.mxu1 %vm1654_vm10, %v1646_v38  ;;  %v12190_v58 = vld [vmem:[#allocation36_spill] sm:$0xff]  ;;  %v895_v19 = vsel %vm894_vm8, %v870_v51, %v12191_v54  ;;  %v2339_v38 = vsel %vm385_vm3, %v2311_v2, %v2312_v44  ;;  %v12193_v40 = vld [vmem:[#allocation33_spill] sm:$0xff]  ;;  %v12196_v2 = vld [vmem:[#allocation67_spill] sm:$0xff]  ;;  %v2336_v7 = vsel %vm385_vm3, %v2314_v17, %v2315_v27  ;;  %v2337_v51 = vsel %vm385_vm3, %v2313_v21, %v2314_v17 }
 0x208   : > { %6226 = vmatmul.mubr.msk.f32.gmra.mxu1 %vm1654_vm10, %v1647_v3  ;;  %v1529_v34 = vpop.permute.xlu1 %1528  ;;  %v1527_v14 = vpop.permute.xlu0 %1526  ;;  %v846_v6 = vsel %vm844_vm6, %v6463_v36, %v12190_v58  ;;  %v2338_v3 = vsel %vm385_vm3, %v2312_v44, %v2313_v21  ;;  %v847_v15 = vsel %vm844_vm6, %v12193_v40, %v12192_v0  ;;  %v12194_v8 = vld [vmem:[#allocation64_spill] sm:$0xff]  ;;  %v12200_v1 = vld [vmem:[#allocation91_spill] sm:$0xff]  ;;  %v12205_v21 = vld [vmem:[#allocation69_spill] sm:$0xff] }
 0x209   : > { %v1649_v5 = vsel %vm919_vm9, %v1625_v9, %v1529_v34  ;;  %v1648_v50 = vsel %vm919_vm9, %v1624_v28, %v1527_v14  ;;  %v872_v25 = vsel %vm869_vm7, %v847_v15, %v12196_v2  ;;  %v12197_v43 = vld [vmem:[#allocation88_spill] sm:$0xff]  ;;  %v848_v9 = vsel %vm844_vm6, %v12199_v23, %v12198_v11  ;;  %v12201_v34 = vld [vmem:[#allocation7_spill] sm:$0xff]  ;;  %v12208_v15 = vld [vmem:[#allocation93_spill] sm:$0xff] }
 0x20a   : > { %2633 = vrot.lane.b32.xlu1 %v2340_v22, %s6544_s29  ;;  %2631 = vrot.lane.b32.xlu0 %v2341_v46, %s6544_s29  ;;  %v871_v22 = vsel %vm869_vm7, %v846_v6, %v12194_v8  ;;  %v12195_v46 = vld [vmem:[#allocation8_spill] sm:$0xff]  ;;  %v897_v28 = vsel %vm894_vm8, %v872_v25, %v12200_v1  ;;  %v12203_v6 = vld [vmem:[#allocation66_spill] sm:$0xff]  ;;  %v2318_v25 = vrot.slane %v8018_v52, 3 }
 0x20b   : > { %6228 = vmatprep.mubr.msk.f32.mxu1 %vm1654_vm10, %v1648_v50  ;;  %v920_v12 = vsel %vm919_vm9, %v895_v19, %v12195_v46  ;;  %v896_v44 = vsel %vm894_vm8, %v871_v22, %v12197_v43  ;;  %v2317_v50 = vrot.slane %v8003_v13, 3  ;;  %v12202_v36 = vld [vmem:[#allocation40_spill] sm:$0xff]  ;;  %v873_v54 = vsel %vm869_vm7, %v848_v9, %v12203_v6  ;;  %v12204_v19 = vld [vmem:[#allocation10_spill] sm:$0xff]  ;;  %v12209_v22 = vld [vmem:[#allocation9_spill] sm:$0xff] }
 0x20c   : > { %6229 = vmatmul.mubr.msk.f32.gmra.mxu1 %vm1654_vm10, %v1649_v5  ;;  %v8568_v61 = vpop.permute.xlu1 %2425  ;;  %v8570_v26 = vpop.permute.xlu0 %2423  ;;  %v921_v14 = vsel %vm919_vm9, %v896_v44, %v12201_v34  ;;  %v2316_v5 = vrot.slane %v8000_v55, 3  ;;  %v849_v58 = vsel %vm844_vm6, %v8190_v63, %v12202_v36  ;;  %v12206_v13 = vld [vmem:[#allocation90_spill] sm:$0xff]  ;;  %v12207_v63 = vld [vmem:[#allocation39_spill] sm:$0xff]  ;;  %v12210_v43 = vld [vmem:[#allocation44_spill] sm:$0xff] }
 0x20d   : > { %6237 = vmatprep.mubr.msk.f32.mxu1 %vm1654_vm10, %v920_v12  ;;  %v874_v55 = vsel %vm869_vm7, %v849_v58, %v12205_v21  ;;  %v898_v17 = vsel %vm894_vm8, %v873_v54, %v12206_v13  ;;  %v850_v40 = vsel %vm844_vm6, %v8184_v16, %v12207_v63  ;;  %v2319_v16 = vrot.slane %v8021_v20, 3  ;;  %v12211_v11 = vld [vmem:[#allocation68_spill] sm:$0xff]  ;;  %v12217_v36 = vld [vmem:[#allocation11_spill] sm:$0xff] }
 0x20e   : > { %2637 = vrot.lane.b32.xlu1 %v2338_v3, %s6544_s29  ;;  %2635 = vrot.lane.b32.xlu0 %v2339_v38, %s6544_s29  ;;  %v922_v3 = vsel %vm919_vm9, %v897_v28, %v12204_v19  ;;  %v899_v8 = vsel %vm894_vm8, %v874_v55, %v12208_v15  ;;  %v923_v46 = vsel %vm919_vm9, %v898_v17, %v12209_v22  ;;  %v12212_v9 = vld [vmem:[#allocation12_spill] sm:$0xff]  ;;  %v2320_v19 = vrot.slane %v8036_v18, 3  ;;  %v12219_v55 = vld [vmem:[#allocation70_spill] sm:$0xff]  ;;  %v12221_v18 = vld [vmem:[#allocation73_spill] sm:$0xff] }
 0x20f   : > { %v2334_v12 = vsel %vm385_vm3, %v2316_v5, %v2317_v50  ;;  %v2335_v2 = vsel %vm385_vm3, %v2315_v27, %v2316_v5  ;;  %v851_v44 = vsel %vm844_vm6, %v8222_v45, %v12210_v43  ;;  %v875_v23 = vsel %vm869_vm7, %v850_v40, %v12211_v11  ;;  %v12213_v27 = vld [vmem:[#allocation71_spill] sm:$0xff]  ;;  %v12214_v20 = vld [vmem:[#allocation92_spill] sm:$0xff]  ;;  %v12220_v17 = vld [vmem:[#allocation14_spill] sm:$0xff] }
 0x210   : > { %6238 = vmatmul.mubr.msk.f32.vlgmr.msra.gmra.mxu1 %vm1654_vm10, %v921_v14  ;;  %v8600_v38 = vpop.permute.xlu1 %2429  ;;  %v8602_v0 = vpop.permute.xlu0 %2427  ;;  %v924_v1 = vsel %vm919_vm9, %v899_v8, %v12212_v9  ;;  %v876_v52 = vsel %vm869_vm7, %v851_v44, %v12213_v27  ;;  %v900_v14 = vsel %vm894_vm8, %v875_v23, %v12214_v20  ;;  %v12215_v45 = vld [vmem:[#allocation43_spill] sm:$0xff]  ;;  %v2332_v6 = vsel %vm385_vm3, %v2318_v25, %v2319_v16  ;;  %v12222_v15 = vld [vmem:[#allocation94_spill] sm:$0xff]  ;;  %v12223_v22 = vld [vmem:[#allocation97_spill] sm:$0xff] }
 0x211   : > { %6240 = vmatprep.mubr.msk.f32.mxu1 %vm1654_vm10, %v922_v3  ;;  %v925_v58 = vsel %vm919_vm9, %v900_v14, %v12217_v36  ;;  %v2333_v54 = vsel %vm385_vm3, %v2317_v50, %v2318_v25  ;;  %v12218_v3 = vld [vmem:[#allocation48_spill] sm:$0xff]  ;;  %v5916_v25 = vld [vmem:[%s11789_s1 + $0x38] sm:$0xff]  ;;  %v2331_v44 = vsel %vm385_vm3, %v2319_v16, %v2320_v19  ;;  %v2322_v11 = vrot.slane %v8511_v59, 3  ;;  %v8691_v23 = vld [vmem:[%s6603_s26 + $0xd0] sm:$0xff] }
 0x212   : > { %2641 = vrot.lane.b32.xlu1 %v2336_v7, %s6544_s29  ;;  %2639 = vrot.lane.b32.xlu0 %v2337_v51, %s6544_s29  ;;  %v852_v7 = vsel %vm844_vm6, %v8214_v39, %v12215_v45  ;;  %v12216_v51 = vld [vmem:[#allocation95_spill] sm:$0xff]  ;;  %v2321_v39 = vrot.slane %v8039_v4, 3  ;;  %v853_v21 = vsel %vm844_vm6, %v8254_v24, %v12218_v3  ;;  %v2323_v9 = vrot.slane %v8691_v23, 3  ;;  %v12229_v45 = vld [vmem:[#allocation50_spill] sm:$0xff] }
 0x213   : > { %v901_v5 = vsel %vm894_vm8, %v876_v52, %v12216_v51  ;;  %v877_v13 = vsel %vm869_vm7, %v852_v7, %v12219_v55  ;;  %v878_v4 = vsel %vm869_vm7, %v853_v21, %v12221_v18  ;;  %v5917_v24 = vld [vmem:[%s11789_s1 + $0x40] sm:$0xf]  ;;  %v856_v7 = vsel %vm844_vm6, %v8278_v57, %v12229_v45 }
 0x214   : > { %6241 = vmatmul.mubr.msk.f32.gmra.mxu1 %vm1654_vm10, %v923_v46  ;;  %v8632_v28 = vpop.permute.xlu1 %2433  ;;  %v8634_v34 = vpop.permute.xlu0 %2431  ;;  %v926_v63 = vsel %vm919_vm9, %v901_v5, %v12220_v17  ;;  %v902_v8 = vsel %vm894_vm8, %v877_v13, %v12222_v15  ;;  %v903_v46 = vsel %vm894_vm8, %v878_v4, %v12223_v22  ;;  %v2330_v43 = vsel %vm385_vm3, %v2320_v19, %v2321_v39  ;;  %v12226_v52 = vld [vmem:[#allocation16_spill] sm:$0xff]  ;;  %v12230_v51 = vld [vmem:[#allocation51_spill] sm:$0xff]  ;;  %v12236_v4 = vld [vmem:[#allocation53_spill] sm:$0xff] }
 0x215   : > { %6243 = vmatprep.mubr.msk.f32.mxu1 %vm1654_vm10, %v924_v1  ;;  %6273 = vmatprep.subr.msk.mxu0 %vm1727_vm5, %v5917_v24  ;;  %v12225_v1 = vld [vmem:[#allocation47_spill] sm:$0xff]  ;;  %v928_v20 = vsel %vm919_vm9, %v903_v46, %v12226_v52  ;;  %v855_v5 = vsel %vm844_vm6, %v8286_v29, %v12230_v51  ;;  %v12233_v19 = vld [vmem:[#allocation96_spill] sm:$0xff]  ;;  %v2324_v29 = vrot.slane %v12142_v42, 3  ;;  %v2325_v3 = vrot.slane %v12143_v60, 3  ;;  %v12237_v42 = vld [vmem:[#allocation74_spill] sm:$0xff] }
 0x216   : > { %2645 = vrot.lane.b32.xlu1 %v2334_v12, %s6544_s29  ;;  %2643 = vrot.lane.b32.xlu0 %v2335_v2, %s6544_s29  ;;  %v12224_v12 = vld [vmem:[#allocation13_spill] sm:$0xff]  ;;  %v854_v27 = vsel %vm844_vm6, %v8248_v62, %v12225_v1  ;;  %v12231_v62 = vld [vmem:[#allocation72_spill] sm:$0xff]  ;;  %v12234_v21 = vld [vmem:[#allocation99_spill] sm:$0xff]  ;;  %v2329_v18 = vsel %vm385_vm3, %v2321_v39, %v2322_v11  ;;  %v857_v15 = vsel %vm844_vm6, %v8316_v31, %v12236_v4 }
 0x217   : > { %v927_v2 = vsel %vm919_vm9, %v902_v8, %v12224_v12  ;;  %6274 = vmatpush3.msk.msra.mxu0 %vm1727_vm5, %v5917_v24  ;;  %v879_v36 = vsel %vm869_vm7, %v854_v27, %v12231_v62  ;;  %v12235_v13 = vld [vmem:[#allocation15_spill] sm:$0xff]  ;;  %v881_v60 = vsel %vm869_vm7, %v856_v7, %v12237_v42  ;;  %v12238_v8 = vld [vmem:[#allocation109_spill] sm:$0xff]  ;;  %v12241_v39 = vld [vmem:[#allocation52_spill] sm:$0xff]  ;;  %v2327_v52 = vsel %vm385_vm3, %v2323_v9, %v2324_v29 }
 0x218   : > { %6244 = vmatmul.mubr.msk.f32.gmra.mxu1 %vm1654_vm10, %v925_v58  ;;  %v8664_v40 = vpop.permute.xlu1 %2437  ;;  %v8666_v50 = vpop.permute.xlu0 %2435  ;;  %6275 = vmatprep.subr.mxu0 %v5916_v25  ;;  %v5915_v58 = vld [vmem:[%s11789_s1 + $0x30] sm:$0xff]  ;;  %v904_v57 = vsel %vm894_vm8, %v879_v36, %v12233_v19  ;;  %v858_v31 = vsel %vm844_vm6, %v8310_v30, %v12241_v39  ;;  %v2326_v30 = vsel %vm385_vm3, %v2324_v29, %v2325_v3  ;;  %v12246_v36 = vld [vmem:[#allocation55_spill] sm:$0xff]  ;;  %v12255_v4 = vld [vmem:[#allocation20_spill] sm:$0xff] }
 0x219   : > { %6246 = vmatprep.mubr.msk.f32.mxu1 %vm1654_vm10, %v926_v63  ;;  %v929_v17 = vsel %vm919_vm9, %v904_v57, %v12235_v13  ;;  %v2328_v63 = vsel %vm385_vm3, %v2322_v11, %v2323_v9  ;;  %6276 = vmatpush3.msra.mxu0 %v5916_v25  ;;  %v12242_v12 = vld [vmem:[#allocation77_spill] sm:$0xff]  ;;  %v12243_v25 = vld [vmem:[#allocation98_spill] sm:$0xff]  ;;  %v12251_v3 = vld [vmem:[#allocation79_spill] sm:$0xff] }
 0x21a   : > { %2649 = vrot.lane.b32.xlu1 %v2332_v6, %s6544_s29  ;;  %2647 = vrot.lane.b32.xlu0 %v2333_v54, %s6544_s29  ;;  %v12232_v6 = vld [vmem:[#allocation75_spill] sm:$0xff]  ;;  %v12245_v1 = vld [vmem:[#allocation18_spill] sm:$0xff] }
 0x21b   : > { %v880_v54 = vsel %vm869_vm7, %v855_v5, %v12232_v6  ;;  %6277 = vmatprep.subr.mxu0 %v5915_v58  ;;  %v8769_v7 = vld [vmem:[%s6603_s26 + $0x30] sm:$0xff]  ;;  %v8773_v5 = vld [vmem:[%s6603_s26 + $0x20] sm:$0xff] }
 0x21c   : > { %6247 = vmatmul.mubr.msk.f32.gmra.mxu1 %vm1654_vm10, %v927_v2  ;;  %v8701_v14 = vpop.permute.xlu1 %2441  ;;  %v8703_v16 = vpop.permute.xlu0 %2439  ;;  %v905_v55 = vsel %vm894_vm8, %v880_v54, %v12234_v21  ;;  %v882_v2 = vsel %vm869_vm7, %v857_v15, %v12242_v12  ;;  %6278 = vmatpush3.msra.mxu0 %v5915_v58  ;;  %v2352_v51 = vrot.slane %v8769_v7, 4  ;;  %v2350_v62 = vrot.slane %v8773_v5, 4  ;;  %v12247_v6 = vld [vmem:[#allocation76_spill] sm:$0xff]  ;;  %v12248_v54 = vld [vmem:[#allocation110_spill] sm:$0xff] }
 0x21d   : > { %12227 = vst [vmem:[#allocation118_spill] sm:$0xff] %v8701_v14  ;;  %12228 = vst [vmem:[#allocation119_spill] sm:$0xff] %v8703_v16  ;;  %6249 = vmatprep.mubr.msk.f32.mxu1 %vm1654_vm10, %v928_v20  ;;  %v930_v24 = vsel %vm919_vm9, %v905_v55, %v12238_v8  ;;  %v8765_v20 = vld [vmem:[%s6603_s26 + $0x28] sm:$0xff]  ;;  %v859_v58 = vsel %vm844_vm6, %v8347_v47, %v12246_v36  ;;  %v883_v9 = vsel %vm869_vm7, %v858_v31, %v12247_v6  ;;  %v12253_v13 = vld [vmem:[#allocation54_spill] sm:$0xff] }
 0x21e   : > { %2653 = vrot.lane.b32.xlu1 %v2330_v43, %s6544_s29  ;;  %2651 = vrot.lane.b32.xlu0 %v2331_v44, %s6544_s29  ;;  %v906_v43 = vsel %vm894_vm8, %v881_v60, %v12243_v25  ;;  %v12244_v44 = vld [vmem:[#allocation101_spill] sm:$0xff]  ;;  %v2351_v45 = vrot.slane %v8765_v20, 4  ;;  %v884_v21 = vsel %vm869_vm7, %v859_v58, %v12251_v3  ;;  %v12252_v55 = vld [vmem:[#allocation100_spill] sm:$0xff]  ;;  %v8807_v8 = vld [vmem:[%s6603_s26 + $0x38] sm:$0xff] }
 0x21f   : > { %v907_v11 = vsel %vm894_vm8, %v882_v2, %v12244_v44  ;;  %v931_v27 = vsel %vm919_vm9, %v906_v43, %v12245_v1  ;;  %v908_v47 = vsel %vm894_vm8, %v883_v9, %v12252_v55  ;;  %v12256_v31 = vld [vmem:[#allocation57_spill] sm:$0xff]  ;;  %v12257_v2 = vld [vmem:[#allocation78_spill] sm:$0xff]  ;;  %v12258_v43 = vld [vmem:[#allocation112_spill] sm:$0xff] }
 0x220   : > { %6250 = vmatmul.mubr.msk.f32.gmra.mxu1 %vm1654_vm10, %v929_v17  ;;  %v8742_v22 = vpop.permute.xlu1 %2445  ;;  %v8744_v46 = vpop.permute.xlu0 %2443  ;;  %v932_v19 = vsel %vm919_vm9, %v907_v11, %v12248_v54  ;;  %v860_v17 = vsel %vm844_vm6, %v8339_v49, %v12253_v13  ;;  %v933_v15 = vsel %vm919_vm9, %v908_v47, %v12255_v4  ;;  %v2397_v42 = vsel %vm435_vm4, %v2351_v45, %v2352_v51  ;;  %v12264_v36 = vld [vmem:[#allocation105_spill] sm:$0xff]  ;;  %v12265_v6 = vld [vmem:[#allocation111_spill] sm:$0xff] }
 0x221   : > { %12239 = vst [vmem:[#allocation29_spill] sm:$0xff] %v8742_v22  ;;  %12240 = vst [vmem:[#allocation30_spill] sm:$0xff] %v8744_v46  ;;  %6252 = vmatprep.mubr.msk.f32.mxu1 %vm1654_vm10, %v930_v24  ;;  %v2398_v60 = vsel %vm435_vm4, %v2350_v62, %v2351_v45  ;;  %v2353_v49 = vrot.slane %v8807_v8, 4  ;;  %v8811_v24 = vld [vmem:[%s6603_s26 + $0x40] sm:$0xff]  ;;  %v861_v12 = vsel %vm844_vm6, %v8383_v41, %v12256_v31  ;;  %v8845_v3 = vld [vmem:[%s6603_s26 + $0x48] sm:$0xff] }
 0x222   : > { %2657 = vrot.lane.b32.xlu1 %v2328_v63, %s6544_s29  ;;  %2655 = vrot.lane.b32.xlu0 %v2329_v18, %s6544_s29  ;;  %v12254_v63 = vld [vmem:[#allocation103_spill] sm:$0xff]  ;;  %v2354_v39 = vrot.slane %v8811_v24, 4  ;;  %v885_v25 = vsel %vm869_vm7, %v860_v17, %v12257_v2  ;;  %v12263_v45 = vld [vmem:[#allocation56_spill] sm:$0xff]  ;;  %v12273_v31 = vld [vmem:[#allocation58_spill] sm:$0xff] }
 0x223   : > { %v909_v18 = vsel %vm894_vm8, %v884_v21, %v12254_v63  ;;  %v862_v62 = vsel %vm844_vm6, %v8377_v56, %v12263_v45  ;;  %v2355_v56 = vrot.slane %v8845_v3, 4  ;;  %v8849_v21 = vld [vmem:[%s6603_s26 + $0x50] sm:$0xff]  ;;  %v12266_v47 = vld [vmem:[#allocation59_spill] sm:$0xff]  ;;  %v12267_v17 = vld [vmem:[#allocation80_spill] sm:$0xff] }
 0x224   : > { %6253 = vmatmul.mubr.msk.f32.gmra.mxu1 %vm1654_vm10, %v931_v27  ;;  %v8784_v57 = vpop.permute.xlu1 %2449  ;;  %v8786_v29 = vpop.permute.xlu0 %2447  ;;  %v934_v44 = vsel %vm919_vm9, %v909_v18, %v12258_v43  ;;  %v12261_v27 = vld [vmem:[#allocation81_spill] sm:$0xff]  ;;  %v2395_v54 = vsel %vm435_vm4, %v2353_v49, %v2354_v39  ;;  %v2356_v55 = vrot.slane %v8849_v21, 4  ;;  %v863_v13 = vsel %vm844_vm6, %v8420_v35, %v12266_v47  ;;  %v12268_v18 = vld [vmem:[#allocation22_spill] sm:$0xff]  ;;  %v12274_v2 = vld [vmem:[#allocation107_spill] sm:$0xff] }
 0x225   : > { %12249 = vst [vmem:[#allocation140_spill] sm:$0xff] %v8784_v57  ;;  %12250 = vst [vmem:[#allocation141_spill] sm:$0xff] %v8786_v29  ;;  %6255 = vmatprep.mubr.msk.f32.mxu1 %vm1654_vm10, %v932_v19  ;;  %v2396_v19 = vsel %vm435_vm4, %v2352_v51, %v2353_v49  ;;  %v887_v63 = vsel %vm869_vm7, %v862_v62, %v12267_v17  ;;  %v12272_v49 = vld [vmem:[#allocation104_spill] sm:$0xff]  ;;  %v12275_v43 = vld [vmem:[#allocation21_spill] sm:$0xff] }
 0x226   : > { %2661 = vrot.lane.b32.xlu1 %v2326_v30, %s6544_s29  ;;  %2659 = vrot.lane.b32.xlu0 %v2327_v52, %s6544_s29  ;;  %v886_v30 = vsel %vm869_vm7, %v861_v12, %v12261_v27  ;;  %v12262_v52 = vld [vmem:[#allocation102_spill] sm:$0xff]  ;;  %v912_v35 = vsel %vm894_vm8, %v887_v63, %v12272_v49  ;;  %v864_v12 = vsel %vm844_vm6, %v8410_v32, %v12273_v31  ;;  %v12277_v62 = vld [vmem:[#allocation61_spill] sm:$0xff]  ;;  %v12284_v17 = vld [vmem:[#allocation60_spill] sm:$0xff] }
 0x227   : > { %v910_v41 = vsel %vm894_vm8, %v885_v25, %v12262_v52  ;;  %v911_v58 = vsel %vm894_vm8, %v886_v30, %v12264_v36  ;;  %v2393_v27 = vsel %vm435_vm4, %v2355_v56, %v2356_v55  ;;  %v2394_v30 = vsel %vm435_vm4, %v2354_v39, %v2355_v56  ;;  %v8883_v52 = vld [vmem:[%s6603_s26 + $0x58] sm:$0xff]  ;;  %v12282_v56 = vld [vmem:[#allocation85_spill] sm:$0xff] }
 0x228   : > { %6256 = vmatmul.mubr.msk.f32.gmra.mxu1 %vm1654_vm10, %v933_v15  ;;  %v8822_v11 = vpop.permute.xlu1 %2453  ;;  %v8824_v1 = vpop.permute.xlu0 %2451  ;;  %v935_v9 = vsel %vm919_vm9, %v910_v41, %v12265_v6  ;;  %v936_v4 = vsel %vm919_vm9, %v911_v58, %v12268_v18  ;;  %v2357_v32 = vrot.slane %v8883_v52, 4  ;;  %v8887_v41 = vld [vmem:[%s6603_s26 + $0x60] sm:$0xff]  ;;  %v865_v36 = vsel %vm844_vm6, %v8455_v37, %v12277_v62  ;;  %v12278_v58 = vld [vmem:[#allocation82_spill] sm:$0xff]  ;;  %v8921_v31 = vld [vmem:[%s6603_s26 + $0x68] sm:$0xff] }
 0x229   : > { %12259 = vst [vmem:[#allocation120_spill] sm:$0xff] %v8822_v11  ;;  %12260 = vst [vmem:[#allocation121_spill] sm:$0xff] %v8824_v1  ;;  %6258 = vmatprep.mubr.msk.f32.mxu1 %vm1654_vm10, %v934_v44  ;;  %v937_v44 = vsel %vm919_vm9, %v912_v35, %v12275_v43  ;;  %v2358_v45 = vrot.slane %v8887_v41, 4  ;;  %v889_v6 = vsel %vm869_vm7, %v864_v12, %v12278_v58  ;;  %v12285_v18 = vld [vmem:[#allocation108_spill] sm:$0xff]  ;;  %v8925_v12 = vld [vmem:[%s6603_s26 + $0x70] sm:$0xff] }
 0x22a   : > { %2713 = vrot.lane.b32.xlu1 %v2397_v42, %s6545_s30  ;;  %2711 = vrot.lane.b32.xlu0 %v2398_v60, %s6545_s30  ;;  %v12271_v42 = vld [vmem:[#allocation83_spill] sm:$0xff]  ;;  %12276 = vst [vmem:[#allocation143_spill] sm:$0xff] %v8887_v41  ;;  %v890_v47 = vsel %vm869_vm7, %v865_v36, %v12282_v56  ;;  %v866_v63 = vsel %vm844_vm6, %v8447_v33, %v12284_v17  ;;  %12287 = vst [vmem:[#allocation19_spill] sm:$0xff] %v8921_v31  ;;  %v2359_v33 = vrot.slane %v8921_v31, 4  ;;  %v12297_v56 = vld [vmem:[#allocation6_spill] sm:$0xff] }
 0x22b   : > { %v888_v60 = vsel %vm869_vm7, %v863_v13, %v12271_v42  ;;  %v12283_v13 = vld [vmem:[#allocation106_spill] sm:$0xff]  ;;  %v12286_v42 = vld [vmem:[#allocation23_spill] sm:$0xff]  ;;  %v2391_v49 = vsel %vm435_vm4, %v2357_v32, %v2358_v45  ;;  %v2392_v35 = vsel %vm435_vm4, %v2356_v55, %v2357_v32  ;;  %12288 = vst [vmem:[#allocation123_spill] sm:$0xff] %v8925_v12  ;;  %v9221_v57 = vld [vmem:[%s6603_s26 + $0xa8] sm:$0xff] }
 0x22c   : > { %6259 = vmatmul.mubr.msk.f32.gmra.mxu1 %vm1654_vm10, %v935_v9  ;;  %v8860_v51 = vpop.permute.xlu1 %2457  ;;  %v8862_v15 = vpop.permute.xlu0 %2455  ;;  %v913_v25 = vsel %vm894_vm8, %v888_v60, %v12274_v2  ;;  %v12279_v9 = vld [vmem:[#allocation24_spill] sm:$0xff]  ;;  %v914_v37 = vsel %vm894_vm8, %v889_v6, %v12283_v13  ;;  %v2360_v2 = vrot.slane %v8925_v12, 4  ;;  %v12294_v36 = vld [vmem:[#allocation87_spill] sm:$0xff]  ;;  %v12298_v13 = vld [vmem:[#allocation25_spill] sm:$0xff] }
 0x22d   : > { %12269 = vst [vmem:[#allocation17_spill] sm:$0xff] %v8860_v51  ;;  %12270 = vst [vmem:[#allocation142_spill] sm:$0xff] %v8862_v15  ;;  %6261 = vmatprep.mubr.msk.f32.mxu1 %vm1654_vm10, %v936_v4  ;;  %v915_v4 = vsel %vm894_vm8, %v890_v47, %v12285_v18  ;;  %v939_v60 = vsel %vm919_vm9, %v914_v37, %v12286_v42  ;;  %v12295_v6 = vld [vmem:[#allocation4_spill] sm:$0xff]  ;;  %v8959_v18 = vld [vmem:[%s6603_s26 + $0x78] sm:$0xff] }
 0x22e   : > { %2717 = vrot.lane.b32.xlu1 %v2395_v54, %s6545_s30  ;;  %2715 = vrot.lane.b32.xlu0 %v2396_v19, %s6545_s30  ;;  %v938_v54 = vsel %vm919_vm9, %v913_v25, %v12279_v9  ;;  %v12289_v25 = vld [vmem:[#allocation63_spill] sm:$0xff]  ;;  %v12296_v9 = vld [vmem:[#allocation62_spill] sm:$0xff]  ;;  %v2389_v17 = vsel %vm435_vm4, %v2359_v33, %v2360_v2  ;;  %12299 = vst [vmem:[#allocation38_spill] sm:$0xff] %v8959_v18 }
 0x22f   : > { %v867_v43 = vsel %vm844_vm6, %v8487_v53, %v12289_v25  ;;  %v9203_v29 = vld [vmem:[%s6603_s26 + $0x98] sm:$0xff] }
 0x230   : > { %6262 = vmatmul.mubr.msk.f32.gmra.mxu1 %vm1654_vm10, %v937_v44  ;;  %v8898_v39 = vpop.permute.xlu1 %2461  ;;  %v8900_v19 = vpop.permute.xlu0 %2459  ;;  %v12290_v44 = vld [vmem:[#allocation84_spill] sm:$0xff]  ;;  %v892_v58 = vsel %vm869_vm7, %v867_v43, %v12294_v36  ;;  %v9239_v46 = vld [vmem:[%s6603_s26 + $0xb8] sm:$0xff] }
 0x231   : > { %12280 = vst [vmem:[#allocation34_spill] sm:$0xff] %v8898_v39  ;;  %12281 = vst [vmem:[#allocation37_spill] sm:$0xff] %v8900_v19  ;;  %6264 = vmatprep.mubr.msk.f32.mxu1 %vm1654_vm10, %v938_v54  ;;  %v868_v54 = vsel %vm844_vm6, %v8481_v48, %v12296_v9  ;;  %v917_v47 = vsel %vm894_vm8, %v892_v58, %v12297_v56  ;;  %v2361_v48 = vrot.slane %v8959_v18, 4  ;;  %v8987_v58 = vld [vmem:[%s6603_s26 + $0x88] sm:$0xff]  ;;  %v9275_v14 = vld [vmem:[%s6603_s26 + $0xd8] sm:$0xff] }
 0x232   : > { %2721 = vrot.lane.b32.xlu1 %v2393_v27, %s6545_s30  ;;  %2719 = vrot.lane.b32.xlu0 %v2394_v30, %s6545_s30  ;;  %v891_v27 = vsel %vm869_vm7, %v866_v63, %v12290_v44  ;;  %v12291_v30 = vld [vmem:[#allocation26_spill] sm:$0xff]  ;;  %v2390_v63 = vsel %vm435_vm4, %v2358_v45, %v2359_v33  ;;  %v12305_v33 = vld [vmem:[#allocation5_spill] sm:$0xff]  ;;  %12307 = vst [vmem:[#allocation127_spill] sm:$0xff] %v8987_v58  ;;  %12345 = vst [vmem:[#allocation35_spill] sm:$0xff] %v9275_v14 }
 0x233   : > { %v940_v62 = vsel %vm919_vm9, %v915_v4, %v12291_v30  ;;  %v916_v53 = vsel %vm894_vm8, %v891_v27, %v12295_v6  ;;  %v8963_v4 = vld [vmem:[%s6603_s26 + $0x80] sm:$0xff]  ;;  %v2388_v36 = vsel %vm435_vm4, %v2360_v2, %v2361_v48  ;;  %v2363_v6 = vrot.slane %v8987_v58, 4 }
 0x234   : > { %6265 = vmatmul.mubr.msk.f32.gmra.mxu1 %vm1654_vm10, %v939_v60  ;;  %v8936_v55 = vpop.permute.xlu1 %2465  ;;  %v8938_v32 = vpop.permute.xlu0 %2463  ;;  %v941_v37 = vsel %vm919_vm9, %v916_v53, %v12298_v13  ;;  %12300 = vst [vmem:[#allocation41_spill] sm:$0xff] %v8963_v4  ;;  %v2362_v42 = vrot.slane %v8963_v4, 4  ;;  %v12301_v60 = vld [vmem:[#allocation86_spill] sm:$0xff]  ;;  %v12306_v27 = vld [vmem:[#allocation27_spill] sm:$0xff] }
 0x235   : > { %12292 = vst [vmem:[#allocation124_spill] sm:$0xff] %v8936_v55  ;;  %12293 = vst [vmem:[#allocation122_spill] sm:$0xff] %v8938_v32  ;;  %6267 = vmatprep.mubr.msk.f32.mxu1 %vm1654_vm10, %v940_v62  ;;  %v8991_v53 = vld [vmem:[%s6603_s26 + $0x90] sm:$0xff]  ;;  %v9006_v13 = vld [vmem:[%s6603_s26 + $0x98] sm:$0xff] }
 0x236   : > { %2725 = vrot.lane.b32.xlu1 %v2391_v49, %s6545_s30  ;;  %2723 = vrot.lane.b32.xlu0 %v2392_v35, %s6545_s30  ;;  %v893_v49 = vsel %vm869_vm7, %v868_v54, %v12301_v60  ;;  %v12302_v35 = vld [vmem:[#allocation28_spill] sm:$0xff]  ;;  %v2387_v62 = vsel %vm435_vm4, %v2361_v48, %v2362_v42  ;;  %12308 = vst [vmem:[#allocation128_spill] sm:$0xff] %v8991_v53  ;;  %v2364_v9 = vrot.slane %v8991_v53, 4  ;;  %12309 = vst [vmem:[#allocation42_spill] sm:$0xff] %v9006_v13  ;;  %v9149_v53 = vld [vmem:[%s6603_s26 + $0x70] sm:$0xff] }
 0x237   : > { %v942_v25 = vsel %vm919_vm9, %v917_v47, %v12302_v35  ;;  %v918_v44 = vsel %vm894_vm8, %v893_v49, %v12305_v33  ;;  %v2386_v47 = vsel %vm435_vm4, %v2362_v42, %v2363_v6  ;;  %v9024_v35 = vld [vmem:[%s6603_s26 + $0xa8] sm:$0xff]  ;;  %v9028_v33 = vld [vmem:[%s6603_s26 + $0xb0] sm:$0xff]  ;;  %v6487_v32 = vld [vmem:[%s6603_s26 + $0xe0] sm:$0xff]  ;;  %12331 = vst [vmem:[#allocation138_spill] sm:$0xff] %v9149_v53 }
 0x238   : > { %6268 = vmatmul.mubr.msk.f32.gmra.mxu1 %vm1654_vm10, %v941_v37  ;;  %v8971_v43 = vpop.permute.xlu1 %2469  ;;  %v8973_v45 = vpop.permute.xlu0 %2467  ;;  %v943_v30 = vsel %vm919_vm9, %v918_v44, %v12306_v27  ;;  %v2385_v2 = vsel %vm435_vm4, %v2363_v6, %v2364_v9  ;;  %v2365_v37 = vrot.slane %v9006_v13, 4  ;;  %12311 = vst [vmem:[#allocation45_spill] sm:$0xff] %v9024_v35  ;;  %12312 = vst [vmem:[#allocation129_spill] sm:$0xff] %v9028_v33  ;;  %v2368_v44 = vrot.slane %v9028_v33, 4  ;;  %v9042_v6 = vld [vmem:[%s6603_s26 + $0xb8] sm:$0xff]  ;;  %v9087_v33 = vld [vmem:[%s6603_s26 + $0x30] sm:$0xff] }
 0x239   : > { %12303 = vst [vmem:[#allocation125_spill] sm:$0xff] %v8971_v43  ;;  %12304 = vst [vmem:[#allocation126_spill] sm:$0xff] %v8973_v45  ;;  %6270 = vmatprep.mubr.msk.f32.mxu1 %vm1654_vm10, %v942_v25  ;;  %v2367_v25 = vrot.slane %v9024_v35, 4  ;;  %v2372_v45 = vrot.slane %v8691_v23, 4  ;;  %v3194_v19 = vrot.slane %v9087_v33, 1 }
 0x23a   : > { %2729 = vrot.lane.b32.xlu1 %v2389_v17, %s6545_s30  ;;  %2727 = vrot.lane.b32.xlu0 %v2390_v63, %s6545_s30  ;;  %v9010_v17 = vld [vmem:[%s6603_s26 + $0xa0] sm:$0xff]  ;;  %v2384_v49 = vsel %vm435_vm4, %v2364_v9, %v2365_v37  ;;  %12313 = vst [vmem:[#allocation130_spill] sm:$0xff] %v9042_v6  ;;  %v2369_v9 = vrot.slane %v9042_v6, 4 }
 0x23b   : > { %12310 = vst [vmem:[#allocation117_spill] sm:$0xff] %v9010_v17  ;;  %v2366_v63 = vrot.slane %v9010_v17, 4 }
 0x23c   : > { %6271 = vmatmul.mubr.msk.f32.gmra.mxu1 %vm1654_vm10, %v943_v30  ;;  %v8995_v54 = vpop.permute.xlu1 %2521  ;;  %v8997_v56 = vpop.permute.xlu0 %2519 }
 0x23d   : > { %v2383_v42 = vsel %vm435_vm4, %v2365_v37, %v2366_v63 }
 0x23e   : > { %2733 = vrot.lane.b32.xlu1 %v2387_v62, %s6545_s30  ;;  %2731 = vrot.lane.b32.xlu0 %v2388_v36, %s6545_s30  ;;  %v2381_v62 = vsel %vm435_vm4, %v2367_v25, %v2368_v44  ;;  %v2382_v36 = vsel %vm435_vm4, %v2366_v63, %v2367_v25  ;;  %v2371_v25 = vrot.slane %v8511_v59, 4 }
 0x240   : > { %v9013_v48 = vpop.permute.xlu1 %2525  ;;  %v9015_v60 = vpop.permute.xlu0 %2523  ;;  %v2377_v59 = vsel %vm435_vm4, %v2371_v25, %v2372_v45 }
 0x242   : > { %2737 = vrot.lane.b32.xlu1 %v2385_v2, %s6545_s30  ;;  %2735 = vrot.lane.b32.xlu0 %v2386_v47, %s6545_s30  ;;  %v9046_v2 = vld [vmem:[%s6603_s26 + $0xc0] sm:$0xff] }
 0x243   : > { %12314 = vst [vmem:[#allocation131_spill] sm:$0xff] %v9046_v2  ;;  %v2370_v47 = vrot.slane %v9046_v2, 4 }
 0x244   : > { %v9031_v27 = vpop.permute.xlu1 %2529  ;;  %v9033_v30 = vpop.permute.xlu0 %2527 }
 0x245   : > { %v2379_v63 = vsel %vm435_vm4, %v2369_v9, %v2370_v47  ;;  %v2378_v23 = vsel %vm435_vm4, %v2370_v47, %v2371_v25 }
 0x246   : > { %2741 = vrot.lane.b32.xlu1 %v2383_v42, %s6545_s30  ;;  %2739 = vrot.lane.b32.xlu0 %v2384_v49, %s6545_s30  ;;  %v2380_v49 = vsel %vm435_vm4, %v2368_v44, %v2369_v9  ;;  %v2374_v44 = vrot.slane %v6487_v32, 4 }
 0x248   : > { %v9049_v37 = vpop.permute.xlu1 %2533  ;;  %v9051_v42 = vpop.permute.xlu0 %2531 }
 0x249   : > { %12315 = vst [vmem:[#allocation132_spill] sm:$0xff] %v9051_v42  ;;  %v9289_v42 = vld [vmem:[%s6603_s26 + $0xe8] sm:$0xff] }
 0x24a   : > { %2745 = vrot.lane.b32.xlu1 %v2381_v62, %s6545_s30  ;;  %2743 = vrot.lane.b32.xlu0 %v2382_v36, %s6545_s30  ;;  %v9068_v62 = vld [vmem:[%s6603_s26 + $0xd8] sm:$0xff]  ;;  %12347 = vst [vmem:[#allocation91_spill] sm:$0xff] %v9289_v42 }
 0x24b   : > { %12318 = vst [vmem:[#allocation134_spill] sm:$0xff] %v9068_v62  ;;  %v2373_v36 = vrot.slane %v9068_v62, 4 }
 0x24c   : > { %v9061_v43 = vpop.permute.xlu1 %2537  ;;  %v9063_v2 = vpop.permute.xlu0 %2535 }
 0x24d   : > { %12316 = vst [vmem:[#allocation46_spill] sm:$0xff] %v9061_v43  ;;  %12317 = vst [vmem:[#allocation49_spill] sm:$0xff] %v9063_v2  ;;  %v2375_v32 = vsel %vm435_vm4, %v2373_v36, %v2374_v44  ;;  %v2376_v47 = vsel %vm435_vm4, %v2372_v45, %v2373_v36  ;;  %v9257_v43 = vld [vmem:[%s6603_s26 + $0xc8] sm:$0xff] }
 0x24e   : > { %2749 = vrot.lane.b32.xlu1 %v2379_v63, %s6545_s30  ;;  %2747 = vrot.lane.b32.xlu0 %v2380_v49, %s6545_s30  ;;  %v9081_v63 = vld [vmem:[%s6603_s26 + $0x38] sm:$0xff]  ;;  %v9084_v49 = vld [vmem:[%s6603_s26 + $0x40] sm:$0xff]  ;;  %12341 = vst [vmem:[#allocation64_spill] sm:$0xff] %v9257_v43 }
 0x24f   : > { %v3195_v25 = vrot.slane %v9081_v63, 1  ;;  %v3196_v62 = vrot.slane %v9084_v49, 1 }
 0x250   : > { %v9076_v9 = vpop.permute.xlu1 %2541  ;;  %v9078_v55 = vpop.permute.xlu0 %2539 }
 0x251   : > { %12319 = vst [vmem:[#allocation135_spill] sm:$0xff] %v9076_v9  ;;  %12320 = vst [vmem:[#allocation133_spill] sm:$0xff] %v9078_v55  ;;  %v3241_v45 = vsel %vm285_vm1, %v3195_v25, %v3196_v62  ;;  %v3242_v36 = vsel %vm285_vm1, %v3194_v19, %v3195_v25 }
 0x252   : > { %2753 = vrot.lane.b32.xlu1 %v2377_v59, %s6545_s30  ;;  %2751 = vrot.lane.b32.xlu0 %v2378_v23, %s6545_s30  ;;  %v9103_v59 = vld [vmem:[%s6603_s26 + $0x48] sm:$0xff]  ;;  %v9106_v23 = vld [vmem:[%s6603_s26 + $0x50] sm:$0xff] }
 0x253   : > { %v3197_v44 = vrot.slane %v9103_v59, 1  ;;  %v9116_v17 = vrot.slane %v9106_v23, 1 }
 0x254   : > { %v9098_v6 = vpop.permute.xlu1 %2545  ;;  %v9100_v39 = vpop.permute.xlu0 %2543 }
 0x255   : > { %12321 = vst [vmem:[#allocation144_spill] sm:$0xff] %v9098_v6  ;;  %12322 = vst [vmem:[#allocation145_spill] sm:$0xff] %v9100_v39  ;;  %v9133_v19 = vsel %vm285_vm1, %v3197_v44, %v9116_v17  ;;  %v9137_v25 = vsel %vm285_vm1, %v3196_v62, %v3197_v44  ;;  %v9185_v6 = vld [vmem:[%s6603_s26 + $0x88] sm:$0xff] }
 0x256   : > { %2757 = vrot.lane.b32.xlu1 %v2375_v32, %s6545_s30  ;;  %2755 = vrot.lane.b32.xlu0 %v2376_v47, %s6545_s30  ;;  %12323 = vst [vmem:[#allocation113_spill] sm:$0xff] %v9116_v17  ;;  %v9123_v32 = vld [vmem:[%s6603_s26 + $0x58] sm:$0xff]  ;;  %v9126_v47 = vld [vmem:[%s6603_s26 + $0x60] sm:$0xff]  ;;  %12326 = vst [vmem:[#allocation137_spill] sm:$0xff] %v9133_v19 }
 0x257   : > { %12327 = vst [vmem:[#allocation146_spill] sm:$0xff] %v9137_v25  ;;  %v3199_v51 = vrot.slane %v9123_v32, 1 }
 0x258   : > { %v9118_v15 = vpop.permute.xlu1 %2549  ;;  %v9120_v35 = vpop.permute.xlu0 %2547 }
 0x259   : > { %12324 = vst [vmem:[#allocation114_spill] sm:$0xff] %v9118_v15  ;;  %12325 = vst [vmem:[#allocation136_spill] sm:$0xff] %v9120_v35  ;;  %v3200_v35 = vrot.slane %v9126_v47, 1  ;;  %v3238_v44 = vsel %vm285_vm1, %v9116_v17, %v3199_v51 }
 0x25a   : > { %3416 = vrot.lane.b32.xlu1 %v3241_v45, %s6542_s27  ;;  %3414 = vrot.lane.b32.xlu0 %v3242_v36, %s6542_s27  ;;  %v9146_v36 = vld [vmem:[%s6603_s26 + $0x68] sm:$0xff] }
 0x25b   : > { %12330 = vst [vmem:[#allocation116_spill] sm:$0xff] %v9146_v36  ;;  %v3237_v62 = vsel %vm285_vm1, %v3199_v51, %v3200_v35 }
 0x25c   : > { %v9141_v15 = vpop.permute.xlu1 %2553  ;;  %v9143_v45 = vpop.permute.xlu0 %2551 }
 0x25d   : > { %12328 = vst [vmem:[#allocation147_spill] sm:$0xff] %v9141_v15  ;;  %12329 = vst [vmem:[#allocation115_spill] sm:$0xff] %v9143_v45  ;;  %v3201_v45 = vrot.slane %v9146_v36, 1  ;;  %v3202_v15 = vrot.slane %v9149_v53, 1 }
 0x25e   : > { %3420 = vrot.lane.b32.xlu1 %v9133_v19, %s6542_s27  ;;  %3418 = vrot.lane.b32.xlu0 %v9137_v25, %s6542_s27  ;;  %v9167_v19 = vld [vmem:[%s6603_s26 + $0x78] sm:$0xff]  ;;  %v9170_v25 = vld [vmem:[%s6603_s26 + $0x80] sm:$0xff] }
 0x25f   : > { %12334 = vst [vmem:[#allocation148_spill] sm:$0xff] %v9167_v19  ;;  %12335 = vst [vmem:[#allocation149_spill] sm:$0xff] %v9170_v25  ;;  %v3235_v51 = vsel %vm285_vm1, %v3201_v45, %v3202_v15  ;;  %v3236_v17 = vsel %vm285_vm1, %v3200_v35, %v3201_v45 }
 0x260   : > { %v9162_v1 = vpop.permute.xlu1 %2557  ;;  %v9164_v13 = vpop.permute.xlu0 %2555 }
 0x261   : > { %12332 = vst [vmem:[#allocation139_spill] sm:$0xff] %v9162_v1  ;;  %12333 = vst [vmem:[#allocation32_spill] sm:$0xff] %v9164_v13  ;;  %v3203_v1 = vrot.slane %v9167_v19, 1  ;;  %v3204_v13 = vrot.slane %v9170_v25, 1 }
 0x262   : > { %3424 = vrot.lane.b32.xlu1 %v3237_v62, %s6542_s27  ;;  %3422 = vrot.lane.b32.xlu0 %v3238_v44, %s6542_s27  ;;  %v9188_v62 = vld [vmem:[%s6603_s26 + $0x90] sm:$0xff]  ;;  %v3205_v44 = vrot.slane %v9185_v6, 1 }
 0x263   : > { %v3233_v35 = vsel %vm285_vm1, %v3203_v1, %v3204_v13  ;;  %v3234_v45 = vsel %vm285_vm1, %v3202_v15, %v3203_v1 }
 0x264   : > { %v9180_v11 = vpop.permute.xlu1 %2561  ;;  %v9182_v39 = vpop.permute.xlu0 %2559  ;;  %v3232_v15 = vsel %vm285_vm1, %v3204_v13, %v3205_v44 }
 0x265   : > { %12336 = vst [vmem:[#allocation65_spill] sm:$0xff] %v9180_v11  ;;  %12337 = vst [vmem:[#allocation36_spill] sm:$0xff] %v9182_v39  ;;  %v3206_v39 = vrot.slane %v9188_v62, 1 }
 0x266   : > { %3428 = vrot.lane.b32.xlu1 %v3235_v51, %s6542_s27  ;;  %3426 = vrot.lane.b32.xlu0 %v3236_v17, %s6542_s27  ;;  %v9206_v51 = vld [vmem:[%s6603_s26 + $0xa0] sm:$0xff]  ;;  %v3207_v17 = vrot.slane %v9203_v29, 1 }
 0x267   : > { %12340 = vst [vmem:[#allocation33_spill] sm:$0xff] %v9206_v51  ;;  %v3231_v1 = vsel %vm285_vm1, %v3205_v44, %v3206_v39  ;;  %v3209_v44 = vrot.slane %v9221_v57, 1 }
 0x268   : > { %v9198_v11 = vpop.permute.xlu1 %2565  ;;  %v9200_v4 = vpop.permute.xlu0 %2563 }
 0x269   : > { %12338 = vst [vmem:[#allocation89_spill] sm:$0xff] %v9198_v11  ;;  %12339 = vst [vmem:[#allocation31_spill] sm:$0xff] %v9200_v4  ;;  %v3208_v4 = vrot.slane %v9206_v51, 1 }
 0x26a   : > { %3432 = vrot.lane.b32.xlu1 %v3233_v35, %s6542_s27  ;;  %3430 = vrot.lane.b32.xlu0 %v3234_v45, %s6542_s27  ;;  %v9224_v35 = vld [vmem:[%s6603_s26 + $0xb0] sm:$0xff]  ;;  %v3230_v45 = vsel %vm285_vm1, %v3206_v39, %v3207_v17 }
 0x26b   : > { %v3229_v13 = vsel %vm285_vm1, %v3207_v17, %v3208_v4  ;;  %v3210_v55 = vrot.slane %v9224_v35, 1  ;;  %v3211_v17 = vrot.slane %v9239_v46, 1 }
 0x26c   : > { %v9216_v11 = vpop.permute.xlu1 %2617  ;;  %v9218_v58 = vpop.permute.xlu0 %2615 }
 0x26d   : > { %v3227_v39 = vsel %vm285_vm1, %v3209_v44, %v3210_v55 }
 0x26e   : > { %3436 = vrot.lane.b32.xlu1 %v3231_v1, %s6542_s27  ;;  %3434 = vrot.lane.b32.xlu0 %v3232_v15, %s6542_s27  ;;  %v9242_v1 = vld [vmem:[%s6603_s26 + $0xc0] sm:$0xff]  ;;  %v3228_v15 = vsel %vm285_vm1, %v3208_v4, %v3209_v44  ;;  %v3213_v44 = vrot.slane %v9257_v43, 1 }
 0x26f   : > { %v3212_v18 = vrot.slane %v9242_v1, 1 }
 0x270   : > { %v9234_v9 = vpop.permute.xlu1 %2621  ;;  %v9236_v12 = vpop.permute.xlu0 %2619 }
 0x271   : > { %v3225_v4 = vsel %vm285_vm1, %v3211_v17, %v3212_v18 }
 0x272   : > { %3440 = vrot.lane.b32.xlu1 %v3229_v13, %s6542_s27  ;;  %3438 = vrot.lane.b32.xlu0 %v3230_v45, %s6542_s27  ;;  %v9260_v13 = vld [vmem:[%s6603_s26 + $0xd0] sm:$0xff]  ;;  %v3226_v45 = vsel %vm285_vm1, %v3210_v55, %v3211_v17  ;;  %v3224_v55 = vsel %vm285_vm1, %v3212_v18, %v3213_v44  ;;  %v3215_v17 = vrot.slane %v9275_v14, 1 }
 0x273   : > { %12342 = vst [vmem:[#allocation8_spill] sm:$0xff] %v9260_v13  ;;  %v3214_v41 = vrot.slane %v9260_v13, 1 }
 0x274   : > { %v9252_v22 = vpop.permute.xlu1 %2625  ;;  %v9254_v2 = vpop.permute.xlu0 %2623 }
 0x276   : > { %3444 = vrot.lane.b32.xlu1 %v3227_v39, %s6542_s27  ;;  %3442 = vrot.lane.b32.xlu0 %v3228_v15, %s6542_s27  ;;  %v9278_v39 = vld [vmem:[%s6603_s26 + $0xe0] sm:$0xff]  ;;  %v3223_v15 = vsel %vm285_vm1, %v3213_v44, %v3214_v41  ;;  %v3222_v44 = vsel %vm285_vm1, %v3214_v41, %v3215_v17  ;;  %v3243_v41 = vrot.slane %v9087_v33, 2 }
 0x277   : > { %12346 = vst [vmem:[#allocation150_spill] sm:$0xff] %v9278_v39 }
 0x278   : > { %v9270_v16 = vpop.permute.xlu1 %2629  ;;  %v9272_v31 = vpop.permute.xlu0 %2627 }
 0x279   : > { %12343 = vst [vmem:[#allocation67_spill] sm:$0xff] %v9270_v16  ;;  %12344 = vst [vmem:[#allocation88_spill] sm:$0xff] %v9272_v31  ;;  %v3216_v16 = vrot.slane %v9278_v39, 1  ;;  %v9292_v31 = vld [vmem:[%s6603_s26 + $0xf0] sm:$0xff] }
 0x27a   : > { %3448 = vrot.lane.b32.xlu1 %v3225_v4, %s6542_s27  ;;  %3446 = vrot.lane.b32.xlu0 %v3226_v45, %s6542_s27  ;;  %12348 = vst [vmem:[#allocation7_spill] sm:$0xff] %v9292_v31  ;;  %v3217_v4 = vrot.slane %v9289_v42, 1  ;;  %v3218_v18 = vrot.slane %v9292_v31, 1  ;;  %v3244_v31 = vrot.slane %v9081_v63, 2  ;;  %v3245_v42 = vrot.slane %v9084_v49, 2 }
 0x27b   : > { %v3221_v45 = vsel %vm285_vm1, %v3215_v17, %v3216_v16 }
 0x27c   : > { %v9294_v13 = vpop.permute.xlu1 %2633  ;;  %v9296_v43 = vpop.permute.xlu0 %2631 }
 0x27e   : > { %3452 = vrot.lane.b32.xlu1 %v3223_v15, %s6542_s27  ;;  %3450 = vrot.lane.b32.xlu0 %v3224_v55, %s6542_s27  ;;  %v3219_v15 = vsel %vm285_vm1, %v3217_v4, %v3218_v18  ;;  %v3220_v55 = vsel %vm285_vm1, %v3216_v16, %v3217_v4  ;;  %v3290_v18 = vsel %vm335_vm2, %v3244_v31, %v3245_v42  ;;  %v3246_v4 = vrot.slane %v9103_v59, 2 }
 0x27f   : > { %v3291_v16 = vsel %vm335_vm2, %v3243_v41, %v3244_v31  ;;  %v3249_v41 = vrot.slane %v9126_v47, 2 }
 0x280   : > { %v9306_v39 = vpop.permute.xlu1 %2637  ;;  %v9308_v14 = vpop.permute.xlu0 %2635  ;;  %v9346_v31 = vsel %vm335_vm2, %v3245_v42, %v3246_v4 }
 0x281   : > { %12349 = vst [vmem:[#allocation40_spill] sm:$0xff] %v9306_v39  ;;  %12355 = vst [vmem:[#allocation93_spill] sm:$0xff] %v9346_v31 }
 0x282   : > { %3456 = vrot.lane.b32.xlu1 %v3221_v45, %s6542_s27  ;;  %3454 = vrot.lane.b32.xlu0 %v3222_v44, %s6542_s27  ;;  %v9331_v45 = vrot.slane %v9106_v23, 2 }
 0x284   : > { %v9319_v17 = vpop.permute.xlu1 %2641  ;;  %v9321_v39 = vpop.permute.xlu0 %2639  ;;  %12351 = vst [vmem:[#allocation10_spill] sm:$0xff] %v9331_v45 }
 0x285   : > { %12350 = vst [vmem:[#allocation66_spill] sm:$0xff] %v9319_v17 }
 0x286   : > { %3460 = vrot.lane.b32.xlu1 %v3219_v15, %s6542_s27  ;;  %3458 = vrot.lane.b32.xlu0 %v3220_v55, %s6542_s27  ;;  %v9342_v15 = vsel %vm335_vm2, %v3246_v4, %v9331_v45  ;;  %v3248_v55 = vrot.slane %v9123_v32, 2  ;;  %v3251_v4 = vrot.slane %v9149_v53, 2 }
 0x287   : > { %12354 = vst [vmem:[#allocation39_spill] sm:$0xff] %v9342_v15 }
 0x288   : > { %v9333_v44 = vpop.permute.xlu1 %2645  ;;  %v9335_v17 = vpop.permute.xlu0 %2643  ;;  %v3287_v42 = vsel %vm335_vm2, %v9331_v45, %v3248_v55  ;;  %v3253_v45 = vrot.slane %v9170_v25, 2 }
 0x289   : > { %12352 = vst [vmem:[#allocation69_spill] sm:$0xff] %v9333_v44  ;;  %12353 = vst [vmem:[#allocation90_spill] sm:$0xff] %v9335_v17 }
 0x28a   : > { %3512 = vrot.lane.b32.xlu1 %v3290_v18, %s6543_s28  ;;  %3510 = vrot.lane.b32.xlu0 %v3291_v16, %s6543_s28  ;;  %v3286_v18 = vsel %vm335_vm2, %v3248_v55, %v3249_v41  ;;  %v3250_v16 = vrot.slane %v9146_v36, 2  ;;  %v3252_v55 = vrot.slane %v9167_v19, 2 }
 0x28c   : > { %v9350_v44 = vpop.permute.xlu1 %2649  ;;  %v9352_v17 = vpop.permute.xlu0 %2647 }
 0x28d   : > { %12356 = vst [vmem:[#allocation9_spill] sm:$0xff] %v9350_v44  ;;  %12357 = vst [vmem:[#allocation44_spill] sm:$0xff] %v9352_v17 }
 0x28e   : > { %3516 = vrot.lane.b32.xlu1 %v9342_v15, %s6543_s28  ;;  %3514 = vrot.lane.b32.xlu0 %v9346_v31, %s6543_s28  ;;  %v3284_v15 = vsel %vm335_vm2, %v3250_v16, %v3251_v4  ;;  %v3285_v31 = vsel %vm335_vm2, %v3249_v41, %v3250_v16  ;;  %v3254_v41 = vrot.slane %v9185_v6, 2  ;;  %v3255_v16 = vrot.slane %v9188_v62, 2 }
 0x290   : > { %v9365_v44 = vpop.permute.xlu1 %2653  ;;  %v9367_v17 = vpop.permute.xlu0 %2651 }
 0x292   : > { %3520 = vrot.lane.b32.xlu1 %v3286_v18, %s6543_s28  ;;  %3518 = vrot.lane.b32.xlu0 %v3287_v42, %s6543_s28  ;;  %v3282_v18 = vsel %vm335_vm2, %v3252_v55, %v3253_v45  ;;  %v3283_v42 = vsel %vm335_vm2, %v3251_v4, %v3252_v55  ;;  %v3256_v4 = vrot.slane %v9203_v29, 2  ;;  %v3257_v55 = vrot.slane %v9206_v51, 2 }
 0x294   : > { %v9377_v36 = vpop.permute.xlu1 %2657  ;;  %v9379_v53 = vpop.permute.xlu0 %2655 }
 0x296   : > { %3524 = vrot.lane.b32.xlu1 %v3284_v15, %s6543_s28  ;;  %3522 = vrot.lane.b32.xlu0 %v3285_v31, %s6543_s28  ;;  %v2784_v15 = vsel %vm844_vm6, %v8765_v20, %v8568_v61  ;;  %v2783_v31 = vsel %vm844_vm6, %v8773_v5, %v8570_v26  ;;  %v3280_v61 = vsel %vm335_vm2, %v3254_v41, %v3255_v16 }
 0x297   : > { %v3281_v26 = vsel %vm335_vm2, %v3253_v45, %v3254_v41  ;;  %v2785_v45 = vsel %vm844_vm6, %v8769_v7, %v8602_v0 }
 0x298   : > { %v9389_v19 = vpop.permute.xlu1 %2661  ;;  %v9391_v25 = vpop.permute.xlu0 %2659  ;;  %v2809_v0 = vsel %vm869_vm7, %v2785_v45, %v9015_v60  ;;  %v3260_v60 = vrot.slane %v9239_v46, 2 }
 0x299   : > { %12358 = vst [vmem:[#allocation68_spill] sm:$0xff] %v9389_v19  ;;  %12359 = vst [vmem:[#allocation12_spill] sm:$0xff] %v9391_v25  ;;  %v2808_v19 = vsel %vm869_vm7, %v2784_v15, %v8995_v54  ;;  %v2807_v25 = vsel %vm869_vm7, %v2783_v31, %v8997_v56  ;;  %v2786_v56 = vsel %vm844_vm6, %v8807_v8, %v8600_v38  ;;  %v3258_v38 = vrot.slane %v9221_v57, 2 }
 0x29a   : > { %3528 = vrot.lane.b32.xlu1 %v3282_v18, %s6543_s28  ;;  %3526 = vrot.lane.b32.xlu0 %v3283_v42, %s6543_s28  ;;  %v2832_v20 = vsel %vm894_vm8, %v2808_v19, %v9216_v11  ;;  %v2831_v5 = vsel %vm894_vm8, %v2807_v25, %v9218_v58  ;;  %v3278_v11 = vsel %vm335_vm2, %v3256_v4, %v3257_v55  ;;  %v3259_v8 = vrot.slane %v9224_v35, 2 }
 0x29b   : > { %v2810_v58 = vsel %vm869_vm7, %v2786_v56, %v9013_v48  ;;  %v3279_v19 = vsel %vm335_vm2, %v3255_v16, %v3256_v4  ;;  %v2833_v48 = vsel %vm894_vm8, %v2809_v0, %v9236_v12  ;;  %v2788_v16 = vsel %vm844_vm6, %v8845_v3, %v8632_v28 }
 0x29c   : > { %v2714_v18 = vpop.permute.xlu1 %2713  ;;  %v2712_v42 = vpop.permute.xlu0 %2711  ;;  %v2834_v7 = vsel %vm894_vm8, %v2810_v58, %v9234_v9  ;;  %v3261_v9 = vrot.slane %v9242_v1, 2  ;;  %v2787_v12 = vsel %vm844_vm6, %v8811_v24, %v8634_v34  ;;  %v3276_v28 = vsel %vm335_vm2, %v3258_v38, %v3259_v8 }
 0x29d   : > { %v2856_v51 = vsel %vm919_vm9, %v2832_v20, %v2714_v18  ;;  %v2855_v54 = vsel %vm919_vm9, %v2831_v5, %v2712_v42  ;;  %v3277_v3 = vsel %vm335_vm2, %v3257_v55, %v3258_v38  ;;  %v2811_v4 = vsel %vm869_vm7, %v2787_v12, %v9033_v30  ;;  %v12362_v18 = vld [vmem:[#allocation132_spill] sm:$0xff]  ;;  %v12365_v38 = vld [vmem:[#allocation118_spill] sm:$0xff] }
 0x29e   : > { %3532 = vrot.lane.b32.xlu1 %v3280_v61, %s6543_s28  ;;  %3530 = vrot.lane.b32.xlu0 %v3281_v26, %s6543_s28  ;;  %v2790_v24 = vsel %vm844_vm6, %v8883_v52, %v8664_v40  ;;  %v2789_v30 = vsel %vm844_vm6, %v8849_v21, %v8666_v50  ;;  %v3275_v52 = vsel %vm335_vm2, %v3259_v8, %v3260_v60  ;;  %v12361_v50 = vld [vmem:[#allocation8_spill] sm:$0xff]  ;;  %v12366_v8 = vld [vmem:[#allocation19_spill] sm:$0xff]  ;;  %v12371_v12 = vld [vmem:[#allocation46_spill] sm:$0xff] }
 0x29f   : > { %6279 = vmatprep.mubr.msk.f32.mxu0 %vm1654_vm10, %v2855_v54  ;;  %v2814_v40 = vsel %vm869_vm7, %v2790_v24, %v9049_v37  ;;  %v3263_v21 = vrot.slane %v12361_v50, 2  ;;  %v2813_v42 = vsel %vm869_vm7, %v2789_v30, %v12362_v18  ;;  %v12363_v54 = vld [vmem:[#allocation67_spill] sm:$0xff]  ;;  %v2792_v0 = vsel %vm844_vm6, %v12366_v8, %v12365_v38 }
 0x2a0   : > { %6280 = vmatmul.mubr.msk.f32.vlgmr.msra.gmra.mxu0 %vm1654_vm10, %v2856_v51  ;;  %v2718_v25 = vpop.permute.xlu1 %2717  ;;  %v2716_v15 = vpop.permute.xlu0 %2715  ;;  %v2812_v51 = vsel %vm869_vm7, %v2788_v16, %v9031_v27  ;;  %v2835_v27 = vsel %vm894_vm8, %v2811_v4, %v9254_v2  ;;  %v12360_v2 = vld [vmem:[#allocation64_spill] sm:$0xff]  ;;  %v2838_v56 = vsel %vm894_vm8, %v2814_v40, %v12363_v54  ;;  %v12369_v16 = vld [vmem:[#allocation119_spill] sm:$0xff]  ;;  %v12372_v4 = vld [vmem:[#allocation49_spill] sm:$0xff] }
 0x2a1   : > { %v2858_v41 = vsel %vm919_vm9, %v2834_v7, %v2718_v25  ;;  %v2857_v31 = vsel %vm919_vm9, %v2833_v48, %v2716_v15  ;;  %v2836_v61 = vsel %vm894_vm8, %v2812_v51, %v9252_v22  ;;  %v3274_v22 = vsel %vm335_vm2, %v3260_v60, %v3261_v9  ;;  %v12367_v25 = vld [vmem:[#allocation35_spill] sm:$0xff] }
 0x2a2   : > { %3536 = vrot.lane.b32.xlu1 %v3278_v11, %s6543_s28  ;;  %3534 = vrot.lane.b32.xlu0 %v3279_v19, %s6543_s28  ;;  %v3262_v5 = vrot.slane %v12360_v2, 2  ;;  %v12364_v11 = vld [vmem:[#allocation88_spill] sm:$0xff]  ;;  %v3264_v48 = vrot.slane %v12367_v25, 2  ;;  %v2816_v51 = vsel %vm869_vm7, %v2792_v0, %v12371_v12  ;;  %v12376_v40 = vld [vmem:[#allocation123_spill] sm:$0xff]  ;;  %v12385_v12 = vld [vmem:[#allocation41_spill] sm:$0xff] }
 0x2a3   : > { %6282 = vmatprep.mubr.msk.f32.mxu0 %vm1654_vm10, %v2857_v31  ;;  %v2837_v37 = vsel %vm894_vm8, %v2813_v42, %v12364_v11  ;;  %v12370_v31 = vld [vmem:[#allocation143_spill] sm:$0xff]  ;;  %v12382_v0 = vld [vmem:[#allocation140_spill] sm:$0xff] }
 0x2a4   : > { %6283 = vmatmul.mubr.msk.f32.gmra.mxu0 %vm1654_vm10, %v2858_v41  ;;  %v2722_v34 = vpop.permute.xlu1 %2721  ;;  %v2720_v20 = vpop.permute.xlu0 %2719  ;;  %v12368_v41 = vld [vmem:[#allocation150_spill] sm:$0xff]  ;;  %v2791_v60 = vsel %vm844_vm6, %v12370_v31, %v12369_v16  ;;  %v12377_v18 = vld [vmem:[#allocation135_spill] sm:$0xff] }
 0x2a5   : > { %v2860_v26 = vsel %vm919_vm9, %v2836_v61, %v2722_v34  ;;  %v2859_v55 = vsel %vm919_vm9, %v2835_v27, %v2720_v20  ;;  %v3265_v15 = vrot.slane %v12368_v41, 2  ;;  %v2815_v61 = vsel %vm869_vm7, %v2791_v60, %v12372_v4  ;;  %v12373_v27 = vld [vmem:[#allocation29_spill] sm:$0xff]  ;;  %v12378_v54 = vld [vmem:[#allocation91_spill] sm:$0xff] }
 0x2a6   : > { %3540 = vrot.lane.b32.xlu1 %v3276_v28, %s6543_s28  ;;  %3538 = vrot.lane.b32.xlu0 %v3277_v3, %s6543_s28  ;;  %v3272_v28 = vsel %vm335_vm2, %v3262_v5, %v3263_v21  ;;  %v3273_v3 = vsel %vm335_vm2, %v3261_v9, %v3262_v5  ;;  %v2840_v34 = vsel %vm894_vm8, %v2816_v51, %v9294_v13  ;;  %v12375_v9 = vld [vmem:[#allocation30_spill] sm:$0xff]  ;;  %v12384_v60 = vld [vmem:[#allocation141_spill] sm:$0xff]  ;;  %v3294_v4 = vrot.slane %v9084_v49, 3 }
 0x2a7   : > { %6285 = vmatprep.mubr.msk.f32.mxu0 %vm1654_vm10, %v2859_v55  ;;  %v2839_v30 = vsel %vm894_vm8, %v2815_v61, %v9296_v43  ;;  %v3270_v13 = vsel %vm335_vm2, %v3264_v48, %v3265_v15  ;;  %v3271_v43 = vsel %vm335_vm2, %v3263_v21, %v3264_v48  ;;  %v2795_v51 = vsel %vm844_vm6, %v12385_v12, %v12384_v60  ;;  %v12386_v61 = vld [vmem:[#allocation144_spill] sm:$0xff] }
 0x2a8   : > { %6286 = vmatmul.mubr.msk.f32.gmra.mxu0 %vm1654_vm10, %v2860_v26  ;;  %v2726_v45 = vpop.permute.xlu1 %2725  ;;  %v2724_v19 = vpop.permute.xlu0 %2723  ;;  %v12374_v26 = vld [vmem:[#allocation38_spill] sm:$0xff] }
 0x2a9   : > { %v2862_v58 = vsel %vm919_vm9, %v2838_v56, %v2726_v45  ;;  %v2861_v7 = vsel %vm919_vm9, %v2837_v37, %v2724_v19  ;;  %v2794_v20 = vsel %vm844_vm6, %v12374_v26, %v12373_v27  ;;  %v3266_v56 = vrot.slane %v12378_v54, 2  ;;  %v12379_v45 = vld [vmem:[#allocation7_spill] sm:$0xff]  ;;  %v12380_v37 = vld [vmem:[#allocation133_spill] sm:$0xff]  ;;  %v12381_v19 = vld [vmem:[#allocation40_spill] sm:$0xff] }
 0x2aa   : > { %3544 = vrot.lane.b32.xlu1 %v3274_v22, %s6543_s28  ;;  %3542 = vrot.lane.b32.xlu0 %v3275_v52, %s6543_s28  ;;  %v2793_v52 = vsel %vm844_vm6, %v12376_v40, %v12375_v9  ;;  %v2818_v42 = vsel %vm869_vm7, %v2794_v20, %v12377_v18  ;;  %v3267_v11 = vrot.slane %v12379_v45, 2  ;;  %v3292_v27 = vrot.slane %v9087_v33, 3  ;;  %v12387_v26 = vld [vmem:[#allocation145_spill] sm:$0xff]  ;;  %v12389_v9 = vld [vmem:[#allocation120_spill] sm:$0xff]  ;;  %v12390_v40 = vld [vmem:[#allocation42_spill] sm:$0xff] }
 0x2ab   : > { %6288 = vmatprep.mubr.msk.f32.mxu0 %vm1654_vm10, %v2861_v7  ;;  %v2842_v38 = vsel %vm894_vm8, %v2818_v42, %v12381_v19  ;;  %v12383_v7 = vld [vmem:[#allocation127_spill] sm:$0xff]  ;;  %v2819_v20 = vsel %vm869_vm7, %v2795_v51, %v12387_v26  ;;  %v12391_v18 = vld [vmem:[#allocation121_spill] sm:$0xff]  ;;  %v12392_v42 = vld [vmem:[#allocation128_spill] sm:$0xff]  ;;  %v3295_v19 = vrot.slane %v9103_v59, 3 }
 0x2ac   : > { %6289 = vmatmul.mubr.msk.f32.gmra.mxu0 %vm1654_vm10, %v2862_v58  ;;  %v2730_v24 = vpop.permute.xlu1 %2729  ;;  %v2728_v22 = vpop.permute.xlu0 %2727  ;;  %v2817_v58 = vsel %vm869_vm7, %v2793_v52, %v12380_v37  ;;  %v2796_v16 = vsel %vm844_vm6, %v12383_v7, %v12382_v0  ;;  %v2798_v52 = vsel %vm844_vm6, %v12390_v40, %v12389_v9  ;;  %v12393_v37 = vld [vmem:[#allocation114_spill] sm:$0xff]  ;;  %v12395_v7 = vld [vmem:[#allocation69_spill] sm:$0xff] }
 0x2ad   : > { %v2864_v55 = vsel %vm919_vm9, %v2840_v34, %v2730_v24  ;;  %v2863_v5 = vsel %vm919_vm9, %v2839_v30, %v2728_v22  ;;  %v2841_v21 = vsel %vm894_vm8, %v2817_v58, %v9308_v14  ;;  %v2820_v14 = vsel %vm869_vm7, %v2796_v16, %v12386_v61  ;;  %v12388_v30 = vld [vmem:[#allocation66_spill] sm:$0xff]  ;;  %v9618_v9 = vpop.f32.mrf.mxu0 }
 0x2ae   : > { %3548 = vrot.lane.b32.xlu1 %v3272_v28, %s6543_s28  ;;  %3546 = vrot.lane.b32.xlu0 %v3273_v3, %s6543_s28  ;;  %v3293_v3 = vrot.slane %v9081_v63, 3  ;;  %v3268_v34 = vsel %vm335_vm2, %v3266_v56, %v3267_v11  ;;  %v3269_v24 = vsel %vm335_vm2, %v3265_v15, %v3266_v56  ;;  %v2822_v58 = vsel %vm869_vm7, %v2798_v52, %v12393_v37  ;;  %v12399_v26 = vld [vmem:[#allocation142_spill] sm:$0xff]  ;;  %v12407_v37 = vld [vmem:[#allocation44_spill] sm:$0xff] }
 0x2af   : > { %6291 = vmatprep.mubr.msk.f32.mxu0 %vm1654_vm10, %v2863_v5  ;;  %v2843_v5 = vsel %vm894_vm8, %v2819_v20, %v9321_v39  ;;  %v2846_v16 = vsel %vm894_vm8, %v2822_v58, %v12395_v7  ;;  %v12400_v20 = vld [vmem:[#allocation117_spill] sm:$0xff]  ;;  %12402 = vst [vmem:[#allocation71_spill] sm:$0xff] %v9618_v9  ;;  %v9628_v52 = vsel %vm385_vm3, %v3294_v4, %v3295_v19 }
 0x2b0   : > { %6292 = vmatmul.mubr.msk.f32.gmra.mxu0 %vm1654_vm10, %v2864_v55  ;;  %v2734_v8 = vpop.permute.xlu1 %2733  ;;  %v2732_v31 = vpop.permute.xlu0 %2731  ;;  %v2844_v55 = vsel %vm894_vm8, %v2820_v14, %v12388_v30  ;;  %v3339_v11 = vsel %vm385_vm3, %v3293_v3, %v3294_v4  ;;  %v3340_v39 = vsel %vm385_vm3, %v3292_v27, %v3293_v3  ;;  %v12398_v3 = vld [vmem:[#allocation45_spill] sm:$0xff]  ;;  %v3298_v27 = vrot.slane %v9126_v47, 3  ;;  %v12403_v47 = vld [vmem:[#allocation115_spill] sm:$0xff] }
 0x2b1   : > { %v2866_v48 = vsel %vm919_vm9, %v2842_v38, %v2734_v8  ;;  %v2865_v28 = vsel %vm919_vm9, %v2841_v21, %v2732_v31  ;;  %v9591_v38 = vrot.slane %v9106_v23, 3  ;;  %v12394_v8 = vld [vmem:[#allocation136_spill] sm:$0xff]  ;;  %v12396_v31 = vld [vmem:[#allocation90_spill] sm:$0xff]  ;;  %v2799_v30 = vsel %vm844_vm6, %v12400_v20, %v12399_v26 }
 0x2b2   : > { %3552 = vrot.lane.b32.xlu1 %v3270_v13, %s6543_s28  ;;  %3550 = vrot.lane.b32.xlu0 %v3271_v43, %s6543_s28  ;;  %v2797_v43 = vsel %vm844_vm6, %v12392_v42, %v12391_v18  ;;  %v12414_v26 = vld [vmem:[#allocation32_spill] sm:$0xff] }
 0x2b3   : > { %6294 = vmatprep.mubr.msk.f32.mxu0 %vm1654_vm10, %v2865_v28  ;;  %v2821_v0 = vsel %vm869_vm7, %v2797_v43, %v12394_v8  ;;  %v12397_v28 = vld [vmem:[#allocation17_spill] sm:$0xff]  ;;  %v9624_v40 = vsel %vm385_vm3, %v3295_v19, %v9591_v38  ;;  %v12405_v43 = vld [vmem:[#allocation34_spill] sm:$0xff] }
 0x2b4   : > { %6295 = vmatmul.mubr.msk.f32.gmra.mxu0 %vm1654_vm10, %v2866_v48  ;;  %v2738_v22 = vpop.permute.xlu1 %2737  ;;  %v2736_v13 = vpop.permute.xlu0 %2735  ;;  %v2845_v60 = vsel %vm894_vm8, %v2821_v0, %v12396_v31  ;;  %v2800_v61 = vsel %vm844_vm6, %v12398_v3, %v12397_v28  ;;  %v12408_v19 = vld [vmem:[#allocation37_spill] sm:$0xff]  ;;  %v12410_v31 = vld [vmem:[#allocation139_spill] sm:$0xff]  ;;  %v12412_v28 = vld [vmem:[#allocation116_spill] sm:$0xff] }
 0x2b5   : > { %v2868_v15 = vsel %vm919_vm9, %v2844_v55, %v2738_v22  ;;  %v2867_v56 = vsel %vm919_vm9, %v2843_v5, %v2736_v13  ;;  %v12401_v55 = vld [vmem:[#allocation147_spill] sm:$0xff]  ;;  %v2823_v5 = vsel %vm869_vm7, %v2799_v30, %v12403_v47  ;;  %v12409_v8 = vld [vmem:[#allocation129_spill] sm:$0xff]  ;;  %v3299_v3 = vrot.slane %v12412_v28, 3 }
 0x2b6   : > { %3556 = vrot.lane.b32.xlu1 %v3268_v34, %s6543_s28  ;;  %3554 = vrot.lane.b32.xlu0 %v3269_v24, %s6543_s28  ;;  %v3297_v24 = vrot.slane %v9123_v32, 3  ;;  %v2824_v22 = vsel %vm869_vm7, %v2800_v61, %v12401_v55  ;;  %v2847_v58 = vsel %vm894_vm8, %v2823_v5, %v12407_v37  ;;  %v2801_v0 = vsel %vm844_vm6, %v12409_v8, %v12408_v19  ;;  %v12413_v61 = vld [vmem:[#allocation138_spill] sm:$0xff]  ;;  %v12417_v37 = vld [vmem:[#allocation149_spill] sm:$0xff] }
 0x2b7   : > { %6297 = vmatprep.mubr.msk.f32.mxu0 %vm1654_vm10, %v2867_v56  ;;  %v12406_v56 = vld [vmem:[#allocation130_spill] sm:$0xff]  ;;  %v2825_v20 = vsel %vm869_vm7, %v2801_v0, %v12414_v26  ;;  %v12420_v19 = vld [vmem:[#allocation65_spill] sm:$0xff] }
 0x2b8   : > { %v9597_v21 = vpop.f32.mrf.mxu1  ;;  %6298 = vmatmul.mubr.msk.f32.gmra.mxu0 %vm1654_vm10, %v2868_v15  ;;  %v2742_v48 = vpop.permute.xlu1 %2741  ;;  %v12404_v15 = vld [vmem:[#allocation9_spill] sm:$0xff]  ;;  %v2849_v47 = vsel %vm894_vm8, %v2825_v20, %v9367_v17  ;;  %v12418_v17 = vld [vmem:[#allocation122_spill] sm:$0xff] }
 0x2b9   : > { %v2870_v12 = vsel %vm919_vm9, %v2846_v16, %v2742_v48  ;;  %v2740_v51 = vpop.permute.xlu0 %2739  ;;  %v2848_v13 = vsel %vm894_vm8, %v2824_v22, %v12404_v15  ;;  %v3335_v48 = vsel %vm385_vm3, %v3297_v24, %v3298_v27  ;;  %v6488_v15 = vld [vmem:[%s6603_s26 + $0xc8] sm:$0xff]  ;;  %v12424_v20 = vld [vmem:[#allocation134_spill] sm:$0xff] }
 0x2ba   : > { %v2869_v14 = vsel %vm919_vm9, %v2845_v60, %v2740_v51  ;;  %v9607_v34 = vpop.f32.mrf.mxu1  ;;  %3608 = vrot.lane.b32.xlu1 %v3339_v11, %s6544_s29  ;;  %3606 = vrot.lane.b32.xlu0 %v3340_v39, %s6544_s29  ;;  %v2802_v11 = vsel %vm844_vm6, %v12406_v56, %v12405_v43  ;;  %v3336_v51 = vsel %vm385_vm3, %v9591_v38, %v3297_v24  ;;  %v12423_v26 = vld [vmem:[#allocation125_spill] sm:$0xff] }
 0x2bb   : > { %6300 = vmatprep.mubr.msk.f32.mxu0 %vm1654_vm10, %v2869_v14  ;;  %v2826_v60 = vsel %vm869_vm7, %v2802_v11, %v12410_v31  ;;  %v3300_v14 = vrot.slane %v12413_v61, 3  ;;  %v12422_v31 = vld [vmem:[#allocation36_spill] sm:$0xff] }
 0x2bc   : > { %v9634_v18 = vpop.f32.mrf.mxu1  ;;  %6301 = vmatmul.mubr.msk.f32.gmra.mxu0 %vm1654_vm10, %v2870_v12  ;;  %v2746_v42 = vpop.permute.xlu1 %2745  ;;  %v2850_v30 = vsel %vm894_vm8, %v2826_v60, %v9365_v44  ;;  %v12416_v44 = vld [vmem:[#allocation148_spill] sm:$0xff] }
 0x2bd   : > { %v2872_v4 = vsel %vm919_vm9, %v2848_v13, %v2746_v42  ;;  %v2744_v39 = vpop.permute.xlu0 %2743  ;;  %v9657_v12 = vpop.f32.mrf.mxu0  ;;  %v12415_v13 = vld [vmem:[#allocation124_spill] sm:$0xff]  ;;  %v3301_v11 = vrot.slane %v12416_v44, 3 }
 0x2be   : > { %v2871_v7 = vsel %vm919_vm9, %v2847_v58, %v2744_v39  ;;  %v9647_v16 = vpop.f32.mrf.mxu1  ;;  %3612 = vrot.lane.b32.xlu1 %v9624_v40, %s6544_s29  ;;  %3610 = vrot.lane.b32.xlu0 %v9628_v52, %s6544_s29  ;;  %12411 = vst [vmem:[#allocation92_spill] sm:$0xff] %v9657_v12  ;;  %v2804_v42 = vsel %vm844_vm6, %v6488_v15, %v12415_v13  ;;  %v3302_v58 = vrot.slane %v12417_v37, 3  ;;  %v3303_v37 = vrot.slane %v9185_v6, 3 }
 0x2bf   : > { %6303 = vmatprep.mubr.msk.f32.mxu0 %vm1654_vm10, %v2871_v7  ;;  %v2828_v8 = vsel %vm869_vm7, %v2804_v42, %v12420_v19  ;;  %v9690_v0 = vpop.f32.mrf.mxu0  ;;  %v3333_v7 = vsel %vm385_vm3, %v3299_v3, %v3300_v14  ;;  %v12426_v42 = vld [vmem:[#allocation89_spill] sm:$0xff]  ;;  %v3332_v44 = vsel %vm385_vm3, %v3300_v14, %v3301_v11  ;;  %v12429_v19 = vld [vmem:[#allocation68_spill] sm:$0xff] }
 0x2c0   : > { %v9669_v55 = vpop.f32.mrf.mxu1  ;;  %6304 = vmatmul.mubr.msk.f32.gmra.mxu0 %vm1654_vm10, %v2872_v4  ;;  %v2750_v22 = vpop.permute.xlu1 %2749  ;;  %v12419_v4 = vld [vmem:[#allocation131_spill] sm:$0xff]  ;;  %12421 = vst [vmem:[#allocation43_spill] sm:$0xff] %v9690_v0 }
 0x2c1   : > { %v2874_v24 = vsel %vm919_vm9, %v2850_v30, %v2750_v22  ;;  %v2748_v5 = vpop.permute.xlu0 %2747  ;;  %v2803_v39 = vsel %vm844_vm6, %v12419_v4, %v12418_v17  ;;  %v2806_v30 = vsel %vm844_vm6, %v12424_v20, %v12423_v26  ;;  %v3304_v17 = vrot.slane %v9188_v62, 3  ;;  %v12428_v4 = vld [vmem:[#allocation31_spill] sm:$0xff] }
 0x2c2   : > { %v2873_v43 = vsel %vm919_vm9, %v2849_v47, %v2748_v5  ;;  %v9679_v56 = vpop.f32.mrf.mxu1  ;;  %3616 = vrot.lane.b32.xlu1 %v3335_v48, %s6544_s29  ;;  %3614 = vrot.lane.b32.xlu0 %v3336_v51, %s6544_s29  ;;  %v3334_v48 = vsel %vm385_vm3, %v3298_v27, %v3299_v3  ;;  %v2827_v60 = vsel %vm869_vm7, %v2803_v39, %v12422_v31  ;;  %v6489_v47 = vld [vmem:[%s6603_s26 + $0xd0] sm:$0xff]  ;;  %v12430_v31 = vld [vmem:[#allocation12_spill] sm:$0xff]  ;;  %v3305_v20 = vrot.slane %v9203_v29, 3 }
 0x2c3   : > { %6306 = vmatprep.mubr.msk.f32.mxu0 %vm1654_vm10, %v2873_v43  ;;  %v2852_v51 = vsel %vm894_vm8, %v2828_v8, %v9377_v36  ;;  %v2851_v22 = vsel %vm894_vm8, %v2827_v60, %v9379_v53  ;;  %v12425_v5 = vld [vmem:[#allocation126_spill] sm:$0xff]  ;;  %v2830_v53 = vsel %vm869_vm7, %v2806_v30, %v12426_v42  ;;  %v9722_v43 = vpop.f32.mrf.mxu0  ;;  %v3330_v26 = vsel %vm385_vm3, %v3302_v58, %v3303_v37  ;;  %v12431_v30 = vld [vmem:[#allocation33_spill] sm:$0xff] }
 0x2c4   : > { %v9701_v28 = vpop.f32.mrf.mxu1  ;;  %6307 = vmatmul.mubr.msk.f32.gmra.mxu0 %vm1654_vm10, %v2874_v24  ;;  %v2754_v61 = vpop.permute.xlu1 %2753  ;;  %v2805_v15 = vsel %vm844_vm6, %v6489_v47, %v12425_v5  ;;  %v3331_v24 = vsel %vm385_vm3, %v3301_v11, %v3302_v58  ;;  %12427 = vst [vmem:[#allocation95_spill] sm:$0xff] %v9722_v43  ;;  %v2854_v8 = vsel %vm894_vm8, %v2830_v53, %v12429_v19 }
 0x2c5   : > { %v2876_v27 = vsel %vm919_vm9, %v2852_v51, %v2754_v61  ;;  %v2752_v3 = vpop.permute.xlu0 %2751  ;;  %v2829_v39 = vsel %vm869_vm7, %v2805_v15, %v12428_v4  ;;  %v6203_v51 = vpop.f32.mrf.mxu0  ;;  %v3329_v61 = vsel %vm385_vm3, %v3303_v37, %v3304_v17  ;;  %v3328_v58 = vsel %vm385_vm3, %v3304_v17, %v3305_v20 }
 0x2c6   : > { %v2875_v36 = vsel %vm919_vm9, %v2851_v22, %v2752_v3  ;;  %v9714_v13 = vpop.f32.mrf.mxu1  ;;  %3620 = vrot.lane.b32.xlu1 %v3333_v7, %s6544_s29  ;;  %3618 = vrot.lane.b32.xlu0 %v3334_v48, %s6544_s29  ;;  %v2853_v60 = vsel %vm894_vm8, %v2829_v39, %v12430_v31  ;;  %v3306_v22 = vrot.slane %v12431_v30, 3  ;;  %v3310_v39 = vrot.slane %v9242_v1, 3 }
 0x2c7   : > { %6309 = vmatprep.mubr.msk.f32.mxu0 %vm1654_vm10, %v2875_v36  ;;  %v1817_v15 = vpop.f32.mrf.mxu0  ;;  %v3307_v36 = vrot.slane %v9221_v57, 3 }
 0x2c8   : > { %v9733_v7 = vpop.f32.mrf.mxu1  ;;  %6310 = vmatmul.mubr.msk.f32.gmra.mxu0 %vm1654_vm10, %v2876_v27  ;;  %v2758_v48 = vpop.permute.xlu1 %2757  ;;  %v3327_v29 = vsel %vm385_vm3, %v3305_v20, %v3306_v22 }
 0x2c9   : > { %v2878_v14 = vsel %vm919_vm9, %v2854_v8, %v2758_v48  ;;  %v2756_v11 = vpop.permute.xlu0 %2755  ;;  %v6206_v4 = vpop.f32.mrf.mxu0  ;;  %v3326_v57 = vsel %vm385_vm3, %v3306_v22, %v3307_v36  ;;  %v5969_v22 = vld [vmem:[%s11789_s1 + $0x50] sm:$0xff] }
 0x2ca   : > { %v2877_v6 = vsel %vm919_vm9, %v2853_v60, %v2756_v11  ;;  %v9740_v62 = vpop.f32.mrf.mxu1  ;;  %3624 = vrot.lane.b32.xlu1 %v3331_v24, %s6544_s29  ;;  %3622 = vrot.lane.b32.xlu0 %v3332_v44, %s6544_s29  ;;  %v3308_v24 = vrot.slane %v9224_v35, 3  ;;  %v3309_v35 = vrot.slane %v9239_v46, 3  ;;  %v3311_v60 = vrot.slane %v12360_v2, 3  ;;  %v5970_v2 = vld [vmem:[%s11789_s1 + $0x58] sm:$0xf] }
 0x2cb   : > { %6312 = vmatprep.mubr.msk.f32.mxu0 %vm1654_vm10, %v2877_v6  ;;  %v1827_v11 = vpop.f32.mrf.mxu0  ;;  %6315 = vmatprep.subr.msk.mxu1 %vm1727_vm5, %v5970_v2 }
 0x2cc   : > { %v9751_v27 = vpop.f32.mrf.mxu1  ;;  %6313 = vmatmul.mubr.msk.f32.gmra.mxu0 %vm1654_vm10, %v2878_v14  ;;  %v9754_v3 = vpop.permute.xlu1 %3416  ;;  %v3325_v17 = vsel %vm385_vm3, %v3307_v36, %v3308_v24  ;;  %v3312_v14 = vrot.slane %v12361_v50, 3  ;;  %v3323_v46 = vsel %vm385_vm3, %v3309_v35, %v3310_v39  ;;  %v3324_v1 = vsel %vm385_vm3, %v3308_v24, %v3309_v35  ;;  %6316 = vmatpush3.msk.msra.mxu1 %vm1727_vm5, %v5970_v2 }
 0x2cd   : > { %v9756_v47 = vpop.permute.xlu0 %3414  ;;  %v3313_v36 = vrot.slane %v12367_v25, 3  ;;  %v3314_v24 = vrot.slane %v12368_v41, 3  ;;  %6317 = vmatprep.subr.mxu1 %v5969_v22  ;;  %v3315_v25 = vrot.slane %v12378_v54, 3  ;;  %v3316_v41 = vrot.slane %v12379_v45, 3 }
 0x2ce   : > { %v9758_v5 = vpop.f32.mrf.mxu1  ;;  %3628 = vrot.lane.b32.xlu1 %v3329_v61, %s6544_s29  ;;  %3626 = vrot.lane.b32.xlu0 %v3330_v26, %s6544_s29  ;;  %v3321_v50 = vsel %vm385_vm3, %v3311_v60, %v3312_v14 }
 0x2cf   : > { %12432 = vst [vmem:[#allocation11_spill] sm:$0xff] %v9758_v5  ;;  %6318 = vmatpush3.msra.mxu1 %v5969_v22  ;;  %v3317_v45 = vsel %vm385_vm3, %v3315_v25, %v3316_v41 }
 0x2d0   : > { %v9768_v42 = vpop.f32.mrf.mxu1  ;;  %v9770_v53 = vpop.permute.xlu1 %3420 }
 0x2d1   : > { %12433 = vst [vmem:[#allocation48_spill] sm:$0xff] %v9768_v42  ;;  %v9772_v44 = vpop.permute.xlu0 %3418 }
 0x2d2   : > { %v9774_v37 = vpop.f32.mrf.mxu1  ;;  %3632 = vrot.lane.b32.xlu1 %v3327_v29, %s6544_s29  ;;  %3630 = vrot.lane.b32.xlu0 %v3328_v58, %s6544_s29  ;;  %v3322_v58 = vsel %vm385_vm3, %v3310_v39, %v3311_v60 }
 0x2d3   : > { %12434 = vst [vmem:[#allocation70_spill] sm:$0xff] %v9774_v37 }
 0x2d4   : > { %v9784_v19 = vpop.f32.mrf.mxu1  ;;  %v9786_v8 = vpop.permute.xlu1 %3424 }
 0x2d5   : > { %12435 = vst [vmem:[#allocation14_spill] sm:$0xff] %v9784_v19  ;;  %v9788_v48 = vpop.permute.xlu0 %3422 }
 0x2d6   : > { %v9790_v31 = vpop.f32.mrf.mxu1  ;;  %3636 = vrot.lane.b32.xlu1 %v3325_v17, %s6544_s29  ;;  %3634 = vrot.lane.b32.xlu0 %v3326_v57, %s6544_s29 }
 0x2d7   : > { %12436 = vst [vmem:[#allocation73_spill] sm:$0xff] %v9790_v31 }
 0x2d8   : > { %v6245_v6 = vpop.f32.mrf.mxu1  ;;  %v9800_v61 = vpop.permute.xlu1 %3428 }
 0x2d9   : > { %12437 = vst [vmem:[#allocation94_spill] sm:$0xff] %v9800_v61  ;;  %v9802_v26 = vadd.f32 %v6245_v6, %v6203_v51  ;;  %v9804_v20 = vpop.permute.xlu0 %3426  ;;  %v6209_v51 = vpop.f32.mrf.mxu0  ;;  %v3320_v6 = vsel %vm385_vm3, %v3312_v14, %v3313_v36  ;;  %v3318_v14 = vsel %vm385_vm3, %v3314_v24, %v3315_v25 }
 0x2da   : > { %v2077_v30 = vpop.f32.mrf.mxu1  ;;  %3640 = vrot.lane.b32.xlu1 %v3323_v46, %s6544_s29  ;;  %3638 = vrot.lane.b32.xlu0 %v3324_v1, %s6544_s29 }
 0x2db   : > { %v9816_v29 = vadd.f32 %v2077_v30, %v1817_v15  ;;  %v5968_v15 = vld [vmem:[%s11789_s1 + $0x48] sm:$0xff]  ;;  %v1837_v60 = vpop.f32.mrf.mxu0 }
 0x2dc   : > { %v6248_v17 = vpop.f32.mrf.mxu1  ;;  %v9823_v57 = vpop.permute.xlu1 %3432  ;;  %6319 = vmatprep.subr.mxu1 %v5968_v15 }
 0x2dd   : > { %12438 = vst [vmem:[#allocation97_spill] sm:$0xff] %v9823_v57  ;;  %v9826_v35 = vadd.f32 %v6248_v17, %v6206_v4  ;;  %v9828_v46 = vpop.permute.xlu0 %3430  ;;  %v3319_v4 = vsel %vm385_vm3, %v3313_v36, %v3314_v24  ;;  %6320 = vmatpush3.msra.mxu1 %v5968_v15  ;;  %v3343_v36 = vrot.slane %v9084_v49, 4  ;;  %v3341_v17 = vrot.slane %v9087_v33, 4 }
 0x2de   : > { %12439 = vst [vmem:[#allocation13_spill] sm:$0xff] %v9828_v46  ;;  %v2087_v39 = vpop.f32.mrf.mxu1  ;;  %3644 = vrot.lane.b32.xlu1 %v3321_v50, %s6544_s29  ;;  %3642 = vrot.lane.b32.xlu0 %v3322_v58, %s6544_s29  ;;  %v3344_v33 = vrot.slane %v9103_v59, 4  ;;  %v9876_v24 = vrot.slane %v9106_v23, 4  ;;  %v10178_v46 = vld [vmem:[%s6603_s26 + $0x90] sm:$0xff] }
 0x2df   : > { %v9837_v1 = vadd.f32 %v2087_v39, %v1827_v11  ;;  %v6212_v11 = vpop.f32.mrf.mxu0  ;;  %12485 = vst [vmem:[#allocation58_spill] sm:$0xff] %v10178_v46 }
 0x2e0   : > { %v6251_v2 = vpop.f32.mrf.mxu1  ;;  %v9843_v30 = vpop.permute.xlu1 %3436  ;;  %v3386_v59 = vsel %vm435_vm4, %v3344_v33, %v9876_v24  ;;  %v3387_v23 = vsel %vm435_vm4, %v3343_v36, %v3344_v33 }
 0x2e1   : > { %12440 = vst [vmem:[#allocation47_spill] sm:$0xff] %v9843_v30  ;;  %v9845_v50 = vadd.f32 %v6251_v2, %v6209_v51  ;;  %v9847_v58 = vpop.permute.xlu0 %3434  ;;  %v3342_v51 = vrot.slane %v9081_v63, 4 }
 0x2e2   : > { %12441 = vst [vmem:[#allocation16_spill] sm:$0xff] %v9847_v58  ;;  %v2097_v54 = vpop.f32.mrf.mxu1  ;;  %3648 = vrot.lane.b32.xlu1 %v3319_v4, %s6544_s29  ;;  %3646 = vrot.lane.b32.xlu0 %v3320_v6, %s6544_s29 }
 0x2e3   : > { %v9855_v22 = vadd.f32 %v2097_v54, %v1837_v60  ;;  %v3388_v63 = vsel %vm435_vm4, %v3342_v51, %v3343_v36  ;;  %v3389_v49 = vsel %vm435_vm4, %v3341_v17, %v3342_v51 }
 0x2e4   : > { %v6254_v15 = vpop.f32.mrf.mxu1  ;;  %v9860_v39 = vpop.permute.xlu1 %3440 }
 0x2e5   : > { %12442 = vst [vmem:[#allocation50_spill] sm:$0xff] %v9860_v39  ;;  %v9862_v4 = vadd.f32 %v6254_v15, %v6212_v11  ;;  %v9864_v6 = vpop.permute.xlu0 %3438 }
 0x2e6   : > { %12443 = vst [vmem:[#allocation51_spill] sm:$0xff] %v9864_v6  ;;  %v9866_v41 = vpop.f32.mrf.mxu1  ;;  %3652 = vrot.lane.b32.xlu1 %v3317_v45, %s6544_s29  ;;  %3650 = vrot.lane.b32.xlu0 %v3318_v14, %s6544_s29 }
 0x2e8   : > { %v6257_v25 = vpop.f32.mrf.mxu1  ;;  %v9878_v60 = vpop.permute.xlu1 %3444 }
 0x2e9   : > { %12444 = vst [vmem:[#allocation72_spill] sm:$0xff] %v9878_v60  ;;  %v9881_v2 = vadd.f32 %v6257_v25, %v9597_v21  ;;  %v9883_v54 = vpop.permute.xlu0 %3442  ;;  %v11888_v21 = vrot.slane %v9123_v32, 4 }
 0x2ea   : > { %12445 = vst [vmem:[#allocation75_spill] sm:$0xff] %v9883_v54  ;;  %v2117_v45 = vpop.f32.mrf.mxu1  ;;  %3704 = vrot.lane.b32.xlu1 %v3388_v63, %s6545_s30  ;;  %3702 = vrot.lane.b32.xlu0 %v3389_v49, %s6545_s30 }
 0x2eb   : > { %v9888_v14 = vadd.f32 %v2117_v45, %v9607_v34  ;;  %v3385_v36 = vsel %vm435_vm4, %v9876_v24, %v11888_v21 }
 0x2ec   : > { %v6260_v11 = vpop.f32.mrf.mxu1  ;;  %v9896_v51 = vpop.permute.xlu1 %3448 }
 0x2ed   : > { %12446 = vst [vmem:[#allocation96_spill] sm:$0xff] %v9896_v51  ;;  %v9899_v17 = vadd.f32 %v6260_v11, %v9634_v18  ;;  %v9901_v15 = vpop.permute.xlu0 %3446  ;;  %v6023_v18 = vld [vmem:[%s11789_s1 + $0x70] sm:$0xf] }
 0x2ee   : > { %12447 = vst [vmem:[#allocation99_spill] sm:$0xff] %v9901_v15  ;;  %v2127_v63 = vpop.f32.mrf.mxu1  ;;  %3708 = vrot.lane.b32.xlu1 %v3386_v59, %s6545_s30  ;;  %3706 = vrot.lane.b32.xlu0 %v3387_v23, %s6545_s30  ;;  %v12450_v11 = vld [vmem:[#allocation146_spill] sm:$0xff] }
 0x2ef   : > { %v9906_v34 = vadd.f32 %v2127_v63, %v9647_v16  ;;  %6357 = vmatprep.subr.msk.mxu0 %vm1727_vm5, %v6023_v18  ;;  %v6022_v63 = vld [vmem:[%s11789_s1 + $0x68] sm:$0xff] }
 0x2f0   : > { %v6263_v49 = vpop.f32.mrf.mxu1  ;;  %v9913_v33 = vpop.permute.xlu1 %3452  ;;  %6358 = vmatpush3.msk.msra.mxu0 %vm1727_vm5, %v6023_v18  ;;  %v12454_v18 = vld [vmem:[#allocation137_spill] sm:$0xff] }
 0x2f1   : > { %12448 = vst [vmem:[#allocation15_spill] sm:$0xff] %v9913_v33  ;;  %v9919_v25 = vadd.f32 %v6263_v49, %v9669_v55  ;;  %v9921_v45 = vpop.permute.xlu0 %3450  ;;  %6359 = vmatprep.subr.mxu0 %v6022_v63 }
 0x2f2   : > { %12449 = vst [vmem:[#allocation53_spill] sm:$0xff] %v9921_v45  ;;  %v2137_v16 = vpop.f32.mrf.mxu1  ;;  %4405 = vrot.lane.b32.xlu1 %v12450_v11, %s6542_s27  ;;  %3710 = vrot.lane.b32.xlu0 %v3385_v36, %s6545_s30  ;;  %v6021_v11 = vld [vmem:[%s11789_s1 + $0x60] sm:$0xff]  ;;  %v10032_v45 = vld [vmem:[%s6603_s26 + $0x70] sm:$0xff] }
 0x2f3   : > { %v9931_v21 = vadd.f32 %v2137_v16, %v9679_v56  ;;  %6360 = vmatpush3.msra.mxu0 %v6022_v63  ;;  %v12453_v56 = vld [vmem:[#allocation93_spill] sm:$0xff]  ;;  %12462 = vst [vmem:[#allocation18_spill] sm:$0xff] %v10032_v45 }
 0x2f4   : > { %v6266_v55 = vpop.f32.mrf.mxu1  ;;  %v9934_v49 = vpop.permute.xlu1 %3456  ;;  %6361 = vmatprep.subr.mxu0 %v6021_v11 }
 0x2f5   : > { %12451 = vst [vmem:[#allocation74_spill] sm:$0xff] %v9934_v49  ;;  %v9940_v36 = vadd.f32 %v6266_v55, %v9701_v28  ;;  %v9942_v5 = vpop.permute.xlu0 %3454  ;;  %v9954_v28 = vld [vmem:[%s6603_s26 + $0x58] sm:$0xff]  ;;  %6362 = vmatpush3.msra.mxu0 %v6021_v11  ;;  %v9972_v11 = vld [vmem:[%s6603_s26 + $0x60] sm:$0xff]  ;;  %v10016_v49 = vld [vmem:[%s6603_s26 + $0x68] sm:$0xff] }
 0x2f6   : > { %12452 = vst [vmem:[#allocation109_spill] sm:$0xff] %v9942_v5  ;;  %v2147_v31 = vpop.f32.mrf.mxu1  ;;  %4501 = vrot.lane.b32.xlu1 %v12453_v56, %s6543_s28  ;;  %4407 = vrot.lane.b32.xlu0 %v12454_v18, %s6542_s27  ;;  %v12457_v18 = vld [vmem:[#allocation39_spill] sm:$0xff] }
 0x2f7   : > { %v9949_v16 = vadd.f32 %v2147_v31, %v9714_v13  ;;  %v4188_v31 = vrot.slane %v9954_v28, 1 }
 0x2f8   : > { %v6269_v43 = vpop.f32.mrf.mxu1  ;;  %v9951_v19 = vpop.permute.xlu1 %3460 }
 0x2f9   : > { %12455 = vst [vmem:[#allocation52_spill] sm:$0xff] %v9951_v19  ;;  %v9957_v63 = vadd.f32 %v6269_v43, %v9733_v7  ;;  %v9959_v55 = vpop.permute.xlu0 %3458 }
 0x2fa   : > { %12456 = vst [vmem:[#allocation77_spill] sm:$0xff] %v9959_v55  ;;  %v2157_v56 = vpop.f32.mrf.mxu1  ;;  %4597 = vrot.lane.b32.xlu1 %v9628_v52, %s6544_s29  ;;  %4503 = vrot.lane.b32.xlu0 %v12457_v18, %s6543_s28  ;;  %v12458_v52 = vld [vmem:[#allocation113_spill] sm:$0xff]  ;;  %v4189_v18 = vrot.slane %v9972_v11, 1 }
 0x2fb   : > { %v9966_v13 = vadd.f32 %v2157_v56, %v9740_v62  ;;  %v4231_v62 = vsel %vm285_vm1, %v12458_v52, %v4188_v31  ;;  %v4237_v56 = vrot.slane %v9954_v28, 2  ;;  %v4238_v52 = vrot.slane %v9972_v11, 2 }
 0x2fc   : > { %v6272_v0 = vpop.f32.mrf.mxu1  ;;  %v9969_v19 = vpop.permute.xlu1 %3512 }
 0x2fd   : > { %v9975_v43 = vadd.f32 %v6272_v0, %v9751_v27  ;;  %v9977_v7 = vpop.permute.xlu0 %3510  ;;  %v12459_v0 = vld [vmem:[#allocation10_spill] sm:$0xff]  ;;  %v4230_v27 = vsel %vm285_vm1, %v4188_v31, %v4189_v18  ;;  %v4279_v31 = vsel %vm335_vm2, %v4237_v56, %v4238_v52 }
 0x2fe   : > { %4693 = vrot.lane.b32.xlu1 %v3387_v23, %s6545_s30  ;;  %4599 = vrot.lane.b32.xlu0 %v9624_v40, %s6544_s29  ;;  %v4280_v40 = vsel %vm335_vm2, %v12459_v0, %v4237_v56  ;;  %v4286_v23 = vrot.slane %v9954_v28, 3  ;;  %v4287_v0 = vrot.slane %v9972_v11, 3 }
 0x300   : > { %v9987_v55 = vpop.permute.xlu1 %3516  ;;  %v4328_v56 = vsel %vm385_vm3, %v4286_v23, %v4287_v0 }
 0x301   : > { %v9989_v37 = vpop.permute.xlu0 %3514 }
 0x302   : > { %4695 = vrot.lane.b32.xlu1 %v3386_v59, %s6545_s30  ;;  %4409 = vrot.lane.b32.xlu0 %v4231_v62, %s6542_s27  ;;  %v4329_v59 = vsel %vm385_vm3, %v9591_v38, %v4286_v23  ;;  %v4335_v62 = vrot.slane %v9954_v28, 4 }
 0x304   : > { %v10000_v12 = vpop.permute.xlu1 %3520  ;;  %v4378_v38 = vsel %vm435_vm4, %v9876_v24, %v4335_v62 }
 0x305   : > { %v10002_v42 = vpop.permute.xlu0 %3518 }
 0x306   : > { %4505 = vrot.lane.b32.xlu1 %v4280_v40, %s6543_s28  ;;  %4411 = vrot.lane.b32.xlu0 %v4230_v27, %s6542_s27  ;;  %v4336_v40 = vrot.slane %v9972_v11, 4  ;;  %v4190_v27 = vrot.slane %v10016_v49, 1 }
 0x308   : > { %v10013_v9 = vpop.permute.xlu1 %3524  ;;  %v4377_v24 = vsel %vm435_vm4, %v4335_v62, %v4336_v40  ;;  %v4229_v23 = vsel %vm285_vm1, %v4189_v18, %v4190_v27  ;;  %v4240_v18 = vrot.slane %v10032_v45, 2 }
 0x309   : > { %12460 = vst [vmem:[#allocation98_spill] sm:$0xff] %v10013_v9  ;;  %v10018_v5 = vpop.permute.xlu0 %3522 }
 0x30a   : > { %4601 = vrot.lane.b32.xlu1 %v4329_v59, %s6544_s29  ;;  %4507 = vrot.lane.b32.xlu0 %v4279_v31, %s6543_s28  ;;  %v4239_v59 = vrot.slane %v10016_v49, 2  ;;  %v4191_v31 = vrot.slane %v10032_v45, 1 }
 0x30c   : > { %v10029_v33 = vpop.permute.xlu1 %3528  ;;  %v4228_v62 = vsel %vm285_vm1, %v4190_v27, %v4191_v31 }
 0x30d   : > { %12461 = vst [vmem:[#allocation101_spill] sm:$0xff] %v10029_v33  ;;  %v10034_v51 = vpop.permute.xlu0 %3526 }
 0x30e   : > { %12463 = vst [vmem:[#allocation55_spill] sm:$0xff] %v10034_v51  ;;  %4697 = vrot.lane.b32.xlu1 %v4378_v38, %s6545_s30  ;;  %4603 = vrot.lane.b32.xlu0 %v4328_v56, %s6544_s29  ;;  %v4278_v38 = vsel %vm335_vm2, %v4238_v52, %v4239_v59  ;;  %v10056_v56 = vld [vmem:[%s6603_s26 + $0x60] sm:$0xff]  ;;  %v4277_v52 = vsel %vm335_vm2, %v4239_v59, %v4240_v18 }
 0x30f   : > { %v3347_v54 = vrot.slane %v10056_v56, 4 }
 0x310   : > { %v10044_v15 = vpop.permute.xlu1 %3532 }
 0x311   : > { %12464 = vst [vmem:[#allocation76_spill] sm:$0xff] %v10044_v15  ;;  %v10046_v60 = vpop.permute.xlu0 %3530  ;;  %v4289_v15 = vrot.slane %v10032_v45, 3 }
 0x312   : > { %12465 = vst [vmem:[#allocation110_spill] sm:$0xff] %v10046_v60  ;;  %4699 = vrot.lane.b32.xlu1 %v4377_v24, %s6545_s30  ;;  %4413 = vrot.lane.b32.xlu0 %v4229_v23, %s6542_s27  ;;  %v12468_v24 = vrot.slane %v9123_v32, 4  ;;  %v4288_v23 = vrot.slane %v10016_v49, 3 }
 0x314   : > { %v10059_v39 = vpop.permute.xlu1 %3536  ;;  %v3384_v27 = vsel %vm435_vm4, %v12468_v24, %v3347_v54  ;;  %v4326_v32 = vsel %vm385_vm3, %v4288_v23, %v4289_v15  ;;  %v4327_v59 = vsel %vm385_vm3, %v4287_v0, %v4288_v23  ;;  %v4337_v24 = vrot.slane %v10016_v49, 4 }
 0x315   : > { %12466 = vst [vmem:[#allocation79_spill] sm:$0xff] %v10059_v39  ;;  %v10061_v6 = vpop.permute.xlu0 %3534  ;;  %v4338_v23 = vrot.slane %v10032_v45, 4 }
 0x316   : > { %12467 = vst [vmem:[#allocation100_spill] sm:$0xff] %v10061_v6  ;;  %4509 = vrot.lane.b32.xlu1 %v4278_v38, %s6543_s28  ;;  %4415 = vrot.lane.b32.xlu0 %v4228_v62, %s6542_s27  ;;  %v10076_v6 = vld [vmem:[%s6603_s26 + $0x78] sm:$0xff] }
 0x317   : > { %12470 = vst [vmem:[#allocation103_spill] sm:$0xff] %v10076_v6  ;;  %v4192_v62 = vrot.slane %v10076_v6, 1 }
 0x318   : > { %v10073_v39 = vpop.permute.xlu1 %3540 }
 0x319   : > { %12469 = vst [vmem:[#allocation54_spill] sm:$0xff] %v10073_v39  ;;  %v10078_v38 = vpop.permute.xlu0 %3538 }
 0x31a   : > { %12471 = vst [vmem:[#allocation20_spill] sm:$0xff] %v10078_v38  ;;  %4511 = vrot.lane.b32.xlu1 %v4277_v52, %s6543_s28  ;;  %3712 = vrot.lane.b32.xlu0 %v3384_v27, %s6545_s30  ;;  %v4227_v52 = vsel %vm285_vm1, %v4191_v31, %v4192_v62  ;;  %v4376_v27 = vsel %vm435_vm4, %v4336_v40, %v4337_v24  ;;  %v10099_v38 = vld [vmem:[%s6603_s26 + $0x68] sm:$0xff] }
 0x31b   : > { %12474 = vst [vmem:[#allocation112_spill] sm:$0xff] %v10099_v38  ;;  %v3348_v0 = vrot.slane %v10099_v38, 4  ;;  %v4375_v31 = vsel %vm435_vm4, %v4337_v24, %v4338_v23 }
 0x31c   : > { %v10088_v39 = vpop.permute.xlu1 %3544 }
 0x31d   : > { %12472 = vst [vmem:[#allocation57_spill] sm:$0xff] %v10088_v39  ;;  %v10090_v30 = vpop.permute.xlu0 %3542  ;;  %v10106_v39 = vld [vmem:[%s6603_s26 + $0x80] sm:$0xff]  ;;  %v3383_v40 = vsel %vm435_vm4, %v3347_v54, %v3348_v0 }
 0x31e   : > { %12473 = vst [vmem:[#allocation78_spill] sm:$0xff] %v10090_v30  ;;  %4607 = vrot.lane.b32.xlu1 %v4326_v32, %s6544_s29  ;;  %4605 = vrot.lane.b32.xlu0 %v4327_v59, %s6544_s29  ;;  %12476 = vst [vmem:[#allocation102_spill] sm:$0xff] %v10106_v39  ;;  %v4241_v59 = vrot.slane %v10076_v6, 2  ;;  %v4193_v30 = vrot.slane %v10106_v39, 1  ;;  %v4242_v24 = vrot.slane %v10106_v39, 2 }
 0x320   : > { %v10103_v60 = vpop.permute.xlu1 %3548  ;;  %v4226_v54 = vsel %vm285_vm1, %v4192_v62, %v4193_v30 }
 0x321   : > { %12475 = vst [vmem:[#allocation81_spill] sm:$0xff] %v10103_v60  ;;  %v10108_v32 = vpop.permute.xlu0 %3546 }
 0x322   : > { %12477 = vst [vmem:[#allocation56_spill] sm:$0xff] %v10108_v32  ;;  %4417 = vrot.lane.b32.xlu1 %v4227_v52, %s6542_s27  ;;  %4701 = vrot.lane.b32.xlu0 %v4376_v27, %s6545_s30  ;;  %v4276_v52 = vsel %vm335_vm2, %v4240_v18, %v4241_v59  ;;  %v10130_v27 = vld [vmem:[%s6603_s26 + $0x70] sm:$0xff]  ;;  %v4275_v18 = vsel %vm335_vm2, %v4241_v59, %v4242_v24 }
 0x323   : > { %12480 = vst [vmem:[#allocation59_spill] sm:$0xff] %v10130_v27  ;;  %v3349_v32 = vrot.slane %v10130_v27, 4  ;;  %v10171_v27 = vld [vmem:[%s6603_s26 + $0x78] sm:$0xff] }
 0x324   : > { %v10118_v60 = vpop.permute.xlu1 %3552  ;;  %12484 = vst [vmem:[#allocation104_spill] sm:$0xff] %v10171_v27 }
 0x325   : > { %12478 = vst [vmem:[#allocation105_spill] sm:$0xff] %v10118_v60  ;;  %v10120_v58 = vpop.permute.xlu0 %3550  ;;  %v3382_v62 = vsel %vm435_vm4, %v3348_v0, %v3349_v32 }
 0x326   : > { %12479 = vst [vmem:[#allocation111_spill] sm:$0xff] %v10120_v58  ;;  %3714 = vrot.lane.b32.xlu1 %v3383_v40, %s6545_s30  ;;  %4703 = vrot.lane.b32.xlu0 %v4375_v31, %s6545_s30  ;;  %v4290_v40 = vrot.slane %v10076_v6, 3  ;;  %v4291_v31 = vrot.slane %v10106_v39, 3 }
 0x328   : > { %v10133_v60 = vpop.permute.xlu1 %3556  ;;  %v4324_v59 = vsel %vm385_vm3, %v4290_v40, %v4291_v31  ;;  %v4325_v0 = vsel %vm385_vm3, %v4289_v15, %v4290_v40  ;;  %v3350_v15 = vrot.slane %v10171_v27, 4  ;;  %v4340_v40 = vrot.slane %v10106_v39, 4 }
 0x329   : > { %12481 = vst [vmem:[#allocation80_spill] sm:$0xff] %v10133_v60  ;;  %v10135_v58 = vpop.permute.xlu0 %3554  ;;  %v10148_v60 = vld [vmem:[%s6603_s26 + $0x88] sm:$0xff]  ;;  %v4195_v39 = vrot.slane %v10178_v46, 1 }
 0x32a   : > { %12482 = vst [vmem:[#allocation22_spill] sm:$0xff] %v10135_v58  ;;  %4513 = vrot.lane.b32.xlu1 %v4276_v52, %s6543_s28  ;;  %4419 = vrot.lane.b32.xlu0 %v4226_v54, %s6542_s27  ;;  %12483 = vst [vmem:[#allocation83_spill] sm:$0xff] %v10148_v60  ;;  %v4194_v52 = vrot.slane %v10148_v60, 1  ;;  %v4339_v54 = vrot.slane %v10076_v6, 4 }
 0x32c   : > { %v10145_v33 = vpop.permute.xlu1 %3608 }
 0x32d   : > { %v10150_v58 = vpop.permute.xlu0 %3606 }
 0x32e   : > { %4515 = vrot.lane.b32.xlu1 %v4275_v18, %s6543_s28  ;;  %3716 = vrot.lane.b32.xlu0 %v3382_v62, %s6545_s30  ;;  %v4225_v18 = vsel %vm285_vm1, %v4193_v30, %v4194_v52  ;;  %v4374_v62 = vsel %vm435_vm4, %v4338_v23, %v4339_v54  ;;  %v3381_v30 = vsel %vm435_vm4, %v3349_v32, %v3350_v15 }
 0x32f   : > { %v4373_v23 = vsel %vm435_vm4, %v4339_v54, %v4340_v40  ;;  %v4224_v32 = vsel %vm285_vm1, %v4194_v52, %v4195_v39  ;;  %v4244_v54 = vrot.slane %v10178_v46, 2 }
 0x330   : > { %v10160_v57 = vpop.permute.xlu1 %3612 }
 0x331   : > { %v10162_v51 = vpop.permute.xlu0 %3610 }
 0x332   : > { %4611 = vrot.lane.b32.xlu1 %v4324_v59, %s6544_s29  ;;  %4609 = vrot.lane.b32.xlu0 %v4325_v0, %s6544_s29  ;;  %v4243_v0 = vrot.slane %v10148_v60, 2 }
 0x334   : > { %v10175_v6 = vpop.permute.xlu1 %3616 }
 0x335   : > { %v10180_v59 = vpop.permute.xlu0 %3614 }
 0x336   : > { %4421 = vrot.lane.b32.xlu1 %v4225_v18, %s6542_s27  ;;  %4705 = vrot.lane.b32.xlu0 %v4374_v62, %s6545_s30  ;;  %v4274_v18 = vsel %vm335_vm2, %v4242_v24, %v4243_v0  ;;  %v10202_v62 = vld [vmem:[%s6603_s26 + $0x80] sm:$0xff]  ;;  %v4273_v24 = vsel %vm335_vm2, %v4243_v0, %v4244_v54 }
 0x337   : > { %12487 = vst [vmem:[#allocation21_spill] sm:$0xff] %v10202_v62  ;;  %v3351_v9 = vrot.slane %v10202_v62, 4 }
 0x338   : > { %v10190_v27 = vpop.permute.xlu1 %3620 }
 0x339   : > { %12486 = vst [vmem:[#allocation107_spill] sm:$0xff] %v10190_v27  ;;  %v10192_v45 = vpop.permute.xlu0 %3618  ;;  %v3380_v52 = vsel %vm435_vm4, %v3350_v15, %v3351_v9 }
 0x33a   : > { %3718 = vrot.lane.b32.xlu1 %v3381_v30, %s6545_s30  ;;  %4707 = vrot.lane.b32.xlu0 %v4373_v23, %s6545_s30  ;;  %v4292_v30 = vrot.slane %v10148_v60, 3  ;;  %v4293_v23 = vrot.slane %v10178_v46, 3 }
 0x33c   : > { %v10205_v27 = vpop.permute.xlu1 %3624  ;;  %v4322_v0 = vsel %vm385_vm3, %v4292_v30, %v4293_v23  ;;  %v4323_v15 = vsel %vm385_vm3, %v4291_v31, %v4292_v30  ;;  %v4342_v30 = vrot.slane %v10178_v46, 4 }
 0x33d   : > { %12488 = vst [vmem:[#allocation61_spill] sm:$0xff] %v10205_v27  ;;  %v10207_v38 = vpop.permute.xlu0 %3622  ;;  %v10220_v27 = vld [vmem:[%s6603_s26 + $0x98] sm:$0xff] }
 0x33e   : > { %12489 = vst [vmem:[#allocation82_spill] sm:$0xff] %v10207_v38  ;;  %4517 = vrot.lane.b32.xlu1 %v4274_v18, %s6543_s28  ;;  %4423 = vrot.lane.b32.xlu0 %v4224_v32, %s6542_s27  ;;  %v4196_v18 = vrot.slane %v10220_v27, 1  ;;  %v4341_v32 = vrot.slane %v10148_v60, 4 }
 0x340   : > { %v10217_v62 = vpop.permute.xlu1 %3628 }
 0x341   : > { %12490 = vst [vmem:[#allocation24_spill] sm:$0xff] %v10217_v62  ;;  %v10222_v38 = vpop.permute.xlu0 %3626 }
 0x342   : > { %12491 = vst [vmem:[#allocation85_spill] sm:$0xff] %v10222_v38  ;;  %4519 = vrot.lane.b32.xlu1 %v4273_v24, %s6543_s28  ;;  %3720 = vrot.lane.b32.xlu0 %v3380_v52, %s6545_s30  ;;  %v4223_v24 = vsel %vm285_vm1, %v4195_v39, %v4196_v18  ;;  %v4372_v52 = vsel %vm435_vm4, %v4340_v40, %v4341_v32  ;;  %v10243_v38 = vld [vmem:[%s6603_s26 + $0x88] sm:$0xff] }
 0x343   : > { %v3352_v31 = vrot.slane %v10243_v38, 4  ;;  %v4371_v40 = vsel %vm435_vm4, %v4341_v32, %v4342_v30 }
 0x344   : > { %v10232_v62 = vpop.permute.xlu1 %3632 }
 0x345   : > { %12492 = vst [vmem:[#allocation106_spill] sm:$0xff] %v10232_v62  ;;  %v10234_v61 = vpop.permute.xlu0 %3630  ;;  %v10250_v62 = vld [vmem:[%s6603_s26 + $0xa0] sm:$0xff]  ;;  %v3379_v39 = vsel %vm435_vm4, %v3351_v9, %v3352_v31 }
 0x346   : > { %12493 = vst [vmem:[#allocation60_spill] sm:$0xff] %v10234_v61  ;;  %4615 = vrot.lane.b32.xlu1 %v4322_v0, %s6544_s29  ;;  %4613 = vrot.lane.b32.xlu0 %v4323_v15, %s6544_s29  ;;  %v4245_v15 = vrot.slane %v10220_v27, 2  ;;  %v4197_v61 = vrot.slane %v10250_v62, 1  ;;  %v11898_v32 = vrot.slane %v10250_v62, 2 }
 0x348   : > { %v10247_v60 = vpop.permute.xlu1 %3636  ;;  %v4222_v9 = vsel %vm285_vm1, %v4196_v18, %v4197_v61 }
 0x349   : > { %12494 = vst [vmem:[#allocation108_spill] sm:$0xff] %v10247_v60  ;;  %v10252_v0 = vpop.permute.xlu0 %3634 }
 0x34a   : > { %12495 = vst [vmem:[#allocation23_spill] sm:$0xff] %v10252_v0  ;;  %4425 = vrot.lane.b32.xlu1 %v4223_v24, %s6542_s27  ;;  %4709 = vrot.lane.b32.xlu0 %v4372_v52, %s6545_s30  ;;  %v4272_v24 = vsel %vm335_vm2, %v4244_v54, %v4245_v15  ;;  %v10274_v52 = vld [vmem:[%s6603_s26 + $0x90] sm:$0xff]  ;;  %v4271_v54 = vsel %vm335_vm2, %v4245_v15, %v11898_v32  ;;  %v4343_v32 = vrot.slane %v10220_v27, 4 }
 0x34b   : > { %12498 = vst [vmem:[#allocation26_spill] sm:$0xff] %v10274_v52  ;;  %v3353_v0 = vrot.slane %v10274_v52, 4 }
 0x34c   : > { %v10262_v60 = vpop.permute.xlu1 %3640 }
 0x34d   : > { %12496 = vst [vmem:[#allocation63_spill] sm:$0xff] %v10262_v60  ;;  %v10264_v46 = vpop.permute.xlu0 %3638  ;;  %v3378_v18 = vsel %vm435_vm4, %v3352_v31, %v3353_v0 }
 0x34e   : > { %12497 = vst [vmem:[#allocation84_spill] sm:$0xff] %v10264_v46  ;;  %3722 = vrot.lane.b32.xlu1 %v3379_v39, %s6545_s30  ;;  %4711 = vrot.lane.b32.xlu0 %v4371_v40, %s6545_s30  ;;  %v4294_v39 = vrot.slane %v10220_v27, 3  ;;  %v11900_v40 = vrot.slane %v10250_v62, 3 }
 0x350   : > { %v10277_v60 = vpop.permute.xlu1 %3644  ;;  %v4320_v31 = vsel %vm385_vm3, %v4294_v39, %v11900_v40  ;;  %v4321_v15 = vsel %vm385_vm3, %v4293_v23, %v4294_v39  ;;  %v10321_v23 = vld [vmem:[%s6603_s26 + $0x98] sm:$0xff] }
 0x351   : > { %12499 = vst [vmem:[#allocation87_spill] sm:$0xff] %v10277_v60  ;;  %v10279_v46 = vpop.permute.xlu0 %3642  ;;  %12505 = vst [vmem:[#allocation28_spill] sm:$0xff] %v10321_v23  ;;  %v3354_v39 = vrot.slane %v10321_v23, 4  ;;  %v10347_v23 = vpop.f32.mrf.mxu0 }
 0x352   : > { %12500 = vst [vmem:[#allocation4_spill] sm:$0xff] %v10279_v46  ;;  %4521 = vrot.lane.b32.xlu1 %v4272_v24, %s6543_s28  ;;  %4427 = vrot.lane.b32.xlu0 %v4222_v9, %s6542_s27  ;;  %v10294_v46 = vld [vmem:[%s6603_s26 + $0xa8] sm:$0xff] }
 0x353   : > { %v4198_v9 = vrot.slane %v10294_v46, 1 }
 0x354   : > { %v10291_v60 = vpop.permute.xlu1 %3648 }
 0x355   : > { %12501 = vst [vmem:[#allocation62_spill] sm:$0xff] %v10291_v60  ;;  %v10296_v24 = vpop.permute.xlu0 %3646 }
 0x356   : > { %12502 = vst [vmem:[#allocation6_spill] sm:$0xff] %v10296_v24  ;;  %4523 = vrot.lane.b32.xlu1 %v4271_v54, %s6543_s28  ;;  %3724 = vrot.lane.b32.xlu0 %v3378_v18, %s6545_s30  ;;  %v6497_v24 = vld [vmem:[%s6603_s26 + $0x38] sm:$0xff]  ;;  %v6498_v18 = vld [vmem:[%s6603_s26 + $0x30] sm:$0xff] }
 0x357   : > { %v3775_v54 = vsel %vm844_vm6, %v6497_v24, %v9754_v3  ;;  %v3774_v40 = vsel %vm844_vm6, %v6498_v18, %v9756_v47  ;;  %v4221_v3 = vsel %vm285_vm1, %v4197_v61, %v4198_v9  ;;  %v4370_v24 = vsel %vm435_vm4, %v4342_v30, %v4343_v32 }
 0x358   : > { %v10308_v60 = vpop.permute.xlu1 %3652  ;;  %v6546_v18 = vmov 0  }
 0x359   : > { %12503 = vst [vmem:[#allocation25_spill] sm:$0xff] %v10308_v60  ;;  %v10310_v52 = vpop.permute.xlu0 %3650  ;;  %v3799_v60 = vsel %vm869_vm7, %v3775_v54, %v9969_v19  ;;  %6437 = vset.pattern.permute.xlu1 %v6546_v18  ;;  %6436 = vset.pattern.permute.xlu0 %v6546_v18  ;;  %v10336_v19 = vld [vmem:[%s6603_s26 + $0xb0] sm:$0xff]  ;;  %v10339_v54 = vld [vmem:[%s6603_s26 + $0x48] sm:$0xff] }
 0x35a   : > { %12504 = vst [vmem:[#allocation86_spill] sm:$0xff] %v10310_v52  ;;  %4619 = vrot.lane.b32.xlu1 %v4320_v31, %s6544_s29  ;;  %4617 = vrot.lane.b32.xlu0 %v4321_v15, %s6544_s29  ;;  %v3798_v31 = vsel %vm869_vm7, %v3774_v40, %v9977_v7  ;;  %v3823_v15 = vsel %vm894_vm8, %v3799_v60, %v10145_v33  ;;  %v10350_v7 = vld [vmem:[%s6603_s26 + $0x40] sm:$0xff]  ;;  %v4247_v40 = vrot.slane %v10294_v46, 2 }
 0x35b   : > { %v3777_v61 = vsel %vm844_vm6, %v10339_v54, %v9770_v53  ;;  %v3822_v30 = vsel %vm894_vm8, %v3798_v31, %v10150_v58  ;;  %v3776_v60 = vsel %vm844_vm6, %v10350_v7, %v9772_v44  ;;  %v3377_v53 = vsel %vm435_vm4, %v3353_v0, %v3354_v39 }
 0x35c   : > { %v3705_v52 = vpop.permute.xlu1 %3704  ;;  %v3801_v58 = vsel %vm869_vm7, %v3777_v61, %v9987_v55  ;;  %v10380_v61 = vld [vmem:[%s6603_s26 + $0x50] sm:$0xff] }
 0x35d   : > { %v3847_v18 = vsel %vm919_vm9, %v3823_v15, %v3705_v52  ;;  %v3703_v47 = vpop.permute.xlu0 %3702  ;;  %v12506_v52 = vrot.slane %v10250_v62, 4  ;;  %v3825_v0 = vsel %vm894_vm8, %v3801_v58, %v10160_v57 }
 0x35e   : > { %v3846_v33 = vsel %vm919_vm9, %v3822_v30, %v3703_v47  ;;  %4429 = vrot.lane.b32.xlu1 %v4221_v3, %s6542_s27  ;;  %4713 = vrot.lane.b32.xlu0 %v4370_v24, %s6545_s30  ;;  %v4199_v3 = vrot.slane %v10336_v19, 1  ;;  %v3800_v24 = vsel %vm869_vm7, %v3776_v60, %v9989_v37  ;;  %v3778_v37 = vsel %vm844_vm6, %v10380_v61, %v9788_v48 }
 0x35f   : > { %6321 = vmatprep.mubr.msk.f32.mxu1 %vm1654_vm10, %v3846_v33  ;;  %v4369_v44 = vsel %vm435_vm4, %v4343_v32, %v12506_v52  ;;  %v3824_v31 = vsel %vm894_vm8, %v3800_v24, %v10162_v51  ;;  %v12507_v51 = vrot.slane %v10250_v62, 2  ;;  %v11903_v48 = vrot.slane %v10336_v19, 2  ;;  %v10399_v33 = vld [vmem:[%s6603_s26 + $0xa0] sm:$0xff] }
 0x360   : > { %v10373_v47 = vpop.f32.mrf.mxu0  ;;  %6322 = vmatmul.mubr.msk.f32.vlgmr.msra.gmra.mxu1 %vm1654_vm10, %v3847_v18  ;;  %v3709_v55 = vpop.permute.xlu1 %3708  ;;  %v4220_v60 = vsel %vm285_vm1, %v4198_v9, %v4199_v3  ;;  %v3355_v58 = vrot.slane %v10399_v33, 4 }
 0x361   : > { %v3849_v32 = vsel %vm919_vm9, %v3825_v0, %v3709_v55  ;;  %v3707_v15 = vpop.permute.xlu0 %3706  ;;  %v4270_v18 = vsel %vm335_vm2, %v12507_v51, %v4247_v40 }
 0x362   : > { %v3848_v57 = vsel %vm919_vm9, %v3824_v31, %v3707_v15  ;;  %v10386_v30 = vpop.f32.mrf.mxu0  ;;  %3726 = vrot.lane.b32.xlu1 %v3377_v53, %s6545_s30  ;;  %4715 = vrot.lane.b32.xlu0 %v4369_v44, %s6545_s30  ;;  %v3802_v53 = vsel %vm869_vm7, %v3778_v37, %v10002_v42  ;;  %v4269_v42 = vsel %vm335_vm2, %v4247_v40, %v11903_v48 }
 0x363   : > { %6324 = vmatprep.mubr.msk.f32.mxu1 %vm1654_vm10, %v3848_v57  ;;  %v3826_v24 = vsel %vm894_vm8, %v3802_v53, %v10180_v59  ;;  %v3376_v31 = vsel %vm435_vm4, %v3354_v39, %v3355_v58  ;;  %v4296_v59 = vrot.slane %v10294_v46, 3  ;;  %v10424_v57 = vld [vmem:[%s6603_s26 + $0xb8] sm:$0xff]  ;;  %v12508_v53 = vrot.slane %v10250_v62, 3 }
 0x364   : > { %v10404_v52 = vpop.f32.mrf.mxu0  ;;  %6325 = vmatmul.mubr.msk.f32.gmra.mxu1 %vm1654_vm10, %v3849_v32  ;;  %v4406_v44 = vpop.permute.xlu1 %4405  ;;  %v11902_v32 = vrot.slane %v10336_v19, 3 }
 0x365   : > { %v3711_v0 = vpop.permute.xlu0 %3710 }
 0x366   : > { %v3850_v9 = vsel %vm919_vm9, %v3826_v24, %v3711_v0  ;;  %v10410_v55 = vpop.f32.mrf.mxu0  ;;  %4525 = vrot.lane.b32.xlu1 %v4270_v18, %s6543_s28  ;;  %4431 = vrot.lane.b32.xlu0 %v4220_v60, %s6542_s27  ;;  %v4318_v39 = vsel %vm385_vm3, %v4296_v59, %v11902_v32  ;;  %v4200_v24 = vrot.slane %v10424_v57, 1 }
 0x367   : > { %6327 = vmatprep.mubr.msk.f32.mxu1 %vm1654_vm10, %v3850_v9 }
 0x368   : > { %v6287_v15 = vpop.f32.mrf.mxu0  ;;  %v4502_v37 = vpop.permute.xlu1 %4501  ;;  %v4219_v32 = vsel %vm285_vm1, %v4199_v3, %v4200_v24 }
 0x369   : > { %v10427_v51 = vadd.f32 %v6287_v15, %v9802_v26  ;;  %v4408_v18 = vpop.permute.xlu0 %4407  ;;  %v4319_v26 = vsel %vm385_vm3, %v12508_v53, %v4296_v59  ;;  %v4765_v15 = vsel %vm844_vm6, %v10350_v7, %v4406_v44 }
 0x36a   : > { %v3044_v60 = vpop.f32.mrf.mxu0  ;;  %4527 = vrot.lane.b32.xlu1 %v4269_v42, %s6543_s28  ;;  %3728 = vrot.lane.b32.xlu0 %v3376_v31, %s6545_s30  ;;  %v4345_v42 = vrot.slane %v10294_v46, 4  ;;  %v4789_v59 = vsel %vm869_vm7, %v4765_v15, %v4502_v37 }
 0x36b   : > { %v10432_v40 = vadd.f32 %v3044_v60, %v9816_v29 }
 0x36c   : > { %v6290_v0 = vpop.f32.mrf.mxu0  ;;  %v4598_v9 = vpop.permute.xlu1 %4597 }
 0x36d   : > { %v10445_v29 = vadd.f32 %v6290_v0, %v9826_v35  ;;  %v4504_v31 = vpop.permute.xlu0 %4503  ;;  %v10458_v35 = vld [vmem:[%s6603_s26 + $0xa8] sm:$0xff]  ;;  %v4813_v7 = vsel %vm894_vm8, %v4789_v59, %v4598_v9  ;;  %v4766_v9 = vsel %vm844_vm6, %v10339_v54, %v4408_v18 }
 0x36e   : > { %v3054_v60 = vpop.f32.mrf.mxu0  ;;  %4623 = vrot.lane.b32.xlu1 %v4318_v39, %s6544_s29  ;;  %4621 = vrot.lane.b32.xlu0 %v4319_v26, %s6544_s29  ;;  %v3356_v0 = vrot.slane %v10458_v35, 4  ;;  %v12509_v39 = vrot.slane %v10250_v62, 4 }
 0x36f   : > { %v10453_v53 = vadd.f32 %v3054_v60, %v9837_v1  ;;  %v10472_v60 = vld [vmem:[%s6603_s26 + $0xc0] sm:$0xff] }
 0x370   : > { %v6293_v44 = vpop.f32.mrf.mxu0  ;;  %v4694_v48 = vpop.permute.xlu1 %4693  ;;  %v4368_v26 = vsel %vm435_vm4, %v12509_v39, %v4345_v42  ;;  %v4790_v39 = vsel %vm869_vm7, %v4766_v9, %v4504_v31  ;;  %v2108_v31 = vadd.f32 %v9866_v41, %v10347_v23 }
 0x371   : > { %v10468_v1 = vadd.f32 %v6293_v44, %v9845_v50  ;;  %v4837_v3 = vsel %vm919_vm9, %v4813_v7, %v4694_v48  ;;  %v4600_v15 = vpop.permute.xlu0 %4599  ;;  %v3375_v50 = vsel %vm435_vm4, %v3355_v58, %v3356_v0  ;;  %v4249_v48 = vrot.slane %v10424_v57, 2 }
 0x372   : > { %v3064_v59 = vpop.f32.mrf.mxu0  ;;  %4433 = vrot.lane.b32.xlu1 %v4219_v32, %s6542_s27  ;;  %6363 = vmatprep.mubr.msk.f32.mxu0 %vm1654_vm10, %v4837_v3  ;;  %v4814_v7 = vsel %vm894_vm8, %v4790_v39, %v4600_v15  ;;  %v12510_v32 = vrot.slane %v10336_v19, 4 }
 0x373   : > { %v10480_v37 = vadd.f32 %v3064_v59, %v9855_v22  ;;  %4717 = vrot.lane.b32.xlu0 %v4368_v26, %s6545_s30  ;;  %v4201_v22 = vrot.slane %v10472_v60, 1 }
 0x374   : > { %v6296_v54 = vpop.f32.mrf.mxu0  ;;  %v4696_v18 = vpop.permute.xlu1 %4695  ;;  %v4367_v44 = vsel %vm435_vm4, %v4345_v42, %v12510_v32  ;;  %v12511_v42 = vrot.slane %v10336_v19, 2 }
 0x375   : > { %v10495_v26 = vadd.f32 %v6296_v54, %v9862_v4  ;;  %v4838_v58 = vsel %vm919_vm9, %v4814_v7, %v4696_v18  ;;  %v4410_v3 = vpop.permute.xlu0 %4409  ;;  %v11904_v4 = vrot.slane %v10472_v60, 2  ;;  %v4218_v39 = vsel %vm285_vm1, %v4200_v24, %v4201_v22 }
 0x376   : > { %v3074_v15 = vpop.f32.mrf.mxu0  ;;  %3730 = vrot.lane.b32.xlu1 %v3375_v50, %s6545_s30  ;;  %6364 = vmatmul.mubr.msk.f32.vlgmr.msra.gmra.mxu0 %vm1654_vm10, %v4838_v58  ;;  %v4268_v41 = vsel %vm335_vm2, %v12511_v42, %v4249_v48  ;;  %v10511_v50 = vld [vmem:[%s6603_s26 + $0xb0] sm:$0xff]  ;;  %v11905_v58 = vrot.slane %v10472_v60, 3 }
 0x377   : > { %v10500_v9 = vadd.f32 %v3074_v15, %v2108_v31  ;;  %4719 = vrot.lane.b32.xlu0 %v4367_v44, %s6545_s30  ;;  %v3357_v7 = vrot.slane %v10511_v50, 4  ;;  %v4267_v24 = vsel %vm335_vm2, %v4249_v48, %v11904_v4  ;;  %v4298_v31 = vrot.slane %v10424_v57, 3 }
 0x378   : > { %v6299_v23 = vpop.f32.mrf.mxu0  ;;  %v4506_v59 = vpop.permute.xlu1 %4505 }
 0x379   : > { %v10515_v54 = vadd.f32 %v6299_v23, %v9881_v2  ;;  %v4412_v18 = vpop.permute.xlu0 %4411  ;;  %v3374_v42 = vsel %vm435_vm4, %v3356_v0, %v3357_v7 }
 0x37a   : > { %v3084_v32 = vpop.f32.mrf.mxu0  ;;  %4529 = vrot.lane.b32.xlu1 %v4268_v41, %s6543_s28  ;;  %v10531_v41 = vld [vmem:[%s6603_s26 + $0xc8] sm:$0xff] }
 0x37b   : > { %v10519_v44 = vadd.f32 %v3084_v32, %v9888_v14  ;;  %4435 = vrot.lane.b32.xlu0 %v4218_v39, %s6542_s27  ;;  %v4767_v39 = vsel %vm844_vm6, %v10380_v61, %v4410_v3  ;;  %v4202_v0 = vrot.slane %v10531_v41, 1 }
 0x37c   : > { %v6302_v2 = vpop.f32.mrf.mxu0  ;;  %v4602_v15 = vpop.permute.xlu1 %4601  ;;  %v4791_v48 = vsel %vm869_vm7, %v4767_v39, %v4506_v59  ;;  %v4347_v59 = vrot.slane %v10424_v57, 4 }
 0x37d   : > { %v10534_v14 = vadd.f32 %v6302_v2, %v9899_v17  ;;  %v4508_v23 = vpop.permute.xlu0 %4507  ;;  %v4316_v17 = vsel %vm385_vm3, %v4298_v31, %v11905_v58  ;;  %v4815_v2 = vsel %vm894_vm8, %v4791_v48, %v4602_v15  ;;  %v4768_v58 = vsel %vm844_vm6, %v9954_v28, %v4412_v18 }
 0x37e   : > { %v3094_v32 = vpop.f32.mrf.mxu0  ;;  %4531 = vrot.lane.b32.xlu1 %v4267_v24, %s6543_s28  ;;  %v12512_v24 = vrot.slane %v10336_v19, 3  ;;  %v4792_v48 = vsel %vm869_vm7, %v4768_v58, %v4508_v23 }
 0x37f   : > { %v10541_v4 = vadd.f32 %v3094_v32, %v9906_v34  ;;  %3732 = vrot.lane.b32.xlu0 %v3374_v42, %s6545_s30 }
 0x380   : > { %v6305_v61 = vpop.f32.mrf.mxu0  ;;  %v4698_v3 = vpop.permute.xlu1 %4697  ;;  %v4317_v34 = vsel %vm385_vm3, %v12512_v24, %v4298_v31 }
 0x381   : > { %v10556_v42 = vadd.f32 %v6305_v61, %v9919_v25  ;;  %v4839_v39 = vsel %vm919_vm9, %v4815_v2, %v4698_v3  ;;  %v4604_v32 = vpop.permute.xlu0 %4603  ;;  %v4217_v25 = vsel %vm285_vm1, %v4201_v22, %v4202_v0  ;;  %v10571_v2 = vld [vmem:[%s6603_s26 + $0xb8] sm:$0xff]  ;;  %v12514_v3 = vrot.slane %v10336_v19, 4 }
 0x382   : > { %v3104_v15 = vpop.f32.mrf.mxu0  ;;  %4627 = vrot.lane.b32.xlu1 %v4316_v17, %s6544_s29  ;;  %6366 = vmatprep.mubr.msk.f32.mxu0 %vm1654_vm10, %v4839_v39  ;;  %v3358_v28 = vrot.slane %v10571_v2, 4  ;;  %v4816_v18 = vsel %vm894_vm8, %v4792_v48, %v4604_v32 }
 0x383   : > { %v10565_v31 = vadd.f32 %v3104_v15, %v9931_v21  ;;  %4625 = vrot.lane.b32.xlu0 %v4317_v34, %s6544_s29  ;;  %v4366_v58 = vsel %vm435_vm4, %v12514_v3, %v4347_v59  ;;  %v11906_v21 = vrot.slane %v10472_v60, 4  ;;  %v10585_v34 = vld [vmem:[%s6603_s26 + $0xd0] sm:$0xff]  ;;  %v4251_v15 = vrot.slane %v10531_v41, 2 }
 0x384   : > { %v6308_v17 = vpop.f32.mrf.mxu0  ;;  %v4700_v61 = vpop.permute.xlu1 %4699 }
 0x385   : > { %12513 = vst [vmem:[#allocation5_spill] sm:$0xff] %v10565_v31  ;;  %v10581_v23 = vadd.f32 %v6308_v17, %v9940_v36  ;;  %v4840_v22 = vsel %vm919_vm9, %v4816_v18, %v4700_v61  ;;  %v4414_v24 = vpop.permute.xlu0 %4413  ;;  %v3373_v36 = vsel %vm435_vm4, %v3357_v7, %v3358_v28  ;;  %v4365_v17 = vsel %vm435_vm4, %v4347_v59, %v11906_v21  ;;  %v6507_v7 = vld [vmem:[%s6603_s26 + $0x58] sm:$0xff] }
 0x386   : > { %v3114_v39 = vpop.f32.mrf.mxu0  ;;  %4437 = vrot.lane.b32.xlu1 %v4217_v25, %s6542_s27  ;;  %6367 = vmatmul.mubr.msk.f32.gmra.mxu0 %vm1654_vm10, %v4840_v22  ;;  %v4203_v25 = vrot.slane %v10585_v34, 1  ;;  %v12519_v59 = vrot.slane %v10472_v60, 2  ;;  %v12547_v31 = vld [vmem:[#allocation83_spill] sm:$0xff] }
 0x387   : > { %12515 = vst [vmem:[#allocation27_spill] sm:$0xff] %v10581_v23  ;;  %v10590_v32 = vadd.f32 %v3114_v39, %v9949_v16  ;;  %4721 = vrot.lane.b32.xlu0 %v4366_v58, %s6545_s30  ;;  %v3779_v58 = vsel %vm844_vm6, %v6507_v7, %v9786_v8 }
 0x388   : > { %v6311_v48 = vpop.f32.mrf.mxu0  ;;  %v4510_v18 = vpop.permute.xlu1 %4509  ;;  %v4266_v39 = vsel %vm335_vm2, %v12519_v59, %v4251_v15  ;;  %v4216_v8 = vsel %vm285_vm1, %v4202_v0, %v4203_v25 }
 0x389   : > { %12516 = vst [vmem:[#allocation64_spill] sm:$0xff] %v10590_v32  ;;  %v10602_v16 = vadd.f32 %v6311_v48, %v9957_v63  ;;  %v4416_v61 = vpop.permute.xlu0 %4415  ;;  %v3803_v48 = vsel %vm869_vm7, %v3779_v58, %v10000_v12  ;;  %v12521_v12 = vrot.slane %v10585_v34, 2  ;;  %v4300_v58 = vrot.slane %v10531_v41, 3  ;;  %v12545_v32 = vld [vmem:[#allocation21_spill] sm:$0xff] }
 0x38a   : > { %v3124_v3 = vpop.f32.mrf.mxu0  ;;  %3734 = vrot.lane.b32.xlu1 %v3373_v36, %s6545_s30 }
 0x38b   : > { %12517 = vst [vmem:[#allocation8_spill] sm:$0xff] %v10602_v16  ;;  %v10609_v22 = vadd.f32 %v3124_v3, %v9966_v13  ;;  %4723 = vrot.lane.b32.xlu0 %v4365_v17, %s6545_s30  ;;  %v10622_v13 = vld [vmem:[%s6603_s26 + $0xc0] sm:$0xff]  ;;  %v3827_v3 = vsel %vm894_vm8, %v3803_v48, %v10175_v6  ;;  %v4265_v0 = vsel %vm335_vm2, %v4251_v15, %v12521_v12  ;;  %v11907_v6 = vrot.slane %v10585_v34, 3 }
 0x38c   : > { %v6314_v36 = vpop.f32.mrf.mxu0  ;;  %v4512_v21 = vpop.permute.xlu1 %4511  ;;  %v3359_v17 = vrot.slane %v10622_v13, 4  ;;  %v12544_v16 = vld [vmem:[#allocation16_spill] sm:$0xff] }
 0x38d   : > { %12518 = vst [vmem:[#allocation132_spill] sm:$0xff] %v10609_v22  ;;  %v10628_v7 = vadd.f32 %v6314_v36, %v9975_v43  ;;  %v3713_v59 = vpop.permute.xlu0 %3712  ;;  %v10643_v36 = vld [vmem:[%s6603_s26 + $0xd8] sm:$0xff]  ;;  %v4314_v15 = vsel %vm385_vm3, %v4300_v58, %v11907_v6 }
 0x38e   : > { %v3851_v63 = vsel %vm919_vm9, %v3827_v3, %v3713_v59  ;;  %4533 = vrot.lane.b32.xlu1 %v4266_v39, %s6543_s28  ;;  %v3372_v48 = vsel %vm435_vm4, %v3358_v28, %v3359_v17  ;;  %v12522_v59 = vrot.slane %v10472_v60, 3  ;;  %v12534_v22 = vld [vmem:[#allocation103_spill] sm:$0xff] }
 0x38f   : > { %12520 = vst [vmem:[#allocation67_spill] sm:$0xff] %v10628_v7  ;;  %4439 = vrot.lane.b32.xlu0 %v4216_v8, %s6542_s27  ;;  %6328 = vmatmul.mubr.msk.f32.gmra.mxu1 %vm1654_vm10, %v3851_v63  ;;  %v4769_v63 = vsel %vm844_vm6, %v9972_v11, %v4414_v24  ;;  %v4204_v8 = vrot.slane %v10643_v36, 1  ;;  %v4349_v11 = vrot.slane %v10531_v41, 4 }
 0x390   : > { %v4608_v43 = vpop.permute.xlu1 %4607  ;;  %v4793_v28 = vsel %vm869_vm7, %v4769_v63, %v4510_v18  ;;  %v4315_v12 = vsel %vm385_vm3, %v12522_v59, %v4300_v58  ;;  %v4770_v58 = vsel %vm844_vm6, %v10016_v49, %v4416_v61  ;;  %v10675_v63 = vld [vmem:[%s6603_s26 + $0xc8] sm:$0xff]  ;;  %v11909_v61 = vrot.slane %v10585_v34, 4 }
 0x391   : > { %v4606_v39 = vpop.permute.xlu0 %4605 }
 0x392   : > { %4535 = vrot.lane.b32.xlu1 %v4265_v0, %s6543_s28  ;;  %v4817_v24 = vsel %vm894_vm8, %v4793_v28, %v4606_v39  ;;  %v4215_v39 = vsel %vm285_vm1, %v4203_v25, %v4204_v8  ;;  %v12523_v28 = vrot.slane %v10472_v60, 4 }
 0x393   : > { %3736 = vrot.lane.b32.xlu0 %v3372_v48, %s6545_s30  ;;  %v3780_v48 = vsel %vm844_vm6, %v10056_v56, %v9804_v20  ;;  %v3360_v20 = vrot.slane %v10675_v63, 4 }
 0x394   : > { %v4418_v3 = vpop.permute.xlu1 %4417  ;;  %v3804_v18 = vsel %vm869_vm7, %v3780_v48, %v10018_v5  ;;  %v4364_v49 = vsel %vm435_vm4, %v12523_v28, %v4349_v11  ;;  %v12527_v28 = vld [vmem:[#allocation98_spill] sm:$0xff] }
 0x395   : > { %v4702_v0 = vpop.permute.xlu0 %4701  ;;  %v3828_v56 = vsel %vm894_vm8, %v3804_v18, %v10192_v45  ;;  %v3371_v45 = vsel %vm435_vm4, %v3359_v17, %v3360_v20  ;;  %v12526_v17 = vrot.slane %v10585_v34, 2 }
 0x396   : > { %v4841_v6 = vsel %vm919_vm9, %v4817_v24, %v4702_v0  ;;  %4631 = vrot.lane.b32.xlu1 %v4314_v15, %s6544_s29  ;;  %v4794_v15 = vsel %vm869_vm7, %v4770_v58, %v4512_v21  ;;  %v4253_v21 = vrot.slane %v10643_v36, 2  ;;  %v4363_v0 = vsel %vm435_vm4, %v4349_v11, %v11909_v61  ;;  %v12524_v58 = vld [vmem:[#allocation94_spill] sm:$0xff]  ;;  %v12532_v61 = vld [vmem:[#allocation59_spill] sm:$0xff] }
 0x397   : > { %4629 = vrot.lane.b32.xlu0 %v4315_v12, %s6544_s29  ;;  %6369 = vmatprep.mubr.msk.f32.mxu0 %vm1654_vm10, %v4841_v6  ;;  %v4818_v6 = vsel %vm894_vm8, %v4794_v15, %v4608_v43  ;;  %v10689_v12 = vld [vmem:[%s6603_s26 + $0xe0] sm:$0xff] }
 0x398   : > { %v3715_v5 = vpop.permute.xlu1 %3714  ;;  %v4205_v48 = vrot.slane %v10689_v12, 1  ;;  %v4264_v15 = vsel %vm335_vm2, %v12526_v17, %v4253_v21 }
 0x399   : > { %v3852_v25 = vsel %vm919_vm9, %v3828_v56, %v3715_v5  ;;  %v4704_v59 = vpop.permute.xlu0 %4703  ;;  %v11908_v5 = vrot.slane %v10689_v12, 2 }
 0x39a   : > { %v4842_v24 = vsel %vm919_vm9, %v4818_v6, %v4704_v59  ;;  %4441 = vrot.lane.b32.xlu1 %v4215_v39, %s6542_s27  ;;  %6330 = vmatprep.mubr.msk.f32.mxu1 %vm1654_vm10, %v3852_v25  ;;  %v12525_v39 = vld [vmem:[#allocation112_spill] sm:$0xff]  ;;  %v4214_v6 = vsel %vm285_vm1, %v4204_v8, %v4205_v48  ;;  %v10719_v25 = vld [vmem:[%s6603_s26 + $0xd0] sm:$0xff] }
 0x39b   : > { %4725 = vrot.lane.b32.xlu0 %v4364_v49, %s6545_s30  ;;  %6370 = vmatmul.mubr.msk.f32.gmra.mxu0 %vm1654_vm10, %v4842_v24  ;;  %v3781_v56 = vsel %vm844_vm6, %v12525_v39, %v12524_v58  ;;  %v3361_v59 = vrot.slane %v10719_v25, 4  ;;  %v12528_v24 = vld [vmem:[#allocation107_spill] sm:$0xff]  ;;  %v4263_v8 = vsel %vm335_vm2, %v4253_v21, %v11908_v5  ;;  %v4302_v39 = vrot.slane %v10643_v36, 3  ;;  %v12531_v5 = vld [vmem:[#allocation13_spill] sm:$0xff] }
 0x39c   : > { %v4514_v43 = vpop.permute.xlu1 %4513  ;;  %v3805_v11 = vsel %vm869_vm7, %v3781_v56, %v12527_v28  ;;  %v11910_v56 = vrot.slane %v10689_v12, 3 }
 0x39d   : > { %v4420_v18 = vpop.permute.xlu0 %4419  ;;  %v3370_v28 = vsel %vm435_vm4, %v3360_v20, %v3361_v59 }
 0x39e   : > { %3738 = vrot.lane.b32.xlu1 %v3371_v45, %s6545_s30  ;;  %v3829_v45 = vsel %vm894_vm8, %v3805_v11, %v12528_v24  ;;  %v10737_v11 = vld [vmem:[%s6603_s26 + $0xe8] sm:$0xff]  ;;  %v4312_v21 = vsel %vm385_vm3, %v4302_v39, %v11910_v56  ;;  %v3782_v56 = vsel %vm844_vm6, %v12532_v61, %v12531_v5  ;;  %v12535_v5 = vld [vmem:[#allocation82_spill] sm:$0xff] }
 0x39f   : > { %4727 = vrot.lane.b32.xlu0 %v4363_v0, %s6545_s30 }
 0x3a0   : > { %v4516_v49 = vpop.permute.xlu1 %4515 }
 0x3a1   : > { %v3717_v0 = vpop.permute.xlu0 %3716 }
 0x3a2   : > { %v3853_v58 = vsel %vm919_vm9, %v3829_v45, %v3717_v0  ;;  %4537 = vrot.lane.b32.xlu1 %v4264_v15, %s6543_s28  ;;  %v4206_v45 = vrot.slane %v10737_v11, 1 }
 0x3a3   : > { %4443 = vrot.lane.b32.xlu0 %v4214_v6, %s6542_s27  ;;  %6331 = vmatmul.mubr.msk.f32.gmra.mxu1 %vm1654_vm10, %v3853_v58  ;;  %v12529_v6 = vld [vmem:[#allocation18_spill] sm:$0xff]  ;;  %v12530_v58 = vrot.slane %v10585_v34, 3 }
 0x3a4   : > { %v4612_v17 = vpop.permute.xlu1 %4611  ;;  %v4771_v24 = vsel %vm844_vm6, %v12529_v6, %v4418_v3  ;;  %v4351_v3 = vrot.slane %v10643_v36, 4 }
 0x3a5   : > { %v4610_v15 = vpop.permute.xlu0 %4609  ;;  %v4795_v20 = vsel %vm869_vm7, %v4771_v24, %v4514_v43  ;;  %v12533_v43 = vld [vmem:[#allocation55_spill] sm:$0xff] }
 0x3a6   : > { %4539 = vrot.lane.b32.xlu1 %v4263_v8, %s6543_s28  ;;  %v4313_v8 = vsel %vm385_vm3, %v12530_v58, %v4302_v39  ;;  %v3806_v24 = vsel %vm869_vm7, %v3782_v56, %v12533_v43  ;;  %v4772_v39 = vsel %vm844_vm6, %v12534_v22, %v4420_v18 }
 0x3a7   : > { %3740 = vrot.lane.b32.xlu0 %v3370_v28, %s6545_s30  ;;  %v4819_v28 = vsel %vm894_vm8, %v4795_v20, %v4610_v15  ;;  %v4213_v15 = vsel %vm285_vm1, %v4205_v48, %v4206_v45  ;;  %v10769_v20 = vld [vmem:[%s6603_s26 + $0xd8] sm:$0xff]  ;;  %v4796_v58 = vsel %vm869_vm7, %v4772_v39, %v4516_v49 }
 0x3a8   : > { %v4422_v0 = vpop.permute.xlu1 %4421  ;;  %v3362_v61 = vrot.slane %v10769_v20, 4  ;;  %v4820_v18 = vsel %vm894_vm8, %v4796_v58, %v4612_v17  ;;  %v4255_v17 = vrot.slane %v10737_v11, 2  ;;  %v12538_v58 = vld [vmem:[#allocation104_spill] sm:$0xff] }
 0x3a9   : > { %v4706_v6 = vpop.permute.xlu0 %4705 }
 0x3aa   : > { %v4843_v7 = vsel %vm919_vm9, %v4819_v28, %v4706_v6  ;;  %4635 = vrot.lane.b32.xlu1 %v4312_v21, %s6544_s29  ;;  %v3830_v21 = vsel %vm894_vm8, %v3806_v24, %v12535_v5  ;;  %v12536_v28 = vrot.slane %v10585_v34, 4  ;;  %v10783_v6 = vld [vmem:[%s6603_s26 + $0xf0] sm:$0xff]  ;;  %v3369_v49 = vsel %vm435_vm4, %v3361_v59, %v3362_v61 }
 0x3ab   : > { %4633 = vrot.lane.b32.xlu0 %v4313_v8, %s6544_s29  ;;  %6372 = vmatprep.mubr.msk.f32.mxu0 %vm1654_vm10, %v4843_v7  ;;  %v11911_v7 = vrot.slane %v10689_v12, 4  ;;  %v12539_v59 = vrot.slane %v10689_v12, 2 }
 0x3ac   : > { %v3719_v56 = vpop.permute.xlu1 %3718  ;;  %v4362_v22 = vsel %vm435_vm4, %v12536_v28, %v4351_v3 }
 0x3ad   : > { %v3854_v48 = vsel %vm919_vm9, %v3830_v21, %v3719_v56  ;;  %v4708_v8 = vpop.permute.xlu0 %4707  ;;  %v4361_v39 = vsel %vm435_vm4, %v4351_v3, %v11911_v7  ;;  %v12537_v21 = vld [vmem:[#allocation97_spill] sm:$0xff]  ;;  %v4262_v28 = vsel %vm335_vm2, %v12539_v59, %v4255_v17 }
 0x3ae   : > { %v4844_v43 = vsel %vm919_vm9, %v4820_v18, %v4708_v8  ;;  %4445 = vrot.lane.b32.xlu1 %v4213_v15, %s6542_s27  ;;  %6333 = vmatprep.mubr.msk.f32.mxu1 %vm1654_vm10, %v3854_v48  ;;  %v4207_v15 = vrot.slane %v10783_v6, 1  ;;  %v3783_v56 = vsel %vm844_vm6, %v12538_v58, %v12537_v21  ;;  %v12540_v18 = vld [vmem:[#allocation101_spill] sm:$0xff] }
 0x3af   : > { %4729 = vrot.lane.b32.xlu0 %v4362_v22, %s6545_s30  ;;  %6373 = vmatmul.mubr.msk.f32.gmra.mxu0 %vm1654_vm10, %v4844_v43  ;;  %v11912_v22 = vrot.slane %v10783_v6, 2  ;;  %v3807_v3 = vsel %vm869_vm7, %v3783_v56, %v12540_v18  ;;  %v10813_v43 = vld [vmem:[%s6603_s26 + $0xe0] sm:$0xff]  ;;  %v4304_v56 = vrot.slane %v10737_v11, 3  ;;  %v11913_v18 = vrot.slane %v10783_v6, 3 }
 0x3b0   : > { %v4518_v24 = vpop.permute.xlu1 %4517  ;;  %v4212_v8 = vsel %vm285_vm1, %v4206_v45, %v4207_v15 }
 0x3b1   : > { %v4424_v5 = vpop.permute.xlu0 %4423  ;;  %v4261_v45 = vsel %vm335_vm2, %v4255_v17, %v11912_v22  ;;  %v4310_v17 = vsel %vm385_vm3, %v4304_v56, %v11913_v18  ;;  %v12543_v22 = vrot.slane %v10689_v12, 3  ;;  %v3784_v18 = vsel %vm844_vm6, %v12545_v32, %v12544_v16  ;;  %v12548_v16 = vld [vmem:[#allocation85_spill] sm:$0xff] }
 0x3b2   : > { %3742 = vrot.lane.b32.xlu1 %v3369_v49, %s6545_s30  ;;  %v3363_v49 = vrot.slane %v10813_v43, 4 }
 0x3b3   : > { %4731 = vrot.lane.b32.xlu0 %v4361_v39, %s6545_s30  ;;  %v12541_v39 = vld [vmem:[#allocation61_spill] sm:$0xff] }
 0x3b4   : > { %v4520_v48 = vpop.permute.xlu1 %4519  ;;  %v3831_v21 = vsel %vm894_vm8, %v3807_v3, %v12541_v39  ;;  %v3368_v3 = vsel %vm435_vm4, %v3362_v61, %v3363_v49  ;;  %v10831_v39 = vld [vmem:[%s6603_s26 + $0xf8] sm:$0xff] }
 0x3b5   : > { %v3721_v58 = vpop.permute.xlu0 %3720 }
 0x3b6   : > { %v3855_v59 = vsel %vm919_vm9, %v3831_v21, %v3721_v58  ;;  %4541 = vrot.lane.b32.xlu1 %v4262_v28, %s6543_s28  ;;  %v4208_v58 = vrot.slane %v10831_v39, 1 }
 0x3b7   : > { %4447 = vrot.lane.b32.xlu0 %v4212_v8, %s6542_s27  ;;  %6334 = vmatmul.mubr.msk.f32.gmra.mxu1 %vm1654_vm10, %v3855_v59  ;;  %v12542_v8 = vld [vmem:[#allocation102_spill] sm:$0xff] }
 0x3b8   : > { %v4616_v7 = vpop.permute.xlu1 %4615  ;;  %v4773_v21 = vsel %vm844_vm6, %v12542_v8, %v4422_v0  ;;  %v4353_v0 = vrot.slane %v10737_v11, 4 }
 0x3b9   : > { %v4614_v28 = vpop.permute.xlu0 %4613  ;;  %v4797_v61 = vsel %vm869_vm7, %v4773_v21, %v4518_v24  ;;  %v12546_v24 = vld [vmem:[#allocation110_spill] sm:$0xff] }
 0x3ba   : > { %4543 = vrot.lane.b32.xlu1 %v4261_v45, %s6543_s28  ;;  %v4311_v45 = vsel %vm385_vm3, %v12543_v22, %v4304_v56  ;;  %v3808_v21 = vsel %vm869_vm7, %v3784_v18, %v12546_v24  ;;  %v4774_v22 = vsel %vm844_vm6, %v12547_v31, %v4424_v5  ;;  %v4211_v56 = vsel %vm285_vm1, %v4207_v15, %v4208_v58 }
 0x3bb   : > { %3744 = vrot.lane.b32.xlu0 %v3368_v3, %s6545_s30  ;;  %v4821_v3 = vsel %vm894_vm8, %v4797_v61, %v4614_v28  ;;  %v10863_v28 = vld [vmem:[%s6603_s26 + $0xe8] sm:$0xff]  ;;  %v4798_v61 = vsel %vm869_vm7, %v4774_v22, %v4520_v48 }
 0x3bc   : > { %v4426_v59 = vpop.permute.xlu1 %4425  ;;  %v3364_v32 = vrot.slane %v10863_v28, 4  ;;  %v4822_v5 = vsel %vm894_vm8, %v4798_v61, %v4616_v7  ;;  %v4257_v7 = vrot.slane %v10831_v39, 2 }
 0x3bd   : > { %v4710_v8 = vpop.permute.xlu0 %4709 }
 0x3be   : > { %v4845_v23 = vsel %vm919_vm9, %v4821_v3, %v4710_v8  ;;  %4639 = vrot.lane.b32.xlu1 %v4310_v17, %s6544_s29  ;;  %v3832_v17 = vsel %vm894_vm8, %v3808_v21, %v12548_v16  ;;  %v12549_v3 = vrot.slane %v10689_v12, 4  ;;  %v6020_v8 = vld [vmem:[%s6603_s26 + $0x100] sm:$0xff]  ;;  %v3367_v48 = vsel %vm435_vm4, %v3363_v49, %v3364_v32 }
 0x3bf   : > { %4637 = vrot.lane.b32.xlu0 %v4311_v45, %s6544_s29  ;;  %6375 = vmatprep.mubr.msk.f32.mxu0 %vm1654_vm10, %v4845_v23  ;;  %v4354_v23 = vrot.slane %v10783_v6, 4  ;;  %v4209_v16 = vrot.slane %v6020_v8, 1 }
 0x3c0   : > { %v3723_v18 = vpop.permute.xlu1 %3722  ;;  %v4360_v31 = vsel %vm435_vm4, %v12549_v3, %v4353_v0  ;;  %v4258_v3 = vrot.slane %v6020_v8, 2 }
 0x3c1   : > { %v3856_v15 = vsel %vm919_vm9, %v3832_v17, %v3723_v18  ;;  %v4712_v45 = vpop.permute.xlu0 %4711  ;;  %v4359_v22 = vsel %vm435_vm4, %v4353_v0, %v4354_v23  ;;  %v12551_v18 = vrot.slane %v10783_v6, 2 }
 0x3c2   : > { %v4846_v24 = vsel %vm919_vm9, %v4822_v5, %v4712_v45  ;;  %4449 = vrot.lane.b32.xlu1 %v4211_v56, %s6542_s27  ;;  %6336 = vmatprep.mubr.msk.f32.mxu1 %vm1654_vm10, %v3856_v15  ;;  %v12550_v56 = vld [vmem:[#allocation47_spill] sm:$0xff]  ;;  %v4210_v15 = vsel %vm285_vm1, %v4208_v58, %v4209_v16  ;;  %v6514_v45 = vld [vmem:[%s6603_s26 + $0xf0] sm:$0xff]  ;;  %v4307_v58 = vrot.slane %v6020_v8, 3 }
 0x3c3   : > { %4733 = vrot.lane.b32.xlu0 %v4360_v31, %s6545_s30  ;;  %6376 = vmatmul.mubr.msk.f32.gmra.mxu0 %vm1654_vm10, %v4846_v24  ;;  %v3785_v61 = vsel %vm844_vm6, %v10243_v38, %v12550_v56  ;;  %v4260_v49 = vsel %vm335_vm2, %v12551_v18, %v4257_v7  ;;  %v12552_v31 = vld [vmem:[#allocation76_spill] sm:$0xff]  ;;  %v3365_v24 = vrot.slane %v6514_v45, 4  ;;  %v4306_v18 = vrot.slane %v10831_v39, 3  ;;  %v12554_v45 = vld [vmem:[#allocation58_spill] sm:$0xff] }
 0x3c4   : > { %v4522_v21 = vpop.permute.xlu1 %4521  ;;  %v3809_v5 = vsel %vm869_vm7, %v3785_v61, %v12552_v31  ;;  %v4259_v61 = vsel %vm335_vm2, %v4257_v7, %v4258_v3  ;;  %v4355_v7 = vrot.slane %v10831_v39, 4  ;;  %v4356_v3 = vrot.slane %v6020_v8, 4  ;;  %v12558_v8 = vld [vmem:[#allocation100_spill] sm:$0xff] }
 0x3c5   : > { %v4428_v17 = vpop.permute.xlu0 %4427  ;;  %v3366_v31 = vsel %vm435_vm4, %v3364_v32, %v3365_v24 }
 0x3c6   : > { %3746 = vrot.lane.b32.xlu1 %v3367_v48, %s6545_s30  ;;  %v12553_v48 = vld [vmem:[#allocation24_spill] sm:$0xff] }
 0x3c7   : > { %4735 = vrot.lane.b32.xlu0 %v4359_v22, %s6545_s30  ;;  %v3833_v38 = vsel %vm894_vm8, %v3809_v5, %v12553_v48 }
 0x3c8   : > { %v4524_v0 = vpop.permute.xlu1 %4523 }
 0x3c9   : > { %v3725_v56 = vpop.permute.xlu0 %3724 }
 0x3ca   : > { %v3857_v22 = vsel %vm919_vm9, %v3833_v38, %v3725_v56  ;;  %4545 = vrot.lane.b32.xlu1 %v4260_v49, %s6543_s28  ;;  %v4775_v49 = vsel %vm844_vm6, %v12554_v45, %v4426_v59  ;;  %v12555_v56 = vrot.slane %v10783_v6, 3  ;;  %v12556_v59 = vld [vmem:[#allocation51_spill] sm:$0xff]  ;;  %v4776_v45 = vsel %vm844_vm6, %v10220_v27, %v4428_v17 }
 0x3cb   : > { %4451 = vrot.lane.b32.xlu0 %v4210_v15, %s6542_s27  ;;  %6337 = vmatmul.mubr.msk.f32.gmra.mxu1 %vm1654_vm10, %v3857_v22  ;;  %v4308_v15 = vsel %vm385_vm3, %v4306_v18, %v4307_v58  ;;  %v4799_v48 = vsel %vm869_vm7, %v4775_v49, %v4522_v21 }
 0x3cc   : > { %v4620_v16 = vpop.permute.xlu1 %4619  ;;  %v4309_v32 = vsel %vm385_vm3, %v12555_v56, %v4306_v18  ;;  %v4357_v18 = vsel %vm435_vm4, %v4355_v7, %v4356_v3  ;;  %v12560_v3 = vld [vmem:[#allocation50_spill] sm:$0xff] }
 0x3cd   : > { %v4618_v5 = vpop.permute.xlu0 %4617 }
 0x3ce   : > { %4547 = vrot.lane.b32.xlu1 %v4259_v61, %s6543_s28  ;;  %v4823_v24 = vsel %vm894_vm8, %v4799_v48, %v4618_v5  ;;  %v12557_v61 = vld [vmem:[#allocation26_spill] sm:$0xff]  ;;  %v12559_v5 = vld [vmem:[#allocation60_spill] sm:$0xff]  ;;  %v4800_v48 = vsel %vm869_vm7, %v4776_v45, %v4524_v0 }
 0x3cf   : > { %3748 = vrot.lane.b32.xlu0 %v3366_v31, %s6545_s30  ;;  %v3786_v31 = vsel %vm844_vm6, %v12557_v61, %v12556_v59  ;;  %v5150_v0 = vld [vmem:[%s11792_s4 + $0x8] sm:$0xff]  ;;  %v5151_v61 = vld [vmem:[%s11792_s4 + $0x10] sm:$0xff] }
 0x3d0   : > { %v4430_v38 = vpop.permute.xlu1 %4429  ;;  %v3810_v21 = vsel %vm869_vm7, %v3786_v31, %v12558_v8  ;;  %v12562_v31 = vld [vmem:[#allocation79_spill] sm:$0xff]  ;;  %v12563_v45 = vld [vmem:[#allocation106_spill] sm:$0xff] }
 0x3d1   : > { %v4714_v22 = vpop.permute.xlu0 %4713  ;;  %v3834_v49 = vsel %vm894_vm8, %v3810_v21, %v12559_v5  ;;  %v5152_v21 = vld [vmem:[%s11792_s4 + $0x18] sm:$0xff] }
 0x3d2   : > { %v4847_v58 = vsel %vm919_vm9, %v4823_v24, %v4714_v22  ;;  %4643 = vrot.lane.b32.xlu1 %v4308_v15, %s6544_s29  ;;  %v4358_v15 = vsel %vm435_vm4, %v4354_v23, %v4355_v7  ;;  %v4824_v24 = vsel %vm894_vm8, %v4800_v48, %v4620_v16  ;;  %v5149_v16 = vld [vmem:[%s11792_s4] sm:$0xff] }
 0x3d3   : > { %4641 = vrot.lane.b32.xlu0 %v4309_v32, %s6544_s29  ;;  %6378 = vmatprep.mubr.msk.f32.mxu0 %vm1654_vm10, %v4847_v58  ;;  %v12561_v22 = vld [vmem:[#allocation28_spill] sm:$0xff] }
 0x3d4   : > { %v3727_v56 = vpop.permute.xlu1 %3726  ;;  %v3787_v59 = vsel %vm844_vm6, %v12561_v22, %v12560_v3  ;;  %v5153_v48 = vld [vmem:[%s11792_s4 + $0x20] sm:$0xff] }
 0x3d5   : > { %v3858_v27 = vsel %vm919_vm9, %v3834_v49, %v3727_v56  ;;  %v4716_v17 = vpop.permute.xlu0 %4715  ;;  %v3811_v58 = vsel %vm869_vm7, %v3787_v59, %v12562_v31  ;;  %v12564_v59 = vld [vmem:[#allocation75_spill] sm:$0xff] }
 0x3d6   : > { %v4848_v32 = vsel %vm919_vm9, %v4824_v24, %v4716_v17  ;;  %4739 = vrot.lane.b32.xlu1 %v4357_v18, %s6545_s30  ;;  %6339 = vmatprep.mubr.msk.f32.mxu1 %vm1654_vm10, %v3858_v27  ;;  %v3835_v18 = vsel %vm894_vm8, %v3811_v58, %v12563_v45  ;;  %v4777_v27 = vsel %vm844_vm6, %v10250_v62, %v4430_v38  ;;  %v5155_v17 = vld [vmem:[%s11792_s4 + $0x30] sm:$0xff]  ;;  %v12565_v38 = vld [vmem:[#allocation20_spill] sm:$0xff] }
 0x3d7   : > { %4737 = vrot.lane.b32.xlu0 %v4358_v15, %s6545_s30  ;;  %6379 = vmatmul.mubr.msk.f32.gmra.mxu0 %vm1654_vm10, %v4848_v32  ;;  %v5154_v15 = vld [vmem:[%s11792_s4 + $0x28] sm:$0xff]  ;;  %v5157_v58 = vld [vmem:[%s11792_s4 + $0x40] sm:$0xff] }
 0x3d8   : > { %v4526_v23 = vpop.permute.xlu1 %4525 }
 0x3d9   : > { %v4432_v7 = vpop.permute.xlu0 %4431  ;;  %v4801_v32 = vsel %vm869_vm7, %v4777_v27, %v4526_v23  ;;  %v12567_v27 = vld [vmem:[#allocation72_spill] sm:$0xff] }
 0x3da   : > { %5180 = vperm.xlu1 %6437, %v5150_v0   ;;  %v4778_v23 = vsel %vm844_vm6, %v10294_v46, %v4432_v7 }
 0x3db   : > { %5175 = vperm.xlu0 %6436, %v5149_v16   ;;  %v5156_v16 = vld [vmem:[%s11792_s4 + $0x38] sm:$0xff] }
 0x3dc   : > { %v4528_v8 = vpop.permute.xlu1 %4527 }
 0x3dd   : > { %v3729_v5 = vpop.permute.xlu0 %3728 }
 0x3de   : > { %v3859_v49 = vsel %vm919_vm9, %v3835_v18, %v3729_v5  ;;  %5185 = vperm.xlu1 %6437, %v5151_v61   ;;  %v3788_v61 = vsel %vm844_vm6, %v10399_v33, %v12564_v59  ;;  %v4802_v33 = vsel %vm869_vm7, %v4778_v23, %v4528_v8  ;;  %v5158_v5 = vld [vmem:[%s11792_s4 + $0x48] sm:$0xff]  ;;  %v5159_v8 = vld [vmem:[%s11792_s4 + $0x50] sm:$0xff] }
 0x3df   : > { %5190 = vperm.xlu0 %6436, %v5152_v21   ;;  %6340 = vmatmul.mubr.msk.f32.gmra.mxu1 %vm1654_vm10, %v3859_v49  ;;  %v3812_v31 = vsel %vm869_vm7, %v3788_v61, %v12565_v38  ;;  %v12566_v21 = vld [vmem:[#allocation23_spill] sm:$0xff]  ;;  %v5162_v59 = vld [vmem:[%s11792_s4 + $0x68] sm:$0xff] }
 0x3e0   : > { %v4624_v56 = vpop.permute.xlu1 %4623  ;;  %v3836_v45 = vsel %vm894_vm8, %v3812_v31, %v12566_v21  ;;  %v12569_v61 = vld [vmem:[#allocation108_spill] sm:$0xff] }
 0x3e1   : > { %v4622_v24 = vpop.permute.xlu0 %4621  ;;  %v4826_v49 = vsel %vm894_vm8, %v4802_v33, %v4624_v56  ;;  %v5160_v56 = vld [vmem:[%s11792_s4 + $0x58] sm:$0xff]  ;;  %v5165_v33 = vld [vmem:[%s11792_s4 + $0x80] sm:$0xff] }
 0x3e2   : > { %5195 = vperm.xlu1 %6437, %v5153_v48   ;;  %v4825_v3 = vsel %vm894_vm8, %v4801_v32, %v4622_v24  ;;  %v5161_v32 = vld [vmem:[%s11792_s4 + $0x60] sm:$0xff] }
 0x3e3   : > { %5200 = vperm.xlu0 %6436, %v5154_v15  }
 0x3e4   : > { %v4434_v0 = vpop.permute.xlu1 %4433 }
 0x3e5   : > { %v4718_v22 = vpop.permute.xlu0 %4717 }
 0x3e6   : > { %v4849_v62 = vsel %vm919_vm9, %v4825_v3, %v4718_v22  ;;  %5205 = vperm.xlu1 %6437, %v5155_v17   ;;  %v3789_v17 = vsel %vm844_vm6, %v10458_v35, %v12567_v27  ;;  %v5163_v35 = vld [vmem:[%s11792_s4 + $0x70] sm:$0xff] }
 0x3e7   : > { %6381 = vmatprep.mubr.msk.f32.mxu0 %vm1654_vm10, %v4849_v62  ;;  %5210 = vperm.xlu0 %6436, %v5156_v16   ;;  %v12568_v16 = vld [vmem:[#allocation54_spill] sm:$0xff] }
 0x3e8   : > { %v3731_v18 = vpop.permute.xlu1 %3730  ;;  %v3813_v3 = vsel %vm869_vm7, %v3789_v17, %v12568_v16  ;;  %v5167_v27 = vld [vmem:[%s11792_s4 + $0x90] sm:$0xff]  ;;  %v12572_v17 = vld [vmem:[#allocation84_spill] sm:$0xff] }
 0x3e9   : > { %v3860_v46 = vsel %vm919_vm9, %v3836_v45, %v3731_v18  ;;  %v4720_v7 = vpop.permute.xlu0 %4719  ;;  %v3837_v62 = vsel %vm894_vm8, %v3813_v3, %v12569_v61  ;;  %v4779_v45 = vsel %vm844_vm6, %v10336_v19, %v4434_v0  ;;  %v12571_v0 = vld [vmem:[#allocation78_spill] sm:$0xff] }
 0x3ea   : > { %v4850_v48 = vsel %vm919_vm9, %v4826_v49, %v4720_v7  ;;  %6342 = vmatprep.mubr.msk.f32.mxu1 %vm1654_vm10, %v3860_v46  ;;  %5215 = vperm.xlu1 %6437, %v5157_v58   ;;  %v5164_v58 = vld [vmem:[%s11792_s4 + $0x78] sm:$0xff]  ;;  %v5166_v49 = vld [vmem:[%s11792_s4 + $0x88] sm:$0xff] }
 0x3eb   : > { %6382 = vmatmul.mubr.msk.f32.gmra.mxu0 %vm1654_vm10, %v4850_v48  ;;  %5220 = vperm.xlu0 %6436, %v5158_v5   ;;  %v12570_v48 = vld [vmem:[#allocation99_spill] sm:$0xff] }
 0x3ec   : > { %v4530_v15 = vpop.permute.xlu1 %4529  ;;  %v5168_v3 = vld [vmem:[%s11792_s4 + $0x98] sm:$0xff] }
 0x3ed   : > { %v4436_v24 = vpop.permute.xlu0 %4435  ;;  %v4803_v18 = vsel %vm869_vm7, %v4779_v45, %v4530_v15 }
 0x3ee   : > { %5225 = vperm.xlu1 %6437, %v5159_v8   ;;  %v3790_v8 = vsel %vm844_vm6, %v10511_v50, %v12570_v48  ;;  %v4780_v15 = vsel %vm844_vm6, %v10424_v57, %v4436_v24 }
 0x3ef   : > { %5230 = vperm.xlu0 %6436, %v5160_v56   ;;  %v3814_v56 = vsel %vm869_vm7, %v3790_v8, %v12571_v0 }
 0x3f0   : > { %v4532_v22 = vpop.permute.xlu1 %4531 }
 0x3f1   : > { %v3733_v38 = vpop.permute.xlu0 %3732  ;;  %v4804_v50 = vsel %vm869_vm7, %v4780_v15, %v4532_v22  ;;  %v5169_v22 = vld [vmem:[%s11792_s4 + $0xa0] sm:$0xff] }
 0x3f2   : > { %v3861_v31 = vsel %vm919_vm9, %v3837_v62, %v3733_v38  ;;  %5235 = vperm.xlu1 %6437, %v5161_v32   ;;  %v3838_v32 = vsel %vm894_vm8, %v3814_v56, %v12572_v17  ;;  %v5170_v38 = vld [vmem:[%s11792_s4 + $0xa8] sm:$0xff] }
 0x3f3   : > { %6343 = vmatmul.mubr.msk.f32.gmra.mxu1 %vm1654_vm10, %v3861_v31  ;;  %5240 = vperm.xlu0 %6436, %v5162_v59   ;;  %v12576_v17 = vld [vmem:[#allocation53_spill] sm:$0xff] }
 0x3f4   : > { %v4628_v23 = vpop.permute.xlu1 %4627 }
 0x3f5   : > { %v4626_v21 = vpop.permute.xlu0 %4625  ;;  %v4828_v59 = vsel %vm894_vm8, %v4804_v50, %v4628_v23 }
 0x3f6   : > { %5245 = vperm.xlu1 %6437, %v5163_v35   ;;  %v4827_v46 = vsel %vm894_vm8, %v4803_v18, %v4626_v21  ;;  %v12573_v35 = vld [vmem:[#allocation96_spill] sm:$0xff]  ;;  %v12574_v21 = vld [vmem:[#allocation57_spill] sm:$0xff]  ;;  %v5172_v18 = vld [vmem:[%s11792_s4 + $0xb8] sm:$0xff] }
 0x3f7   : > { %5250 = vperm.xlu0 %6436, %v5164_v58   ;;  %v3791_v23 = vsel %vm844_vm6, %v10571_v2, %v12573_v35  ;;  %v5171_v58 = vld [vmem:[%s11792_s4 + $0xb0] sm:$0xff] }
 0x3f8   : > { %v4438_v5 = vpop.permute.xlu1 %4437  ;;  %v3815_v45 = vsel %vm869_vm7, %v3791_v23, %v12574_v21  ;;  %v12580_v23 = vld [vmem:[#allocation81_spill] sm:$0xff] }
 0x3f9   : > { %v4722_v7 = vpop.permute.xlu0 %4721 }
 0x3fa   : > { %v4851_v19 = vsel %vm919_vm9, %v4827_v46, %v4722_v7  ;;  %5255 = vperm.xlu1 %6437, %v5165_v33  }
 0x3fb   : > { %6384 = vmatprep.mubr.msk.f32.mxu0 %vm1654_vm10, %v4851_v19  ;;  %5260 = vperm.xlu0 %6436, %v5166_v49   ;;  %v12575_v49 = vld [vmem:[#allocation63_spill] sm:$0xff]  ;;  %v4781_v19 = vsel %vm844_vm6, %v10472_v60, %v4438_v5  ;;  %v12578_v60 = vld [vmem:[#allocation4_spill] sm:$0xff] }
 0x3fc   : > { %v3735_v16 = vpop.permute.xlu1 %3734  ;;  %v3839_v46 = vsel %vm894_vm8, %v3815_v45, %v12575_v49  ;;  %v12581_v45 = vld [vmem:[#allocation87_spill] sm:$0xff] }
 0x3fd   : > { %v3862_v57 = vsel %vm919_vm9, %v3838_v32, %v3735_v16  ;;  %v4724_v24 = vpop.permute.xlu0 %4723  ;;  %v3792_v32 = vsel %vm844_vm6, %v10622_v13, %v12576_v17  ;;  %v12577_v16 = vld [vmem:[#allocation56_spill] sm:$0xff]  ;;  %v12583_v17 = vld [vmem:[#allocation111_spill] sm:$0xff] }
 0x3fe   : > { %v4852_v61 = vsel %vm919_vm9, %v4828_v59, %v4724_v24  ;;  %6345 = vmatprep.mubr.msk.f32.mxu1 %vm1654_vm10, %v3862_v57  ;;  %5265 = vperm.xlu1 %6437, %v5167_v27  }
 0x3ff   : > { %6385 = vmatmul.mubr.msk.f32.gmra.mxu0 %vm1654_vm10, %v4852_v61  ;;  %5270 = vperm.xlu0 %6436, %v5168_v3   ;;  %v3816_v3 = vsel %vm869_vm7, %v3792_v32, %v12577_v16 }
 0x400   : > { %v4534_v62 = vpop.permute.xlu1 %4533  ;;  %v3840_v5 = vsel %vm894_vm8, %v3816_v3, %v12578_v60 }
 0x401   : > { %v4440_v31 = vpop.permute.xlu0 %4439  ;;  %v4805_v0 = vsel %vm869_vm7, %v4781_v19, %v4534_v62 }
 0x402   : > { %5275 = vperm.xlu1 %6437, %v5169_v22   ;;  %v4782_v59 = vsel %vm844_vm6, %v10531_v41, %v4440_v31  ;;  %v12579_v31 = vld [vmem:[#allocation15_spill] sm:$0xff] }
 0x403   : > { %5280 = vperm.xlu0 %6436, %v5170_v38   ;;  %v3793_v35 = vsel %vm844_vm6, %v10675_v63, %v12579_v31 }
 0x404   : > { %v4536_v33 = vpop.permute.xlu1 %4535 }
 0x405   : > { %v3737_v7 = vpop.permute.xlu0 %3736  ;;  %v4806_v57 = vsel %vm869_vm7, %v4782_v59, %v4536_v33 }
 0x406   : > { %v3863_v48 = vsel %vm919_vm9, %v3839_v46, %v3737_v7  ;;  %5285 = vperm.xlu1 %6437, %v5171_v58   ;;  %v3817_v58 = vsel %vm869_vm7, %v3793_v35, %v12580_v23  ;;  %v11149_v35 = vpop.f32.mrf.mxu1 }
 0x407   : > { %6346 = vmatmul.mubr.msk.f32.gmra.mxu1 %vm1654_vm10, %v3863_v48  ;;  %5290 = vperm.xlu0 %6436, %v5172_v18   ;;  %v3841_v33 = vsel %vm894_vm8, %v3817_v58, %v12581_v45  ;;  %v12588_v45 = vld [vmem:[#allocation71_spill] sm:$0xff] }
 0x408   : > { %v4632_v2 = vpop.permute.xlu1 %4631 }
 0x409   : > { %v4630_v8 = vpop.permute.xlu0 %4629  ;;  %v4830_v61 = vsel %vm894_vm8, %v4806_v57, %v4632_v2 }
 0x40a   : > { %v4829_v15 = vsel %vm894_vm8, %v4805_v0, %v4630_v8  ;;  %v12582_v0 = vld [vmem:[#allocation109_spill] sm:$0xff] }
 0x40c   : > { %v4442_v56 = vpop.permute.xlu1 %4441 }
 0x40d   : > { %v4726_v27 = vpop.permute.xlu0 %4725  ;;  %v4783_v48 = vsel %vm844_vm6, %v10585_v34, %v4442_v56  ;;  %v12584_v34 = vld [vmem:[#allocation6_spill] sm:$0xff] }
 0x40e   : > { %v4853_v50 = vsel %vm919_vm9, %v4829_v15, %v4726_v27  ;;  %v3794_v15 = vsel %vm844_vm6, %v10719_v25, %v12582_v0 }
 0x40f   : > { %6387 = vmatprep.mubr.msk.f32.mxu0 %vm1654_vm10, %v4853_v50  ;;  %v3818_v32 = vsel %vm869_vm7, %v3794_v15, %v12583_v17 }
 0x410   : > { %v3739_v24 = vpop.permute.xlu1 %3738  ;;  %v3842_v56 = vsel %vm894_vm8, %v3818_v32, %v12584_v34  ;;  %v12592_v34 = vld [vmem:[#allocation77_spill] sm:$0xff] }
 0x411   : > { %v3864_v13 = vsel %vm919_vm9, %v3840_v5, %v3739_v24  ;;  %v4728_v22 = vpop.permute.xlu0 %4727  ;;  %v12585_v24 = vld [vmem:[#allocation74_spill] sm:$0xff] }
 0x412   : > { %v4854_v62 = vsel %vm919_vm9, %v4830_v61, %v4728_v22  ;;  %6348 = vmatprep.mubr.msk.f32.mxu1 %vm1654_vm10, %v3864_v13  ;;  %v3795_v61 = vsel %vm844_vm6, %v10769_v20, %v12585_v24  ;;  %v12586_v13 = vld [vmem:[#allocation105_spill] sm:$0xff] }
 0x413   : > { %6388 = vmatmul.mubr.msk.f32.gmra.mxu0 %vm1654_vm10, %v4854_v62  ;;  %v3819_v22 = vsel %vm869_vm7, %v3795_v61, %v12586_v13 }
 0x414   : > { %v4538_v41 = vpop.permute.xlu1 %4537 }
 0x415   : > { %v4444_v38 = vpop.permute.xlu0 %4443  ;;  %v4807_v2 = vsel %vm869_vm7, %v4783_v48, %v4538_v41  ;;  %v12587_v41 = vld [vmem:[#allocation62_spill] sm:$0xff] }
 0x416   : > { %v4784_v50 = vsel %vm844_vm6, %v10643_v36, %v4444_v38  ;;  %v3843_v38 = vsel %vm894_vm8, %v3819_v22, %v12587_v41  ;;  %v12595_v41 = vld [vmem:[#allocation52_spill] sm:$0xff] }
 0x418   : > { %v4540_v21 = vpop.permute.xlu1 %4539 }
 0x419   : > { %v3741_v18 = vpop.permute.xlu0 %3740  ;;  %v4808_v16 = vsel %vm869_vm7, %v4784_v50, %v4540_v21 }
 0x41a   : > { %v3865_v49 = vsel %vm919_vm9, %v3841_v33, %v3741_v18  ;;  %v12589_v33 = vld [vmem:[#allocation48_spill] sm:$0xff] }
 0x41b   : > { %6349 = vmatmul.mubr.msk.f32.gmra.mxu1 %vm1654_vm10, %v3865_v49  ;;  %v2063_v18 = vadd.f32 %v12589_v33, %v12588_v45  ;;  %v12590_v49 = vld [vmem:[#allocation92_spill] sm:$0xff]  ;;  %v12597_v45 = vld [vmem:[#allocation43_spill] sm:$0xff]  ;;  %v12598_v33 = vld [vmem:[#allocation14_spill] sm:$0xff] }
 0x41c   : > { %v4636_v46 = vpop.permute.xlu1 %4635 }
 0x41d   : > { %v4634_v7 = vpop.permute.xlu0 %4633  ;;  %v4832_v59 = vsel %vm894_vm8, %v4808_v16, %v4636_v46  ;;  %v12591_v46 = vld [vmem:[#allocation70_spill] sm:$0xff]  ;;  %v3144_v48 = vadd.f32 %v10373_v47, %v2063_v18  ;;  %v2073_v18 = vadd.f32 %v12598_v33, %v12597_v45 }
 0x41e   : > { %v4831_v8 = vsel %vm894_vm8, %v4807_v2, %v4634_v7  ;;  %v2058_v7 = vadd.f32 %v12591_v46, %v12590_v49  ;;  %v11159_v2 = vpop.f32.mrf.mxu0 }
 0x420   : > { %v4446_v63 = vpop.permute.xlu1 %4445  ;;  %v6323_v58 = vpop.f32.mrf.mxu1 }
 0x421   : > { %v4730_v19 = vpop.permute.xlu0 %4729  ;;  %v4135_v17 = vadd.f32 %v6323_v58, %v3144_v48  ;;  %v12600_v48 = vld [vmem:[#allocation95_spill] sm:$0xff] }
 0x422   : > { %v4855_v27 = vsel %vm919_vm9, %v4831_v8, %v4730_v19  ;;  %v4785_v8 = vsel %vm844_vm6, %v10689_v12, %v4446_v63  ;;  %v4015_v19 = vpop.f32.mrf.mxu1  ;;  %v12593_v12 = vld [vmem:[#allocation22_spill] sm:$0xff] }
 0x423   : > { %6390 = vmatprep.mubr.msk.f32.mxu0 %vm1654_vm10, %v4855_v27  ;;  %v3143_v27 = vadd.f32 %v10386_v30, %v2058_v7 }
 0x424   : > { %v3743_v3 = vpop.permute.xlu1 %3742  ;;  %v6326_v58 = vpop.f32.mrf.mxu1 }
 0x425   : > { %v3866_v25 = vsel %vm919_vm9, %v3842_v56, %v3743_v3  ;;  %v4732_v60 = vpop.permute.xlu0 %4731  ;;  %v3796_v56 = vsel %vm844_vm6, %v10813_v43, %v12592_v34  ;;  %v4134_v63 = vadd.f32 %v4015_v19, %v3143_v27  ;;  %v12594_v43 = vld [vmem:[#allocation86_spill] sm:$0xff] }
 0x426   : > { %v4856_v5 = vsel %vm919_vm9, %v4832_v59, %v4732_v60  ;;  %6351 = vmatprep.mubr.msk.f32.mxu1 %vm1654_vm10, %v3866_v25  ;;  %v3820_v30 = vsel %vm869_vm7, %v3796_v56, %v12593_v12 }
 0x427   : > { %6391 = vmatmul.mubr.msk.f32.gmra.mxu0 %vm1654_vm10, %v4856_v5  ;;  %v3844_v25 = vsel %vm894_vm8, %v3820_v30, %v12594_v43 }
 0x428   : > { %v4542_v36 = vpop.permute.xlu1 %4541 }
 0x429   : > { %v4448_v57 = vpop.permute.xlu0 %4447  ;;  %v4809_v0 = vsel %vm869_vm7, %v4785_v8, %v4542_v36  ;;  %v12601_v8 = vld [vmem:[#allocation73_spill] sm:$0xff] }
 0x42a   : > { %v4786_v3 = vsel %vm844_vm6, %v10737_v11, %v4448_v57  ;;  %v2068_v19 = vadd.f32 %v12601_v8, %v12600_v48 }
 0x42c   : > { %v4544_v62 = vpop.permute.xlu1 %4543 }
 0x42d   : > { %v3745_v31 = vpop.permute.xlu0 %3744  ;;  %v4810_v60 = vsel %vm869_vm7, %v4786_v3, %v4544_v62 }
 0x42e   : > { %v3867_v23 = vsel %vm919_vm9, %v3843_v38, %v3745_v31  ;;  %v3797_v38 = vsel %vm844_vm6, %v10863_v28, %v12595_v41  ;;  %v12596_v31 = vld [vmem:[#allocation80_spill] sm:$0xff]  ;;  %v4025_v28 = vpop.f32.mrf.mxu1 }
 0x42f   : > { %6352 = vmatmul.mubr.msk.f32.gmra.mxu1 %vm1654_vm10, %v3867_v23  ;;  %v3821_v23 = vsel %vm869_vm7, %v3797_v38, %v12596_v31 }
 0x430   : > { %v4640_v21 = vpop.permute.xlu1 %4639 }
 0x431   : > { %v4638_v20 = vpop.permute.xlu0 %4637  ;;  %v4834_v24 = vsel %vm894_vm8, %v4810_v60, %v4640_v21 }
 0x432   : > { %v4833_v32 = vsel %vm894_vm8, %v4809_v0, %v4638_v20  ;;  %v12599_v20 = vld [vmem:[#allocation25_spill] sm:$0xff]  ;;  %v3146_v0 = vadd.f32 %v10404_v52, %v2073_v18 }
 0x433   : > { %v3845_v49 = vsel %vm894_vm8, %v3821_v23, %v12599_v20 }
 0x434   : > { %v4450_v15 = vpop.permute.xlu1 %4449 }
 0x435   : > { %v4734_v50 = vpop.permute.xlu0 %4733 }
 0x436   : > { %v4857_v47 = vsel %vm919_vm9, %v4833_v32, %v4734_v50  ;;  %v6365_v16 = vpop.f32.mrf.mxu0  ;;  %v4137_v32 = vadd.f32 %v6326_v58, %v3146_v0 }
 0x437   : > { %v5126_v59 = vadd.f32 %v6365_v16, %v4135_v17  ;;  %6393 = vmatprep.mubr.msk.f32.mxu0 %vm1654_vm10, %v4857_v47  ;;  %v3145_v17 = vadd.f32 %v10410_v55, %v2068_v19  ;;  %v4787_v16 = vsel %vm844_vm6, %v10783_v6, %v4450_v15 }
 0x438   : > { %v3747_v5 = vpop.permute.xlu1 %3746  ;;  %v5006_v36 = vpop.f32.mrf.mxu0 }
 0x439   : > { %5458 = vst.msk [vmem:[%s11173_s8 + $0x8] sm:$0xff] %vm869_vm7, %v5126_v59  ;;  %v3868_v61 = vsel %vm919_vm9, %v3844_v25, %v3747_v5  ;;  %v5125_v13 = vadd.f32 %v5006_v36, %v4134_v63  ;;  %v4736_v22 = vpop.permute.xlu0 %4735  ;;  %v4136_v47 = vadd.f32 %v4025_v28, %v3145_v17 }
 0x43a   : > { %v4858_v11 = vsel %vm919_vm9, %v4834_v24, %v4736_v22  ;;  %6354 = vmatprep.mubr.msk.f32.mxu1 %vm1654_vm10, %v3868_v61 }
 0x43b   : > { %5457 = vst.msk [vmem:[%s11173_s8] sm:$0xff] %vm869_vm7, %v5125_v13  ;;  %6394 = vmatmul.mubr.msk.f32.gmra.mxu0 %vm1654_vm10, %v4858_v11 }
 0x43c   : > { %v4546_v57 = vpop.permute.xlu1 %4545 }
 0x43d   : > { %v4452_v62 = vpop.permute.xlu0 %4451  ;;  %v4811_v30 = vsel %vm869_vm7, %v4787_v16, %v4546_v57 }
 0x43e   : > { %v4788_v34 = vsel %vm844_vm6, %v10831_v39, %v4452_v62 }
 0x440   : > { %v4548_v21 = vpop.permute.xlu1 %4547 }
 0x441   : > { %v3749_v46 = vpop.permute.xlu0 %3748  ;;  %v4812_v52 = vsel %vm869_vm7, %v4788_v34, %v4548_v21 }
 0x442   : > { %v3869_v7 = vsel %vm919_vm9, %v3845_v49, %v3749_v46 }
 0x443   : > { %6355 = vmatmul.mubr.msk.f32.gmra.mxu1 %vm1654_vm10, %v3869_v7 }
 0x444   : > { %v4644_v27 = vpop.permute.xlu1 %4643 }
 0x445   : > { %v4642_v50 = vpop.permute.xlu0 %4641  ;;  %v4836_v63 = vsel %vm894_vm8, %v4812_v52, %v4644_v27 }
 0x446   : > { %v6368_v56 = vpop.f32.mrf.mxu0  ;;  %v4835_v43 = vsel %vm894_vm8, %v4811_v30, %v4642_v50 }
 0x447   : > { %v5128_v12 = vadd.f32 %v6368_v56, %v4137_v32 }
 0x448   : > { %v4740_v3 = vpop.permute.xlu1 %4739  ;;  %v5016_v55 = vpop.f32.mrf.mxu0 }
 0x449   : > { %5460 = vst.msk [vmem:[%s11173_s8 + $0x18] sm:$0xff] %vm869_vm7, %v5128_v12  ;;  %v4860_v39 = vsel %vm919_vm9, %v4836_v63, %v4740_v3  ;;  %v5127_v25 = vadd.f32 %v5016_v55, %v4136_v47  ;;  %v4738_v60 = vpop.permute.xlu0 %4737 }
 0x44a   : > { %v4859_v5 = vsel %vm919_vm9, %v4835_v43, %v4738_v60 }
 0x44b   : > { %5459 = vst.msk [vmem:[%s11173_s8 + $0x10] sm:$0xff] %vm869_vm7, %v5127_v25  ;;  %6396 = vmatprep.mubr.msk.f32.mxu0 %vm1654_vm10, %v4859_v5 }
 0x44c   : > { %6397 = vmatmul.mubr.msk.f32.gmra.mxu0 %vm1654_vm10, %v4860_v39 }
 0x44f   : > { %v6329_v6 = vpop.f32.mrf.mxu1 }
 0x450   : > { %v4139_v31 = vadd.f32 %v6329_v6, %v10427_v51 }
 0x451   : > { %v4035_v22 = vpop.f32.mrf.mxu1 }
 0x452   : > { %v4138_v33 = vadd.f32 %v4035_v22, %v10432_v40 }
 0x455   : > { %v5181_v15 = vpop.permute.xlu1 %5180 }
 0x456   : > { %v5294_v36 = vmul.f32 %v5181_v15, %v5126_v59  ;;  %v5176_v24 = vpop.permute.xlu0 %5175 }
 0x457   : > { %v5293_v61 = vmul.f32 %v5176_v24, %v5125_v13 }
 0x458   : > { %v5319_v11 = vsel %vm869_vm7, %v5294_v36, 0.0  ;;  %v5376_v57 = vmul.f32 %v5294_v36, %v5126_v59 }
 0x459   : > { %v5318_v62 = vsel %vm869_vm7, %v5293_v61, 0.0  ;;  %v5375_v41 = vmul.f32 %v5293_v61, %v5125_v13  ;;  %v5186_v38 = vpop.permute.xlu1 %5185 }
 0x45a   : > { %v5400_v23 = vsel %vm869_vm7, %v5376_v57, 0.0  ;;  %v5320_v58 = vadd.f32 %v5319_v11, %v5318_v62  ;;  %v5295_v21 = vmul.f32 %v5186_v38, %v5127_v25  ;;  %v5191_v45 = vpop.permute.xlu0 %5190 }
 0x45b   : > { %v5399_v18 = vsel %vm869_vm7, %v5375_v41, 0.0  ;;  %v5296_v20 = vmul.f32 %v5191_v45, %v5128_v12  ;;  %v6371_v49 = vpop.f32.mrf.mxu0 }
 0x45c   : > { %v5401_v46 = vadd.f32 %v5400_v23, %v5399_v18  ;;  %v5321_v59 = vsel %vm869_vm7, %v5295_v21, 0.0  ;;  %v5377_v13 = vmul.f32 %v5295_v21, %v5127_v25  ;;  %v5130_v7 = vadd.f32 %v6371_v49, %v4139_v31 }
 0x45d   : > { %v5322_v48 = vadd.f32 %v5321_v59, %v5320_v58  ;;  %v5378_v51 = vmul.f32 %v5296_v20, %v5128_v12  ;;  %v5026_v8 = vpop.f32.mrf.mxu0  ;;  %v5196_v19 = vpop.permute.xlu1 %5195  ;;  %v5323_v28 = vsel %vm869_vm7, %v5296_v20, 0.0 }
 0x45e   : > { %v5402_v0 = vsel %vm869_vm7, %v5377_v13, 0.0  ;;  %5462 = vst.msk [vmem:[%s11173_s8 + $0x28] sm:$0xff] %vm869_vm7, %v5130_v7  ;;  %v5129_v40 = vadd.f32 %v5026_v8, %v4138_v33  ;;  %v5201_v27 = vpop.permute.xlu0 %5200 }
 0x45f   : > { %v5403_v17 = vadd.f32 %v5402_v0, %v5401_v46  ;;  %v5324_v32 = vadd.f32 %v5323_v28, %v5322_v48  ;;  %v5298_v50 = vmul.f32 %v5201_v27, %v5130_v7  ;;  %v5404_v34 = vsel %vm869_vm7, %v5378_v51, 0.0 }
 0x460   : > { %5461 = vst.msk [vmem:[%s11173_s8 + $0x20] sm:$0xff] %vm869_vm7, %v5129_v40  ;;  %v5297_v56 = vmul.f32 %v5196_v19, %v5129_v40 }
 0x461   : > { %v5405_v47 = vadd.f32 %v5404_v34, %v5403_v17  ;;  %v5380_v16 = vmul.f32 %v5298_v50, %v5130_v7  ;;  %v5327_v63 = vsel %vm869_vm7, %v5298_v50, 0.0  ;;  %v5206_v11 = vpop.permute.xlu1 %5205 }
 0x462   : > { %v5325_v52 = vsel %vm869_vm7, %v5297_v56, 0.0  ;;  %v5379_v12 = vmul.f32 %v5297_v56, %v5129_v40  ;;  %v5211_v36 = vpop.permute.xlu0 %5210 }
 0x463   : > { %v5326_v30 = vadd.f32 %v5325_v52, %v5324_v32  ;;  %v5408_v39 = vsel %vm869_vm7, %v5380_v16, 0.0  ;;  %v6332_v60 = vpop.f32.mrf.mxu1 }
 0x464   : > { %v5406_v3 = vsel %vm869_vm7, %v5379_v12, 0.0  ;;  %v4141_v6 = vadd.f32 %v6332_v60, %v10445_v29 }
 0x465   : > { %v5407_v55 = vadd.f32 %v5406_v3, %v5405_v47  ;;  %v5328_v43 = vadd.f32 %v5327_v63, %v5326_v30  ;;  %v4045_v5 = vpop.f32.mrf.mxu1  ;;  %v5216_v8 = vpop.permute.xlu1 %5215 }
 0x466   : > { %v4140_v24 = vadd.f32 %v4045_v5, %v10453_v53  ;;  %v5221_v13 = vpop.permute.xlu0 %5220 }
 0x467   : > { %v5409_v25 = vadd.f32 %v5408_v39, %v5407_v55 }
 0x469   : > { %v5226_v39 = vpop.permute.xlu1 %5225 }
 0x46a   : > { %v5231_v63 = vpop.permute.xlu0 %5230 }
 0x46f   : > { %v6374_v15 = vpop.f32.mrf.mxu0 }
 0x470   : > { %v5132_v61 = vadd.f32 %v6374_v15, %v4141_v6 }
 0x471   : > { %v5036_v22 = vpop.f32.mrf.mxu0 }
 0x472   : > { %5464 = vst.msk [vmem:[%s11173_s8 + $0x38] sm:$0xff] %vm869_vm7, %v5132_v61  ;;  %v5131_v57 = vadd.f32 %v5036_v22, %v4140_v24  ;;  %v5300_v62 = vmul.f32 %v5211_v36, %v5132_v61 }
 0x474   : > { %5463 = vst.msk [vmem:[%s11173_s8 + $0x30] sm:$0xff] %vm869_vm7, %v5131_v57  ;;  %v5299_v41 = vmul.f32 %v5206_v11, %v5131_v57  ;;  %v5382_v38 = vmul.f32 %v5300_v62, %v5132_v61  ;;  %v5331_v29 = vsel %vm869_vm7, %v5300_v62, 0.0 }
 0x476   : > { %v5329_v31 = vsel %vm869_vm7, %v5299_v41, 0.0  ;;  %v5381_v23 = vmul.f32 %v5299_v41, %v5131_v57  ;;  %v5412_v33 = vsel %vm869_vm7, %v5382_v38, 0.0 }
 0x477   : > { %v5330_v58 = vadd.f32 %v5329_v31, %v5328_v43  ;;  %v6335_v20 = vpop.f32.mrf.mxu1 }
 0x478   : > { %v5410_v53 = vsel %vm869_vm7, %v5381_v23, 0.0  ;;  %v4143_v46 = vadd.f32 %v6335_v20, %v10468_v1  ;;  %v5241_v23 = vpop.permute.xlu0 %5240 }
 0x479   : > { %v5411_v21 = vadd.f32 %v5410_v53, %v5409_v25  ;;  %v5332_v45 = vadd.f32 %v5331_v29, %v5330_v58  ;;  %v4055_v49 = vpop.f32.mrf.mxu1 }
 0x47a   : > { %v4142_v7 = vadd.f32 %v4055_v49, %v10480_v37 }
 0x47b   : > { %v5413_v18 = vadd.f32 %v5412_v33, %v5411_v21  ;;  %v5236_v21 = vpop.permute.xlu1 %5235 }
 0x483   : > { %v6377_v59 = vpop.f32.mrf.mxu0 }
 0x484   : > { %v5134_v48 = vadd.f32 %v6377_v59, %v4143_v46 }
 0x485   : > { %v5046_v51 = vpop.f32.mrf.mxu0 }
 0x486   : > { %5466 = vst.msk [vmem:[%s11173_s8 + $0x48] sm:$0xff] %vm869_vm7, %v5134_v48  ;;  %v5133_v19 = vadd.f32 %v5046_v51, %v4142_v7  ;;  %v5302_v0 = vmul.f32 %v5221_v13, %v5134_v48 }
 0x488   : > { %5465 = vst.msk [vmem:[%s11173_s8 + $0x40] sm:$0xff] %vm869_vm7, %v5133_v19  ;;  %v5301_v28 = vmul.f32 %v5216_v8, %v5133_v19  ;;  %v5384_v40 = vmul.f32 %v5302_v0, %v5134_v48  ;;  %v5335_v1 = vsel %vm869_vm7, %v5302_v0, 0.0 }
 0x48a   : > { %v5333_v27 = vsel %vm869_vm7, %v5301_v28, 0.0  ;;  %v5383_v17 = vmul.f32 %v5301_v28, %v5133_v19  ;;  %v5416_v56 = vsel %vm869_vm7, %v5384_v40, 0.0  ;;  %v5251_v40 = vpop.permute.xlu0 %5250 }
 0x48b   : > { %v5334_v32 = vadd.f32 %v5333_v27, %v5332_v45  ;;  %v6338_v16 = vpop.f32.mrf.mxu1 }
 0x48c   : > { %v5414_v37 = vsel %vm869_vm7, %v5383_v17, 0.0  ;;  %v4145_v12 = vadd.f32 %v6338_v16, %v10495_v26 }
 0x48d   : > { %v5415_v50 = vadd.f32 %v5414_v37, %v5413_v18  ;;  %v5336_v34 = vadd.f32 %v5335_v1, %v5334_v32  ;;  %v4065_v52 = vpop.f32.mrf.mxu1  ;;  %v5246_v1 = vpop.permute.xlu1 %5245 }
 0x48e   : > { %v4144_v3 = vadd.f32 %v4065_v52, %v10500_v9 }
 0x48f   : > { %v5417_v47 = vadd.f32 %v5416_v56, %v5415_v50 }
 0x497   : > { %v6380_v30 = vpop.f32.mrf.mxu0 }
 0x498   : > { %v5136_v55 = vadd.f32 %v6380_v30, %v4145_v12 }
 0x499   : > { %v5056_v43 = vpop.f32.mrf.mxu0 }
 0x49a   : > { %5468 = vst.msk [vmem:[%s11173_s8 + $0x58] sm:$0xff] %vm869_vm7, %v5136_v55  ;;  %v5135_v25 = vadd.f32 %v5056_v43, %v4144_v3  ;;  %v5304_v60 = vmul.f32 %v5231_v63, %v5136_v55 }
 0x49c   : > { %5467 = vst.msk [vmem:[%s11173_s8 + $0x50] sm:$0xff] %vm869_vm7, %v5135_v25  ;;  %v5303_v5 = vmul.f32 %v5226_v39, %v5135_v25  ;;  %v5386_v6 = vmul.f32 %v5304_v60, %v5136_v55  ;;  %v5339_v24 = vsel %vm869_vm7, %v5304_v60, 0.0  ;;  %v5261_v60 = vpop.permute.xlu0 %5260 }
 0x49e   : > { %v5337_v15 = vsel %vm869_vm7, %v5303_v5, 0.0  ;;  %v5385_v36 = vmul.f32 %v5303_v5, %v5135_v25  ;;  %v5420_v11 = vsel %vm869_vm7, %v5386_v6, 0.0  ;;  %v12602_v5 = vld [vmem:[#allocation5_spill] sm:$0xff] }
 0x49f   : > { %v5338_v26 = vadd.f32 %v5337_v15, %v5336_v34  ;;  %v6341_v62 = vpop.f32.mrf.mxu1 }
 0x4a0   : > { %v5418_v9 = vsel %vm869_vm7, %v5385_v36, 0.0  ;;  %v4147_v38 = vadd.f32 %v6341_v62, %v10515_v54 }
 0x4a1   : > { %v5419_v61 = vadd.f32 %v5418_v9, %v5417_v47  ;;  %v5340_v22 = vadd.f32 %v5339_v24, %v5338_v26  ;;  %v4075_v41 = vpop.f32.mrf.mxu1  ;;  %v5256_v26 = vpop.permute.xlu1 %5255 }
 0x4a2   : > { %v4146_v58 = vadd.f32 %v4075_v41, %v10519_v44 }
 0x4a3   : > { %v5421_v57 = vadd.f32 %v5420_v11, %v5419_v61 }
 0x4ab   : > { %v6383_v31 = vpop.f32.mrf.mxu0 }
 0x4ac   : > { %v5138_v29 = vadd.f32 %v6383_v31, %v4147_v38 }
 0x4ad   : > { %v5066_v53 = vpop.f32.mrf.mxu0 }
 0x4ae   : > { %5470 = vst.msk [vmem:[%s11173_s8 + $0x68] sm:$0xff] %vm869_vm7, %v5138_v29  ;;  %v5137_v45 = vadd.f32 %v5066_v53, %v4146_v58  ;;  %v5306_v33 = vmul.f32 %v5241_v23, %v5138_v29 }
 0x4b0   : > { %5469 = vst.msk [vmem:[%s11173_s8 + $0x60] sm:$0xff] %vm869_vm7, %v5137_v45  ;;  %v5305_v18 = vmul.f32 %v5236_v21, %v5137_v45  ;;  %v5388_v20 = vmul.f32 %v5306_v33, %v5138_v29  ;;  %v5343_v54 = vsel %vm869_vm7, %v5306_v33, 0.0  ;;  %v12603_v21 = vld [vmem:[#allocation27_spill] sm:$0xff] }
 0x4b2   : > { %v5341_v49 = vsel %vm869_vm7, %v5305_v18, 0.0  ;;  %v5387_v46 = vmul.f32 %v5305_v18, %v5137_v45  ;;  %v5424_v48 = vsel %vm869_vm7, %v5388_v20, 0.0  ;;  %v12604_v18 = vld [vmem:[#allocation64_spill] sm:$0xff] }
 0x4b3   : > { %v5342_v59 = vadd.f32 %v5341_v49, %v5340_v22  ;;  %v6344_v8 = vpop.f32.mrf.mxu1 }
 0x4b4   : > { %v5422_v44 = vsel %vm869_vm7, %v5387_v46, 0.0  ;;  %v4149_v0 = vadd.f32 %v6344_v8, %v10534_v14  ;;  %v5271_v46 = vpop.permute.xlu0 %5270 }
 0x4b5   : > { %v5423_v13 = vadd.f32 %v5422_v44, %v5421_v57  ;;  %v5344_v7 = vadd.f32 %v5343_v54, %v5342_v59  ;;  %v4085_v19 = vpop.f32.mrf.mxu1 }
 0x4b6   : > { %v4148_v27 = vadd.f32 %v4085_v19, %v10541_v4 }
 0x4b7   : > { %v5425_v51 = vadd.f32 %v5424_v48, %v5423_v13  ;;  %v5266_v13 = vpop.permute.xlu1 %5265 }
 0x4bf   : > { %v6386_v28 = vpop.f32.mrf.mxu0 }
 0x4c0   : > { %v5140_v17 = vadd.f32 %v6386_v28, %v4149_v0 }
 0x4c1   : > { %v5076_v32 = vpop.f32.mrf.mxu0 }
 0x4c2   : > { %5472 = vst.msk [vmem:[%s11173_s8 + $0x78] sm:$0xff] %vm869_vm7, %v5140_v17  ;;  %v5139_v37 = vadd.f32 %v5076_v32, %v4148_v27  ;;  %v5308_v50 = vmul.f32 %v5251_v40, %v5140_v17 }
 0x4c4   : > { %5471 = vst.msk [vmem:[%s11173_s8 + $0x70] sm:$0xff] %vm869_vm7, %v5139_v37  ;;  %v5307_v34 = vmul.f32 %v5246_v1, %v5139_v37  ;;  %v5390_v56 = vmul.f32 %v5308_v50, %v5140_v17  ;;  %v5347_v14 = vsel %vm869_vm7, %v5308_v50, 0.0  ;;  %v12605_v50 = vld [vmem:[#allocation8_spill] sm:$0xff] }
 0x4c6   : > { %v5345_v47 = vsel %vm869_vm7, %v5307_v34, 0.0  ;;  %v5389_v16 = vmul.f32 %v5307_v34, %v5139_v37  ;;  %v5428_v63 = vsel %vm869_vm7, %v5390_v56, 0.0 }
 0x4c7   : > { %v5346_v52 = vadd.f32 %v5345_v47, %v5344_v7  ;;  %v6347_v55 = vpop.f32.mrf.mxu1  ;;  %v12606_v47 = vld [vmem:[#allocation132_spill] sm:$0xff] }
 0x4c8   : > { %v5426_v4 = vsel %vm869_vm7, %v5389_v16, 0.0  ;;  %v4151_v39 = vadd.f32 %v6347_v55, %v10556_v42 }
 0x4c9   : > { %v5427_v12 = vadd.f32 %v5426_v4, %v5425_v51  ;;  %v5348_v30 = vadd.f32 %v5347_v14, %v5346_v52  ;;  %v4095_v43 = vpop.f32.mrf.mxu1  ;;  %v5281_v14 = vpop.permute.xlu0 %5280 }
 0x4ca   : > { %v4150_v6 = vadd.f32 %v4095_v43, %v12602_v5 }
 0x4cb   : > { %v5429_v3 = vadd.f32 %v5428_v63, %v5427_v12  ;;  %v5276_v63 = vpop.permute.xlu1 %5275 }
 0x4d3   : > { %v6389_v25 = vpop.f32.mrf.mxu0 }
 0x4d4   : > { %v5142_v15 = vadd.f32 %v6389_v25, %v4151_v39 }
 0x4d5   : > { %v5086_v36 = vpop.f32.mrf.mxu0 }
 0x4d6   : > { %5474 = vst.msk [vmem:[%s11173_s8 + $0x88] sm:$0xff] %vm869_vm7, %v5142_v15  ;;  %v5141_v24 = vadd.f32 %v5086_v36, %v4150_v6  ;;  %v5310_v9 = vmul.f32 %v5261_v60, %v5142_v15 }
 0x4d8   : > { %5473 = vst.msk [vmem:[%s11173_s8 + $0x80] sm:$0xff] %vm869_vm7, %v5141_v24  ;;  %v5309_v61 = vmul.f32 %v5256_v26, %v5141_v24  ;;  %v5392_v22 = vmul.f32 %v5310_v9, %v5142_v15  ;;  %v5351_v42 = vsel %vm869_vm7, %v5310_v9, 0.0  ;;  %v12607_v9 = vld [vmem:[#allocation11_spill] sm:$0xff] }
 0x4da   : > { %v5349_v11 = vsel %vm869_vm7, %v5309_v61, 0.0  ;;  %v5391_v57 = vmul.f32 %v5309_v61, %v5141_v24  ;;  %v5432_v23 = vsel %vm869_vm7, %v5392_v22, 0.0  ;;  %v2168_v61 = vadd.f32 %v11149_v35, %v12607_v9 }
 0x4db   : > { %v5350_v62 = vadd.f32 %v5349_v11, %v5348_v30  ;;  %v6350_v29 = vpop.f32.mrf.mxu1 }
 0x4dc   : > { %v5430_v41 = vsel %vm869_vm7, %v5391_v57, 0.0  ;;  %v4153_v45 = vadd.f32 %v6350_v29, %v12603_v21  ;;  %v3165_v11 = vadd.f32 %v11159_v2, %v2168_v61  ;;  %v12608_v57 = vld [vmem:[#allocation67_spill] sm:$0xff] }
 0x4dd   : > { %v5352_v38 = vadd.f32 %v5351_v42, %v5350_v62  ;;  %v5431_v31 = vadd.f32 %v5430_v41, %v5429_v3  ;;  %v4105_v53 = vpop.f32.mrf.mxu1 }
 0x4de   : > { %v4152_v20 = vadd.f32 %v4105_v53, %v12604_v18  ;;  %v5286_v53 = vpop.permute.xlu1 %5285 }
 0x4df   : > { %v5433_v58 = vadd.f32 %v5432_v23, %v5431_v31  ;;  %v5291_v31 = vpop.permute.xlu0 %5290 }
 0x4e7   : > { %v6392_v33 = vpop.f32.mrf.mxu0 }
 0x4e8   : > { %v5144_v49 = vadd.f32 %v6392_v33, %v4153_v45 }
 0x4e9   : > { %v5096_v59 = vpop.f32.mrf.mxu0 }
 0x4ea   : > { %v5312_v54 = vmul.f32 %v5271_v46, %v5144_v49  ;;  %5476 = vst.msk [vmem:[%s11173_s8 + $0x98] sm:$0xff] %vm869_vm7, %v5144_v49  ;;  %v5143_v44 = vadd.f32 %v5096_v59, %v4152_v20 }
 0x4ec   : > { %v5311_v7 = vmul.f32 %v5266_v13, %v5143_v44  ;;  %5475 = vst.msk [vmem:[%s11173_s8 + $0x90] sm:$0xff] %vm869_vm7, %v5143_v44  ;;  %v5394_v48 = vmul.f32 %v5312_v54, %v5144_v49  ;;  %v5355_v0 = vsel %vm869_vm7, %v5312_v54, 0.0 }
 0x4ee   : > { %v5353_v51 = vsel %vm869_vm7, %v5311_v7, 0.0  ;;  %v5393_v8 = vmul.f32 %v5311_v7, %v5143_v44  ;;  %v5436_v17 = vsel %vm869_vm7, %v5394_v48, 0.0 }
 0x4ef   : > { %v5354_v19 = vadd.f32 %v5353_v51, %v5352_v38  ;;  %v6353_v1 = vpop.f32.mrf.mxu1 }
 0x4f0   : > { %v5434_v28 = vsel %vm869_vm7, %v5393_v8, 0.0  ;;  %v4155_v34 = vadd.f32 %v6353_v1, %v12605_v50 }
 0x4f1   : > { %v5435_v40 = vadd.f32 %v5434_v28, %v5433_v58  ;;  %v5356_v27 = vadd.f32 %v5355_v0, %v5354_v19  ;;  %v4115_v37 = vpop.f32.mrf.mxu1 }
 0x4f2   : > { %v4154_v16 = vadd.f32 %v4115_v37, %v12606_v47 }
 0x4f3   : > { %v5437_v32 = vadd.f32 %v5436_v17, %v5435_v40  ;;  %v5317_v40 = vld [vmem:[#allocation2] sm:$0x1] }
 0x4fb   : > { %v6395_v56 = vpop.f32.mrf.mxu0 }
 0x4fc   : > { %v5146_v52 = vadd.f32 %v6395_v56, %v4155_v34 }
 0x4fd   : > { %v5106_v4 = vpop.f32.mrf.mxu0 }
 0x4fe   : > { %v5314_v12 = vmul.f32 %v5281_v14, %v5146_v52  ;;  %5478 = vst.msk [vmem:[%s11173_s8 + $0xa8] sm:$0xff] %vm869_vm7, %v5146_v52  ;;  %v5145_v30 = vadd.f32 %v5106_v4, %v4154_v16 }
 0x500   : > { %v5313_v3 = vmul.f32 %v5276_v63, %v5145_v30  ;;  %5477 = vst.msk [vmem:[%s11173_s8 + $0xa0] sm:$0xff] %vm869_vm7, %v5145_v30  ;;  %v5396_v55 = vmul.f32 %v5314_v12, %v5146_v52  ;;  %v5359_v60 = vsel %vm869_vm7, %v5314_v12, 0.0  ;;  %v5551_v63 = vsub.s32 (%p5481_p6), 0, %v6623_v10 }
 0x502   : > { %v5357_v43 = vsel %vm869_vm7, %v5313_v3, 0.0  ;;  %v5395_v39 = vmul.f32 %v5313_v3, %v5145_v30  ;;  %v5440_v36 = vsel %vm869_vm7, %v5396_v55, 0.0  ;;  %v5495_v30 = vld [vmem:[%s11790_s2] sm:$0x1] (%p5481_p6) }
 0x503   : > { %v5358_v25 = vadd.f32 %v5357_v43, %v5356_v27  ;;  %v6356_v26 = vpop.f32.mrf.mxu1  ;;  %v5497_v43 = vld [vmem:[%s11791_s3] sm:$0x1] (%p5481_p6) }
 0x504   : > { %v5438_v5 = vsel %vm869_vm7, %v5395_v39, 0.0  ;;  %v4157_v62 = vadd.f32 %v6356_v26, %v12608_v57 }
 0x505   : > { %v5439_v6 = vadd.f32 %v5438_v5, %v5437_v32  ;;  %v5360_v15 = vadd.f32 %v5359_v60, %v5358_v25  ;;  %v4125_v22 = vpop.f32.mrf.mxu1  ;;  %v5374_v32 = vld [vmem:[#allocation3] sm:$0x1] }
 0x506   : > { %v4156_v41 = vadd.f32 %v4125_v22, %v3165_v11 }
 0x507   : > { %v5441_v24 = vadd.f32 %v5440_v36, %v5439_v6 }
 0x50c   : > { %v6398_v42 = vpop.f32.mrf.mxu0 }
 0x50d   : > { %v5148_v38 = vadd.f32 %v6398_v42, %v4157_v62 }
 0x50e   : > { %v5116_v23 = vpop.f32.mrf.mxu0 }
 0x50f   : > { %v5316_v58 = vmul.f32 %v5291_v31, %v5148_v38  ;;  %5480 = vst.msk [vmem:[%s11173_s8 + $0xb8] sm:$0xff] %vm869_vm7, %v5148_v38  ;;  %v5147_v29 = vadd.f32 %v5116_v23, %v4156_v41 }
 0x511   : > { %v5315_v21 = vmul.f32 %v5286_v53, %v5147_v29  ;;  %5479 = vst.msk [vmem:[%s11173_s8 + $0xb0] sm:$0xff] %vm869_vm7, %v5147_v29  ;;  %v5398_v45 = vmul.f32 %v5316_v58, %v5148_v38  ;;  %v5363_v18 = vsel %vm869_vm7, %v5316_v58, 0.0 }
 0x513   : > { %v5361_v35 = vsel %vm869_vm7, %v5315_v21, 0.0  ;;  %v5397_v33 = vmul.f32 %v5315_v21, %v5147_v29  ;;  %v5444_v59 = vsel %vm869_vm7, %v5398_v45, 0.0 }
 0x514   : > { %v5362_v2 = vadd.f32 %v5361_v35, %v5360_v15 }
 0x515   : > { %v5442_v20 = vsel %vm869_vm7, %v5397_v33, 0.0 }
 0x516   : > { %v5364_v49 = vadd.f32 %v5363_v18, %v5362_v2  ;;  %v5443_v46 = vadd.f32 %v5442_v20, %v5441_v24 }
 0x518   : > { %v5365_v54 = vrot.slane %v5364_v49, 4  ;;  %v5445_v44 = vadd.f32 %v5444_v59, %v5443_v46  ;;  %v5500_v39 = vld [vmem:[%s11793_s5] sm:$0xff] (%p5481_p6)  ;;  %v5501_v25 = vld [vmem:[%s11793_s5 + $0x8] sm:$0xff] (%p5481_p6)  ;;  %v5502_v60 = vld [vmem:[%s11793_s5 + $0x10] sm:$0xff] (%p5481_p6) }
 0x519   : > { %v5503_v10 = vld [vmem:[%s11793_s5 + $0x18] sm:$0xff] (%p5481_p6)  ;;  %v5504_v5 = vld [vmem:[%s11793_s5 + $0x20] sm:$0xff] (%p5481_p6)  ;;  %v5505_v36 = vld [vmem:[%s11793_s5 + $0x28] sm:$0xff] (%p5481_p6) }
 0x51a   : > { %v5366_v13 = vadd.f32 %v5365_v54, %v5364_v49  ;;  %v5446_v7 = vrot.slane %v5445_v44, 4  ;;  %v5506_v26 = vld [vmem:[%s11793_s5 + $0x30] sm:$0xff] (%p5481_p6)  ;;  %v5507_v24 = vld [vmem:[%s11793_s5 + $0x38] sm:$0xff] (%p5481_p6)  ;;  %v5508_v9 = vld [vmem:[%s11793_s5 + $0x40] sm:$0xff] (%p5481_p6) }
 0x51b   : > { %v5509_v61 = vld [vmem:[%s11793_s5 + $0x48] sm:$0xff] (%p5481_p6)  ;;  %v5510_v22 = vld [vmem:[%s11793_s5 + $0x50] sm:$0xff] (%p5481_p6)  ;;  %v5511_v41 = vld [vmem:[%s11793_s5 + $0x58] sm:$0xff] (%p5481_p6) }
 0x51c   : > { %v5367_v48 = vrot.slane %v5366_v13, 2  ;;  %v5447_v51 = vadd.f32 %v5446_v7, %v5445_v44  ;;  %v5512_v38 = vld [vmem:[%s11793_s5 + $0x60] sm:$0xff] (%p5481_p6)  ;;  %v5513_v31 = vld [vmem:[%s11793_s5 + $0x68] sm:$0xff] (%p5481_p6) }
 0x51e   : > { %v5368_v8 = vadd.f32 %v5367_v48, %v5366_v13  ;;  %v5448_v19 = vrot.slane %v5447_v51, 2 }
 0x520   : > { %v5369_v0 = vrot.slane %v5368_v8, 1  ;;  %v5449_v28 = vadd.f32 %v5448_v19, %v5447_v51 }
 0x522   : > { %v5370_v27 = vadd.f32 %v5369_v0, %v5368_v8  ;;  %v5450_v17 = vrot.slane %v5449_v28, 1 }
 0x524   : > { %v5371_v1 = vadd.f32 %v5370_v27, %v5317_v40  ;;  %v5451_v37 = vadd.f32 %v5450_v17, %v5449_v28  ;;  %5485 = sbr.rel (!%p5481_p6) target bundleno = 1396 (0x574), region = 48  ;;  %v5514_v40 = vld [vmem:[%s11793_s5 + $0x70] sm:$0xff] (%p5481_p6)  ;;  %v5515_v27 = vld [vmem:[%s11793_s5 + $0x78] sm:$0xff] (%p5481_p6) }
 0x526   : > { %5373 = vst.msk [vmem:[#allocation2] sm:$0x1] %vm5372_vm11, %v5371_v1  ;;  %v5452_v50 = vadd.f32 %v5451_v37, %v5374_v32 }
 0x528   : > { %5453 = vst.msk [vmem:[#allocation3] sm:$0x1] %vm5372_vm11, %v5452_v50 }
 0x52d   : > { %v5486_v34 = vld [vmem:[#allocation2] sm:$0x1] }
 0x52e   : > { %v5487_v47 = vmul.f32 0.0034722222, %v5486_v34 }
 0x52f   : > { %v5488_v56 = vld [vmem:[#allocation3] sm:$0x1] }
 0x530   : > { %v5489_v16 = vmul.f32 0.0034722222, %v5488_v56  ;;  %v5490_v52 = vmul.f32 %v5487_v47, %v5487_v47 }
 0x532   : > { %v5491_v14 = vsub.f32 %v5489_v16, %v5490_v52  ;;  %v5516_v16 = vld [vmem:[%s11793_s5 + $0x80] sm:$0xff] }
 0x534   : > { %v5492_v4 = vmax.f32 %v5491_v14, 0.0 }
 0x536   : > { %v5493_v12 = vadd.f32 1e-05, %v5492_v4 }
 0x538   : > { %6515 = vrsqrt.f32 %v5493_v12 }
 0x545   : > { %v6516_v3 = vpop.eup %6515 }
 0x546   : > { %v5496_v55 = vmul.f32 %v6516_v3, %v5495_v30  ;;  %v5517_v30 = vld [vmem:[%s11793_s5 + $0x88] sm:$0xff]  ;;  %v5519_v3 = vld [vmem:[%s11793_s5 + $0x98] sm:$0xff] }
 0x548   : > { %v5498_v6 = vmul.f32 %v5496_v55, %v5487_v47  ;;  %v11358_v15 = vrot.slane %v5496_v55, %v5551_v63 }
 0x54a   : > { %v5499_v11 = vsub.f32 %v5497_v43, %v5498_v6  ;;  %v5554_v57 = vmul.f32 %v11358_v15, %v5500_v39  ;;  %v5555_v62 = vmul.f32 %v11358_v15, %v5501_v25  ;;  %v5556_v42 = vmul.f32 %v11358_v15, %v5502_v60  ;;  %v5520_v60 = vld [vmem:[%s11793_s5 + $0xa0] sm:$0xff] }
 0x54b   : > { %v5557_v23 = vmul.f32 %v11358_v15, %v5503_v10  ;;  %v5558_v58 = vmul.f32 %v11358_v15, %v5504_v5  ;;  %v5559_v29 = vmul.f32 %v11358_v15, %v5505_v36  ;;  %v5560_v53 = vmul.f32 %v11358_v15, %v5506_v26  ;;  %v5521_v10 = vld [vmem:[%s11793_s5 + $0xa8] sm:$0xff] }
 0x54c   : > { %v11394_v21 = vrot.slane %v5499_v11, %v5551_v63  ;;  %v5561_v45 = vmul.f32 %v11358_v15, %v5507_v24  ;;  %v5562_v35 = vmul.f32 %v11358_v15, %v5508_v9  ;;  %v5563_v33 = vmul.f32 %v11358_v15, %v5509_v61  ;;  %v5518_v63 = vld [vmem:[%s11793_s5 + $0x90] sm:$0xff] }
 0x54d   : > { %v5564_v2 = vmul.f32 %v11358_v15, %v5510_v22  ;;  %v5565_v18 = vmul.f32 %v11358_v15, %v5511_v41  ;;  %v5566_v20 = vmul.f32 %v11358_v15, %v5512_v38  ;;  %v5567_v49 = vmul.f32 %v11358_v15, %v5513_v31  ;;  %v5522_v11 = vld [vmem:[%s11793_s5 + $0xb0] sm:$0xff] }
 0x54e   : > { %v5608_v46 = vadd.f32 %v11394_v21, %v5554_v57  ;;  %v5609_v59 = vadd.f32 %v11394_v21, %v5555_v62  ;;  %v5610_v54 = vadd.f32 %v11394_v21, %v5556_v42  ;;  %v5611_v44 = vadd.f32 %v11394_v21, %v5557_v23  ;;  %v5523_v57 = vld [vmem:[%s11793_s5 + $0xb8] sm:$0xff] }
 0x54f   : > { %v5612_v13 = vadd.f32 %v11394_v21, %v5558_v58  ;;  %v5613_v7 = vadd.f32 %v11394_v21, %v5559_v29  ;;  %v5614_v48 = vadd.f32 %v11394_v21, %v5560_v53  ;;  %v5615_v51 = vadd.f32 %v11394_v21, %v5561_v45  ;;  %v5524_v53 = vld [vmem:[%s11793_s5 + $0xc0] sm:$0xff] }
 0x550   : > { %v5656_v8 = vmax.f32 %v5608_v46, 0.0  ;;  %v5657_v19 = vmax.f32 %v5609_v59, 0.0  ;;  %v5658_v0 = vmax.f32 %v5610_v54, 0.0  ;;  %v5659_v28 = vmax.f32 %v5611_v44, 0.0 }
 0x551   : > { %v5660_v17 = vmax.f32 %v5612_v13, 0.0  ;;  %v5661_v32 = vmax.f32 %v5613_v7, 0.0  ;;  %v5662_v1 = vmax.f32 %v5614_v48, 0.0  ;;  %v5663_v37 = vmax.f32 %v5615_v51, 0.0  ;;  %v5528_v13 = vld [vmem:[%s11793_s5 + $0xe0] sm:$0xff]  ;;  %v5529_v7 = vld [vmem:[%s11793_s5 + $0xe8] sm:$0xff] }
 0x552   : > { %5704 = vst.msk [vmem:[%s11793_s5] sm:$0xff] %vm869_vm7, %v5656_v8  ;;  %5705 = vst.msk [vmem:[%s11793_s5 + $0x8] sm:$0xff] %vm869_vm7, %v5657_v19  ;;  %v5616_v50 = vadd.f32 %v11394_v21, %v5562_v35  ;;  %v5617_v34 = vadd.f32 %v11394_v21, %v5563_v33  ;;  %v5618_v56 = vadd.f32 %v11394_v21, %v5564_v2 }
 0x553   : > { %5706 = vst.msk [vmem:[%s11793_s5 + $0x10] sm:$0xff] %vm869_vm7, %v5658_v0  ;;  %5707 = vst.msk [vmem:[%s11793_s5 + $0x18] sm:$0xff] %vm869_vm7, %v5659_v28  ;;  %v5619_v47 = vadd.f32 %v11394_v21, %v5565_v18  ;;  %v5620_v52 = vadd.f32 %v11394_v21, %v5566_v20  ;;  %v5621_v14 = vadd.f32 %v11394_v21, %v5567_v49  ;;  %v5525_v18 = vld [vmem:[%s11793_s5 + $0xc8] sm:$0xff]  ;;  %v5526_v20 = vld [vmem:[%s11793_s5 + $0xd0] sm:$0xff] }
 0x554   : > { %5708 = vst.msk [vmem:[%s11793_s5 + $0x20] sm:$0xff] %vm869_vm7, %v5660_v17  ;;  %5709 = vst.msk [vmem:[%s11793_s5 + $0x28] sm:$0xff] %vm869_vm7, %v5661_v32  ;;  %v5568_v4 = vmul.f32 %v11358_v15, %v5514_v40  ;;  %v5569_v12 = vmul.f32 %v11358_v15, %v5515_v27  ;;  %v5664_v55 = vmax.f32 %v5616_v50, 0.0  ;;  %v5665_v43 = vmax.f32 %v5617_v34, 0.0  ;;  %v5527_v49 = vld [vmem:[%s11793_s5 + $0xd8] sm:$0xff]  ;;  %v5530_v17 = vld [vmem:[%s11793_s5 + $0xf0] sm:$0xff] }
 0x555   : > { %5710 = vst.msk [vmem:[%s11793_s5 + $0x30] sm:$0xff] %vm869_vm7, %v5662_v1  ;;  %5711 = vst.msk [vmem:[%s11793_s5 + $0x38] sm:$0xff] %vm869_vm7, %v5663_v37  ;;  %v5666_v39 = vmax.f32 %v5618_v56, 0.0  ;;  %v5667_v25 = vmax.f32 %v5619_v47, 0.0  ;;  %v5668_v5 = vmax.f32 %v5620_v52, 0.0  ;;  %v5669_v6 = vmax.f32 %v5621_v14, 0.0 }
 0x556   : > { %v5622_v36 = vadd.f32 %v11394_v21, %v5568_v4  ;;  %v5623_v26 = vadd.f32 %v11394_v21, %v5569_v12  ;;  %5712 = vst.msk [vmem:[%s11793_s5 + $0x40] sm:$0xff] %vm869_vm7, %v5664_v55  ;;  %5713 = vst.msk [vmem:[%s11793_s5 + $0x48] sm:$0xff] %vm869_vm7, %v5665_v43  ;;  %v5570_v24 = vmul.f32 %v11358_v15, %v5516_v16  ;;  %v5531_v32 = vld [vmem:[%s11793_s5 + $0xf8] sm:$0xff]  ;;  %v5532_v14 = vld [vmem:[%s11793_s5 + $0x100] sm:$0xff] }
 0x557   : > { %5714 = vst.msk [vmem:[%s11793_s5 + $0x50] sm:$0xff] %vm869_vm7, %v5666_v39  ;;  %5715 = vst.msk [vmem:[%s11793_s5 + $0x58] sm:$0xff] %vm869_vm7, %v5667_v25  ;;  %v5571_v9 = vmul.f32 %v11358_v15, %v5517_v30  ;;  %v5572_v61 = vmul.f32 %v11358_v15, %v5518_v63  ;;  %v5573_v22 = vmul.f32 %v11358_v15, %v5519_v3  ;;  %v5533_v3 = vld [vmem:[%s11793_s5 + $0x108] sm:$0xff]  ;;  %v5534_v55 = vld [vmem:[%s11793_s5 + $0x110] sm:$0xff] }
 0x558   : > { %5716 = vst.msk [vmem:[%s11793_s5 + $0x60] sm:$0xff] %vm869_vm7, %v5668_v5  ;;  %5717 = vst.msk [vmem:[%s11793_s5 + $0x68] sm:$0xff] %vm869_vm7, %v5669_v6  ;;  %v5670_v62 = vmax.f32 %v5622_v36, 0.0  ;;  %v5671_v42 = vmax.f32 %v5623_v26, 0.0  ;;  %v5574_v41 = vmul.f32 %v11358_v15, %v5520_v60  ;;  %v5575_v38 = vmul.f32 %v11358_v15, %v5521_v10  ;;  %v5535_v43 = vld [vmem:[%s11793_s5 + $0x118] sm:$0xff]  ;;  %v5536_v5 = vld [vmem:[%s11793_s5 + $0x120] sm:$0xff] }
 0x559   : > { %v5624_v31 = vadd.f32 %v11394_v21, %v5570_v24  ;;  %v5625_v23 = vadd.f32 %v11394_v21, %v5571_v9  ;;  %v5626_v58 = vadd.f32 %v11394_v21, %v5572_v61  ;;  %v5627_v29 = vadd.f32 %v11394_v21, %v5573_v22  ;;  %v5537_v6 = vld [vmem:[%s11793_s5 + $0x128] sm:$0xff] }
 0x55a   : > { %5718 = vst.msk [vmem:[%s11793_s5 + $0x70] sm:$0xff] %vm869_vm7, %v5670_v62  ;;  %5719 = vst.msk [vmem:[%s11793_s5 + $0x78] sm:$0xff] %vm869_vm7, %v5671_v42  ;;  %v5628_v45 = vadd.f32 %v11394_v21, %v5574_v41  ;;  %v5629_v35 = vadd.f32 %v11394_v21, %v5575_v38  ;;  %v5576_v33 = vmul.f32 %v11358_v15, %v5522_v11  ;;  %v5538_v62 = vld [vmem:[%s11793_s5 + $0x130] sm:$0xff]  ;;  %v5539_v42 = vld [vmem:[%s11793_s5 + $0x138] sm:$0xff] }
 0x55b   : > { %v5577_v2 = vmul.f32 %v11358_v15, %v5523_v57  ;;  %v5672_v46 = vmax.f32 %v5624_v31, 0.0  ;;  %v5673_v59 = vmax.f32 %v5625_v23, 0.0  ;;  %v5674_v54 = vmax.f32 %v5626_v58, 0.0 }
 0x55c   : > { %v5675_v44 = vmax.f32 %v5627_v29, 0.0  ;;  %v5676_v48 = vmax.f32 %v5628_v45, 0.0  ;;  %v5677_v51 = vmax.f32 %v5629_v35, 0.0  ;;  %v5630_v8 = vadd.f32 %v11394_v21, %v5576_v33  ;;  %v5540_v35 = vld [vmem:[%s11793_s5 + $0x140] sm:$0xff] }
 0x55d   : > { %v5631_v19 = vadd.f32 %v11394_v21, %v5577_v2  ;;  %5720 = vst.msk [vmem:[%s11793_s5 + $0x80] sm:$0xff] %vm869_vm7, %v5672_v46  ;;  %5721 = vst.msk [vmem:[%s11793_s5 + $0x88] sm:$0xff] %vm869_vm7, %v5673_v59  ;;  %v5578_v0 = vmul.f32 %v11358_v15, %v5524_v53  ;;  %v5579_v28 = vmul.f32 %v11358_v15, %v5525_v18  ;;  %v5542_v46 = vld [vmem:[%s11793_s5 + $0x150] sm:$0xff]  ;;  %v5543_v59 = vld [vmem:[%s11793_s5 + $0x158] sm:$0xff] }
 0x55e   : > { %5722 = vst.msk [vmem:[%s11793_s5 + $0x90] sm:$0xff] %vm869_vm7, %v5674_v54  ;;  %5723 = vst.msk [vmem:[%s11793_s5 + $0x98] sm:$0xff] %vm869_vm7, %v5675_v44  ;;  %v5580_v40 = vmul.f32 %v11358_v15, %v5526_v20  ;;  %v5581_v27 = vmul.f32 %v11358_v15, %v5527_v49  ;;  %v5678_v1 = vmax.f32 %v5630_v8, 0.0  ;;  %v5582_v50 = vmul.f32 %v11358_v15, %v5528_v13  ;;  %v5541_v49 = vld [vmem:[%s11793_s5 + $0x148] sm:$0xff] }
 0x55f   : > { %5724 = vst.msk [vmem:[%s11793_s5 + $0xa0] sm:$0xff] %vm869_vm7, %v5676_v48  ;;  %5725 = vst.msk [vmem:[%s11793_s5 + $0xa8] sm:$0xff] %vm869_vm7, %v5677_v51  ;;  %v5679_v37 = vmax.f32 %v5631_v19, 0.0  ;;  %v5583_v34 = vmul.f32 %v11358_v15, %v5529_v7  ;;  %v5632_v56 = vadd.f32 %v11394_v21, %v5578_v0  ;;  %v5633_v47 = vadd.f32 %v11394_v21, %v5579_v28  ;;  %v5544_v48 = vld [vmem:[%s11793_s5 + $0x160] sm:$0xff]  ;;  %v5545_v51 = vld [vmem:[%s11793_s5 + $0x168] sm:$0xff] }
 0x560   : > { %v5634_v16 = vadd.f32 %v11394_v21, %v5580_v40  ;;  %v5635_v52 = vadd.f32 %v11394_v21, %v5581_v27  ;;  %5726 = vst.msk [vmem:[%s11793_s5 + $0xb0] sm:$0xff] %vm869_vm7, %v5678_v1  ;;  %v5636_v4 = vadd.f32 %v11394_v21, %v5582_v50  ;;  %v5584_v30 = vmul.f32 %v11358_v15, %v5530_v17  ;;  %v5546_v1 = vld [vmem:[%s11793_s5 + $0x170] sm:$0xff] }
 0x561   : > { %5727 = vst.msk [vmem:[%s11793_s5 + $0xb8] sm:$0xff] %vm869_vm7, %v5679_v37  ;;  %v5637_v12 = vadd.f32 %v11394_v21, %v5583_v34  ;;  %v5585_v63 = vmul.f32 %v11358_v15, %v5531_v32  ;;  %v5680_v39 = vmax.f32 %v5632_v56, 0.0  ;;  %v5681_v25 = vmax.f32 %v5633_v47, 0.0  ;;  %v5547_v37 = vld [vmem:[%s11793_s5 + $0x178] sm:$0xff] }
 0x562   : > { %v5682_v60 = vmax.f32 %v5634_v16, 0.0  ;;  %v5683_v10 = vmax.f32 %v5635_v52, 0.0  ;;  %v5684_v36 = vmax.f32 %v5636_v4, 0.0  ;;  %v5638_v24 = vadd.f32 %v11394_v21, %v5584_v30 }
 0x563   : > { %v5685_v26 = vmax.f32 %v5637_v12, 0.0  ;;  %v5639_v9 = vadd.f32 %v11394_v21, %v5585_v63  ;;  %5728 = vst.msk [vmem:[%s11793_s5 + $0xc0] sm:$0xff] %vm869_vm7, %v5680_v39  ;;  %5729 = vst.msk [vmem:[%s11793_s5 + $0xc8] sm:$0xff] %vm869_vm7, %v5681_v25  ;;  %v5586_v61 = vmul.f32 %v11358_v15, %v5532_v14  ;;  %v5587_v22 = vmul.f32 %v11358_v15, %v5533_v3 }
 0x564   : > { %5730 = vst.msk [vmem:[%s11793_s5 + $0xd0] sm:$0xff] %vm869_vm7, %v5682_v60  ;;  %5731 = vst.msk [vmem:[%s11793_s5 + $0xd8] sm:$0xff] %vm869_vm7, %v5683_v10  ;;  %v5588_v11 = vmul.f32 %v11358_v15, %v5534_v55  ;;  %v5589_v57 = vmul.f32 %v11358_v15, %v5535_v43  ;;  %v5686_v41 = vmax.f32 %v5638_v24, 0.0  ;;  %v5590_v31 = vmul.f32 %v11358_v15, %v5536_v5 }
 0x565   : > { %5732 = vst.msk [vmem:[%s11793_s5 + $0xe0] sm:$0xff] %vm869_vm7, %v5684_v36  ;;  %5733 = vst.msk [vmem:[%s11793_s5 + $0xe8] sm:$0xff] %vm869_vm7, %v5685_v26  ;;  %v5687_v38 = vmax.f32 %v5639_v9, 0.0  ;;  %v5591_v23 = vmul.f32 %v11358_v15, %v5537_v6  ;;  %v5640_v58 = vadd.f32 %v11394_v21, %v5586_v61  ;;  %v5641_v29 = vadd.f32 %v11394_v21, %v5587_v22 }
 0x566   : > { %v5642_v53 = vadd.f32 %v11394_v21, %v5588_v11  ;;  %v5643_v45 = vadd.f32 %v11394_v21, %v5589_v57  ;;  %5734 = vst.msk [vmem:[%s11793_s5 + $0xf0] sm:$0xff] %vm869_vm7, %v5686_v41  ;;  %v5644_v33 = vadd.f32 %v11394_v21, %v5590_v31  ;;  %v5592_v18 = vmul.f32 %v11358_v15, %v5538_v62 }
 0x567   : > { %5735 = vst.msk [vmem:[%s11793_s5 + $0xf8] sm:$0xff] %vm869_vm7, %v5687_v38  ;;  %v5645_v2 = vadd.f32 %v11394_v21, %v5591_v23  ;;  %v5593_v20 = vmul.f32 %v11358_v15, %v5539_v42  ;;  %v5688_v54 = vmax.f32 %v5640_v58, 0.0  ;;  %v5689_v44 = vmax.f32 %v5641_v29, 0.0 }
 0x568   : > { %v5690_v13 = vmax.f32 %v5642_v53, 0.0  ;;  %v5691_v7 = vmax.f32 %v5643_v45, 0.0  ;;  %v5692_v8 = vmax.f32 %v5644_v33, 0.0  ;;  %v5646_v0 = vadd.f32 %v11394_v21, %v5592_v18 }
 0x569   : > { %v5693_v19 = vmax.f32 %v5645_v2, 0.0  ;;  %v5647_v28 = vadd.f32 %v11394_v21, %v5593_v20  ;;  %5736 = vst.msk [vmem:[%s11793_s5 + $0x100] sm:$0xff] %vm869_vm7, %v5688_v54  ;;  %5737 = vst.msk [vmem:[%s11793_s5 + $0x108] sm:$0xff] %vm869_vm7, %v5689_v44  ;;  %v5594_v40 = vmul.f32 %v11358_v15, %v5540_v35  ;;  %v5595_v27 = vmul.f32 %v11358_v15, %v5541_v49 }
 0x56a   : > { %5738 = vst.msk [vmem:[%s11793_s5 + $0x110] sm:$0xff] %vm869_vm7, %v5690_v13  ;;  %5739 = vst.msk [vmem:[%s11793_s5 + $0x118] sm:$0xff] %vm869_vm7, %v5691_v7  ;;  %v5596_v17 = vmul.f32 %v11358_v15, %v5542_v46  ;;  %v5597_v32 = vmul.f32 %v11358_v15, %v5543_v59  ;;  %v5694_v50 = vmax.f32 %v5646_v0, 0.0  ;;  %v5598_v56 = vmul.f32 %v11358_v15, %v5544_v48 }
 0x56b   : > { %5740 = vst.msk [vmem:[%s11793_s5 + $0x120] sm:$0xff] %vm869_vm7, %v5692_v8  ;;  %5741 = vst.msk [vmem:[%s11793_s5 + $0x128] sm:$0xff] %vm869_vm7, %v5693_v19  ;;  %v5695_v34 = vmax.f32 %v5647_v28, 0.0  ;;  %v5599_v47 = vmul.f32 %v11358_v15, %v5545_v51  ;;  %v5648_v16 = vadd.f32 %v11394_v21, %v5594_v40  ;;  %v5649_v52 = vadd.f32 %v11394_v21, %v5595_v27 }
 0x56c   : > { %v5650_v14 = vadd.f32 %v11394_v21, %v5596_v17  ;;  %v5651_v4 = vadd.f32 %v11394_v21, %v5597_v32  ;;  %5742 = vst.msk [vmem:[%s11793_s5 + $0x130] sm:$0xff] %vm869_vm7, %v5694_v50  ;;  %v5652_v12 = vadd.f32 %v11394_v21, %v5598_v56  ;;  %v5600_v63 = vmul.f32 %v11358_v15, %v5546_v1 }
 0x56d   : > { %5743 = vst.msk [vmem:[%s11793_s5 + $0x138] sm:$0xff] %vm869_vm7, %v5695_v34  ;;  %v5653_v30 = vadd.f32 %v11394_v21, %v5599_v47  ;;  %v5601_v3 = vmul.f32 %v11358_v15, %v5547_v37  ;;  %v5696_v55 = vmax.f32 %v5648_v16, 0.0  ;;  %v5697_v43 = vmax.f32 %v5649_v52, 0.0 }
 0x56e   : > { %v5698_v39 = vmax.f32 %v5650_v14, 0.0  ;;  %v5699_v25 = vmax.f32 %v5651_v4, 0.0  ;;  %v5700_v60 = vmax.f32 %v5652_v12, 0.0  ;;  %v5654_v5 = vadd.f32 %v11394_v21, %v5600_v63 }
 0x56f   : > { %v5701_v10 = vmax.f32 %v5653_v30, 0.0  ;;  %v5655_v6 = vadd.f32 %v11394_v21, %v5601_v3  ;;  %5744 = vst.msk [vmem:[%s11793_s5 + $0x140] sm:$0xff] %vm869_vm7, %v5696_v55  ;;  %5745 = vst.msk [vmem:[%s11793_s5 + $0x148] sm:$0xff] %vm869_vm7, %v5697_v43 }
 0x570   : > { %5746 = vst.msk [vmem:[%s11793_s5 + $0x150] sm:$0xff] %vm869_vm7, %v5698_v39  ;;  %5747 = vst.msk [vmem:[%s11793_s5 + $0x158] sm:$0xff] %vm869_vm7, %v5699_v25  ;;  %v5702_v15 = vmax.f32 %v5654_v5, 0.0 }
 0x571   : > { %5748 = vst.msk [vmem:[%s11793_s5 + $0x160] sm:$0xff] %vm869_vm7, %v5700_v60  ;;  %5749 = vst.msk [vmem:[%s11793_s5 + $0x168] sm:$0xff] %vm869_vm7, %v5701_v10  ;;  %v5703_v21 = vmax.f32 %v5655_v6, 0.0 }
 0x572   : > { %5750 = vst.msk [vmem:[%s11793_s5 + $0x170] sm:$0xff] %vm869_vm7, %v5702_v15 }
 0x573   : > { %5751 = vst.msk [vmem:[%s11793_s5 + $0x178] sm:$0xff] %vm869_vm7, %v5703_v21 }
 0x574 PF: > { %s15_s20 = sadd.s32 1, %s6539_s20   ;;  %s12609_s18 = smov %s6535_s19 }
 0x575   : > { %p12_p7 = scmp.ge.s32.totalorder %s15_s20, 4   ;;  %s12610_s19 = smov %s12612_s21 }
 0x577   :  { %14 = sbr.rel (!%p12_p7) target bundleno = 2 (0x2), region = 84 }

</bundles_post_ra>
